<compile_context>
chip_gen: v7x
topology: tpu7x:2x2x1
jax: 0.10.0
libtpu: 0.0.40
codegen_flags: <defaults>
</compile_context>

<pallas_src>
import jax
import jax.numpy as jnp
from jax.experimental import pallas as pl
from jax.experimental.pallas import tpu as pltpu

F_SIZE = 5      # conv1 / conv2 kernel size
IN_SIZE = 32    # conv1 output channels / conv2 input channels
OUT_SIZE = 64   # conv2 output channels
Z_DIM = 8       # hypernetwork latent dim

# Flat "h*Wp + w" per-image layout constants (row strides are multiples of 8).
S2 = 408        # conv2 padded input: 20x20 (pad 2) flat = 400 rows, + spare
S3 = 112        # conv3 padded input: 10x10 (pad 1) flat = 100 rows, + spare


def _pick_nb(batch):
    """Images per grid step: biggest of 8/4/2 that divides B and keeps >=2 steps."""
    for nb in (8, 4, 2):
        if batch % nb == 0 and batch // nb >= 2:
            return nb
    return 1


# ----------------------------------------------------------------------------
# Wrapper-side conv1 im2col (Cin=3 is lane-hostile; done once, lane-dense).
# ----------------------------------------------------------------------------
def _conv1_im2col(x_nchw):
    """(B,3,32,32) -> (B*1024, 128) bf16 patch matrix.

    Row order ((di*2+dj)*256 + i*16 + j) <-> conv1 output pixel (2i+di, 2j+dj),
    so 2x2 max-pooling is an elementwise max of four 256-row slabs per image.
    Feature order (dy*5+dx)*3 + c, zero-padded 75 -> 128 lanes.
    """
    B = x_nchw.shape[0]
    x = jnp.transpose(x_nchw, (0, 2, 3, 1)).astype(jnp.float32)      # NHWC
    xp = jnp.pad(x, ((0, 0), (2, 2), (2, 2), (0, 0)))
    slabs = [xp[:, dy:dy + 32, dx:dx + 32, :] for dy in range(5) for dx in range(5)]
    p = jnp.concatenate(slabs, axis=-1)                              # (B,32,32,75)
    p = jnp.pad(p, ((0, 0), (0, 0), (0, 0), (0, 128 - 75)))          # lane-dense
    p = p.reshape(B, 16, 2, 16, 2, 128).transpose(0, 2, 4, 1, 3, 5)
    return p.reshape(B * 1024, 128).astype(jnp.bfloat16)


# ----------------------------------------------------------------------------
# Fused forward: one grid step == NB batch elements, everything stays in VMEM.
# ----------------------------------------------------------------------------
def hyper_cnn_forward(x_nchw, params):
    B = x_nchw.shape[0]
    f32, bf16 = jnp.float32, jnp.bfloat16
    f = F_SIZE
    NB = _pick_nb(B)
    G = B // NB

    # conv1 patches + tap-layout weight.
    x1p = _conv1_im2col(x_nchw)
    w1t = jnp.transpose(params["conv1_w"], (2, 3, 1, 0)).reshape(f * f * 3, IN_SIZE)
    w1t = jnp.pad(w1t, ((0, 128 - 75), (0, 0))).astype(bf16)         # (128, 32)
    b1c = params["conv1_b"].reshape(1, IN_SIZE).astype(f32)

    # Hypernetwork (batch-invariant) hoisted out of the kernel entirely.
    h_in = (params["z_signal"] @ params["w2"] + params["b2"]).reshape(IN_SIZE, Z_DIM)
    h_final = h_in @ params["w1"] + params["b1"]                     # (32, 1600)
    conv2_w = h_final.reshape(OUT_SIZE, IN_SIZE, f, f)               # OIHW, torch order
    w2w = jnp.transpose(conv2_w, (2, 3, 1, 0)).reshape(f * f * IN_SIZE, OUT_SIZE)
    w2w = w2w.astype(bf16)                                           # row = (dy*5+dx)*32 + c
    b2c = params["conv2_bias"].reshape(1, OUT_SIZE).astype(f32)

    # conv3 / fc weights in kernel-friendly layouts (static transforms).
    w3t = jnp.transpose(params["conv3_w"], (2, 3, 1, 0)).reshape(9 * OUT_SIZE, 128).astype(bf16)
    b3c = params["conv3_b"].reshape(1, 128).astype(f32)
    wf1 = params["fc1_w"].reshape(256, 128, 16).transpose(2, 1, 0).reshape(2048, 256).astype(bf16)
    bf1 = params["fc1_b"].reshape(1, 256).astype(f32)
    wf2 = jnp.pad(params["fc2_w"].T, ((0, 0), (0, 28))).astype(bf16)  # (256, 128) lane-dense
    bf2 = jnp.pad(params["fc2_b"], (0, 28)).reshape(1, 128).astype(f32)

    def kernel(x1_ref, w1t_ref, b1c_ref, w2w_ref, b2c_ref, w3t_ref, b3c_ref,
               wf1_ref, bf1_ref, wf2_ref, bf2_ref, o_ref,
               pad2_ref, a2_ref, b2im_ref, r2_ref, pad3_ref, c3_ref, r3_ref):
        # Re-zero padded borders every step (scratch persists across grid steps
        # and is per-core under v7x megacore, so never gate init on program_id).
        pad2_ref[...] = jnp.zeros_like(pad2_ref)
        pad3_ref[...] = jnp.zeros_like(pad3_ref)

        # ---- conv1 + bias + ReLU: ONE bf16 MXU matmul for all NB images.
        y1 = jnp.dot(x1_ref[...], w1t_ref[...], preferred_element_type=f32)
        y1 = jnp.maximum(y1 + b1c_ref[...], 0.0)                     # (NB*1024, 32)

        # ---- 2x2 max-pool 1 (quadrant-major rows) -> padded 20x20 flat layout.
        for n in range(NB):
            q = n * 1024
            pooled = jnp.maximum(
                jnp.maximum(y1[q:q + 256], y1[q + 256:q + 512]),
                jnp.maximum(y1[q + 512:q + 768], y1[q + 768:q + 1024]),
            ).astype(bf16)                                           # (256, 32)
            for i in range(16):
                pad2_ref[pl.ds(n * S2 + 42 + 20 * i, 16), :] = pooled[16 * i:16 * i + 16, :]

        # ---- conv2 im2col, built in two stages: dx-expand then dy-expand.
        for n in range(NB):
            for dx in range(5):
                a2_ref[pl.ds(n * 400, 400), pl.ds(dx * 32, 32)] = \
                    pad2_ref[pl.ds(n * S2 + dx, 400), :]
        for n in range(NB):
            for dy in range(5):
                b2im_ref[pl.ds(n * 320, 320), pl.ds(dy * 160, 160)] = \
                    a2_ref[pl.ds(n * 400 + 20 * dy, 320), :]

        # ---- conv2 (hyper-generated weights) + ReLU: ONE merged bf16 matmul.
        r2_ref[...] = jnp.maximum(
            jnp.dot(b2im_ref[...], w2w_ref[...], preferred_element_type=f32)
            + b2c_ref[...], 0.0)                                     # (NB*320, 64)

        # ---- 2x2 max-pool 2 (stride-2 row reads) -> padded 10x10 flat layout.
        for n in range(NB):
            for i in range(8):
                q = n * 320 + 40 * i
                pooled = jnp.maximum(
                    jnp.maximum(r2_ref[pl.ds(q, 8, stride=2), :],
                                r2_ref[pl.ds(q + 1, 8, stride=2), :]),
                    jnp.maximum(r2_ref[pl.ds(q + 20, 8, stride=2), :],
                                r2_ref[pl.ds(q + 21, 8, stride=2), :]))
                pad3_ref[pl.ds(n * S3 + 10 * (i + 1) + 1, 8), :] = pooled.astype(bf16)

        # ---- conv3 im2col (9 shifted-slab copies) + ONE merged bf16 matmul + ReLU.
        for n in range(NB):
            for t in range(9):
                dy, dx = t // 3, t % 3
                c3_ref[pl.ds(n * 80, 80), pl.ds(t * 64, 64)] = \
                    pad3_ref[pl.ds(n * S3 + 10 * dy + dx, 80), :]
        r3_ref[...] = jnp.maximum(
            jnp.dot(c3_ref[...], w3t_ref[...], preferred_element_type=f32)
            + b3c_ref[...], 0.0)                                     # (NB*80, 128)

        # ---- 2x2 max-pool 3 + torch NCHW .view() flatten (spatial-major lanes).
        rows = []
        for n in range(NB):
            pieces = []
            for s in range(16):
                k = n * 80 + 20 * (s // 4) + 2 * (s % 4)
                pieces.append(jnp.maximum(
                    jnp.maximum(r3_ref[pl.ds(k, 1), :], r3_ref[pl.ds(k + 1, 1), :]),
                    jnp.maximum(r3_ref[pl.ds(k + 10, 1), :], r3_ref[pl.ds(k + 11, 1), :])))
            rows.append(jnp.concatenate(pieces, axis=1))             # (1, 2048)
        fc_in = jnp.concatenate(rows, axis=0).astype(bf16)           # (NB, 2048)

        # ---- fc1 + ReLU, then fc2 (output lane-padded 100 -> 128).
        h = jnp.dot(fc_in, wf1_ref[...], preferred_element_type=f32) + bf1_ref[...]
        h = jnp.maximum(h, 0.0).astype(bf16)                         # (NB, 256)
        # TODO(synk): nn.Dropout(0.5) is identity at inference; no RNG mask applied.
        o_ref[0] = jnp.dot(h, wf2_ref[...], preferred_element_type=f32) + bf2_ref[...]

    def const(arr):
        return pl.BlockSpec(arr.shape, lambda b: (0,) * arr.ndim)

    out = pl.pallas_call(
        kernel,
        out_shape=jax.ShapeDtypeStruct((G, NB, 128), f32),
        grid=(G,),
        in_specs=[
            pl.BlockSpec((NB * 1024, 128), lambda b: (b, 0)),        # conv1 patches
            const(w1t), const(b1c),                                  # conv1 w, b
            const(w2w), const(b2c),                                  # conv2 (hypernet) w, b
            const(w3t), const(b3c),                                  # conv3 w, b
            const(wf1), const(bf1),                                  # fc1 w, b
            const(wf2), const(bf2),                                  # fc2 w, b (lane-padded)
        ],
        out_specs=pl.BlockSpec((1, NB, 128), lambda b: (b, 0, 0)),
        scratch_shapes=[
            pltpu.VMEM((NB * S2, IN_SIZE), bf16),                    # pad2: padded conv2 input
            pltpu.VMEM((NB * 400, 160), bf16),                       # a2:   dx-expanded slabs
            pltpu.VMEM((NB * 320, 800), bf16),                       # b2im: conv2 im2col
            pltpu.VMEM((NB * 320, OUT_SIZE), f32),                   # r2:   conv2 activations
            pltpu.VMEM((NB * S3, OUT_SIZE), bf16),                   # pad3: padded conv3 input
            pltpu.VMEM((NB * 80, 576), bf16),                        # c3:   conv3 im2col
            pltpu.VMEM((NB * 80, 128), f32),                         # r3:   conv3 activations
        ],
        compiler_params=pltpu.CompilerParams(
            dimension_semantics=("parallel",),
            vmem_limit_bytes=32 * 1024 * 1024),
    )(x1p, w1t, b1c, w2w, b2c, w3t, b3c, wf1, bf1, wf2, bf2)

    return out.reshape(B, 128)[:, :100]


# ----------------------------------------------------------------------------
# Parameters (deterministic synthetic init, mirroring the PyTorch __init__).
# ----------------------------------------------------------------------------
def init_params(key):
    ks = jax.random.split(key, 7)
    n = lambda k, shape: (0.01 * jax.random.normal(k, shape)).astype(jnp.float32)
    f = F_SIZE
    return {
        "conv1_w": n(ks[0], (IN_SIZE, 3, f, f)),                     # OIHW
        "conv1_b": jnp.zeros((IN_SIZE,), jnp.float32),
        "z_signal": n(ks[1], (1, Z_DIM)),
        "w2": n(ks[2], (Z_DIM, IN_SIZE * Z_DIM)),
        "b2": jnp.zeros((IN_SIZE * Z_DIM,), jnp.float32),
        "w1": n(ks[3], (Z_DIM, OUT_SIZE * f * f)),
        "b1": jnp.zeros((OUT_SIZE * f * f,), jnp.float32),
        "conv2_bias": jnp.zeros((OUT_SIZE,), jnp.float32),
        "conv3_w": n(ks[4], (128, OUT_SIZE, 3, 3)),                  # OIHW
        "conv3_b": jnp.zeros((128,), jnp.float32),
        "fc1_w": n(ks[5], (256, 128 * 4 * 4)),                       # (out, in) like nn.Linear
        "fc1_b": jnp.zeros((256,), jnp.float32),
        "fc2_w": n(ks[6], (100, 256)),
        "fc2_b": jnp.zeros((100,), jnp.float32),
    }


if __name__ == "__main__":
    key = jax.random.PRNGKey(0)
    pkey, xkey = jax.random.split(key)
    params = init_params(pkey)
    # CIFAR-like input: batch=2, NCHW (3, 32, 32) — spatial 32 is required so
    # the flattened feature is 128*4*4, as fc1 in the module expects.
    x = jax.random.normal(xkey, (2, 3, 32, 32), dtype=jnp.float32)

    out = jax.jit(hyper_cnn_forward)(x, params)
    out = jax.block_until_ready(out)

    assert out.shape == (2, 100), out.shape
    assert bool(jnp.all(jnp.isfinite(out)))
    print("KERNEL_OK")
</pallas_src>

<mosaic_0001>
module attributes {stable_mosaic.version = 11 : i64} {
  func.func @kernel(%arg0: i32, %arg1: memref<1024x128xbf16, #tpu.memory_space<vmem>>, %arg2: memref<128x32xbf16, #tpu.memory_space<vmem>>, %arg3: memref<1x32xf32, #tpu.memory_space<vmem>>, %arg4: memref<800x64xbf16, #tpu.memory_space<vmem>>, %arg5: memref<1x64xf32, #tpu.memory_space<vmem>>, %arg6: memref<576x128xbf16, #tpu.memory_space<vmem>>, %arg7: memref<1x128xf32, #tpu.memory_space<vmem>>, %arg8: memref<2048x256xbf16, #tpu.memory_space<vmem>>, %arg9: memref<1x256xf32, #tpu.memory_space<vmem>>, %arg10: memref<256x128xbf16, #tpu.memory_space<vmem>>, %arg11: memref<1x128xf32, #tpu.memory_space<vmem>>, %arg12: memref<1x1x128xf32, #tpu.memory_space<vmem>>, %arg13: memref<408x32xbf16, #tpu.memory_space<vmem>>, %arg14: memref<400x160xbf16, #tpu.memory_space<vmem>>, %arg15: memref<320x800xbf16, #tpu.memory_space<vmem>>, %arg16: memref<320x64xf32, #tpu.memory_space<vmem>>, %arg17: memref<112x64xbf16, #tpu.memory_space<vmem>>, %arg18: memref<80x576xbf16, #tpu.memory_space<vmem>>, %arg19: memref<80x128xf32, #tpu.memory_space<vmem>>) attributes {dimension_semantics = [#tpu.dimension_semantics<parallel>], iteration_bounds = array<i64: 2>, scalar_prefetch = 0 : i64, scratch_operands = 7 : i64, tpu.core_type = #tpu.core_type<tc>, window_params = [{transform_indices = @transform_0, window_bounds = array<i64: 1024, 128>}, {pipeline_mode = #tpu.pipeline_mode<synchronous>, transform_indices = @transform_1, window_bounds = array<i64: 128, 32>}, {pipeline_mode = #tpu.pipeline_mode<synchronous>, transform_indices = @transform_2, window_bounds = array<i64: 1, 32>}, {pipeline_mode = #tpu.pipeline_mode<synchronous>, transform_indices = @transform_3, window_bounds = array<i64: 800, 64>}, {pipeline_mode = #tpu.pipeline_mode<synchronous>, transform_indices = @transform_4, window_bounds = array<i64: 1, 64>}, {pipeline_mode = #tpu.pipeline_mode<synchronous>, transform_indices = @transform_5, window_bounds = array<i64: 576, 128>}, {pipeline_mode = #tpu.pipeline_mode<synchronous>, transform_indices = @transform_6, window_bounds = array<i64: 1, 128>}, {pipeline_mode = #tpu.pipeline_mode<synchronous>, transform_indices = @transform_7, window_bounds = array<i64: 2048, 256>}, {pipeline_mode = #tpu.pipeline_mode<synchronous>, transform_indices = @transform_8, window_bounds = array<i64: 1, 256>}, {pipeline_mode = #tpu.pipeline_mode<synchronous>, transform_indices = @transform_9, window_bounds = array<i64: 256, 128>}, {pipeline_mode = #tpu.pipeline_mode<synchronous>, transform_indices = @transform_10, window_bounds = array<i64: 1, 128>}, {transform_indices = @transform_11, window_bounds = array<i64: 1, 1, 128>}]} {
    %cst = arith.constant 0.000000e+00 : bf16
    %0 = vector.broadcast %cst : bf16 to vector<408x32xbf16>
    %c0 = arith.constant 0 : index
    %c0_0 = arith.constant 0 : index
    %1 = vector.load %arg13[%c0, %c0_0] : memref<408x32xbf16, #tpu.memory_space<vmem>>, vector<408x32xbf16>
    tpu.vector_store %arg13[%c0, %c0_0], %0 {strides = array<i32>} : memref<408x32xbf16, #tpu.memory_space<vmem>>, vector<408x32xbf16>,
    %cst_1 = arith.constant 0.000000e+00 : bf16
    %2 = vector.broadcast %cst_1 : bf16 to vector<112x64xbf16>
    %c0_2 = arith.constant 0 : index
    %c0_3 = arith.constant 0 : index
    %3 = vector.load %arg17[%c0_2, %c0_3] : memref<112x64xbf16, #tpu.memory_space<vmem>>, vector<112x64xbf16>
    tpu.vector_store %arg17[%c0_2, %c0_3], %2 {strides = array<i32>} : memref<112x64xbf16, #tpu.memory_space<vmem>>, vector<112x64xbf16>,
    %c0_4 = arith.constant 0 : index
    %c0_5 = arith.constant 0 : index
    %4 = vector.load %arg1[%c0_4, %c0_5] : memref<1024x128xbf16, #tpu.memory_space<vmem>>, vector<1024x128xbf16>
    %c0_6 = arith.constant 0 : index
    %c0_7 = arith.constant 0 : index
    %5 = vector.load %arg2[%c0_6, %c0_7] : memref<128x32xbf16, #tpu.memory_space<vmem>>, vector<128x32xbf16>
    %cst_8 = arith.constant dense<0.000000e+00> : vector<1024x32xf32>
    %6 = tpu.matmul %4, %5, %cst_8 {dimension_numbers = #tpu.dot_dimension_numbers<[1], [0], [0], [1], [0, 0, 1, 1], [], []>} : vector<1024x128xbf16>, vector<128x32xbf16>, vector<1024x32xf32> -> vector<1024x32xf32>
    %c0_9 = arith.constant 0 : index
    %c0_10 = arith.constant 0 : index
    %7 = vector.load %arg3[%c0_9, %c0_10] : memref<1x32xf32, #tpu.memory_space<vmem>>, vector<1x32xf32>
    %8 = vector.broadcast %7 : vector<1x32xf32> to vector<1024x32xf32>
    %9 = arith.addf %6, %8 : vector<1024x32xf32>
    %cst_11 = arith.constant 0.000000e+00 : f32
    %10 = vector.broadcast %cst_11 : f32 to vector<1024x32xf32>
    %11 = arith.maximumf %9, %10 : vector<1024x32xf32>
    %12 = vector.extract_strided_slice %11 {offsets = [0, 0], sizes = [256, 32], strides = [1, 1]} : vector<1024x32xf32> to vector<256x32xf32>
    %13 = vector.extract_strided_slice %11 {offsets = [256, 0], sizes = [256, 32], strides = [1, 1]} : vector<1024x32xf32> to vector<256x32xf32>
    %14 = arith.maximumf %12, %13 : vector<256x32xf32>
    %15 = vector.extract_strided_slice %11 {offsets = [512, 0], sizes = [256, 32], strides = [1, 1]} : vector<1024x32xf32> to vector<256x32xf32>
    %16 = vector.extract_strided_slice %11 {offsets = [768, 0], sizes = [256, 32], strides = [1, 1]} : vector<1024x32xf32> to vector<256x32xf32>
    %17 = arith.maximumf %15, %16 : vector<256x32xf32>
    %18 = arith.maximumf %14, %17 : vector<256x32xf32>
    %19 = arith.truncf %18 : vector<256x32xf32> to vector<256x32xbf16>
    %20 = vector.extract_strided_slice %19 {offsets = [0, 0], sizes = [16, 32], strides = [1, 1]} : vector<256x32xbf16> to vector<16x32xbf16>
    %c42 = arith.constant 42 : index
    %c0_12 = arith.constant 0 : index
    %21 = vector.load %arg13[%c42, %c0_12] : memref<408x32xbf16, #tpu.memory_space<vmem>>, vector<16x32xbf16>
    tpu.vector_store %arg13[%c42, %c0_12], %20 {strides = array<i32>} : memref<408x32xbf16, #tpu.memory_space<vmem>>, vector<16x32xbf16>,
    %22 = vector.extract_strided_slice %19 {offsets = [16, 0], sizes = [16, 32], strides = [1, 1]} : vector<256x32xbf16> to vector<16x32xbf16>
    %c62 = arith.constant 62 : index
    %c0_13 = arith.constant 0 : index
    %23 = vector.load %arg13[%c62, %c0_13] : memref<408x32xbf16, #tpu.memory_space<vmem>>, vector<16x32xbf16>
    tpu.vector_store %arg13[%c62, %c0_13], %22 {strides = array<i32>} : memref<408x32xbf16, #tpu.memory_space<vmem>>, vector<16x32xbf16>,
    %24 = vector.extract_strided_slice %19 {offsets = [32, 0], sizes = [16, 32], strides = [1, 1]} : vector<256x32xbf16> to vector<16x32xbf16>
    %c82 = arith.constant 82 : index
    %c0_14 = arith.constant 0 : index
    %25 = vector.load %arg13[%c82, %c0_14] : memref<408x32xbf16, #tpu.memory_space<vmem>>, vector<16x32xbf16>
    tpu.vector_store %arg13[%c82, %c0_14], %24 {strides = array<i32>} : memref<408x32xbf16, #tpu.memory_space<vmem>>, vector<16x32xbf16>,
    %26 = vector.extract_strided_slice %19 {offsets = [48, 0], sizes = [16, 32], strides = [1, 1]} : vector<256x32xbf16> to vector<16x32xbf16>
    %c102 = arith.constant 102 : index
    %c0_15 = arith.constant 0 : index
    %27 = vector.load %arg13[%c102, %c0_15] : memref<408x32xbf16, #tpu.memory_space<vmem>>, vector<16x32xbf16>
    tpu.vector_store %arg13[%c102, %c0_15], %26 {strides = array<i32>} : memref<408x32xbf16, #tpu.memory_space<vmem>>, vector<16x32xbf16>,
    %28 = vector.extract_strided_slice %19 {offsets = [64, 0], sizes = [16, 32], strides = [1, 1]} : vector<256x32xbf16> to vector<16x32xbf16>
    %c122 = arith.constant 122 : index
    %c0_16 = arith.constant 0 : index
    %29 = vector.load %arg13[%c122, %c0_16] : memref<408x32xbf16, #tpu.memory_space<vmem>>, vector<16x32xbf16>
    tpu.vector_store %arg13[%c122, %c0_16], %28 {strides = array<i32>} : memref<408x32xbf16, #tpu.memory_space<vmem>>, vector<16x32xbf16>,
    %30 = vector.extract_strided_slice %19 {offsets = [80, 0], sizes = [16, 32], strides = [1, 1]} : vector<256x32xbf16> to vector<16x32xbf16>
    %c142 = arith.constant 142 : index
    %c0_17 = arith.constant 0 : index
    %31 = vector.load %arg13[%c142, %c0_17] : memref<408x32xbf16, #tpu.memory_space<vmem>>, vector<16x32xbf16>
    tpu.vector_store %arg13[%c142, %c0_17], %30 {strides = array<i32>} : memref<408x32xbf16, #tpu.memory_space<vmem>>, vector<16x32xbf16>,
    %32 = vector.extract_strided_slice %19 {offsets = [96, 0], sizes = [16, 32], strides = [1, 1]} : vector<256x32xbf16> to vector<16x32xbf16>
    %c162 = arith.constant 162 : index
    %c0_18 = arith.constant 0 : index
    %33 = vector.load %arg13[%c162, %c0_18] : memref<408x32xbf16, #tpu.memory_space<vmem>>, vector<16x32xbf16>
    tpu.vector_store %arg13[%c162, %c0_18], %32 {strides = array<i32>} : memref<408x32xbf16, #tpu.memory_space<vmem>>, vector<16x32xbf16>,
    %34 = vector.extract_strided_slice %19 {offsets = [112, 0], sizes = [16, 32], strides = [1, 1]} : vector<256x32xbf16> to vector<16x32xbf16>
    %c182 = arith.constant 182 : index
    %c0_19 = arith.constant 0 : index
    %35 = vector.load %arg13[%c182, %c0_19] : memref<408x32xbf16, #tpu.memory_space<vmem>>, vector<16x32xbf16>
    tpu.vector_store %arg13[%c182, %c0_19], %34 {strides = array<i32>} : memref<408x32xbf16, #tpu.memory_space<vmem>>, vector<16x32xbf16>,
    %36 = vector.extract_strided_slice %19 {offsets = [128, 0], sizes = [16, 32], strides = [1, 1]} : vector<256x32xbf16> to vector<16x32xbf16>
    %c202 = arith.constant 202 : index
    %c0_20 = arith.constant 0 : index
    %37 = vector.load %arg13[%c202, %c0_20] : memref<408x32xbf16, #tpu.memory_space<vmem>>, vector<16x32xbf16>
    tpu.vector_store %arg13[%c202, %c0_20], %36 {strides = array<i32>} : memref<408x32xbf16, #tpu.memory_space<vmem>>, vector<16x32xbf16>,
    %38 = vector.extract_strided_slice %19 {offsets = [144, 0], sizes = [16, 32], strides = [1, 1]} : vector<256x32xbf16> to vector<16x32xbf16>
    %c222 = arith.constant 222 : index
    %c0_21 = arith.constant 0 : index
    %39 = vector.load %arg13[%c222, %c0_21] : memref<408x32xbf16, #tpu.memory_space<vmem>>, vector<16x32xbf16>
    tpu.vector_store %arg13[%c222, %c0_21], %38 {strides = array<i32>} : memref<408x32xbf16, #tpu.memory_space<vmem>>, vector<16x32xbf16>,
    %40 = vector.extract_strided_slice %19 {offsets = [160, 0], sizes = [16, 32], strides = [1, 1]} : vector<256x32xbf16> to vector<16x32xbf16>
    %c242 = arith.constant 242 : index
    %c0_22 = arith.constant 0 : index
    %41 = vector.load %arg13[%c242, %c0_22] : memref<408x32xbf16, #tpu.memory_space<vmem>>, vector<16x32xbf16>
    tpu.vector_store %arg13[%c242, %c0_22], %40 {strides = array<i32>} : memref<408x32xbf16, #tpu.memory_space<vmem>>, vector<16x32xbf16>,
    %42 = vector.extract_strided_slice %19 {offsets = [176, 0], sizes = [16, 32], strides = [1, 1]} : vector<256x32xbf16> to vector<16x32xbf16>
    %c262 = arith.constant 262 : index
    %c0_23 = arith.constant 0 : index
    %43 = vector.load %arg13[%c262, %c0_23] : memref<408x32xbf16, #tpu.memory_space<vmem>>, vector<16x32xbf16>
    tpu.vector_store %arg13[%c262, %c0_23], %42 {strides = array<i32>} : memref<408x32xbf16, #tpu.memory_space<vmem>>, vector<16x32xbf16>,
    %44 = vector.extract_strided_slice %19 {offsets = [192, 0], sizes = [16, 32], strides = [1, 1]} : vector<256x32xbf16> to vector<16x32xbf16>
    %c282 = arith.constant 282 : index
    %c0_24 = arith.constant 0 : index
    %45 = vector.load %arg13[%c282, %c0_24] : memref<408x32xbf16, #tpu.memory_space<vmem>>, vector<16x32xbf16>
    tpu.vector_store %arg13[%c282, %c0_24], %44 {strides = array<i32>} : memref<408x32xbf16, #tpu.memory_space<vmem>>, vector<16x32xbf16>,
    %46 = vector.extract_strided_slice %19 {offsets = [208, 0], sizes = [16, 32], strides = [1, 1]} : vector<256x32xbf16> to vector<16x32xbf16>
    %c302 = arith.constant 302 : index
    %c0_25 = arith.constant 0 : index
    %47 = vector.load %arg13[%c302, %c0_25] : memref<408x32xbf16, #tpu.memory_space<vmem>>, vector<16x32xbf16>
    tpu.vector_store %arg13[%c302, %c0_25], %46 {strides = array<i32>} : memref<408x32xbf16, #tpu.memory_space<vmem>>, vector<16x32xbf16>,
    %48 = vector.extract_strided_slice %19 {offsets = [224, 0], sizes = [16, 32], strides = [1, 1]} : vector<256x32xbf16> to vector<16x32xbf16>
    %c322 = arith.constant 322 : index
    %c0_26 = arith.constant 0 : index
    %49 = vector.load %arg13[%c322, %c0_26] : memref<408x32xbf16, #tpu.memory_space<vmem>>, vector<16x32xbf16>
    tpu.vector_store %arg13[%c322, %c0_26], %48 {strides = array<i32>} : memref<408x32xbf16, #tpu.memory_space<vmem>>, vector<16x32xbf16>,
    %50 = vector.extract_strided_slice %19 {offsets = [240, 0], sizes = [16, 32], strides = [1, 1]} : vector<256x32xbf16> to vector<16x32xbf16>
    %c342 = arith.constant 342 : index
    %c0_27 = arith.constant 0 : index
    %51 = vector.load %arg13[%c342, %c0_27] : memref<408x32xbf16, #tpu.memory_space<vmem>>, vector<16x32xbf16>
    tpu.vector_store %arg13[%c342, %c0_27], %50 {strides = array<i32>} : memref<408x32xbf16, #tpu.memory_space<vmem>>, vector<16x32xbf16>,
    %c0_28 = arith.constant 0 : index
    %c0_29 = arith.constant 0 : index
    %52 = vector.load %arg13[%c0_28, %c0_29] : memref<408x32xbf16, #tpu.memory_space<vmem>>, vector<400x32xbf16>
    %c0_30 = arith.constant 0 : index
    %c0_31 = arith.constant 0 : index
    %53 = vector.load %arg14[%c0_30, %c0_31] : memref<400x160xbf16, #tpu.memory_space<vmem>>, vector<400x32xbf16>
    tpu.vector_store %arg14[%c0_30, %c0_31], %52 {strides = array<i32>} : memref<400x160xbf16, #tpu.memory_space<vmem>>, vector<400x32xbf16>,
    %c1 = arith.constant 1 : index
    %c0_32 = arith.constant 0 : index
    %54 = vector.load %arg13[%c1, %c0_32] : memref<408x32xbf16, #tpu.memory_space<vmem>>, vector<400x32xbf16>
    %c0_33 = arith.constant 0 : index
    %c32 = arith.constant 32 : index
    %55 = vector.load %arg14[%c0_33, %c32] : memref<400x160xbf16, #tpu.memory_space<vmem>>, vector<400x32xbf16>
    tpu.vector_store %arg14[%c0_33, %c32], %54 {strides = array<i32>} : memref<400x160xbf16, #tpu.memory_space<vmem>>, vector<400x32xbf16>,
    %c2 = arith.constant 2 : index
    %c0_34 = arith.constant 0 : index
    %56 = vector.load %arg13[%c2, %c0_34] : memref<408x32xbf16, #tpu.memory_space<vmem>>, vector<400x32xbf16>
    %c0_35 = arith.constant 0 : index
    %c64 = arith.constant 64 : index
    %57 = vector.load %arg14[%c0_35, %c64] : memref<400x160xbf16, #tpu.memory_space<vmem>>, vector<400x32xbf16>
    tpu.vector_store %arg14[%c0_35, %c64], %56 {strides = array<i32>} : memref<400x160xbf16, #tpu.memory_space<vmem>>, vector<400x32xbf16>,
    %c3 = arith.constant 3 : index
    %c0_36 = arith.constant 0 : index
    %58 = vector.load %arg13[%c3, %c0_36] : memref<408x32xbf16, #tpu.memory_space<vmem>>, vector<400x32xbf16>
    %c0_37 = arith.constant 0 : index
    %c96 = arith.constant 96 : index
    %59 = vector.load %arg14[%c0_37, %c96] : memref<400x160xbf16, #tpu.memory_space<vmem>>, vector<400x32xbf16>
    tpu.vector_store %arg14[%c0_37, %c96], %58 {strides = array<i32>} : memref<400x160xbf16, #tpu.memory_space<vmem>>, vector<400x32xbf16>,
    %c4 = arith.constant 4 : index
    %c0_38 = arith.constant 0 : index
    %60 = vector.load %arg13[%c4, %c0_38] : memref<408x32xbf16, #tpu.memory_space<vmem>>, vector<400x32xbf16>
    %c0_39 = arith.constant 0 : index
    %c128 = arith.constant 128 : index
    %61 = vector.load %arg14[%c0_39, %c128] : memref<400x160xbf16, #tpu.memory_space<vmem>>, vector<400x32xbf16>
    tpu.vector_store %arg14[%c0_39, %c128], %60 {strides = array<i32>} : memref<400x160xbf16, #tpu.memory_space<vmem>>, vector<400x32xbf16>,
    %c0_40 = arith.constant 0 : index
    %c0_41 = arith.constant 0 : index
    %62 = vector.load %arg14[%c0_40, %c0_41] : memref<400x160xbf16, #tpu.memory_space<vmem>>, vector<320x160xbf16>
    %c0_42 = arith.constant 0 : index
    %c0_43 = arith.constant 0 : index
    %63 = vector.load %arg15[%c0_42, %c0_43] : memref<320x800xbf16, #tpu.memory_space<vmem>>, vector<320x160xbf16>
    tpu.vector_store %arg15[%c0_42, %c0_43], %62 {strides = array<i32>} : memref<320x800xbf16, #tpu.memory_space<vmem>>, vector<320x160xbf16>,
    %c20 = arith.constant 20 : index
    %c0_44 = arith.constant 0 : index
    %64 = vector.load %arg14[%c20, %c0_44] : memref<400x160xbf16, #tpu.memory_space<vmem>>, vector<320x160xbf16>
    %c0_45 = arith.constant 0 : index
    %c160 = arith.constant 160 : index
    %65 = vector.load %arg15[%c0_45, %c160] : memref<320x800xbf16, #tpu.memory_space<vmem>>, vector<320x160xbf16>
    tpu.vector_store %arg15[%c0_45, %c160], %64 {strides = array<i32>} : memref<320x800xbf16, #tpu.memory_space<vmem>>, vector<320x160xbf16>,
    %c40 = arith.constant 40 : index
    %c0_46 = arith.constant 0 : index
    %66 = vector.load %arg14[%c40, %c0_46] : memref<400x160xbf16, #tpu.memory_space<vmem>>, vector<320x160xbf16>
    %c0_47 = arith.constant 0 : index
    %c320 = arith.constant 320 : index
    %67 = vector.load %arg15[%c0_47, %c320] : memref<320x800xbf16, #tpu.memory_space<vmem>>, vector<320x160xbf16>
    tpu.vector_store %arg15[%c0_47, %c320], %66 {strides = array<i32>} : memref<320x800xbf16, #tpu.memory_space<vmem>>, vector<320x160xbf16>,
    %c60 = arith.constant 60 : index
    %c0_48 = arith.constant 0 : index
    %68 = vector.load %arg14[%c60, %c0_48] : memref<400x160xbf16, #tpu.memory_space<vmem>>, vector<320x160xbf16>
    %c0_49 = arith.constant 0 : index
    %c480 = arith.constant 480 : index
    %69 = vector.load %arg15[%c0_49, %c480] : memref<320x800xbf16, #tpu.memory_space<vmem>>, vector<320x160xbf16>
    tpu.vector_store %arg15[%c0_49, %c480], %68 {strides = array<i32>} : memref<320x800xbf16, #tpu.memory_space<vmem>>, vector<320x160xbf16>,
    %c80 = arith.constant 80 : index
    %c0_50 = arith.constant 0 : index
    %70 = vector.load %arg14[%c80, %c0_50] : memref<400x160xbf16, #tpu.memory_space<vmem>>, vector<320x160xbf16>
    %c0_51 = arith.constant 0 : index
    %c640 = arith.constant 640 : index
    %71 = vector.load %arg15[%c0_51, %c640] : memref<320x800xbf16, #tpu.memory_space<vmem>>, vector<320x160xbf16>
    tpu.vector_store %arg15[%c0_51, %c640], %70 {strides = array<i32>} : memref<320x800xbf16, #tpu.memory_space<vmem>>, vector<320x160xbf16>,
    %c0_52 = arith.constant 0 : index
    %c0_53 = arith.constant 0 : index
    %72 = vector.load %arg15[%c0_52, %c0_53] : memref<320x800xbf16, #tpu.memory_space<vmem>>, vector<320x800xbf16>
    %c0_54 = arith.constant 0 : index
    %c0_55 = arith.constant 0 : index
    %73 = vector.load %arg4[%c0_54, %c0_55] : memref<800x64xbf16, #tpu.memory_space<vmem>>, vector<800x64xbf16>
    %cst_56 = arith.constant dense<0.000000e+00> : vector<320x64xf32>
    %74 = tpu.matmul %72, %73, %cst_56 {dimension_numbers = #tpu.dot_dimension_numbers<[1], [0], [0], [1], [0, 0, 1, 1], [], []>} : vector<320x800xbf16>, vector<800x64xbf16>, vector<320x64xf32> -> vector<320x64xf32>
    %c0_57 = arith.constant 0 : index
    %c0_58 = arith.constant 0 : index
    %75 = vector.load %arg5[%c0_57, %c0_58] : memref<1x64xf32, #tpu.memory_space<vmem>>, vector<1x64xf32>
    %76 = vector.broadcast %75 : vector<1x64xf32> to vector<320x64xf32>
    %77 = arith.addf %74, %76 : vector<320x64xf32>
    %cst_59 = arith.constant 0.000000e+00 : f32
    %78 = vector.broadcast %cst_59 : f32 to vector<320x64xf32>
    %79 = arith.maximumf %77, %78 : vector<320x64xf32>
    %c0_60 = arith.constant 0 : index
    %c0_61 = arith.constant 0 : index
    %80 = vector.load %arg16[%c0_60, %c0_61] : memref<320x64xf32, #tpu.memory_space<vmem>>, vector<320x64xf32>
    tpu.vector_store %arg16[%c0_60, %c0_61], %79 {strides = array<i32>} : memref<320x64xf32, #tpu.memory_space<vmem>>, vector<320x64xf32>,
    %c0_62 = arith.constant 0 : index
    %c0_63 = arith.constant 0 : index
    %81 = tpu.strided_load %arg16[%c0_62, %c0_63] {strides = array<i32: 2, 1>} : memref<320x64xf32, #tpu.memory_space<vmem>>, vector<8x64xf32>
    %c1_64 = arith.constant 1 : index
    %c0_65 = arith.constant 0 : index
    %82 = tpu.strided_load %arg16[%c1_64, %c0_65] {strides = array<i32: 2, 1>} : memref<320x64xf32, #tpu.memory_space<vmem>>, vector<8x64xf32>
    %83 = arith.maximumf %81, %82 : vector<8x64xf32>
    %c20_66 = arith.constant 20 : index
    %c0_67 = arith.constant 0 : index
    %84 = tpu.strided_load %arg16[%c20_66, %c0_67] {strides = array<i32: 2, 1>} : memref<320x64xf32, #tpu.memory_space<vmem>>, vector<8x64xf32>
    %c21 = arith.constant 21 : index
    %c0_68 = arith.constant 0 : index
    %85 = tpu.strided_load %arg16[%c21, %c0_68] {strides = array<i32: 2, 1>} : memref<320x64xf32, #tpu.memory_space<vmem>>, vector<8x64xf32>
    %86 = arith.maximumf %84, %85 : vector<8x64xf32>
    %87 = arith.maximumf %83, %86 : vector<8x64xf32>
    %88 = arith.truncf %87 : vector<8x64xf32> to vector<8x64xbf16>
    %c11 = arith.constant 11 : index
    %c0_69 = arith.constant 0 : index
    %89 = vector.load %arg17[%c11, %c0_69] : memref<112x64xbf16, #tpu.memory_space<vmem>>, vector<8x64xbf16>
    tpu.vector_store %arg17[%c11, %c0_69], %88 {strides = array<i32>} : memref<112x64xbf16, #tpu.memory_space<vmem>>, vector<8x64xbf16>,
    %c40_70 = arith.constant 40 : index
    %c0_71 = arith.constant 0 : index
    %90 = tpu.strided_load %arg16[%c40_70, %c0_71] {strides = array<i32: 2, 1>} : memref<320x64xf32, #tpu.memory_space<vmem>>, vector<8x64xf32>
    %c41 = arith.constant 41 : index
    %c0_72 = arith.constant 0 : index
    %91 = tpu.strided_load %arg16[%c41, %c0_72] {strides = array<i32: 2, 1>} : memref<320x64xf32, #tpu.memory_space<vmem>>, vector<8x64xf32>
    %92 = arith.maximumf %90, %91 : vector<8x64xf32>
    %c60_73 = arith.constant 60 : index
    %c0_74 = arith.constant 0 : index
    %93 = tpu.strided_load %arg16[%c60_73, %c0_74] {strides = array<i32: 2, 1>} : memref<320x64xf32, #tpu.memory_space<vmem>>, vector<8x64xf32>
    %c61 = arith.constant 61 : index
    %c0_75 = arith.constant 0 : index
    %94 = tpu.strided_load %arg16[%c61, %c0_75] {strides = array<i32: 2, 1>} : memref<320x64xf32, #tpu.memory_space<vmem>>, vector<8x64xf32>
    %95 = arith.maximumf %93, %94 : vector<8x64xf32>
    %96 = arith.maximumf %92, %95 : vector<8x64xf32>
    %97 = arith.truncf %96 : vector<8x64xf32> to vector<8x64xbf16>
    %c21_76 = arith.constant 21 : index
    %c0_77 = arith.constant 0 : index
    %98 = vector.load %arg17[%c21_76, %c0_77] : memref<112x64xbf16, #tpu.memory_space<vmem>>, vector<8x64xbf16>
    tpu.vector_store %arg17[%c21_76, %c0_77], %97 {strides = array<i32>} : memref<112x64xbf16, #tpu.memory_space<vmem>>, vector<8x64xbf16>,
    %c80_78 = arith.constant 80 : index
    %c0_79 = arith.constant 0 : index
    %99 = tpu.strided_load %arg16[%c80_78, %c0_79] {strides = array<i32: 2, 1>} : memref<320x64xf32, #tpu.memory_space<vmem>>, vector<8x64xf32>
    %c81 = arith.constant 81 : index
    %c0_80 = arith.constant 0 : index
    %100 = tpu.strided_load %arg16[%c81, %c0_80] {strides = array<i32: 2, 1>} : memref<320x64xf32, #tpu.memory_space<vmem>>, vector<8x64xf32>
    %101 = arith.maximumf %99, %100 : vector<8x64xf32>
    %c100 = arith.constant 100 : index
    %c0_81 = arith.constant 0 : index
    %102 = tpu.strided_load %arg16[%c100, %c0_81] {strides = array<i32: 2, 1>} : memref<320x64xf32, #tpu.memory_space<vmem>>, vector<8x64xf32>
    %c101 = arith.constant 101 : index
    %c0_82 = arith.constant 0 : index
    %103 = tpu.strided_load %arg16[%c101, %c0_82] {strides = array<i32: 2, 1>} : memref<320x64xf32, #tpu.memory_space<vmem>>, vector<8x64xf32>
    %104 = arith.maximumf %102, %103 : vector<8x64xf32>
    %105 = arith.maximumf %101, %104 : vector<8x64xf32>
    %106 = arith.truncf %105 : vector<8x64xf32> to vector<8x64xbf16>
    %c31 = arith.constant 31 : index
    %c0_83 = arith.constant 0 : index
    %107 = vector.load %arg17[%c31, %c0_83] : memref<112x64xbf16, #tpu.memory_space<vmem>>, vector<8x64xbf16>
    tpu.vector_store %arg17[%c31, %c0_83], %106 {strides = array<i32>} : memref<112x64xbf16, #tpu.memory_space<vmem>>, vector<8x64xbf16>,
    %c120 = arith.constant 120 : index
    %c0_84 = arith.constant 0 : index
    %108 = tpu.strided_load %arg16[%c120, %c0_84] {strides = array<i32: 2, 1>} : memref<320x64xf32, #tpu.memory_space<vmem>>, vector<8x64xf32>
    %c121 = arith.constant 121 : index
    %c0_85 = arith.constant 0 : index
    %109 = tpu.strided_load %arg16[%c121, %c0_85] {strides = array<i32: 2, 1>} : memref<320x64xf32, #tpu.memory_space<vmem>>, vector<8x64xf32>
    %110 = arith.maximumf %108, %109 : vector<8x64xf32>
    %c140 = arith.constant 140 : index
    %c0_86 = arith.constant 0 : index
    %111 = tpu.strided_load %arg16[%c140, %c0_86] {strides = array<i32: 2, 1>} : memref<320x64xf32, #tpu.memory_space<vmem>>, vector<8x64xf32>
    %c141 = arith.constant 141 : index
    %c0_87 = arith.constant 0 : index
    %112 = tpu.strided_load %arg16[%c141, %c0_87] {strides = array<i32: 2, 1>} : memref<320x64xf32, #tpu.memory_space<vmem>>, vector<8x64xf32>
    %113 = arith.maximumf %111, %112 : vector<8x64xf32>
    %114 = arith.maximumf %110, %113 : vector<8x64xf32>
    %115 = arith.truncf %114 : vector<8x64xf32> to vector<8x64xbf16>
    %c41_88 = arith.constant 41 : index
    %c0_89 = arith.constant 0 : index
    %116 = vector.load %arg17[%c41_88, %c0_89] : memref<112x64xbf16, #tpu.memory_space<vmem>>, vector<8x64xbf16>
    tpu.vector_store %arg17[%c41_88, %c0_89], %115 {strides = array<i32>} : memref<112x64xbf16, #tpu.memory_space<vmem>>, vector<8x64xbf16>,
    %c160_90 = arith.constant 160 : index
    %c0_91 = arith.constant 0 : index
    %117 = tpu.strided_load %arg16[%c160_90, %c0_91] {strides = array<i32: 2, 1>} : memref<320x64xf32, #tpu.memory_space<vmem>>, vector<8x64xf32>
    %c161 = arith.constant 161 : index
    %c0_92 = arith.constant 0 : index
    %118 = tpu.strided_load %arg16[%c161, %c0_92] {strides = array<i32: 2, 1>} : memref<320x64xf32, #tpu.memory_space<vmem>>, vector<8x64xf32>
    %119 = arith.maximumf %117, %118 : vector<8x64xf32>
    %c180 = arith.constant 180 : index
    %c0_93 = arith.constant 0 : index
    %120 = tpu.strided_load %arg16[%c180, %c0_93] {strides = array<i32: 2, 1>} : memref<320x64xf32, #tpu.memory_space<vmem>>, vector<8x64xf32>
    %c181 = arith.constant 181 : index
    %c0_94 = arith.constant 0 : index
    %121 = tpu.strided_load %arg16[%c181, %c0_94] {strides = array<i32: 2, 1>} : memref<320x64xf32, #tpu.memory_space<vmem>>, vector<8x64xf32>
    %122 = arith.maximumf %120, %121 : vector<8x64xf32>
    %123 = arith.maximumf %119, %122 : vector<8x64xf32>
    %124 = arith.truncf %123 : vector<8x64xf32> to vector<8x64xbf16>
    %c51 = arith.constant 51 : index
    %c0_95 = arith.constant 0 : index
    %125 = vector.load %arg17[%c51, %c0_95] : memref<112x64xbf16, #tpu.memory_space<vmem>>, vector<8x64xbf16>
    tpu.vector_store %arg17[%c51, %c0_95], %124 {strides = array<i32>} : memref<112x64xbf16, #tpu.memory_space<vmem>>, vector<8x64xbf16>,
    %c200 = arith.constant 200 : index
    %c0_96 = arith.constant 0 : index
    %126 = tpu.strided_load %arg16[%c200, %c0_96] {strides = array<i32: 2, 1>} : memref<320x64xf32, #tpu.memory_space<vmem>>, vector<8x64xf32>
    %c201 = arith.constant 201 : index
    %c0_97 = arith.constant 0 : index
    %127 = tpu.strided_load %arg16[%c201, %c0_97] {strides = array<i32: 2, 1>} : memref<320x64xf32, #tpu.memory_space<vmem>>, vector<8x64xf32>
    %128 = arith.maximumf %126, %127 : vector<8x64xf32>
    %c220 = arith.constant 220 : index
    %c0_98 = arith.constant 0 : index
    %129 = tpu.strided_load %arg16[%c220, %c0_98] {strides = array<i32: 2, 1>} : memref<320x64xf32, #tpu.memory_space<vmem>>, vector<8x64xf32>
    %c221 = arith.constant 221 : index
    %c0_99 = arith.constant 0 : index
    %130 = tpu.strided_load %arg16[%c221, %c0_99] {strides = array<i32: 2, 1>} : memref<320x64xf32, #tpu.memory_space<vmem>>, vector<8x64xf32>
    %131 = arith.maximumf %129, %130 : vector<8x64xf32>
    %132 = arith.maximumf %128, %131 : vector<8x64xf32>
    %133 = arith.truncf %132 : vector<8x64xf32> to vector<8x64xbf16>
    %c61_100 = arith.constant 61 : index
    %c0_101 = arith.constant 0 : index
    %134 = vector.load %arg17[%c61_100, %c0_101] : memref<112x64xbf16, #tpu.memory_space<vmem>>, vector<8x64xbf16>
    tpu.vector_store %arg17[%c61_100, %c0_101], %133 {strides = array<i32>} : memref<112x64xbf16, #tpu.memory_space<vmem>>, vector<8x64xbf16>,
    %c240 = arith.constant 240 : index
    %c0_102 = arith.constant 0 : index
    %135 = tpu.strided_load %arg16[%c240, %c0_102] {strides = array<i32: 2, 1>} : memref<320x64xf32, #tpu.memory_space<vmem>>, vector<8x64xf32>
    %c241 = arith.constant 241 : index
    %c0_103 = arith.constant 0 : index
    %136 = tpu.strided_load %arg16[%c241, %c0_103] {strides = array<i32: 2, 1>} : memref<320x64xf32, #tpu.memory_space<vmem>>, vector<8x64xf32>
    %137 = arith.maximumf %135, %136 : vector<8x64xf32>
    %c260 = arith.constant 260 : index
    %c0_104 = arith.constant 0 : index
    %138 = tpu.strided_load %arg16[%c260, %c0_104] {strides = array<i32: 2, 1>} : memref<320x64xf32, #tpu.memory_space<vmem>>, vector<8x64xf32>
    %c261 = arith.constant 261 : index
    %c0_105 = arith.constant 0 : index
    %139 = tpu.strided_load %arg16[%c261, %c0_105] {strides = array<i32: 2, 1>} : memref<320x64xf32, #tpu.memory_space<vmem>>, vector<8x64xf32>
    %140 = arith.maximumf %138, %139 : vector<8x64xf32>
    %141 = arith.maximumf %137, %140 : vector<8x64xf32>
    %142 = arith.truncf %141 : vector<8x64xf32> to vector<8x64xbf16>
    %c71 = arith.constant 71 : index
    %c0_106 = arith.constant 0 : index
    %143 = vector.load %arg17[%c71, %c0_106] : memref<112x64xbf16, #tpu.memory_space<vmem>>, vector<8x64xbf16>
    tpu.vector_store %arg17[%c71, %c0_106], %142 {strides = array<i32>} : memref<112x64xbf16, #tpu.memory_space<vmem>>, vector<8x64xbf16>,
    %c280 = arith.constant 280 : index
    %c0_107 = arith.constant 0 : index
    %144 = tpu.strided_load %arg16[%c280, %c0_107] {strides = array<i32: 2, 1>} : memref<320x64xf32, #tpu.memory_space<vmem>>, vector<8x64xf32>
    %c281 = arith.constant 281 : index
    %c0_108 = arith.constant 0 : index
    %145 = tpu.strided_load %arg16[%c281, %c0_108] {strides = array<i32: 2, 1>} : memref<320x64xf32, #tpu.memory_space<vmem>>, vector<8x64xf32>
    %146 = arith.maximumf %144, %145 : vector<8x64xf32>
    %c300 = arith.constant 300 : index
    %c0_109 = arith.constant 0 : index
    %147 = tpu.strided_load %arg16[%c300, %c0_109] {strides = array<i32: 2, 1>} : memref<320x64xf32, #tpu.memory_space<vmem>>, vector<8x64xf32>
    %c301 = arith.constant 301 : index
    %c0_110 = arith.constant 0 : index
    %148 = tpu.strided_load %arg16[%c301, %c0_110] {strides = array<i32: 2, 1>} : memref<320x64xf32, #tpu.memory_space<vmem>>, vector<8x64xf32>
    %149 = arith.maximumf %147, %148 : vector<8x64xf32>
    %150 = arith.maximumf %146, %149 : vector<8x64xf32>
    %151 = arith.truncf %150 : vector<8x64xf32> to vector<8x64xbf16>
    %c81_111 = arith.constant 81 : index
    %c0_112 = arith.constant 0 : index
    %152 = vector.load %arg17[%c81_111, %c0_112] : memref<112x64xbf16, #tpu.memory_space<vmem>>, vector<8x64xbf16>
    tpu.vector_store %arg17[%c81_111, %c0_112], %151 {strides = array<i32>} : memref<112x64xbf16, #tpu.memory_space<vmem>>, vector<8x64xbf16>,
    %c0_113 = arith.constant 0 : index
    %c0_114 = arith.constant 0 : index
    %153 = vector.load %arg17[%c0_113, %c0_114] : memref<112x64xbf16, #tpu.memory_space<vmem>>, vector<80x64xbf16>
    %c0_115 = arith.constant 0 : index
    %c0_116 = arith.constant 0 : index
    %154 = vector.load %arg18[%c0_115, %c0_116] : memref<80x576xbf16, #tpu.memory_space<vmem>>, vector<80x64xbf16>
    tpu.vector_store %arg18[%c0_115, %c0_116], %153 {strides = array<i32>} : memref<80x576xbf16, #tpu.memory_space<vmem>>, vector<80x64xbf16>,
    %c1_117 = arith.constant 1 : index
    %c0_118 = arith.constant 0 : index
    %155 = vector.load %arg17[%c1_117, %c0_118] : memref<112x64xbf16, #tpu.memory_space<vmem>>, vector<80x64xbf16>
    %c0_119 = arith.constant 0 : index
    %c64_120 = arith.constant 64 : index
    %156 = vector.load %arg18[%c0_119, %c64_120] : memref<80x576xbf16, #tpu.memory_space<vmem>>, vector<80x64xbf16>
    tpu.vector_store %arg18[%c0_119, %c64_120], %155 {strides = array<i32>} : memref<80x576xbf16, #tpu.memory_space<vmem>>, vector<80x64xbf16>,
    %c2_121 = arith.constant 2 : index
    %c0_122 = arith.constant 0 : index
    %157 = vector.load %arg17[%c2_121, %c0_122] : memref<112x64xbf16, #tpu.memory_space<vmem>>, vector<80x64xbf16>
    %c0_123 = arith.constant 0 : index
    %c128_124 = arith.constant 128 : index
    %158 = vector.load %arg18[%c0_123, %c128_124] : memref<80x576xbf16, #tpu.memory_space<vmem>>, vector<80x64xbf16>
    tpu.vector_store %arg18[%c0_123, %c128_124], %157 {strides = array<i32>} : memref<80x576xbf16, #tpu.memory_space<vmem>>, vector<80x64xbf16>,
    %c10 = arith.constant 10 : index
    %c0_125 = arith.constant 0 : index
    %159 = vector.load %arg17[%c10, %c0_125] : memref<112x64xbf16, #tpu.memory_space<vmem>>, vector<80x64xbf16>
    %c0_126 = arith.constant 0 : index
    %c192 = arith.constant 192 : index
    %160 = vector.load %arg18[%c0_126, %c192] : memref<80x576xbf16, #tpu.memory_space<vmem>>, vector<80x64xbf16>
    tpu.vector_store %arg18[%c0_126, %c192], %159 {strides = array<i32>} : memref<80x576xbf16, #tpu.memory_space<vmem>>, vector<80x64xbf16>,
    %c11_127 = arith.constant 11 : index
    %c0_128 = arith.constant 0 : index
    %161 = vector.load %arg17[%c11_127, %c0_128] : memref<112x64xbf16, #tpu.memory_space<vmem>>, vector<80x64xbf16>
    %c0_129 = arith.constant 0 : index
    %c256 = arith.constant 256 : index
    %162 = vector.load %arg18[%c0_129, %c256] : memref<80x576xbf16, #tpu.memory_space<vmem>>, vector<80x64xbf16>
    tpu.vector_store %arg18[%c0_129, %c256], %161 {strides = array<i32>} : memref<80x576xbf16, #tpu.memory_space<vmem>>, vector<80x64xbf16>,
    %c12 = arith.constant 12 : index
    %c0_130 = arith.constant 0 : index
    %163 = vector.load %arg17[%c12, %c0_130] : memref<112x64xbf16, #tpu.memory_space<vmem>>, vector<80x64xbf16>
    %c0_131 = arith.constant 0 : index
    %c320_132 = arith.constant 320 : index
    %164 = vector.load %arg18[%c0_131, %c320_132] : memref<80x576xbf16, #tpu.memory_space<vmem>>, vector<80x64xbf16>
    tpu.vector_store %arg18[%c0_131, %c320_132], %163 {strides = array<i32>} : memref<80x576xbf16, #tpu.memory_space<vmem>>, vector<80x64xbf16>,
    %c20_133 = arith.constant 20 : index
    %c0_134 = arith.constant 0 : index
    %165 = vector.load %arg17[%c20_133, %c0_134] : memref<112x64xbf16, #tpu.memory_space<vmem>>, vector<80x64xbf16>
    %c0_135 = arith.constant 0 : index
    %c384 = arith.constant 384 : index
    %166 = vector.load %arg18[%c0_135, %c384] : memref<80x576xbf16, #tpu.memory_space<vmem>>, vector<80x64xbf16>
    tpu.vector_store %arg18[%c0_135, %c384], %165 {strides = array<i32>} : memref<80x576xbf16, #tpu.memory_space<vmem>>, vector<80x64xbf16>,
    %c21_136 = arith.constant 21 : index
    %c0_137 = arith.constant 0 : index
    %167 = vector.load %arg17[%c21_136, %c0_137] : memref<112x64xbf16, #tpu.memory_space<vmem>>, vector<80x64xbf16>
    %c0_138 = arith.constant 0 : index
    %c448 = arith.constant 448 : index
    %168 = vector.load %arg18[%c0_138, %c448] : memref<80x576xbf16, #tpu.memory_space<vmem>>, vector<80x64xbf16>
    tpu.vector_store %arg18[%c0_138, %c448], %167 {strides = array<i32>} : memref<80x576xbf16, #tpu.memory_space<vmem>>, vector<80x64xbf16>,
    %c22 = arith.constant 22 : index
    %c0_139 = arith.constant 0 : index
    %169 = vector.load %arg17[%c22, %c0_139] : memref<112x64xbf16, #tpu.memory_space<vmem>>, vector<80x64xbf16>
    %c0_140 = arith.constant 0 : index
    %c512 = arith.constant 512 : index
    %170 = vector.load %arg18[%c0_140, %c512] : memref<80x576xbf16, #tpu.memory_space<vmem>>, vector<80x64xbf16>
    tpu.vector_store %arg18[%c0_140, %c512], %169 {strides = array<i32>} : memref<80x576xbf16, #tpu.memory_space<vmem>>, vector<80x64xbf16>,
    %c0_141 = arith.constant 0 : index
    %c0_142 = arith.constant 0 : index
    %171 = vector.load %arg18[%c0_141, %c0_142] : memref<80x576xbf16, #tpu.memory_space<vmem>>, vector<80x576xbf16>
    %c0_143 = arith.constant 0 : index
    %c0_144 = arith.constant 0 : index
    %172 = vector.load %arg6[%c0_143, %c0_144] : memref<576x128xbf16, #tpu.memory_space<vmem>>, vector<576x128xbf16>
    %cst_145 = arith.constant dense<0.000000e+00> : vector<80x128xf32>
    %173 = tpu.matmul %171, %172, %cst_145 {dimension_numbers = #tpu.dot_dimension_numbers<[1], [0], [0], [1], [0, 0, 1, 1], [], []>} : vector<80x576xbf16>, vector<576x128xbf16>, vector<80x128xf32> -> vector<80x128xf32>
    %c0_146 = arith.constant 0 : index
    %c0_147 = arith.constant 0 : index
    %174 = vector.load %arg7[%c0_146, %c0_147] : memref<1x128xf32, #tpu.memory_space<vmem>>, vector<1x128xf32>
    %175 = vector.broadcast %174 : vector<1x128xf32> to vector<80x128xf32>
    %176 = arith.addf %173, %175 : vector<80x128xf32>
    %cst_148 = arith.constant 0.000000e+00 : f32
    %177 = vector.broadcast %cst_148 : f32 to vector<80x128xf32>
    %178 = arith.maximumf %176, %177 : vector<80x128xf32>
    %c0_149 = arith.constant 0 : index
    %c0_150 = arith.constant 0 : index
    %179 = vector.load %arg19[%c0_149, %c0_150] : memref<80x128xf32, #tpu.memory_space<vmem>>, vector<80x128xf32>
    tpu.vector_store %arg19[%c0_149, %c0_150], %178 {strides = array<i32>} : memref<80x128xf32, #tpu.memory_space<vmem>>, vector<80x128xf32>,
    %c0_151 = arith.constant 0 : index
    %c0_152 = arith.constant 0 : index
    %180 = vector.load %arg19[%c0_151, %c0_152] : memref<80x128xf32, #tpu.memory_space<vmem>>, vector<1x128xf32>
    %c1_153 = arith.constant 1 : index
    %c0_154 = arith.constant 0 : index
    %181 = vector.load %arg19[%c1_153, %c0_154] : memref<80x128xf32, #tpu.memory_space<vmem>>, vector<1x128xf32>
    %182 = arith.maximumf %180, %181 : vector<1x128xf32>
    %c10_155 = arith.constant 10 : index
    %c0_156 = arith.constant 0 : index
    %183 = vector.load %arg19[%c10_155, %c0_156] : memref<80x128xf32, #tpu.memory_space<vmem>>, vector<1x128xf32>
    %c11_157 = arith.constant 11 : index
    %c0_158 = arith.constant 0 : index
    %184 = vector.load %arg19[%c11_157, %c0_158] : memref<80x128xf32, #tpu.memory_space<vmem>>, vector<1x128xf32>
    %185 = arith.maximumf %183, %184 : vector<1x128xf32>
    %186 = arith.maximumf %182, %185 : vector<1x128xf32>
    %c2_159 = arith.constant 2 : index
    %c0_160 = arith.constant 0 : index
    %187 = vector.load %arg19[%c2_159, %c0_160] : memref<80x128xf32, #tpu.memory_space<vmem>>, vector<1x128xf32>
    %c3_161 = arith.constant 3 : index
    %c0_162 = arith.constant 0 : index
    %188 = vector.load %arg19[%c3_161, %c0_162] : memref<80x128xf32, #tpu.memory_space<vmem>>, vector<1x128xf32>
    %189 = arith.maximumf %187, %188 : vector<1x128xf32>
    %c12_163 = arith.constant 12 : index
    %c0_164 = arith.constant 0 : index
    %190 = vector.load %arg19[%c12_163, %c0_164] : memref<80x128xf32, #tpu.memory_space<vmem>>, vector<1x128xf32>
    %c13 = arith.constant 13 : index
    %c0_165 = arith.constant 0 : index
    %191 = vector.load %arg19[%c13, %c0_165] : memref<80x128xf32, #tpu.memory_space<vmem>>, vector<1x128xf32>
    %192 = arith.maximumf %190, %191 : vector<1x128xf32>
    %193 = arith.maximumf %189, %192 : vector<1x128xf32>
    %c4_166 = arith.constant 4 : index
    %c0_167 = arith.constant 0 : index
    %194 = vector.load %arg19[%c4_166, %c0_167] : memref<80x128xf32, #tpu.memory_space<vmem>>, vector<1x128xf32>
    %c5 = arith.constant 5 : index
    %c0_168 = arith.constant 0 : index
    %195 = vector.load %arg19[%c5, %c0_168] : memref<80x128xf32, #tpu.memory_space<vmem>>, vector<1x128xf32>
    %196 = arith.maximumf %194, %195 : vector<1x128xf32>
    %c14 = arith.constant 14 : index
    %c0_169 = arith.constant 0 : index
    %197 = vector.load %arg19[%c14, %c0_169] : memref<80x128xf32, #tpu.memory_space<vmem>>, vector<1x128xf32>
    %c15 = arith.constant 15 : index
    %c0_170 = arith.constant 0 : index
    %198 = vector.load %arg19[%c15, %c0_170] : memref<80x128xf32, #tpu.memory_space<vmem>>, vector<1x128xf32>
    %199 = arith.maximumf %197, %198 : vector<1x128xf32>
    %200 = arith.maximumf %196, %199 : vector<1x128xf32>
    %c6 = arith.constant 6 : index
    %c0_171 = arith.constant 0 : index
    %201 = vector.load %arg19[%c6, %c0_171] : memref<80x128xf32, #tpu.memory_space<vmem>>, vector<1x128xf32>
    %c7 = arith.constant 7 : index
    %c0_172 = arith.constant 0 : index
    %202 = vector.load %arg19[%c7, %c0_172] : memref<80x128xf32, #tpu.memory_space<vmem>>, vector<1x128xf32>
    %203 = arith.maximumf %201, %202 : vector<1x128xf32>
    %c16 = arith.constant 16 : index
    %c0_173 = arith.constant 0 : index
    %204 = vector.load %arg19[%c16, %c0_173] : memref<80x128xf32, #tpu.memory_space<vmem>>, vector<1x128xf32>
    %c17 = arith.constant 17 : index
    %c0_174 = arith.constant 0 : index
    %205 = vector.load %arg19[%c17, %c0_174] : memref<80x128xf32, #tpu.memory_space<vmem>>, vector<1x128xf32>
    %206 = arith.maximumf %204, %205 : vector<1x128xf32>
    %207 = arith.maximumf %203, %206 : vector<1x128xf32>
    %c20_175 = arith.constant 20 : index
    %c0_176 = arith.constant 0 : index
    %208 = vector.load %arg19[%c20_175, %c0_176] : memref<80x128xf32, #tpu.memory_space<vmem>>, vector<1x128xf32>
    %c21_177 = arith.constant 21 : index
    %c0_178 = arith.constant 0 : index
    %209 = vector.load %arg19[%c21_177, %c0_178] : memref<80x128xf32, #tpu.memory_space<vmem>>, vector<1x128xf32>
    %210 = arith.maximumf %208, %209 : vector<1x128xf32>
    %c30 = arith.constant 30 : index
    %c0_179 = arith.constant 0 : index
    %211 = vector.load %arg19[%c30, %c0_179] : memref<80x128xf32, #tpu.memory_space<vmem>>, vector<1x128xf32>
    %c31_180 = arith.constant 31 : index
    %c0_181 = arith.constant 0 : index
    %212 = vector.load %arg19[%c31_180, %c0_181] : memref<80x128xf32, #tpu.memory_space<vmem>>, vector<1x128xf32>
    %213 = arith.maximumf %211, %212 : vector<1x128xf32>
    %214 = arith.maximumf %210, %213 : vector<1x128xf32>
    %c22_182 = arith.constant 22 : index
    %c0_183 = arith.constant 0 : index
    %215 = vector.load %arg19[%c22_182, %c0_183] : memref<80x128xf32, #tpu.memory_space<vmem>>, vector<1x128xf32>
    %c23 = arith.constant 23 : index
    %c0_184 = arith.constant 0 : index
    %216 = vector.load %arg19[%c23, %c0_184] : memref<80x128xf32, #tpu.memory_space<vmem>>, vector<1x128xf32>
    %217 = arith.maximumf %215, %216 : vector<1x128xf32>
    %c32_185 = arith.constant 32 : index
    %c0_186 = arith.constant 0 : index
    %218 = vector.load %arg19[%c32_185, %c0_186] : memref<80x128xf32, #tpu.memory_space<vmem>>, vector<1x128xf32>
    %c33 = arith.constant 33 : index
    %c0_187 = arith.constant 0 : index
    %219 = vector.load %arg19[%c33, %c0_187] : memref<80x128xf32, #tpu.memory_space<vmem>>, vector<1x128xf32>
    %220 = arith.maximumf %218, %219 : vector<1x128xf32>
    %221 = arith.maximumf %217, %220 : vector<1x128xf32>
    %c24 = arith.constant 24 : index
    %c0_188 = arith.constant 0 : index
    %222 = vector.load %arg19[%c24, %c0_188] : memref<80x128xf32, #tpu.memory_space<vmem>>, vector<1x128xf32>
    %c25 = arith.constant 25 : index
    %c0_189 = arith.constant 0 : index
    %223 = vector.load %arg19[%c25, %c0_189] : memref<80x128xf32, #tpu.memory_space<vmem>>, vector<1x128xf32>
    %224 = arith.maximumf %222, %223 : vector<1x128xf32>
    %c34 = arith.constant 34 : index
    %c0_190 = arith.constant 0 : index
    %225 = vector.load %arg19[%c34, %c0_190] : memref<80x128xf32, #tpu.memory_space<vmem>>, vector<1x128xf32>
    %c35 = arith.constant 35 : index
    %c0_191 = arith.constant 0 : index
    %226 = vector.load %arg19[%c35, %c0_191] : memref<80x128xf32, #tpu.memory_space<vmem>>, vector<1x128xf32>
    %227 = arith.maximumf %225, %226 : vector<1x128xf32>
    %228 = arith.maximumf %224, %227 : vector<1x128xf32>
    %c26 = arith.constant 26 : index
    %c0_192 = arith.constant 0 : index
    %229 = vector.load %arg19[%c26, %c0_192] : memref<80x128xf32, #tpu.memory_space<vmem>>, vector<1x128xf32>
    %c27 = arith.constant 27 : index
    %c0_193 = arith.constant 0 : index
    %230 = vector.load %arg19[%c27, %c0_193] : memref<80x128xf32, #tpu.memory_space<vmem>>, vector<1x128xf32>
    %231 = arith.maximumf %229, %230 : vector<1x128xf32>
    %c36 = arith.constant 36 : index
    %c0_194 = arith.constant 0 : index
    %232 = vector.load %arg19[%c36, %c0_194] : memref<80x128xf32, #tpu.memory_space<vmem>>, vector<1x128xf32>
    %c37 = arith.constant 37 : index
    %c0_195 = arith.constant 0 : index
    %233 = vector.load %arg19[%c37, %c0_195] : memref<80x128xf32, #tpu.memory_space<vmem>>, vector<1x128xf32>
    %234 = arith.maximumf %232, %233 : vector<1x128xf32>
    %235 = arith.maximumf %231, %234 : vector<1x128xf32>
    %c40_196 = arith.constant 40 : index
    %c0_197 = arith.constant 0 : index
    %236 = vector.load %arg19[%c40_196, %c0_197] : memref<80x128xf32, #tpu.memory_space<vmem>>, vector<1x128xf32>
    %c41_198 = arith.constant 41 : index
    %c0_199 = arith.constant 0 : index
    %237 = vector.load %arg19[%c41_198, %c0_199] : memref<80x128xf32, #tpu.memory_space<vmem>>, vector<1x128xf32>
    %238 = arith.maximumf %236, %237 : vector<1x128xf32>
    %c50 = arith.constant 50 : index
    %c0_200 = arith.constant 0 : index
    %239 = vector.load %arg19[%c50, %c0_200] : memref<80x128xf32, #tpu.memory_space<vmem>>, vector<1x128xf32>
    %c51_201 = arith.constant 51 : index
    %c0_202 = arith.constant 0 : index
    %240 = vector.load %arg19[%c51_201, %c0_202] : memref<80x128xf32, #tpu.memory_space<vmem>>, vector<1x128xf32>
    %241 = arith.maximumf %239, %240 : vector<1x128xf32>
    %242 = arith.maximumf %238, %241 : vector<1x128xf32>
    %c42_203 = arith.constant 42 : index
    %c0_204 = arith.constant 0 : index
    %243 = vector.load %arg19[%c42_203, %c0_204] : memref<80x128xf32, #tpu.memory_space<vmem>>, vector<1x128xf32>
    %c43 = arith.constant 43 : index
    %c0_205 = arith.constant 0 : index
    %244 = vector.load %arg19[%c43, %c0_205] : memref<80x128xf32, #tpu.memory_space<vmem>>, vector<1x128xf32>
    %245 = arith.maximumf %243, %244 : vector<1x128xf32>
    %c52 = arith.constant 52 : index
    %c0_206 = arith.constant 0 : index
    %246 = vector.load %arg19[%c52, %c0_206] : memref<80x128xf32, #tpu.memory_space<vmem>>, vector<1x128xf32>
    %c53 = arith.constant 53 : index
    %c0_207 = arith.constant 0 : index
    %247 = vector.load %arg19[%c53, %c0_207] : memref<80x128xf32, #tpu.memory_space<vmem>>, vector<1x128xf32>
    %248 = arith.maximumf %246, %247 : vector<1x128xf32>
    %249 = arith.maximumf %245, %248 : vector<1x128xf32>
    %c44 = arith.constant 44 : index
    %c0_208 = arith.constant 0 : index
    %250 = vector.load %arg19[%c44, %c0_208] : memref<80x128xf32, #tpu.memory_space<vmem>>, vector<1x128xf32>
    %c45 = arith.constant 45 : index
    %c0_209 = arith.constant 0 : index
    %251 = vector.load %arg19[%c45, %c0_209] : memref<80x128xf32, #tpu.memory_space<vmem>>, vector<1x128xf32>
    %252 = arith.maximumf %250, %251 : vector<1x128xf32>
    %c54 = arith.constant 54 : index
    %c0_210 = arith.constant 0 : index
    %253 = vector.load %arg19[%c54, %c0_210] : memref<80x128xf32, #tpu.memory_space<vmem>>, vector<1x128xf32>
    %c55 = arith.constant 55 : index
    %c0_211 = arith.constant 0 : index
    %254 = vector.load %arg19[%c55, %c0_211] : memref<80x128xf32, #tpu.memory_space<vmem>>, vector<1x128xf32>
    %255 = arith.maximumf %253, %254 : vector<1x128xf32>
    %256 = arith.maximumf %252, %255 : vector<1x128xf32>
    %c46 = arith.constant 46 : index
    %c0_212 = arith.constant 0 : index
    %257 = vector.load %arg19[%c46, %c0_212] : memref<80x128xf32, #tpu.memory_space<vmem>>, vector<1x128xf32>
    %c47 = arith.constant 47 : index
    %c0_213 = arith.constant 0 : index
    %258 = vector.load %arg19[%c47, %c0_213] : memref<80x128xf32, #tpu.memory_space<vmem>>, vector<1x128xf32>
    %259 = arith.maximumf %257, %258 : vector<1x128xf32>
    %c56 = arith.constant 56 : index
    %c0_214 = arith.constant 0 : index
    %260 = vector.load %arg19[%c56, %c0_214] : memref<80x128xf32, #tpu.memory_space<vmem>>, vector<1x128xf32>
    %c57 = arith.constant 57 : index
    %c0_215 = arith.constant 0 : index
    %261 = vector.load %arg19[%c57, %c0_215] : memref<80x128xf32, #tpu.memory_space<vmem>>, vector<1x128xf32>
    %262 = arith.maximumf %260, %261 : vector<1x128xf32>
    %263 = arith.maximumf %259, %262 : vector<1x128xf32>
    %c60_216 = arith.constant 60 : index
    %c0_217 = arith.constant 0 : index
    %264 = vector.load %arg19[%c60_216, %c0_217] : memref<80x128xf32, #tpu.memory_space<vmem>>, vector<1x128xf32>
    %c61_218 = arith.constant 61 : index
    %c0_219 = arith.constant 0 : index
    %265 = vector.load %arg19[%c61_218, %c0_219] : memref<80x128xf32, #tpu.memory_space<vmem>>, vector<1x128xf32>
    %266 = arith.maximumf %264, %265 : vector<1x128xf32>
    %c70 = arith.constant 70 : index
    %c0_220 = arith.constant 0 : index
    %267 = vector.load %arg19[%c70, %c0_220] : memref<80x128xf32, #tpu.memory_space<vmem>>, vector<1x128xf32>
    %c71_221 = arith.constant 71 : index
    %c0_222 = arith.constant 0 : index
    %268 = vector.load %arg19[%c71_221, %c0_222] : memref<80x128xf32, #tpu.memory_space<vmem>>, vector<1x128xf32>
    %269 = arith.maximumf %267, %268 : vector<1x128xf32>
    %270 = arith.maximumf %266, %269 : vector<1x128xf32>
    %c62_223 = arith.constant 62 : index
    %c0_224 = arith.constant 0 : index
    %271 = vector.load %arg19[%c62_223, %c0_224] : memref<80x128xf32, #tpu.memory_space<vmem>>, vector<1x128xf32>
    %c63 = arith.constant 63 : index
    %c0_225 = arith.constant 0 : index
    %272 = vector.load %arg19[%c63, %c0_225] : memref<80x128xf32, #tpu.memory_space<vmem>>, vector<1x128xf32>
    %273 = arith.maximumf %271, %272 : vector<1x128xf32>
    %c72 = arith.constant 72 : index
    %c0_226 = arith.constant 0 : index
    %274 = vector.load %arg19[%c72, %c0_226] : memref<80x128xf32, #tpu.memory_space<vmem>>, vector<1x128xf32>
    %c73 = arith.constant 73 : index
    %c0_227 = arith.constant 0 : index
    %275 = vector.load %arg19[%c73, %c0_227] : memref<80x128xf32, #tpu.memory_space<vmem>>, vector<1x128xf32>
    %276 = arith.maximumf %274, %275 : vector<1x128xf32>
    %277 = arith.maximumf %273, %276 : vector<1x128xf32>
    %c64_228 = arith.constant 64 : index
    %c0_229 = arith.constant 0 : index
    %278 = vector.load %arg19[%c64_228, %c0_229] : memref<80x128xf32, #tpu.memory_space<vmem>>, vector<1x128xf32>
    %c65 = arith.constant 65 : index
    %c0_230 = arith.constant 0 : index
    %279 = vector.load %arg19[%c65, %c0_230] : memref<80x128xf32, #tpu.memory_space<vmem>>, vector<1x128xf32>
    %280 = arith.maximumf %278, %279 : vector<1x128xf32>
    %c74 = arith.constant 74 : index
    %c0_231 = arith.constant 0 : index
    %281 = vector.load %arg19[%c74, %c0_231] : memref<80x128xf32, #tpu.memory_space<vmem>>, vector<1x128xf32>
    %c75 = arith.constant 75 : index
    %c0_232 = arith.constant 0 : index
    %282 = vector.load %arg19[%c75, %c0_232] : memref<80x128xf32, #tpu.memory_space<vmem>>, vector<1x128xf32>
    %283 = arith.maximumf %281, %282 : vector<1x128xf32>
    %284 = arith.maximumf %280, %283 : vector<1x128xf32>
    %c66 = arith.constant 66 : index
    %c0_233 = arith.constant 0 : index
    %285 = vector.load %arg19[%c66, %c0_233] : memref<80x128xf32, #tpu.memory_space<vmem>>, vector<1x128xf32>
    %c67 = arith.constant 67 : index
    %c0_234 = arith.constant 0 : index
    %286 = vector.load %arg19[%c67, %c0_234] : memref<80x128xf32, #tpu.memory_space<vmem>>, vector<1x128xf32>
    %287 = arith.maximumf %285, %286 : vector<1x128xf32>
    %c76 = arith.constant 76 : index
    %c0_235 = arith.constant 0 : index
    %288 = vector.load %arg19[%c76, %c0_235] : memref<80x128xf32, #tpu.memory_space<vmem>>, vector<1x128xf32>
    %c77 = arith.constant 77 : index
    %c0_236 = arith.constant 0 : index
    %289 = vector.load %arg19[%c77, %c0_236] : memref<80x128xf32, #tpu.memory_space<vmem>>, vector<1x128xf32>
    %290 = arith.maximumf %288, %289 : vector<1x128xf32>
    %291 = arith.maximumf %287, %290 : vector<1x128xf32>
    %292 = tpu.concatenate %186, %193, %200, %207, %214, %221, %228, %235, %242, %249, %256, %263, %270, %277, %284, %291 in 1 : vector<1x128xf32>, vector<1x128xf32>, vector<1x128xf32>, vector<1x128xf32>, vector<1x128xf32>, vector<1x128xf32>, vector<1x128xf32>, vector<1x128xf32>, vector<1x128xf32>, vector<1x128xf32>, vector<1x128xf32>, vector<1x128xf32>, vector<1x128xf32>, vector<1x128xf32>, vector<1x128xf32>, vector<1x128xf32> -> vector<1x2048xf32>
    %293 = arith.truncf %292 : vector<1x2048xf32> to vector<1x2048xbf16>
    %c0_237 = arith.constant 0 : index
    %c0_238 = arith.constant 0 : index
    %294 = vector.load %arg8[%c0_237, %c0_238] : memref<2048x256xbf16, #tpu.memory_space<vmem>>, vector<2048x256xbf16>
    %cst_239 = arith.constant dense<0.000000e+00> : vector<1x256xf32>
    %295 = tpu.matmul %293, %294, %cst_239 {dimension_numbers = #tpu.dot_dimension_numbers<[1], [0], [0], [1], [0, 0, 1, 1], [], []>} : vector<1x2048xbf16>, vector<2048x256xbf16>, vector<1x256xf32> -> vector<1x256xf32>
    %c0_240 = arith.constant 0 : index
    %c0_241 = arith.constant 0 : index
    %296 = vector.load %arg9[%c0_240, %c0_241] : memref<1x256xf32, #tpu.memory_space<vmem>>, vector<1x256xf32>
    %297 = arith.addf %295, %296 : vector<1x256xf32>
    %cst_242 = arith.constant 0.000000e+00 : f32
    %298 = vector.broadcast %cst_242 : f32 to vector<1x256xf32>
    %299 = arith.maximumf %297, %298 : vector<1x256xf32>
    %300 = arith.truncf %299 : vector<1x256xf32> to vector<1x256xbf16>
    %c0_243 = arith.constant 0 : index
    %c0_244 = arith.constant 0 : index
    %301 = vector.load %arg10[%c0_243, %c0_244] : memref<256x128xbf16, #tpu.memory_space<vmem>>, vector<256x128xbf16>
    %cst_245 = arith.constant dense<0.000000e+00> : vector<1x128xf32>
    %302 = tpu.matmul %300, %301, %cst_245 {dimension_numbers = #tpu.dot_dimension_numbers<[1], [0], [0], [1], [0, 0, 1, 1], [], []>} : vector<1x256xbf16>, vector<256x128xbf16>, vector<1x128xf32> -> vector<1x128xf32>
    %c0_246 = arith.constant 0 : index
    %c0_247 = arith.constant 0 : index
    %303 = vector.load %arg11[%c0_246, %c0_247] : memref<1x128xf32, #tpu.memory_space<vmem>>, vector<1x128xf32>
    %304 = arith.addf %302, %303 : vector<1x128xf32>
    %c0_248 = arith.constant 0 : index
    %c0_249 = arith.constant 0 : index
    %c0_250 = arith.constant 0 : index
    %305 = vector.load %arg12[%c0_248, %c0_249, %c0_250] : memref<1x1x128xf32, #tpu.memory_space<vmem>>, vector<1x1x128xf32>
    %306 = vector.shape_cast %305 : vector<1x1x128xf32> to vector<1x128xf32>
    %307 = vector.shape_cast %304 : vector<1x128xf32> to vector<1x1x128xf32>
    tpu.vector_store %arg12[%c0_248, %c0_249, %c0_250], %307 {strides = array<i32>} : memref<1x1x128xf32, #tpu.memory_space<vmem>>, vector<1x1x128xf32>,
    return
  }
  func.func @transform_0(%arg0: i32) -> (i32, i32) {
    %c0_i32 = arith.constant 0 : i32
    %c0_i32_0 = arith.constant 0 : i32
    return %arg0, %c0_i32 : i32, i32
  }
  func.func @transform_1(%arg0: i32) -> (i32, i32) {
    %c0_i32 = arith.constant 0 : i32
    %c0_i32_0 = arith.constant 0 : i32
    %c0_i32_1 = arith.constant 0 : i32
    return %c0_i32, %c0_i32_0 : i32, i32
  }
  func.func @transform_2(%arg0: i32) -> (i32, i32) {
    %c0_i32 = arith.constant 0 : i32
    %c0_i32_0 = arith.constant 0 : i32
    %c0_i32_1 = arith.constant 0 : i32
    return %c0_i32, %c0_i32_0 : i32, i32
  }
  func.func @transform_3(%arg0: i32) -> (i32, i32) {
    %c0_i32 = arith.constant 0 : i32
    %c0_i32_0 = arith.constant 0 : i32
    %c0_i32_1 = arith.constant 0 : i32
    return %c0_i32, %c0_i32_0 : i32, i32
  }
  func.func @transform_4(%arg0: i32) -> (i32, i32) {
    %c0_i32 = arith.constant 0 : i32
    %c0_i32_0 = arith.constant 0 : i32
    %c0_i32_1 = arith.constant 0 : i32
    return %c0_i32, %c0_i32_0 : i32, i32
  }
  func.func @transform_5(%arg0: i32) -> (i32, i32) {
    %c0_i32 = arith.constant 0 : i32
    %c0_i32_0 = arith.constant 0 : i32
    %c0_i32_1 = arith.constant 0 : i32
    return %c0_i32, %c0_i32_0 : i32, i32
  }
  func.func @transform_6(%arg0: i32) -> (i32, i32) {
    %c0_i32 = arith.constant 0 : i32
    %c0_i32_0 = arith.constant 0 : i32
    %c0_i32_1 = arith.constant 0 : i32
    return %c0_i32, %c0_i32_0 : i32, i32
  }
  func.func @transform_7(%arg0: i32) -> (i32, i32) {
    %c0_i32 = arith.constant 0 : i32
    %c0_i32_0 = arith.constant 0 : i32
    %c0_i32_1 = arith.constant 0 : i32
    return %c0_i32, %c0_i32_0 : i32, i32
  }
  func.func @transform_8(%arg0: i32) -> (i32, i32) {
    %c0_i32 = arith.constant 0 : i32
    %c0_i32_0 = arith.constant 0 : i32
    %c0_i32_1 = arith.constant 0 : i32
    return %c0_i32, %c0_i32_0 : i32, i32
  }
  func.func @transform_9(%arg0: i32) -> (i32, i32) {
    %c0_i32 = arith.constant 0 : i32
    %c0_i32_0 = arith.constant 0 : i32
    %c0_i32_1 = arith.constant 0 : i32
    return %c0_i32, %c0_i32_0 : i32, i32
  }
  func.func @transform_10(%arg0: i32) -> (i32, i32) {
    %c0_i32 = arith.constant 0 : i32
    %c0_i32_0 = arith.constant 0 : i32
    %c0_i32_1 = arith.constant 0 : i32
    return %c0_i32, %c0_i32_0 : i32, i32
  }
  func.func @transform_11(%arg0: i32) -> (i32, i32, i32) {
    %c0_i32 = arith.constant 0 : i32
    %c0_i32_0 = arith.constant 0 : i32
    %c0_i32_1 = arith.constant 0 : i32
    return %arg0, %c0_i32, %c0_i32_0 : i32, i32, i32
  }
}

</mosaic_0001>

<bundles_post_ra>
// kernel: hyper_cnn_forward.1
= control target key start
LH: loop header
LB: loop body
LE: loop exit
PB: predicated region body
PF: predicated region fallthrough
CT: control target
= control target key end

     0   :  { %s16622_s0 = inlined_call_operand.vmem [shape: bf16[2048,128], index: 0, kind: input, shape index: {}]   ;;  %s16623_s1 = inlined_call_operand.vmem [shape: bf16[128,32], index: 1, kind: input, shape index: {}]   ;;  %s16624_s2 = inlined_call_operand.vmem [shape: f32[1,32], index: 2, kind: input, shape index: {}]   ;;  %s16625_s3 = inlined_call_operand.vmem [shape: bf16[800,64], index: 3, kind: input, shape index: {}]   ;;  %s16626_s4 = inlined_call_operand.vmem [shape: f32[1,64], index: 4, kind: input, shape index: {}]   ;;  %s16627_s5 = inlined_call_operand.vmem [shape: bf16[576,128], index: 5, kind: input, shape index: {}]   ;;  %s16628_s6 = inlined_call_operand.vmem [shape: f32[1,128], index: 6, kind: input, shape index: {}]   ;;  %s16629_s7 = inlined_call_operand.vmem [shape: bf16[2048,256], index: 7, kind: input, shape index: {}]   ;;  %s16630_s8 = inlined_call_operand.vmem [shape: f32[1,256], index: 8, kind: input, shape index: {}]   ;;  %s16631_s9 = inlined_call_operand.vmem [shape: bf16[256,128], index: 9, kind: input, shape index: {}]   ;;  %s16632_s10 = inlined_call_operand.vmem [shape: f32[1,128], index: 10, kind: input, shape index: {}]   ;;  %s16633_s11 = inlined_call_operand.hbm [shape: f32[2,1,128], index: 11, kind: output, shape index: {}]  }
   0x1   :  { %16665 = sst [smem:[#allocation64_spill]] %s16622_s0 }
   0x2   :  { %16 = vsyncpa [#allocation10], 0 }
   0x3   :  { %18 = vsyncpa [#allocation10 + $0x1], 0  ;;  %s12267_s17 = smov 0   ;;  %s12269_s18 = smov 0  }
   0x4   :  { %s12271_s19 = smov 0   ;;  %s12273_s20 = smov 0  }
   0x5 LB: > { %s12288_s21 = sadd.s32 4294967295, %s12198_s20   ;;  %s10058_s22 = sadd.s32 4294967294, %s12198_s20   ;;  %s12198_s20 = sphi %s12273_s20, %s16884_s20   ;;  %s12194_s19 = sphi %s12271_s19, %s16883_s19   ;;  %s12190_s18 = sphi %s12269_s18, %s16882_s18   ;;  %s12186_s17 = sphi %s12267_s17, %s16881_s17  }
   0x6   : > { %s12292_s23 = sadd.s32 1, %s12198_s20   ;;  %s267_s24 = sadd.s32 1, %s12194_s19 }
   0x7   : > { %s264_s25 = ssub.s32 %s12198_s20, %s12292_s23  ;;  %p277_p0 = scmp.ne.s32.totalorder %s12194_s19, %s12190_s18 }
   0x8   : > { %p265_p1 = scmp.eq.s32.totalorder %s264_s25, 0  ;;  %p278_p2 = scmp.eq.s32.totalorder %s12288_s21, 1 }
   0x9   : > { %p283_p3 = scmp.ne.s32.totalorder %s12190_s18, %s12186_s17  ;;  %p284_p4 = scmp.eq.s32.totalorder %s10058_s22, 1 }
   0xa   : > { %s12303_s26 = scalar_select %p265_p1, %s12194_s19, %s267_s24  }
   0xb   : > { %p12305_p5 = por %p278_p2, %p277_p0  ;;  %p12309_p6 = por %p284_p4, %p283_p3 }
   0xc   : > { %p10061_p7 = scmp.ge.s32.totalorder %s12198_s20, 1  ;;  %p341_p8 = scmp.lt.s32.totalorder %s12198_s20, 3 }
   0xe   : > { %p342_p9 = pnand %p10061_p7, %p341_p8 }
  0x10   : > { %345 = sbr.rel (%p342_p9) target bundleno = 2947 (0xb83), region = 64 }
  0x17   : > { %v11442_v0 = vld [vmem:[%s16623_s1] sm:$0xff]   ;;  %s10062_s12 = sshll.u32 %s12288_s21, 7  ;;  %v11443_v1 = vld [vmem:[%s16623_s1 + $0x8] sm:$0xff]   ;;  %v11444_v2 = vld [vmem:[%s16623_s1 + $0x10] sm:$0xff]   ;;  %s16668_s0 = sld [smem:[#allocation64_spill]]  ;;  %vm387_vm0 = vcmask 257024  }
  0x18   : > { %p381_p10 = scmp.lt.s32.totalorder %s10062_s12, 255  ;;  %11151 = vmatprep.subr.bf16.mxu1 %v11442_v0  ;;  %10935 = vmatprep.subr.bf16.mxu0 %v11442_v0  ;;  %v11445_v3 = vld [vmem:[%s16623_s1 + $0x18] sm:$0xff]   ;;  %v11446_v5 = vld [vmem:[%s16623_s1 + $0x20] sm:$0xff]   ;;  %v11447_v6 = vld [vmem:[%s16623_s1 + $0x28] sm:$0xff]   ;;  %vm1841_vm1 = vcmask 1042432   ;;  %vm1842_vm2 = vcmask 1046532  }
  0x19   : > { %11159 = vmatpush3.bf16.msra.mxu1 %v11442_v0  ;;  %10936 = vmatpush3.bf16.msra.mxu0 %v11442_v0  ;;  %v11448_v8 = vld [vmem:[%s16623_s1 + $0x30] sm:$0xff]   ;;  %v11449_v9 = vld [vmem:[%s16623_s1 + $0x38] sm:$0xff]   ;;  %vm1852_vm3 = vcmask 257027   ;;  %vm1820_vm4 = vcmask 1040384   ;;  %vm1821_vm5 = vcmask 1044484   ;;  %vm1831_vm6 = vcmask 257025   ;;  %vm12928_vm9 = vmor %vm1841_vm1, %vm1842_vm2 }
  0x1a   : > { %s16886_s12 = smov (!%p381_p10, %s10062_s12), 255  ;;  %11152 = vmatprep.subr.bf16.mxu1 %v11443_v1  ;;  %10937 = vmatprep.subr.bf16.mxu0 %v11443_v1  ;;  %vm1855_vm7 = vcmask 256000   ;;  %vm1834_vm8 = vcmask 253952   ;;  %vm12936_vm10 = vmor %vm1820_vm4, %vm1821_vm5  ;;  %vm2281_vm11 = vcmask 261120   ;;  %vm2971_vm12 = vcmask 1046528   ;;  %s12201_s25 = smov 64  }
  0x1b   : > { %s10063_s22 = sshll.u32 %s16886_s12, 2  ;;  %vm2486_vm13 = vsmask.f32 7424  ;;  %vm3817_vm14 = vcmask 1045504   ;;  %s12202_s30 = smov 32   ;;  %vm3098_vm2 = vcmask 785920  }
  0x1c   : > { %vm3303_vm15 = vsmask.f32 6400  ;;  %vm4431_vm4 = vcmask 1043456   ;;  %vm4781_vm5 = vcmask 1041408   ;;  %s378_s14 = sand.u32 1, %s12190_s18   ;;  %s10683_s16 = sshll.u32 %s12288_s21, 4 }
  0x1d   : > { %s12328_s29 = scalar_lea.vmem %s16668_s0, %s10063_s22  ;;  %11160 = vmatpush3.bf16.msra.mxu1 %v11443_v1  ;;  %10938 = vmatpush3.bf16.msra.mxu0 %v11443_v1  ;;  %s16580_s13 = scalar_lea.hbm %s16633_s11, %s10683_s16 }
  0x1e   : > { %11153 = vmatprep.subr.bf16.mxu1 %v11444_v2  ;;  %v11450_v4 = vld [vmem:[%s12328_s29 + $0x40] sm:$0xff]   ;;  %10939 = vmatprep.subr.bf16.mxu0 %v11444_v2  ;;  %v11451_v10 = vld [vmem:[%s12328_s29 + $0x48] sm:$0xff]   ;;  %v11452_v11 = vld [vmem:[%s12328_s29 + $0x50] sm:$0xff]   ;;  %s9991_s12 = scalar_lea.sflag [#allocation10], %s378_s14  ;;  %s12206_s21 = smov [#allocation9]  }
  0x1f   : > { %10967 = vmatprep.mubr.bf16.mxu1 %v11450_v4  ;;  %v11458_v7 = vld [vmem:[%s12328_s29] sm:$0xff]   ;;  %v11460_v12 = vld [vmem:[%s12328_s29 + $0x8] sm:$0xff]   ;;  %v11462_v13 = vld [vmem:[%s12328_s29 + $0x10] sm:$0xff]   ;;  %s12140_s15 = sshll.u32 %s12206_s21, 4  ;;  %s12141_s15 = int_to_ptr.vmem [resolvable:$false] %s12140_s15 }
  0x20   : > { %10951 = vmatprep.mubr.bf16.mxu0 %v11458_v7  ;;  %v11453_v14 = vld [vmem:[%s12328_s29 + $0x58] sm:$0xff]   ;;  %v11454_v15 = vld [vmem:[%s12328_s29 + $0x60] sm:$0xff]   ;;  %v11455_v18 = vld [vmem:[%s12328_s29 + $0x68] sm:$0xff]   ;;  %s12142_s0 = scalar_lea.vmem %s12141_s15, 32 }
  0x21   : > { %11161 = vmatpush3.bf16.msra.mxu1 %v11444_v2  ;;  %10940 = vmatpush3.bf16.msra.mxu0 %v11444_v2  ;;  %v11464_v16 = vld [vmem:[%s12328_s29 + $0x18] sm:$0xff]   ;;  %v11466_v17 = vld [vmem:[%s12328_s29 + $0x20] sm:$0xff]   ;;  %v11456_v19 = vld [vmem:[%s12328_s29 + $0x70] sm:$0xff]  }
  0x22   : > { %11154 = vmatprep.subr.bf16.mxu1 %v11445_v3  ;;  %10941 = vmatprep.subr.bf16.mxu0 %v11445_v3  ;;  %v11468_v20 = vld [vmem:[%s12328_s29 + $0x28] sm:$0xff]   ;;  %v11470_v21 = vld [vmem:[%s12328_s29 + $0x30] sm:$0xff]   ;;  %v11457_v22 = vld [vmem:[%s12328_s29 + $0x78] sm:$0xff]  }
  0x23   : > { %v11472_v23 = vld [vmem:[%s12328_s29 + $0x38] sm:$0xff]   ;;  %v11459_v24 = vld [vmem:[%s12328_s29 + $0x80] sm:$0xff]   ;;  %v11461_v25 = vld [vmem:[%s12328_s29 + $0x88] sm:$0xff]  }
  0x24   : > { %v11463_v26 = vld [vmem:[%s12328_s29 + $0x90] sm:$0xff]   ;;  %v11465_v27 = vld [vmem:[%s12328_s29 + $0x98] sm:$0xff]   ;;  %v11467_v28 = vld [vmem:[%s12328_s29 + $0xa0] sm:$0xff]  }
  0x25   : > { %11162 = vmatpush3.bf16.msra.mxu1 %v11445_v3  ;;  %10942 = vmatpush3.bf16.msra.mxu0 %v11445_v3  ;;  %v11469_v29 = vld [vmem:[%s12328_s29 + $0xa8] sm:$0xff]   ;;  %v11471_v30 = vld [vmem:[%s12328_s29 + $0xb0] sm:$0xff]   ;;  %v11473_v31 = vld [vmem:[%s12328_s29 + $0xb8] sm:$0xff]  }
  0x26   : > { %11155 = vmatprep.subr.bf16.mxu1 %v11446_v5  ;;  %10943 = vmatprep.subr.bf16.mxu0 %v11446_v5  ;;  %v11474_v32 = vld [vmem:[%s12328_s29 + $0xc0] sm:$0xff]   ;;  %v11475_v33 = vld [vmem:[%s12328_s29 + $0xc8] sm:$0xff]   ;;  %v11476_v34 = vld [vmem:[%s12328_s29 + $0xd0] sm:$0xff]  }
  0x27   : > { %v11477_v35 = vld [vmem:[%s12328_s29 + $0xd8] sm:$0xff]   ;;  %v11478_v36 = vld [vmem:[%s12328_s29 + $0xe0] sm:$0xff]   ;;  %v11479_v37 = vld [vmem:[%s12328_s29 + $0xe8] sm:$0xff]  }
  0x28   : > { %v11480_v38 = vld [vmem:[%s12328_s29 + $0xf0] sm:$0xff]   ;;  %v11481_v39 = vld [vmem:[%s12328_s29 + $0xf8] sm:$0xff]   ;;  %v11482_v40 = vld [vmem:[%s12328_s29 + $0x100] sm:$0xff]  }
  0x29   : > { %11163 = vmatpush3.bf16.msra.mxu1 %v11446_v5  ;;  %10944 = vmatpush3.bf16.msra.mxu0 %v11446_v5  ;;  %v11483_v41 = vld [vmem:[%s12328_s29 + $0x108] sm:$0xff]   ;;  %v11484_v42 = vld [vmem:[%s12328_s29 + $0x110] sm:$0xff]   ;;  %v11485_v43 = vld [vmem:[%s12328_s29 + $0x118] sm:$0xff]  }
  0x2a   : > { %11156 = vmatprep.subr.bf16.mxu1 %v11447_v6  ;;  %10945 = vmatprep.subr.bf16.mxu0 %v11447_v6  ;;  %v11486_v44 = vld [vmem:[%s12328_s29 + $0x120] sm:$0xff]   ;;  %v11487_v45 = vld [vmem:[%s12328_s29 + $0x128] sm:$0xff]   ;;  %v11488_v46 = vld [vmem:[%s12328_s29 + $0x130] sm:$0xff]  }
  0x2b   : > { %v11489_v47 = vld [vmem:[%s12328_s29 + $0x138] sm:$0xff]   ;;  %v11490_v48 = vld [vmem:[%s12328_s29 + $0x140] sm:$0xff]   ;;  %v11491_v49 = vld [vmem:[%s12328_s29 + $0x148] sm:$0xff]  }
  0x2c   : > { %v11492_v50 = vld [vmem:[%s12328_s29 + $0x150] sm:$0xff]   ;;  %v11493_v51 = vld [vmem:[%s12328_s29 + $0x158] sm:$0xff]   ;;  %v11494_v52 = vld [vmem:[%s12328_s29 + $0x160] sm:$0xff]  }
  0x2d   : > { %11164 = vmatpush3.bf16.msra.mxu1 %v11447_v6  ;;  %10946 = vmatpush3.bf16.msra.mxu0 %v11447_v6  ;;  %v11495_v53 = vld [vmem:[%s12328_s29 + $0x168] sm:$0xff]   ;;  %v11496_v54 = vld [vmem:[%s12328_s29 + $0x170] sm:$0xff]   ;;  %v11497_v55 = vld [vmem:[%s12328_s29 + $0x178] sm:$0xff]  }
  0x2e   : > { %11157 = vmatprep.subr.bf16.mxu1 %v11448_v8  ;;  %10947 = vmatprep.subr.bf16.mxu0 %v11448_v8  ;;  %v11498_v56 = vld [vmem:[%s12328_s29 + $0x180] sm:$0xff]   ;;  %v11499_v57 = vld [vmem:[%s12328_s29 + $0x188] sm:$0xff]   ;;  %v11500_v58 = vld [vmem:[%s12328_s29 + $0x190] sm:$0xff]  }
  0x2f   : > { %v11501_v59 = vld [vmem:[%s12328_s29 + $0x198] sm:$0xff]   ;;  %v11502_v60 = vld [vmem:[%s12328_s29 + $0x1a0] sm:$0xff]   ;;  %v11503_v61 = vld [vmem:[%s12328_s29 + $0x1a8] sm:$0xff]  }
  0x30   : > { %v11504_v62 = vld [vmem:[%s12328_s29 + $0x1b0] sm:$0xff]   ;;  %v11505_v63 = vld [vmem:[%s12328_s29 + $0x1b8] sm:$0xff]   ;;  %v11506_v0 = vld [vmem:[%s12328_s29 + $0x1c0] sm:$0xff]  }
  0x31   : > { %11165 = vmatpush3.bf16.msra.mxu1 %v11448_v8  ;;  %10948 = vmatpush3.bf16.msra.mxu0 %v11448_v8  ;;  %v11507_v1 = vld [vmem:[%s12328_s29 + $0x1c8] sm:$0xff]   ;;  %v11508_v2 = vld [vmem:[%s12328_s29 + $0x1d0] sm:$0xff]   ;;  %v11509_v3 = vld [vmem:[%s12328_s29 + $0x1d8] sm:$0xff]  }
  0x32   : > { %11158 = vmatprep.subr.bf16.mxu1 %v11449_v9  ;;  %10949 = vmatprep.subr.bf16.mxu0 %v11449_v9  ;;  %v11510_v4 = vld [vmem:[%s12328_s29 + $0x1e0] sm:$0xff]   ;;  %v11511_v5 = vld [vmem:[%s12328_s29 + $0x1e8] sm:$0xff]   ;;  %v11512_v6 = vld [vmem:[%s12328_s29 + $0x1f0] sm:$0xff]  }
  0x35   : > { %11166 = vmatpush3.bf16.msra.mxu1 %v11449_v9  ;;  %10950 = vmatpush3.bf16.msra.mxu0 %v11449_v9 }
  0x38   : > { %10968 = vmatmul.mubr.bf16.vlgmr.msra.gmra.mrb[0].mxu1 %v11451_v10  ;;  %10952 = vmatmul.mubr.bf16.vlgmr.msra.gmra.mrb[0].mxu0 %v11460_v12  ;;  %v11513_v10 = vld [vmem:[%s12328_s29 + $0x1f8] sm:$0xff]   ;;  %s12203_s29 = smov 96  }
  0x39   : > { %10971 = vmatprep.mubr.bf16.mxu1 %v11452_v11  ;;  %10955 = vmatprep.mubr.bf16.mxu0 %v11462_v13 }
  0x40   : > { %10972 = vmatmul.mubr.bf16.gmra.mrb[4].mxu1 %v11453_v14  ;;  %10956 = vmatmul.mubr.bf16.gmra.mrb[4].mxu0 %v11464_v16 }
  0x41   : > { %10975 = vmatprep.mubr.bf16.mxu1 %v11454_v15  ;;  %10959 = vmatprep.mubr.bf16.mxu0 %v11466_v17 }
  0x48   : > { %10976 = vmatmul.mubr.bf16.gmra.mrb[8].mxu1 %v11455_v18  ;;  %10960 = vmatmul.mubr.bf16.gmra.mrb[8].mxu0 %v11468_v20 }
  0x49   : > { %10979 = vmatprep.mubr.bf16.mxu1 %v11456_v19  ;;  %10963 = vmatprep.mubr.bf16.mxu0 %v11470_v21 }
  0x50   : > { %10980 = vmatmul.mubr.bf16.gmra.mrb[12].mxu1 %v11457_v22  ;;  %10964 = vmatmul.mubr.bf16.gmra.mrb[12].mxu0 %v11472_v23 }
  0x51   : > { %10983 = vmatprep.mubr.bf16.mxu1 %v11459_v24 }
  0x58   : > { %10984 = vmatmul.mubr.bf16.gmra.mrb[16].mxu1 %v11461_v25 }
  0x59   : > { %10987 = vmatprep.mubr.bf16.mxu1 %v11463_v26 }
  0x60   : > { %10988 = vmatmul.mubr.bf16.gmra.mrb[20].mxu1 %v11465_v27 }
  0x61   : > { %10991 = vmatprep.mubr.bf16.mxu1 %v11467_v28 }
  0x68   : > { %10992 = vmatmul.mubr.bf16.gmra.mrb[24].mxu1 %v11469_v29 }
  0x69   : > { %10995 = vmatprep.mubr.bf16.mxu1 %v11471_v30 }
  0x70   : > { %10996 = vmatmul.mubr.bf16.gmra.mrb[28].mxu1 %v11473_v31 }
  0x71   : > { %10999 = vmatprep.mubr.bf16.mxu1 %v11474_v32 }
  0x78   : > { %11000 = vmatmul.mubr.bf16.gmra.mrb[32].mxu1 %v11475_v33 }
  0x79   : > { %11003 = vmatprep.mubr.bf16.mxu1 %v11476_v34 }
  0x80   : > { %11004 = vmatmul.mubr.bf16.gmra.mrb[36].mxu1 %v11477_v35 }
  0x81   : > { %11007 = vmatprep.mubr.bf16.mxu1 %v11478_v36 }
  0x88   : > { %11008 = vmatmul.mubr.bf16.gmra.mrb[40].mxu1 %v11479_v37 }
  0x89   : > { %11011 = vmatprep.mubr.bf16.mxu1 %v11480_v38 }
  0x90   : > { %11012 = vmatmul.mubr.bf16.gmra.mrb[44].mxu1 %v11481_v39 }
  0x91   : > { %11015 = vmatprep.mubr.bf16.mxu1 %v11482_v40  ;;  %v12470_v40 = vld [vmem:[%s16624_s2] ss:$0 sm:$0xff] }
  0x98   : > { %11016 = vmatmul.mubr.bf16.gmra.mrb[48].mxu1 %v11483_v41 }
  0x99   : > { %11019 = vmatprep.mubr.bf16.mxu1 %v11484_v42 }
  0xa0   : > { %11020 = vmatmul.mubr.bf16.gmra.mrb[52].mxu1 %v11485_v43 }
  0xa1   : > { %11023 = vmatprep.mubr.bf16.mxu1 %v11486_v44  ;;  %v16634_v44 = vmov 0  }
  0xa2   : > { %395 = vst.msk [vmem:[#allocation2 + $0x1c] sm:$0xf] %vm387_vm0, %v16634_v44  ;;  %388 = vst.msk [vmem:[#allocation2] sm:$0xf] %vm387_vm0, %v16634_v44  ;;  %5732 = vmatprep.subr.bf16.mxu1 %v16634_v44 }
  0xa3   : > { %389 = vst.msk [vmem:[#allocation2 + $0x4] sm:$0xf] %vm387_vm0, %v16634_v44  ;;  %390 = vst.msk [vmem:[#allocation2 + $0x8] sm:$0xf] %vm387_vm0, %v16634_v44 }
  0xa4   : > { %391 = vst.msk [vmem:[#allocation2 + $0xc] sm:$0xf] %vm387_vm0, %v16634_v44  ;;  %392 = vst.msk [vmem:[#allocation2 + $0x10] sm:$0xf] %vm387_vm0, %v16634_v44 }
  0xa5   : > { %393 = vst.msk [vmem:[#allocation2 + $0x14] sm:$0xf] %vm387_vm0, %v16634_v44  ;;  %394 = vst.msk [vmem:[#allocation2 + $0x18] sm:$0xf] %vm387_vm0, %v16634_v44 }
  0xa6   : > { %396 = vst.msk [vmem:[#allocation2 + $0x20] sm:$0xf] %vm387_vm0, %v16634_v44  ;;  %397 = vst.msk [vmem:[#allocation2 + $0x24] sm:$0xf] %vm387_vm0, %v16634_v44 }
  0xa7   : > { %398 = vst.msk [vmem:[#allocation2 + $0x28] sm:$0xf] %vm387_vm0, %v16634_v44  ;;  %399 = vst.msk [vmem:[#allocation2 + $0x2c] sm:$0xf] %vm387_vm0, %v16634_v44 }
  0xa8   : > { %11024 = vmatmul.mubr.bf16.gmra.mrb[56].mxu1 %v11487_v45  ;;  %400 = vst.msk [vmem:[#allocation2 + $0x30] sm:$0xf] %vm387_vm0, %v16634_v44  ;;  %401 = vst.msk [vmem:[#allocation2 + $0x34] sm:$0xf] %vm387_vm0, %v16634_v44 }
  0xa9   : > { %11027 = vmatprep.mubr.bf16.mxu1 %v11488_v46  ;;  %402 = vst.msk [vmem:[#allocation2 + $0x38] sm:$0xf] %vm387_vm0, %v16634_v44  ;;  %403 = vst.msk [vmem:[#allocation2 + $0x3c] sm:$0xf] %vm387_vm0, %v16634_v44 }
  0xaa   : > { %404 = vst.msk [vmem:[#allocation2 + $0x40] sm:$0xf] %vm387_vm0, %v16634_v44  ;;  %405 = vst.msk [vmem:[#allocation2 + $0x44] sm:$0xf] %vm387_vm0, %v16634_v44 }
  0xab   : > { %406 = vst.msk [vmem:[#allocation2 + $0x48] sm:$0xf] %vm387_vm0, %v16634_v44  ;;  %407 = vst.msk [vmem:[#allocation2 + $0x4c] sm:$0xf] %vm387_vm0, %v16634_v44 }
  0xac   : > { %408 = vst.msk [vmem:[#allocation2 + $0x50] sm:$0xf] %vm387_vm0, %v16634_v44  ;;  %409 = vst.msk [vmem:[#allocation2 + $0x54] sm:$0xf] %vm387_vm0, %v16634_v44 }
  0xad   : > { %410 = vst.msk [vmem:[#allocation2 + $0x58] sm:$0xf] %vm387_vm0, %v16634_v44  ;;  %411 = vst.msk [vmem:[#allocation2 + $0x5c] sm:$0xf] %vm387_vm0, %v16634_v44 }
  0xae   : > { %412 = vst.msk [vmem:[#allocation2 + $0x60] sm:$0xf] %vm387_vm0, %v16634_v44  ;;  %413 = vst.msk [vmem:[#allocation2 + $0x64] sm:$0xf] %vm387_vm0, %v16634_v44 }
  0xaf   : > { %414 = vst.msk [vmem:[#allocation2 + $0x68] sm:$0xf] %vm387_vm0, %v16634_v44  ;;  %415 = vst.msk [vmem:[#allocation2 + $0x6c] sm:$0xf] %vm387_vm0, %v16634_v44 }
  0xb0   : > { %11028 = vmatmul.mubr.bf16.gmra.mrb[60].mxu1 %v11489_v47  ;;  %416 = vst.msk [vmem:[#allocation2 + $0x70] sm:$0xf] %vm387_vm0, %v16634_v44  ;;  %417 = vst.msk [vmem:[#allocation2 + $0x74] sm:$0xf] %vm387_vm0, %v16634_v44 }
  0xb1   : > { %11031 = vmatprep.mubr.bf16.mxu1 %v11490_v48  ;;  %418 = vst.msk [vmem:[#allocation2 + $0x78] sm:$0xf] %vm387_vm0, %v16634_v44  ;;  %419 = vst.msk [vmem:[#allocation2 + $0x7c] sm:$0xf] %vm387_vm0, %v16634_v44 }
  0xb2   : > { %420 = vst.msk [vmem:[#allocation2 + $0x80] sm:$0xf] %vm387_vm0, %v16634_v44  ;;  %421 = vst.msk [vmem:[#allocation2 + $0x84] sm:$0xf] %vm387_vm0, %v16634_v44 }
  0xb3   : > { %422 = vst.msk [vmem:[#allocation2 + $0x88] sm:$0xf] %vm387_vm0, %v16634_v44  ;;  %423 = vst.msk [vmem:[#allocation2 + $0x8c] sm:$0xf] %vm387_vm0, %v16634_v44 }
  0xb4   : > { %424 = vst.msk [vmem:[#allocation2 + $0x90] sm:$0xf] %vm387_vm0, %v16634_v44  ;;  %425 = vst.msk [vmem:[#allocation2 + $0x94] sm:$0xf] %vm387_vm0, %v16634_v44 }
  0xb5   : > { %426 = vst.msk [vmem:[#allocation2 + $0x98] sm:$0xf] %vm387_vm0, %v16634_v44  ;;  %427 = vst.msk [vmem:[#allocation2 + $0x9c] sm:$0xf] %vm387_vm0, %v16634_v44 }
  0xb6   : > { %428 = vst.msk [vmem:[#allocation2 + $0xa0] sm:$0xf] %vm387_vm0, %v16634_v44  ;;  %429 = vst.msk [vmem:[#allocation2 + $0xa4] sm:$0xf] %vm387_vm0, %v16634_v44 }
  0xb7   : > { %430 = vst.msk [vmem:[#allocation2 + $0xa8] sm:$0xf] %vm387_vm0, %v16634_v44  ;;  %431 = vst.msk [vmem:[#allocation2 + $0xac] sm:$0xf] %vm387_vm0, %v16634_v44 }
  0xb8   : > { %11032 = vmatmul.mubr.bf16.gmra.mrb[64].mxu1 %v11491_v49  ;;  %432 = vst.msk [vmem:[#allocation2 + $0xb0] sm:$0xf] %vm387_vm0, %v16634_v44  ;;  %433 = vst.msk [vmem:[#allocation2 + $0xb4] sm:$0xf] %vm387_vm0, %v16634_v44 }
  0xb9   : > { %11035 = vmatprep.mubr.bf16.mxu1 %v11492_v50  ;;  %434 = vst.msk [vmem:[#allocation2 + $0xb8] sm:$0xf] %vm387_vm0, %v16634_v44  ;;  %435 = vst.msk [vmem:[#allocation2 + $0xbc] sm:$0xf] %vm387_vm0, %v16634_v44 }
  0xba   : > { %436 = vst.msk [vmem:[#allocation2 + $0xc0] sm:$0xf] %vm387_vm0, %v16634_v44  ;;  %437 = vst.msk [vmem:[#allocation2 + $0xc4] sm:$0xf] %vm387_vm0, %v16634_v44 }
  0xbb   : > { %438 = vst.msk [vmem:[#allocation2 + $0xc8] sm:$0xf] %vm387_vm0, %v16634_v44 }
  0xc0   : > { %11036 = vmatmul.mubr.bf16.gmra.mrb[68].mxu1 %v11493_v51 }
  0xc1   : > { %11039 = vmatprep.mubr.bf16.mxu1 %v11494_v52 }
  0xc8   : > { %11040 = vmatmul.mubr.bf16.gmra.mrb[72].mxu1 %v11495_v53 }
  0xc9   : > { %11043 = vmatprep.mubr.bf16.mxu1 %v11496_v54 }
  0xd0   : > { %11044 = vmatmul.mubr.bf16.gmra.mrb[76].mxu1 %v11497_v55 }
  0xd1   : > { %11047 = vmatprep.mubr.bf16.mxu1 %v11498_v56 }
  0xd8   : > { %11048 = vmatmul.mubr.bf16.gmra.mrb[80].mxu1 %v11499_v57 }
  0xd9   : > { %11051 = vmatprep.mubr.bf16.mxu1 %v11500_v58 }
  0xe0   : > { %11052 = vmatmul.mubr.bf16.gmra.mrb[84].mxu1 %v11501_v59 }
  0xe1   : > { %11055 = vmatprep.mubr.bf16.mxu1 %v11502_v60 }
  0xe8   : > { %11056 = vmatmul.mubr.bf16.gmra.mrb[88].mxu1 %v11503_v61 }
  0xe9   : > { %11059 = vmatprep.mubr.bf16.mxu1 %v11504_v62 }
  0xf0   : > { %11060 = vmatmul.mubr.bf16.gmra.mrb[92].mxu1 %v11505_v63 }
  0xf1   : > { %11063 = vmatprep.mubr.bf16.mxu1 %v11506_v0 }
  0xf8   : > { %11064 = vmatmul.mubr.bf16.gmra.mrb[96].mxu1 %v11507_v1 }
  0xf9   : > { %11067 = vmatprep.mubr.bf16.mxu1 %v11508_v2 }
 0x100   : > { %11068 = vmatmul.mubr.bf16.gmra.mrb[100].mxu1 %v11509_v3 }
 0x101   : > { %11071 = vmatprep.mubr.bf16.mxu1 %v11510_v4 }
 0x108   : > { %11072 = vmatmul.mubr.bf16.gmra.mrb[104].mxu1 %v11511_v5 }
 0x109   : > { %11075 = vmatprep.mubr.bf16.mxu1 %v11512_v6 }
 0x10b   : > { %v12408_v7 = vpop.f32.mrb[0].mxu1  ;;  %v10953_v8 = vpop.f32.mrb[0].mxu0 }
 0x10c   : > { %v12410_v9 = vpop.f32.mrb[1].mxu1  ;;  %v1064_v11 = vpop.f32.mrb[1].mxu0  ;;  %v12473_v41 = vadd.f32 %v10953_v8, %v12470_v40 }
 0x10d   : > { %v12413_v12 = vpop.f32.mrb[2].mxu1  ;;  %v10954_v13 = vpop.f32.mrb[2].mxu0  ;;  %v12476_v42 = vadd.f32 %v12470_v40, %v1064_v11 }
 0x10e   : > { %v12415_v14 = vpop.f32.mrb[3].mxu1  ;;  %v12417_v15 = vpop.f32.mrb[3].mxu0  ;;  %v12479_v43 = vadd.f32 %v10954_v13, %v12470_v40  ;;  %v1577_v47 = vmax.f32 %v12473_v41, 0.0 }
 0x10f   : > { %v1068_v46 = vadd.f32 %v12470_v40, %v12417_v15  ;;  %v1575_v50 = vmax.f32 %v12476_v42, 0.0 }
 0x110   : > { %11076 = vmatmul.mubr.bf16.gmra.mrb[108].mxu1 %v11513_v10  ;;  %v1578_v54 = vmax.f32 %v12479_v43, 0.0 }
 0x111   : > { %v1576_v58 = vmax.f32 %v1068_v46, 0.0 }
 0x113   : > { %v12419_v16 = vpop.f32.mrb[4].mxu1  ;;  %v12421_v17 = vpop.f32.mrb[4].mxu0 }
 0x114   : > { %v12423_v18 = vpop.f32.mrb[5].mxu1  ;;  %v12425_v19 = vpop.f32.mrb[5].mxu0  ;;  %v1089_v60 = vadd.f32 %v12421_v17, %v12470_v40 }
 0x115   : > { %v12427_v20 = vpop.f32.mrb[6].mxu1  ;;  %v12429_v21 = vpop.f32.mrb[6].mxu0  ;;  %v1081_v63 = vadd.f32 %v12470_v40, %v12425_v19 }
 0x116   : > { %v12431_v22 = vpop.f32.mrb[7].mxu1  ;;  %v12433_v23 = vpop.f32.mrb[7].mxu0  ;;  %v1092_v2 = vadd.f32 %v12429_v21, %v12470_v40  ;;  %v1581_v5 = vmax.f32 %v1089_v60, 0.0 }
 0x117   : > { %v1084_v8 = vadd.f32 %v12470_v40, %v12433_v23  ;;  %v1579_v11 = vmax.f32 %v1081_v63, 0.0 }
 0x118   : > { %v1582_v17 = vmax.f32 %v1092_v2, 0.0 }
 0x11b   : > { %v12435_v24 = vpop.f32.mrb[8].mxu1  ;;  %v12437_v25 = vpop.f32.mrb[8].mxu0 }
 0x11c   : > { %v12439_v26 = vpop.f32.mrb[9].mxu1  ;;  %v12441_v27 = vpop.f32.mrb[9].mxu0 }
 0x11d   : > { %v12443_v28 = vpop.f32.mrb[10].mxu1  ;;  %v12445_v29 = vpop.f32.mrb[10].mxu0 }
 0x11e   : > { %v12447_v30 = vpop.f32.mrb[11].mxu1  ;;  %v12449_v31 = vpop.f32.mrb[11].mxu0 }
 0x123   : > { %v12451_v32 = vpop.f32.mrb[12].mxu1  ;;  %v12453_v33 = vpop.f32.mrb[12].mxu0 }
 0x124   : > { %v12455_v34 = vpop.f32.mrb[13].mxu1  ;;  %v12457_v35 = vpop.f32.mrb[13].mxu0 }
 0x125   : > { %v12459_v36 = vpop.f32.mrb[14].mxu1  ;;  %v12461_v37 = vpop.f32.mrb[14].mxu0 }
 0x126   : > { %v12463_v38 = vpop.f32.mrb[15].mxu1  ;;  %v12465_v39 = vpop.f32.mrb[15].mxu0 }
 0x12b   : > { %v10985_v45 = vpop.f32.mrb[16].mxu1 }
 0x12c   : > { %v1201_v48 = vadd.f32 %v10985_v45, %v12470_v40  ;;  %v1192_v49 = vpop.f32.mrb[17].mxu1  ;;  %v1580_v45 = vmax.f32 %v1084_v8, 0.0 }
 0x12d   : > { %v1193_v51 = vadd.f32 %v12470_v40, %v1192_v49  ;;  %v10986_v52 = vpop.f32.mrb[18].mxu1  ;;  %v1097_v49 = vadd.f32 %v12470_v40, %v12441_v27 }
 0x12e   : > { %v1609_v53 = vmax.f32 %v1201_v48, 0.0  ;;  %v1204_v55 = vadd.f32 %v10986_v52, %v12470_v40  ;;  %v1195_v56 = vpop.f32.mrb[19].mxu1  ;;  %v1108_v52 = vadd.f32 %v12445_v29, %v12470_v40 }
 0x12f   : > { %v1607_v57 = vmax.f32 %v1193_v51, 0.0  ;;  %v1196_v59 = vadd.f32 %v12470_v40, %v1195_v56 }
 0x130   : > { %v12595_v61 = vmax.f32 %v1577_v47, %v1609_v53  ;;  %v1610_v62 = vmax.f32 %v1204_v55, 0.0  ;;  %v1105_v47 = vadd.f32 %v12437_v25, %v12470_v40  ;;  %v1100_v25 = vadd.f32 %v12470_v40, %v12449_v31 }
 0x131   : > { %v12599_v0 = vmax.f32 %v1575_v50, %v1607_v57  ;;  %v1608_v1 = vmax.f32 %v1196_v59, 0.0  ;;  %v1586_v60 = vmax.f32 %v1108_v52, 0.0  ;;  %v1121_v31 = vadd.f32 %v12453_v33, %v12470_v40 }
 0x132   : > { %v12603_v3 = vmax.f32 %v1578_v54, %v1610_v62  ;;  %v1585_v55 = vmax.f32 %v1105_v47, 0.0 }
 0x133   : > { %v12605_v4 = vmax.f32 %v1576_v58, %v1608_v1  ;;  %v10989_v6 = vpop.f32.mrb[20].mxu1  ;;  %v1583_v58 = vmax.f32 %v1097_v49, 0.0 }
 0x134   : > { %v1217_v10 = vadd.f32 %v10989_v6, %v12470_v40  ;;  %v1208_v13 = vpop.f32.mrb[21].mxu1 }
 0x135   : > { %v1209_v15 = vadd.f32 %v12470_v40, %v1208_v13  ;;  %v10990_v19 = vpop.f32.mrb[22].mxu1 }
 0x136   : > { %v1613_v41 = vmax.f32 %v1217_v10, 0.0  ;;  %v1220_v21 = vadd.f32 %v10990_v19, %v12470_v40  ;;  %v1211_v42 = vpop.f32.mrb[23].mxu1  ;;  %v1124_v19 = vadd.f32 %v12461_v37, %v12470_v40 }
 0x137   : > { %v1611_v43 = vmax.f32 %v1209_v15, 0.0  ;;  %v1212_v46 = vadd.f32 %v12470_v40, %v1211_v42  ;;  %v1113_v15 = vadd.f32 %v12470_v40, %v12457_v35  ;;  %v1116_v42 = vadd.f32 %v12470_v40, %v12465_v39 }
 0x138   : > { %v12615_v23 = vmax.f32 %v1581_v5, %v1613_v41  ;;  %v1614_v48 = vmax.f32 %v1220_v21, 0.0  ;;  %v1584_v5 = vmax.f32 %v1100_v25, 0.0  ;;  %v1590_v49 = vmax.f32 %v1124_v19, 0.0 }
 0x139   : > { %v12619_v50 = vmax.f32 %v1579_v11, %v1611_v43  ;;  %v1612_v51 = vmax.f32 %v1212_v46, 0.0  ;;  %v1589_v43 = vmax.f32 %v1121_v31, 0.0  ;;  %v1587_v46 = vmax.f32 %v1113_v15, 0.0 }
 0x13a   : > { %v12623_v53 = vmax.f32 %v1582_v17, %v1614_v48 }
 0x13b   : > { %v12625_v54 = vmax.f32 %v1580_v45, %v1612_v51  ;;  %v10993_v56 = vpop.f32.mrb[24].mxu1 }
 0x13c   : > { %v1233_v57 = vadd.f32 %v10993_v56, %v12470_v40  ;;  %v1224_v59 = vpop.f32.mrb[25].mxu1 }
 0x13d   : > { %v1225_v27 = vadd.f32 %v12470_v40, %v1224_v59  ;;  %v10994_v62 = vpop.f32.mrb[26].mxu1  ;;  %v1137_v59 = vadd.f32 %v12408_v7, %v12470_v40 }
 0x13e   : > { %v1617_v63 = vmax.f32 %v1233_v57, 0.0  ;;  %v1236_v29 = vadd.f32 %v10994_v62, %v12470_v40  ;;  %v1227_v1 = vpop.f32.mrb[27].mxu1 }
 0x13f   : > { %v1615_v2 = vmax.f32 %v1225_v27, 0.0  ;;  %v1228_v6 = vadd.f32 %v12470_v40, %v1227_v1 }
 0x140   : > { %v12633_v8 = vmax.f32 %v1585_v55, %v1617_v63  ;;  %v1618_v10 = vmax.f32 %v1236_v29, 0.0  ;;  %v1588_v55 = vmax.f32 %v1116_v42, 0.0  ;;  %v1140_v29 = vadd.f32 %v12413_v12, %v12470_v40 }
 0x141   : > { %v12637_v11 = vmax.f32 %v1583_v58, %v1615_v2  ;;  %v1616_v13 = vmax.f32 %v1228_v6, 0.0 }
 0x142   : > { %v12641_v17 = vmax.f32 %v1586_v60, %v1618_v10  ;;  %v1129_v60 = vadd.f32 %v12470_v40, %v12410_v9  ;;  %v1593_v10 = vmax.f32 %v1137_v59, 0.0  ;;  %v1594_v42 = vmax.f32 %v1140_v29, 0.0 }
 0x143   : > { %v12645_v41 = vmax.f32 %v1584_v5, %v1616_v13  ;;  %v10997_v21 = vpop.f32.mrb[28].mxu1  ;;  %v1132_v5 = vadd.f32 %v12470_v40, %v12415_v14 }
 0x144   : > { %v1249_v33 = vadd.f32 %v10997_v21, %v12470_v40  ;;  %v1240_v45 = vpop.f32.mrb[29].mxu1  ;;  %v1591_v15 = vmax.f32 %v1129_v60, 0.0 }
 0x145   : > { %v1241_v47 = vadd.f32 %v12470_v40, %v1240_v45  ;;  %v10998_v48 = vpop.f32.mrb[30].mxu1 }
 0x146   : > { %v1621_v35 = vmax.f32 %v1249_v33, 0.0  ;;  %v1252_v51 = vadd.f32 %v10998_v48, %v12470_v40  ;;  %v1243_v52 = vpop.f32.mrb[31].mxu1  ;;  %v1592_v33 = vmax.f32 %v1132_v5, 0.0  ;;  %v1145_v48 = vadd.f32 %v12470_v40, %v12423_v18 }
 0x147   : > { %v1619_v37 = vmax.f32 %v1241_v47, 0.0  ;;  %v1244_v56 = vadd.f32 %v12470_v40, %v1243_v52 }
 0x148   : > { %v12653_v25 = vmax.f32 %v1589_v43, %v1621_v35  ;;  %v1622_v39 = vmax.f32 %v1252_v51, 0.0  ;;  %v1156_v51 = vadd.f32 %v12427_v20, %v12470_v40  ;;  %v1595_v60 = vmax.f32 %v1145_v48, 0.0 }
 0x149   : > { %v12655_v57 = vmax.f32 %v1587_v46, %v1619_v37  ;;  %v1620_v58 = vmax.f32 %v1244_v56, 0.0  ;;  %v1153_v46 = vadd.f32 %v12419_v16, %v12470_v40 }
 0x14a   : > { %v12659_v27 = vmax.f32 %v1590_v49, %v1622_v39 }
 0x14b   : > { %v12663_v62 = vmax.f32 %v1588_v55, %v1620_v58  ;;  %v11001_v63 = vpop.f32.mrb[32].mxu1  ;;  %v1148_v55 = vadd.f32 %v12470_v40, %v12431_v22  ;;  %v1597_v39 = vmax.f32 %v1153_v46, 0.0 }
 0x14c   : > { %v1265_v1 = vadd.f32 %v11001_v63, %v12470_v40  ;;  %v1256_v2 = vpop.f32.mrb[33].mxu1 }
 0x14d   : > { %v1257_v6 = vadd.f32 %v12470_v40, %v1256_v2  ;;  %v11002_v7 = vpop.f32.mrb[34].mxu1  ;;  %v1596_v5 = vmax.f32 %v1148_v55, 0.0 }
 0x14e   : > { %v1625_v31 = vmax.f32 %v1265_v1, 0.0  ;;  %v1268_v13 = vadd.f32 %v11002_v7, %v12470_v40  ;;  %v1259_v9 = vpop.f32.mrb[35].mxu1  ;;  %v1598_v1 = vmax.f32 %v1156_v51, 0.0  ;;  %v1169_v7 = vadd.f32 %v12435_v24, %v12470_v40 }
 0x14f   : > { %v1623_v19 = vmax.f32 %v1257_v6, 0.0  ;;  %v1260_v21 = vadd.f32 %v12470_v40, %v1259_v9 }
 0x150   : > { %v12673_v12 = vmax.f32 %v1593_v10, %v1625_v31  ;;  %v1626_v43 = vmax.f32 %v1268_v13, 0.0  ;;  %v1161_v31 = vadd.f32 %v12470_v40, %v12439_v26 }
 0x151   : > { %v12675_v45 = vmax.f32 %v1591_v15, %v1623_v19  ;;  %v1624_v14 = vmax.f32 %v1260_v21, 0.0  ;;  %v1172_v15 = vadd.f32 %v12443_v28, %v12470_v40 }
 0x152   : > { %v12679_v47 = vmax.f32 %v1594_v42, %v1626_v43  ;;  %v1164_v42 = vadd.f32 %v12470_v40, %v12447_v30  ;;  %v1599_v48 = vmax.f32 %v1161_v31, 0.0 }
 0x153   : > { %16669 = vst [vmem:[#allocation12_spill] sm:$0xff] %v12675_v45  ;;  %v12683_v35 = vmax.f32 %v1592_v33, %v1624_v14  ;;  %v11005_v49 = vpop.f32.mrb[36].mxu1  ;;  %v1601_v33 = vmax.f32 %v1169_v7, 0.0 }
 0x154   : > { %16670 = vst [vmem:[#allocation13_spill] sm:$0xff] %v12679_v47  ;;  %v1281_v52 = vadd.f32 %v11005_v49, %v12470_v40  ;;  %v1272_v37 = vpop.f32.mrb[37].mxu1  ;;  %v1600_v55 = vmax.f32 %v1164_v42, 0.0 }
 0x155   : > { %16671 = vst [vmem:[#allocation14_spill] sm:$0xff] %v12683_v35  ;;  %v1273_v56 = vadd.f32 %v12470_v40, %v1272_v37  ;;  %v11006_v16 = vpop.f32.mrb[38].mxu1 }
 0x156   : > { %v1629_v58 = vmax.f32 %v1281_v52, 0.0  ;;  %v1284_v59 = vadd.f32 %v11006_v16, %v12470_v40  ;;  %v1275_v18 = vpop.f32.mrb[39].mxu1  ;;  %v1602_v52 = vmax.f32 %v1172_v15, 0.0  ;;  %v1185_v16 = vadd.f32 %v12451_v32, %v12470_v40 }
 0x157   : > { %v1627_v63 = vmax.f32 %v1273_v56, 0.0  ;;  %v1276_v29 = vadd.f32 %v12470_v40, %v1275_v18 }
 0x158   : > { %v12693_v20 = vmax.f32 %v1597_v39, %v1629_v58  ;;  %v1630_v2 = vmax.f32 %v1284_v59, 0.0  ;;  %v1177_v58 = vadd.f32 %v12470_v40, %v12455_v34 }
 0x159   : > { %v12695_v6 = vmax.f32 %v1595_v60, %v1627_v63  ;;  %v1628_v22 = vmax.f32 %v1276_v29, 0.0  ;;  %v1188_v60 = vadd.f32 %v12459_v36, %v12470_v40 }
 0x15a   : > { %16672 = vst [vmem:[#allocation15_spill] sm:$0xff] %v12693_v20  ;;  %v12699_v10 = vmax.f32 %v1598_v1, %v1630_v2  ;;  %v1180_v1 = vadd.f32 %v12470_v40, %v12463_v38  ;;  %v1603_v31 = vmax.f32 %v1177_v58, 0.0 }
 0x15b   : > { %16673 = vst [vmem:[#allocation16_spill] sm:$0xff] %v12695_v6  ;;  %v12703_v13 = vmax.f32 %v1596_v5, %v1628_v22  ;;  %v11009_v9 = vpop.f32.mrb[40].mxu1  ;;  %v1605_v5 = vmax.f32 %v1185_v16, 0.0 }
 0x15c   : > { %16674 = vst [vmem:[#allocation17_spill] sm:$0xff] %v12699_v10  ;;  %v1297_v19 = vadd.f32 %v11009_v9, %v12470_v40  ;;  %v1288_v21 = vpop.f32.mrb[41].mxu1  ;;  %v1604_v42 = vmax.f32 %v1180_v1, 0.0 }
 0x15d   : > { %16675 = vst [vmem:[#allocation18_spill] sm:$0xff] %v12703_v13  ;;  %v1289_v43 = vadd.f32 %v12470_v40, %v1288_v21  ;;  %v11010_v24 = vpop.f32.mrb[42].mxu1 }
 0x15e   : > { %v1633_v14 = vmax.f32 %v1297_v19, 0.0  ;;  %v1300_v46 = vadd.f32 %v11010_v24, %v12470_v40  ;;  %v1291_v26 = vpop.f32.mrb[43].mxu1  ;;  %v1606_v19 = vmax.f32 %v1188_v60, 0.0 }
 0x15f   : > { %v1631_v49 = vmax.f32 %v1289_v43, 0.0  ;;  %v1292_v51 = vadd.f32 %v12470_v40, %v1291_v26 }
 0x160   : > { %v12713_v28 = vmax.f32 %v1601_v33, %v1633_v14  ;;  %v1634_v37 = vmax.f32 %v1300_v46, 0.0 }
 0x161   : > { %v12715_v56 = vmax.f32 %v1599_v48, %v1631_v49  ;;  %v1632_v30 = vmax.f32 %v1292_v51, 0.0 }
 0x162   : > { %16676 = vst [vmem:[#allocation19_spill] sm:$0xff] %v12713_v28  ;;  %v12719_v39 = vmax.f32 %v1602_v52, %v1634_v37 }
 0x163   : > { %16677 = vst [vmem:[#allocation20_spill] sm:$0xff] %v12715_v56  ;;  %v12723_v59 = vmax.f32 %v1600_v55, %v1632_v30  ;;  %v11013_v18 = vpop.f32.mrb[44].mxu1 }
 0x164   : > { %16678 = vst [vmem:[#allocation21_spill] sm:$0xff] %v12719_v39  ;;  %v1313_v63 = vadd.f32 %v11013_v18, %v12470_v40  ;;  %v1304_v29 = vpop.f32.mrb[45].mxu1  ;;  %v11538_v18 = vld [vmem:[%s16625_s3 + $0x180] sm:$0xff]  }
 0x165   : > { %16679 = vst [vmem:[#allocation22_spill] sm:$0xff] %v12723_v59  ;;  %v1305_v2 = vadd.f32 %v12470_v40, %v1304_v29  ;;  %v11014_v32 = vpop.f32.mrb[46].mxu1  ;;  %11079 = vmatprep.subr.bf16.mxu0 %v11538_v18  ;;  %v11541_v29 = vld [vmem:[%s16625_s3 + $0x188] sm:$0xff]  }
 0x166   : > { %v1637_v22 = vmax.f32 %v1313_v63, 0.0  ;;  %v1316_v7 = vadd.f32 %v11014_v32, %v12470_v40  ;;  %v1307_v34 = vpop.f32.mrb[47].mxu1  ;;  %11080 = vmatpush3.bf16.msra.mxu0 %v11538_v18  ;;  %v12760_v59 = vld [vmem:[#allocation2 + $0x8] sm:$0xff]  }
 0x167   : > { %v1635_v9 = vmax.f32 %v1305_v2, 0.0  ;;  %v1308_v15 = vadd.f32 %v12470_v40, %v1307_v34  ;;  %11081 = vmatprep.subr.bf16.mxu0 %v11541_v29 }
 0x168   : > { %v12733_v36 = vmax.f32 %v1605_v5, %v1637_v22  ;;  %v1638_v21 = vmax.f32 %v1316_v7, 0.0 }
 0x169   : > { %v12735_v43 = vmax.f32 %v1603_v31, %v1635_v9  ;;  %v1636_v38 = vmax.f32 %v1308_v15, 0.0  ;;  %v11519_v15 = vld [vmem:[#allocation2 + $0x8] sm:$0xff]  }
 0x16a   : > { %16680 = vst [vmem:[#allocation23_spill] sm:$0xff] %v12733_v36  ;;  %v12737_v24 = vmax.f32 %v1606_v19, %v1638_v21  ;;  %11082 = vmatpush3.bf16.msra.mxu0 %v11541_v29  ;;  %v11528_v21 = vld [vmem:[#allocation2 + $0x8] sm:$0xff]   ;;  %v2499_v39 = vshrl.u32 %v11519_v15, 16 }
 0x16b   : > { %16681 = vst [vmem:[#allocation24_spill] sm:$0xff] %v12735_v43  ;;  %v12739_v33 = vmax.f32 %v1604_v42, %v1636_v38  ;;  %v11017_v14 = vpop.f32.mrb[48].mxu1  ;;  %v2495_v42 = vshll.u32 %v11519_v15, 16  ;;  %v3313_v38 = vshrl.u32 %v11528_v21, 16  ;;  %v3316_v18 = vshll.u32 %v11528_v21, 16 }
 0x16c   : > { %16682 = vst [vmem:[#allocation25_spill] sm:$0xff] %v12737_v24  ;;  %v1320_v46 = vpop.f32.mrb[49].mxu1  ;;  %v12756_v43 = vadd.f32 %v11017_v14, %v12470_v40 }
 0x16d   : > { %16683 = vst [vmem:[#allocation26_spill] sm:$0xff] %v12739_v33  ;;  %v11018_v26 = vpop.f32.mrb[50].mxu1  ;;  %v12753_v29 = vrot.slane %v2495_v42, 1  ;;  %v3315_v56 = vrot.slane %v3313_v38, 1  ;;  %v3318_v28 = vrot.slane %v3316_v18, 2  ;;  %v12763_v21 = vadd.f32 %v12470_v40, %v1320_v46 }
 0x16e   : > { %v1323_v48 = vpop.f32.mrb[51].mxu1  ;;  %v12766_v13 = vadd.f32 %v11018_v26, %v12470_v40 }
 0x16f   : > { %16684 = vst [vmem:[#allocation27_spill] sm:$0xff] %v12753_v29  ;;  %v12769_v10 = vadd.f32 %v12470_v40, %v1323_v48  ;;  %v12786_v38 = vor.u32 %v2499_v39, %v12753_v29  ;;  %v12788_v48 = vor.u32 %v3318_v28, %v3315_v56 }
 0x171   : > { %16685 = vst [vmem:[#allocation28_spill] sm:$0xff] %v12788_v48 }
 0x173   : > { %v11021_v49 = vpop.f32.mrb[52].mxu1 }
 0x174   : > { %v1336_v51 = vpop.f32.mrb[53].mxu1  ;;  %v12772_v42 = vadd.f32 %v11021_v49, %v12470_v40 }
 0x175   : > { %v11022_v52 = vpop.f32.mrb[54].mxu1  ;;  %v12775_v14 = vadd.f32 %v12470_v40, %v1336_v51 }
 0x176   : > { %v1339_v37 = vpop.f32.mrb[55].mxu1  ;;  %v12778_v6 = vadd.f32 %v11022_v52, %v12470_v40 }
 0x177   : > { %v12781_v15 = vadd.f32 %v12470_v40, %v1339_v37 }
 0x17b   : > { %v11025_v55 = vpop.f32.mrb[56].mxu1 }
 0x17c   : > { %v1352_v30 = vpop.f32.mrb[57].mxu1  ;;  %v12797_v26 = vadd.f32 %v11025_v55, %v12470_v40 }
 0x17d   : > { %v11026_v16 = vpop.f32.mrb[58].mxu1  ;;  %v12800_v39 = vadd.f32 %v12470_v40, %v1352_v30 }
 0x17e   : > { %v1355_v58 = vpop.f32.mrb[59].mxu1  ;;  %v12804_v51 = vadd.f32 %v11026_v16, %v12470_v40 }
 0x17f   : > { %v12807_v18 = vadd.f32 %v12470_v40, %v1355_v58 }
 0x183   : > { %v11029_v60 = vpop.f32.mrb[60].mxu1 }
 0x184   : > { %v1368_v63 = vpop.f32.mrb[61].mxu1  ;;  %v12810_v52 = vadd.f32 %v11029_v60, %v12470_v40 }
 0x185   : > { %v11030_v1 = vpop.f32.mrb[62].mxu1  ;;  %v12815_v55 = vadd.f32 %v12470_v40, %v1368_v63 }
 0x186   : > { %v1371_v2 = vpop.f32.mrb[63].mxu1  ;;  %v12818_v30 = vadd.f32 %v11030_v1, %v12470_v40 }
 0x187   : > { %v12821_v46 = vadd.f32 %v12470_v40, %v1371_v2 }
 0x18b   : > { %v11033_v32 = vpop.f32.mrb[64].mxu1 }
 0x18c   : > { %v1384_v5 = vpop.f32.mrb[65].mxu1  ;;  %v12824_v16 = vadd.f32 %v11033_v32, %v12470_v40 }
 0x18d   : > { %v11034_v22 = vpop.f32.mrb[66].mxu1  ;;  %v12829_v58 = vadd.f32 %v12470_v40, %v1384_v5 }
 0x18e   : > { %v1387_v7 = vpop.f32.mrb[67].mxu1  ;;  %v12832_v60 = vadd.f32 %v11034_v22, %v12470_v40 }
 0x18f   : > { %v12835_v63 = vadd.f32 %v12470_v40, %v1387_v7 }
 0x190   : > { %16686 = vst [vmem:[#allocation29_spill] sm:$0xff] %v12832_v60 }
 0x191   : > { %16687 = vst [vmem:[#allocation30_spill] sm:$0xff] %v12835_v63  ;;  %v16693_v63 = vmax.f32 %v12763_v21, 0.0 }
 0x193   : > { %v11037_v34 = vpop.f32.mrb[68].mxu1 }
 0x194   : > { %v1400_v31 = vpop.f32.mrb[69].mxu1  ;;  %v12838_v1 = vadd.f32 %v11037_v34, %v12470_v40  ;;  %v12854_v34 = vld [vmem:[#allocation2] sm:$0xff]  }
 0x195   : > { %v11038_v9 = vpop.f32.mrb[70].mxu1  ;;  %v12843_v32 = vadd.f32 %v12470_v40, %v1400_v31 }
 0x196   : > { %v1403_v19 = vpop.f32.mrb[71].mxu1  ;;  %16688 = vst [vmem:[#allocation31_spill] sm:$0xff] %v12838_v1  ;;  %v12846_v29 = vadd.f32 %v11038_v9, %v12470_v40 }
 0x197   : > { %16689 = vst [vmem:[#allocation32_spill] sm:$0xff] %v12843_v32  ;;  %v12852_v48 = vadd.f32 %v12470_v40, %v1403_v19 }
 0x198   : > { %16690 = vst [vmem:[#allocation33_spill] sm:$0xff] %v12846_v29  ;;  %v16702_v29 = vmax.f32 %v12778_v6, 0.0 }
 0x199   : > { %16691 = vst [vmem:[#allocation34_spill] sm:$0xff] %v12852_v48 }
 0x19b   : > { %v12747_v44 = vpop.f32.mrb[72].mxu1 }
 0x19c   : > { %v12749_v33 = vpop.f32.mrb[73].mxu1  ;;  %v12868_v49 = vadd.f32 %v12747_v44, %v12470_v40  ;;  %v2490_v44 = vshll.u32 %v12854_v34, 16 }
 0x19d   : > { %v12751_v24 = vpop.f32.mrb[74].mxu1  ;;  %v12874_v22 = vadd.f32 %v12470_v40, %v12749_v33 }
 0x19e   : > { %v12758_v36 = vpop.f32.mrb[75].mxu1  ;;  %v12901_v60 = vrot.slane %v2490_v44, 1 }
 0x19f   : > { %v12884_v45 = vadd.f32 %v12470_v40, %v12758_v36  ;;  %v16692_v36 = vmax.f32 %v12756_v43, 0.0 }
 0x1a3   : > { %v11045_v20 = vpop.f32.mrb[76].mxu1 }
 0x1a4   : > { %v1432_v28 = vpop.f32.mrb[77].mxu1 }
 0x1a5   : > { %v12812_v37 = vpop.f32.mrb[78].mxu1  ;;  %v12894_v32 = vadd.f32 %v12470_v40, %v1432_v28 }
 0x1a6   : > { %v12826_v56 = vpop.f32.mrb[79].mxu1  ;;  %v12911_v21 = vadd.f32 %v12812_v37, %v12470_v40 }
 0x1ab   : > { %v11049_v19 = vpop.f32.mrb[80].mxu1 }
 0x1ac   : > { %v1457_v31 = vadd.f32 %v11049_v19, %v12470_v40  ;;  %v1448_v9 = vpop.f32.mrb[81].mxu1  ;;  %v12880_v19 = vadd.f32 %v12751_v24, %v12470_v40  ;;  %v16694_v24 = vmax.f32 %v12766_v13, 0.0 }
 0x1ad   : > { %v1449_v47 = vadd.f32 %v12470_v40, %v1448_v9  ;;  %v11050_v7 = vpop.f32.mrb[82].mxu1  ;;  %v12888_v9 = vadd.f32 %v11045_v20, %v12470_v40 }
 0x1ae   : > { %v1673_v5 = vmax.f32 %v1457_v31, 0.0  ;;  %v1460_v33 = vadd.f32 %v11050_v7, %v12470_v40  ;;  %v1451_v35 = vpop.f32.mrb[83].mxu1  ;;  %v1663_v7 = vmax.f32 %v12874_v22, 0.0 }
 0x1af   : > { %v1671_v2 = vmax.f32 %v1449_v47, 0.0  ;;  %v1452_v48 = vadd.f32 %v12470_v40, %v1451_v35 }
 0x1b0   : > { %v1737_v31 = vmax.f32 %v16692_v36, %v1673_v5  ;;  %v1674_v1 = vmax.f32 %v1460_v33, 0.0 }
 0x1b1   : > { %v1735_v20 = vmax.f32 %v16693_v63, %v1671_v2  ;;  %v1672_v47 = vmax.f32 %v1452_v48, 0.0  ;;  %v16695_v63 = vmax.f32 %v12769_v10, 0.0 }
 0x1b2   : > { %v1769_v28 = vmax.f32 %v12595_v61, %v1737_v31  ;;  %v1738_v43 = vmax.f32 %v16694_v24, %v1674_v1  ;;  %v12921_v24 = vadd.f32 %v12470_v40, %v12826_v56 }
 0x1b3   : > { %v1767_v48 = vmax.f32 %v12599_v0, %v1735_v20  ;;  %v1736_v2 = vmax.f32 %v16695_v63, %v1672_v47  ;;  %v11053_v44 = vpop.f32.mrb[84].mxu1 }
 0x1b4   : > { %v10688_v36 = vpack.c.bf16 %v1769_v28, %v1769_v28  ;;  %v1770_v61 = vmax.f32 %v12603_v3, %v1738_v43  ;;  %v1473_v13 = vadd.f32 %v11053_v44, %v12470_v40  ;;  %v1464_v1 = vpop.f32.mrb[85].mxu1  ;;  %v13393_v43 = vld [vmem:[#allocation2] sm:$0xfe]  }
 0x1b5   : > { %v10686_v37 = vpack.c.bf16 %v1767_v48, %v1767_v48  ;;  %v1768_v31 = vmax.f32 %v12605_v4, %v1736_v2  ;;  %v1465_v0 = vadd.f32 %v12470_v40, %v1464_v1  ;;  %v11054_v10 = vpop.f32.mrb[86].mxu1 }
 0x1b6   : > { %v1844_v20 = vrot.slane %v10688_v36, 5  ;;  %v10689_v47 = vpack.c.bf16 %v1770_v61, %v1770_v61  ;;  %v1677_v63 = vmax.f32 %v1473_v13, 0.0  ;;  %v1476_v28 = vadd.f32 %v11054_v10, %v12470_v40  ;;  %v1467_v33 = vpop.f32.mrb[87].mxu1 }
 0x1b7   : > { %v1823_v3 = vrot.slane %v10686_v37, 7  ;;  %v10687_v56 = vpack.c.bf16 %v1768_v31, %v1768_v31  ;;  %v1675_v48 = vmax.f32 %v1465_v0, 0.0  ;;  %v1468_v4 = vadd.f32 %v12470_v40, %v1467_v33 }
 0x1b8   : > { %v1845_v2 = vrot.slane %v1844_v20, 4  ;;  %1853 = vst.msk [vmem:[#allocation2 + $0x1c] sm:$0x8] %vm1852_vm3, %v1844_v20  ;;  %v1846_v44 = vrot.slane %v10689_v47, 5  ;;  %v16700_v61 = vmax.f32 %v12772_v42, 0.0  ;;  %v1678_v1 = vmax.f32 %v1476_v28, 0.0 }
 0x1b9   : > { %v1824_v37 = vrot.slane %v1823_v3, 4  ;;  %1832 = vst.msk [vmem:[#allocation2 + $0x14] sm:$0xe] %vm1831_vm6, %v1823_v3  ;;  %v1825_v31 = vrot.slane %v10687_v56, 7  ;;  %v16701_v33 = vmax.f32 %v12775_v14, 0.0  ;;  %v1676_v10 = vmax.f32 %v1468_v4, 0.0 }
 0x1ba   : > { %v1741_v13 = vmax.f32 %v16700_v61, %v1677_v63  ;;  %v1847_v20 = vsel %vm12928_vm9, %v1845_v2, %v1846_v44  ;;  %v1848_v47 = vrot.slane %v1846_v44, 4  ;;  %v1742_v35 = vmax.f32 %v16702_v29, %v1678_v1 }
 0x1bb   : > { %v1739_v0 = vmax.f32 %v16701_v33, %v1675_v48  ;;  %1854 = vst.msk [vmem:[#allocation2 + $0x20] sm:$0xf] %vm387_vm0, %v1847_v20  ;;  %v1826_v42 = vsel %vm12936_vm10, %v1824_v37, %v1825_v31  ;;  %v1827_v63 = vrot.slane %v1825_v31, 4  ;;  %v16703_v14 = vmax.f32 %v12781_v15, 0.0  ;;  %v11057_v56 = vpop.f32.mrb[88].mxu1 }
 0x1bc   : > { %v1773_v5 = vmax.f32 %v12615_v23, %v1741_v13  ;;  %v1670_v48 = vmax.f32 %v12911_v21, 0.0  ;;  %1856 = vst.msk [vmem:[#allocation2 + $0x24] sm:$0x7] %vm1855_vm7, %v1848_v47  ;;  %v1774_v6 = vmax.f32 %v12623_v53, %v1742_v35  ;;  %v1489_v29 = vadd.f32 %v11057_v56, %v12470_v40  ;;  %v1480_v4 = vpop.f32.mrb[89].mxu1 }
 0x1bd   : > { %v1771_v28 = vmax.f32 %v12619_v50, %v1739_v0  ;;  %v1740_v3 = vmax.f32 %v16703_v14, %v1676_v10  ;;  %1833 = vst.msk [vmem:[#allocation2 + $0x18] sm:$0xf] %vm387_vm0, %v1826_v42  ;;  %v1668_v2 = vmax.f32 %v12921_v24, 0.0  ;;  %v1481_v44 = vadd.f32 %v12470_v40, %v1480_v4  ;;  %v11058_v61 = vpop.f32.mrb[90].mxu1 }
 0x1be   : > { %v10692_v23 = vpack.c.bf16 %v1773_v5, %v1773_v5  ;;  %1835 = vst.msk [vmem:[#allocation2 + $0x1c] sm:$0x1] %vm1834_vm8, %v1827_v63  ;;  %v10693_v1 = vpack.c.bf16 %v1774_v6, %v1774_v6  ;;  %v1681_v37 = vmax.f32 %v1489_v29, 0.0  ;;  %v1492_v5 = vadd.f32 %v11058_v61, %v12470_v40  ;;  %v1483_v31 = vpop.f32.mrb[91].mxu1 }
 0x1bf   : > { %v10690_v50 = vpack.c.bf16 %v1771_v28, %v1771_v28  ;;  %v1772_v15 = vmax.f32 %v12625_v54, %v1740_v3  ;;  %v1679_v33 = vmax.f32 %v1481_v44, 0.0  ;;  %v1484_v0 = vadd.f32 %v12470_v40, %v1483_v31 }
 0x1c0   : > { %v1878_v13 = vrot.slane %v10692_v23, 5  ;;  %v1880_v20 = vrot.slane %v10693_v1, 5  ;;  %v16704_v54 = vmax.f32 %v12797_v26, 0.0  ;;  %v1682_v42 = vmax.f32 %v1492_v5, 0.0  ;;  %v12970_v63 = vld [vmem:[#allocation2 + $0x10] sm:$0xff]  }
 0x1c1   : > { %v1862_v53 = vrot.slane %v10690_v50, 7  ;;  %v10691_v35 = vpack.c.bf16 %v1772_v15, %v1772_v15  ;;  %v16705_v3 = vmax.f32 %v12800_v39, 0.0  ;;  %v1680_v23 = vmax.f32 %v1484_v0, 0.0  ;;  %v12975_v40 = vld [vmem:[#allocation2 + $0x10] sm:$0xff]  }
 0x1c2   : > { %v1879_v10 = vrot.slane %v1878_v13, 4  ;;  %1886 = vst.msk [vmem:[#allocation2 + $0x30] sm:$0x8] %vm1852_vm3, %v1878_v13  ;;  %v1745_v47 = vmax.f32 %v16704_v54, %v1681_v37  ;;  %v1882_v29 = vrot.slane %v1880_v20, 4  ;;  %v16706_v4 = vmax.f32 %v12804_v51, 0.0 }
 0x1c3   : > { %v1863_v28 = vrot.slane %v1862_v53, 4  ;;  %1870 = vst.msk [vmem:[#allocation2 + $0x28] sm:$0xe] %vm1831_vm6, %v1862_v53  ;;  %v1864_v14 = vrot.slane %v10691_v35, 7  ;;  %v1743_v56 = vmax.f32 %v16705_v3, %v1679_v33  ;;  %v16707_v61 = vmax.f32 %v12807_v18, 0.0  ;;  %v11061_v1 = vpop.f32.mrb[92].mxu1 }
 0x1c4   : > { %v1881_v6 = vsel %vm12928_vm9, %v1879_v10, %v1880_v20  ;;  %v1777_v26 = vmax.f32 %v12633_v8, %v1745_v47  ;;  %v1746_v50 = vmax.f32 %v16706_v4, %v1682_v42  ;;  %1888 = vst.msk [vmem:[#allocation2 + $0x38] sm:$0x7] %vm1855_vm7, %v1882_v29  ;;  %v12994_v37 = vld [vmem:[%s16624_s2] ss:$0 sm:$0xff]  ;;  %v1496_v31 = vpop.f32.mrb[93].mxu1 }
 0x1c5   : > { %1887 = vst.msk [vmem:[#allocation2 + $0x34] sm:$0xf] %vm387_vm0, %v1881_v6  ;;  %v1865_v15 = vsel %vm12936_vm10, %v1863_v28, %v1864_v14  ;;  %v1866_v39 = vrot.slane %v1864_v14, 4  ;;  %v1775_v44 = vmax.f32 %v12637_v11, %v1743_v56  ;;  %v1744_v13 = vmax.f32 %v16707_v61, %v1680_v23  ;;  %v11062_v33 = vpop.f32.mrb[94].mxu1 }
 0x1c6   : > { %1871 = vst.msk [vmem:[#allocation2 + $0x2c] sm:$0xf] %vm387_vm0, %v1865_v15  ;;  %v10696_v8 = vpack.c.bf16 %v1777_v26, %v1777_v26  ;;  %v1778_v51 = vmax.f32 %v12641_v17, %v1746_v50  ;;  %v1505_v5 = vadd.f32 %v12994_v37, %v11061_v1  ;;  %v2975_v11 = vrot.slane %v12970_v63, 1  ;;  %v1499_v47 = vpop.f32.mrb[95].mxu1  ;;  %v13007_v26 = vld [vmem:[#allocation2 + $0x18] sm:$0xff]  }
 0x1c7   : > { %1872 = vst.msk [vmem:[#allocation2 + $0x30] sm:$0x1] %vm1834_vm8, %v1866_v39  ;;  %v10694_v18 = vpack.c.bf16 %v1775_v44, %v1775_v44  ;;  %v1776_v53 = vmax.f32 %v12645_v41, %v1744_v13  ;;  %v1497_v35 = vadd.f32 %v12994_v37, %v1496_v31  ;;  %v2503_v17 = vshll.u32 %v12975_v40, 16  ;;  %v11577_v13 = vld [vmem:[#allocation2 + $0x10] sm:$0xff]  }
 0x1c8   : > { %v1910_v0 = vrot.slane %v10696_v8, 5  ;;  %v10697_v10 = vpack.c.bf16 %v1778_v51, %v1778_v51  ;;  %v1685_v20 = vmax.f32 %v1505_v5, 0.0  ;;  %v1508_v54 = vadd.f32 %v12994_v37, %v11062_v33  ;;  %2284 = vst.msk [vmem:[#allocation3 + $0x20] sm:$0xff] %vm2281_vm11, %v11577_v13 }
 0x1c9   : > { %v1894_v42 = vrot.slane %v10694_v18, 7  ;;  %v10695_v28 = vpack.c.bf16 %v1776_v53, %v1776_v53  ;;  %v1683_v14 = vmax.f32 %v1497_v35, 0.0  ;;  %v1500_v3 = vadd.f32 %v12994_v37, %v1499_v47  ;;  %v11580_v18 = vld [vmem:[#allocation2 + $0x18] sm:$0xff]  }
 0x1ca   : > { %v1911_v56 = vrot.slane %v1910_v0, 4  ;;  %1918 = vst.msk [vmem:[#allocation2 + $0x44] sm:$0x8] %vm1852_vm3, %v1910_v0  ;;  %v1912_v41 = vrot.slane %v10697_v10, 5  ;;  %v16708_v23 = vmax.f32 %v12810_v52, 0.0  ;;  %v1686_v29 = vmax.f32 %v1508_v54, 0.0 }
 0x1cb   : > { %v3648_v4 = vld [vmem:[#allocation2 + $0x28] sm:$0xf]  ;;  %v1895_v50 = vrot.slane %v1894_v42, 4  ;;  %1902 = vst.msk [vmem:[#allocation2 + $0x3c] sm:$0xe] %vm1831_vm6, %v1894_v42  ;;  %v1896_v15 = vrot.slane %v10695_v28, 7 }
 0x1cc   : > { %v1749_v6 = vmax.f32 %v16708_v23, %v1685_v20  ;;  %v16709_v39 = vmax.f32 %v12815_v55, 0.0  ;;  %v1684_v61 = vmax.f32 %v1500_v3, 0.0  ;;  %v3651_v1 = vld [vmem:[#allocation2 + $0x34] sm:$0xf]  ;;  %v1913_v8 = vsel %vm12928_vm9, %v1911_v56, %v1912_v41  ;;  %v11065_v20 = vpop.f32.mrb[96].mxu1  ;;  %2285 = vst.msk [vmem:[#allocation3 + $0x30] sm:$0xff] %vm2281_vm11, %v11580_v18 }
 0x1cd   : > { %v1914_v51 = vrot.slane %v1912_v41, 4  ;;  %v16710_v5 = vmax.f32 %v12818_v30, 0.0  ;;  %v3649_v53 = vld [vmem:[#allocation2 + $0x2c] sm:$0xf]  ;;  %1919 = vst.msk [vmem:[#allocation2 + $0x48] sm:$0xf] %vm387_vm0, %v1913_v8  ;;  %v1897_v55 = vsel %vm12936_vm10, %v1895_v50, %v1896_v15 }
 0x1ce   : > { %v1747_v44 = vmax.f32 %v16709_v39, %v1683_v14  ;;  %v1781_v52 = vmax.f32 %v12653_v25, %v1749_v6  ;;  %v1898_v35 = vrot.slane %v1896_v15, 4  ;;  %v16711_v0 = vmax.f32 %v12821_v46, 0.0  ;;  %v3650_v25 = vld [vmem:[#allocation2 + $0x30] sm:$0xf]  ;;  %1903 = vst.msk [vmem:[#allocation2 + $0x40] sm:$0xf] %vm387_vm0, %v1897_v55 }
 0x1cf   : > { %v1750_v31 = vmax.f32 %v16710_v5, %v1686_v29  ;;  %v10277_v54 = vcombine.low %v3648_v4, %v3649_v53  ;;  %1920 = vst.msk [vmem:[#allocation2 + $0x4c] sm:$0x7] %vm1855_vm7, %v1914_v51  ;;  %v16712_v42 = vrot.slane %v12760_v59, 1  ;;  %v1512_v46 = vpop.f32.mrb[97].mxu1  ;;  %v10278_v28 = vcombine.low %v3650_v25, %v3651_v1  ;;  %v13049_v8 = vld [vmem:[#allocation2 + $0x18] sm:$0xff]   ;;  %v13059_v53 = vld [vmem:[#allocation2 + $0x10] sm:$0xff]  }
 0x1d0   : > { %v1779_v33 = vmax.f32 %v12655_v57, %v1747_v44  ;;  %v1748_v10 = vmax.f32 %v16711_v0, %v1684_v61  ;;  %v10700_v30 = vpack.c.bf16 %v1781_v52, %v1781_v52  ;;  %1904 = vst.msk [vmem:[#allocation2 + $0x44] sm:$0x1] %vm1834_vm8, %v1898_v35  ;;  %v2505_v56 = vrot.slane %v2503_v17, 1 }
 0x1d1   : > { %v1782_v47 = vmax.f32 %v12659_v27, %v1750_v31  ;;  %v2976_v57 = vsel %vm2971_vm12, %v16712_v42, %v2975_v11  ;;  %v11066_v27 = vpop.f32.mrb[98].mxu1  ;;  %v13036_v41 = vrot.slane %v10277_v54, 2  ;;  %v2977_v29 = vrot.slane %v13007_v26, 1 }
 0x1d2   : > { %v10698_v14 = vpack.c.bf16 %v1779_v33, %v1779_v33  ;;  %v1780_v3 = vmax.f32 %v12663_v62, %v1748_v10  ;;  %3025 = vrot.lane.b32.xlu1 %v2976_v57, %s12201_s25  ;;  %v1942_v23 = vrot.slane %v10700_v30, 5  ;;  %v1515_v4 = vpop.f32.mrb[99].mxu1  ;;  %v3829_v50 = vrot.slane %v10278_v28, 2  ;;  %v11514_v61 = vld [vmem:[#allocation2 + $0x38] sm:$0xff]  }
 0x1d3   : > { %v10701_v6 = vpack.c.bf16 %v1782_v47, %v1782_v47  ;;  %v2506_v44 = vsel %vm2486_vm13, %v12786_v38, %v2505_v56  ;;  %v2978_v17 = vsel %vm2971_vm12, %v2975_v11, %v2977_v29  ;;  %v1521_v1 = vadd.f32 %v12994_v37, %v11065_v20  ;;  %v13074_v57 = vpop.f32.mrb[100].mxu1 }
 0x1d4   : > { %v1926_v15 = vrot.slane %v10698_v14, 7  ;;  %v10699_v39 = vpack.c.bf16 %v1780_v3, %v1780_v3  ;;  %v1943_v62 = vrot.slane %v1942_v23, 4  ;;  %1950 = vst.msk [vmem:[#allocation2 + $0x58] sm:$0x8] %vm1852_vm3, %v1942_v23  ;;  %2693 = vrot.lane.b32.xlu0 %v2506_v44, %s12202_s30  ;;  %v3830_v38 = vsel %vm3817_vm14, %v13036_v41, %v3829_v50  ;;  %v13080_v23 = vpop.f32.mrb[101].mxu1  ;;  %v16715_v44 = vld [vmem:[#allocation29_spill] sm:$0xff] }
 0x1d5   : > { %v1944_v13 = vrot.slane %v10701_v6, 5  ;;  %v1513_v5 = vadd.f32 %v12994_v37, %v1512_v46  ;;  %3899 = vst.msk [vmem:[#allocation3 + $0x58] sm:$0xff] %vm2281_vm11, %v3830_v38  ;;  %v3831_v63 = vrot.slane %v11514_v61, 2  ;;  %v1689_v18 = vmax.f32 %v1521_v1, 0.0 }
 0x1d6   : > { %v1927_v51 = vrot.slane %v1926_v15, 4  ;;  %1934 = vst.msk [vmem:[#allocation2 + $0x50] sm:$0xe] %vm1831_vm6, %v1926_v15  ;;  %v1928_v52 = vrot.slane %v10699_v39, 7  ;;  %3027 = vrot.lane.b32.xlu1 %v2978_v17, %s12201_s25  ;;  %v13061_v55 = vld [vmem:[#allocation2 + $0x48] sm:$0xff]   ;;  %v1524_v0 = vadd.f32 %v12994_v37, %v11066_v27  ;;  %v1516_v10 = vadd.f32 %v12994_v37, %v1515_v4  ;;  %v11527_v27 = vld [vmem:[#allocation2 + $0x18] sm:$0xff]  }
 0x1d7   : > { %v1945_v11 = vsel %vm12928_vm9, %v1943_v62, %v1944_v13  ;;  %v1946_v31 = vrot.slane %v1944_v13, 4  ;;  %v3832_v20 = vsel %vm3817_vm14, %v3829_v50, %v3831_v63  ;;  %v11516_v25 = vld [vmem:[#allocation2 + $0x40] sm:$0xff]   ;;  %v16713_v54 = vmax.f32 %v12824_v16, 0.0  ;;  %v13085_v15 = vpop.f32.mrb[102].mxu1 }
 0x1d8   : > { %1951 = vst.msk [vmem:[#allocation2 + $0x5c] sm:$0xf] %vm387_vm0, %v1945_v11  ;;  %v1929_v35 = vsel %vm12936_vm10, %v1927_v51, %v1928_v52  ;;  %v1930_v33 = vrot.slane %v1928_v52, 4  ;;  %v1687_v47 = vmax.f32 %v1513_v5, 0.0  ;;  %v2507_v42 = vshrl.u32 %v12975_v40, 16  ;;  %v16717_v13 = vld [vmem:[#allocation30_spill] sm:$0xff] }
 0x1d9   : > { %1952 = vst.msk [vmem:[#allocation2 + $0x60] sm:$0x7] %vm1855_vm7, %v1946_v31  ;;  %v1753_v30 = vmax.f32 %v16713_v54, %v1689_v18  ;;  %v3835_v46 = vrot.slane %v13061_v55, 2  ;;  %v2511_v28 = vshll.u32 %v13049_v8, 16  ;;  %v1690_v14 = vmax.f32 %v1524_v0, 0.0  ;;  %v13094_v51 = vld [vmem:[#allocation2 + $0x20] sm:$0xff]  }
 0x1da   : > { %1935 = vst.msk [vmem:[#allocation2 + $0x54] sm:$0xf] %vm387_vm0, %v1929_v35  ;;  %v1688_v3 = vmax.f32 %v1516_v10, 0.0  ;;  %v3833_v16 = vrot.slane %v11516_v25, 2  ;;  %v16714_v40 = vmax.f32 %v12829_v58, 0.0  ;;  %v2509_v50 = vor.u32 %v2507_v42, %v2505_v56  ;;  %v13096_v52 = vpop.f32.mrb[103].mxu1 }
 0x1db   : > { %3900 = vst.msk [vmem:[#allocation3 + $0x68] sm:$0xff] %vm2281_vm11, %v3832_v20  ;;  %v1785_v6 = vmax.f32 %v12673_v12, %v1753_v30  ;;  %v13087_v39 = vrot.slane %v2511_v28, 1  ;;  %v16716_v61 = vmax.f32 %v16715_v44, 0.0  ;;  %v16718_v17 = vmax.f32 %v16717_v13, 0.0  ;;  %v16719_v5 = vld [vmem:[#allocation12_spill] sm:$0xff]  ;;  %v16720_v35 = vld [vmem:[#allocation13_spill] sm:$0xff] }
 0x1dc   : > { %1936 = vst.msk [vmem:[#allocation2 + $0x58] sm:$0x1] %vm1834_vm8, %v1930_v33  ;;  %v1751_v4 = vmax.f32 %v16714_v40, %v1687_v47  ;;  %v3322_v38 = vshrl.u32 %v13059_v53, 16  ;;  %v3834_v12 = vsel %vm3817_vm14, %v3831_v63, %v3833_v16  ;;  %v3836_v58 = vsel %vm3817_vm14, %v3833_v16, %v3835_v46  ;;  %v16721_v0 = vld [vmem:[#allocation14_spill] sm:$0xff]  ;;  %v13116_v13 = vpop.f32.mrb[104].mxu1 }
 0x1dd   : > { %v1754_v62 = vmax.f32 %v16716_v61, %v1690_v14  ;;  %v1752_v1 = vmax.f32 %v16718_v17, %v1688_v3  ;;  %v10704_v56 = vpack.c.bf16 %v1785_v6, %v1785_v6  ;;  %3901 = vst.msk [vmem:[#allocation3 + $0x78] sm:$0xff] %vm2281_vm11, %v3834_v12  ;;  %3902 = vst.msk [vmem:[#allocation3 + $0x88] sm:$0xff] %vm2281_vm11, %v3836_v58  ;;  %v3658_v31 = vld [vmem:[#allocation2 + $0x50] sm:$0xf]  ;;  %v5046_v20 = vld [vmem:[#allocation3 + $0x58] sm:$0xff]  ;;  %v3325_v47 = vshll.u32 %v13059_v53, 16 }
 0x1de   : > { %v1783_v11 = vmax.f32 %v16719_v5, %v1751_v4  ;;  %v2514_v18 = vsel %vm2486_vm13, %v2509_v50, %v13087_v39  ;;  %v3324_v63 = vrot.slane %v3322_v38, 1  ;;  %v3331_v42 = vshrl.u32 %v11527_v27, 16  ;;  %5086 = vst.msk [vmem:[#allocation4 + $0x30] sm:$0xff] %vm2281_vm11, %v5046_v20  ;;  %v13118_v12 = vpop.f32.mrb[105].mxu1 }
 0x1df   : > { %v1786_v33 = vmax.f32 %v16720_v35, %v1754_v62  ;;  %v1784_v10 = vmax.f32 %v16721_v0, %v1752_v1  ;;  %v3661_v25 = vld [vmem:[#allocation2 + $0x5c] sm:$0xf]  ;;  %v1974_v54 = vrot.slane %v10704_v56, 5  ;;  %2695 = vrot.lane.b32.xlu0 %v2514_v18, %s12202_s30  ;;  %v3334_v16 = vshll.u32 %v11527_v27, 16  ;;  %v13114_v62 = vld [vmem:[#allocation2 + $0x20] sm:$0xff]  }
 0x1e0   : > { %v10702_v30 = vpack.c.bf16 %v1783_v11, %v1783_v11  ;;  %v2979_v6 = vrot.slane %v13094_v51, 1  ;;  %v3327_v61 = vrot.slane %v3325_v47, 2  ;;  %v3333_v38 = vrot.slane %v3331_v42, 1  ;;  %v13121_v11 = vpop.f32.mrb[106].mxu1 }
 0x1e1   : > { %v3659_v28 = vld [vmem:[#allocation2 + $0x54] sm:$0xf]  ;;  %v10705_v14 = vpack.c.bf16 %v1786_v33, %v1786_v33  ;;  %v10703_v3 = vpack.c.bf16 %v1784_v10, %v1784_v10  ;;  %v1975_v50 = vrot.slane %v1974_v54, 4  ;;  %1982 = vst.msk [vmem:[#allocation2 + $0x6c] sm:$0x8] %vm1852_vm3, %v1974_v54  ;;  %v3336_v5 = vrot.slane %v3334_v16, 2 }
 0x1e2   : > { %v10282_v4 = vcombine.low %v3658_v31, %v3659_v28  ;;  %v1958_v44 = vrot.slane %v10702_v30, 7  ;;  %v3328_v56 = vor.u32 %v3327_v61, %v3324_v63  ;;  %v13127_v0 = vpop.f32.mrb[107].mxu1  ;;  %v13139_v30 = vld [vmem:[#allocation2 + $0x28] sm:$0xff]   ;;  %v5048_v47 = vld [vmem:[#allocation3 + $0x68] sm:$0xff]  ;;  %v2980_v55 = vsel %vm2971_vm12, %v2977_v29, %v2979_v6 }
 0x1e3   : > { %v3660_v40 = vld [vmem:[#allocation2 + $0x58] sm:$0xf]  ;;  %v1976_v17 = vrot.slane %v10705_v14, 5  ;;  %v1960_v1 = vrot.slane %v10703_v3, 7  ;;  %v13135_v20 = vor.u32 %v3336_v5, %v3333_v38  ;;  %v1529_v28 = vadd.f32 %v12994_v37, %v13080_v23  ;;  %v13157_v14 = vld [vmem:[#allocation2 + $0x20] sm:$0xff]   ;;  %5088 = vst.msk [vmem:[#allocation4 + $0x68] sm:$0xff] %vm2281_vm11, %v5048_v47 }
 0x1e4   : > { %v10283_v53 = vcombine.low %v3660_v40, %v3661_v25  ;;  %v3837_v27 = vrot.slane %v10282_v4, 2  ;;  %v1959_v58 = vrot.slane %v1958_v44, 4  ;;  %1966 = vst.msk [vmem:[#allocation2 + $0x64] sm:$0xe] %vm1831_vm6, %v1958_v44  ;;  %v16722_v25 = vld [vmem:[#allocation28_spill] sm:$0xff]  ;;  %v2515_v26 = vshrl.u32 %v13049_v8, 16 }
 0x1e5   : > { %v1977_v18 = vsel %vm12928_vm9, %v1975_v50, %v1976_v17  ;;  %v1978_v35 = vrot.slane %v1976_v17, 4  ;;  %v1962_v33 = vrot.slane %v1960_v1, 4  ;;  %v3329_v54 = vsel %vm3303_vm15, %v16722_v25, %v3328_v56  ;;  %v5131_v3 = vld [vmem:[#allocation4 + $0x30] sm:$0xff]  ;;  %v13172_v44 = vpop.f32.mrb[108].mxu1  ;;  %v5050_v61 = vld [vmem:[#allocation3 + $0x78] sm:$0xff] }
 0x1e6   : > { %v13123_v31 = vrot.slane %v10283_v53, 2  ;;  %v3838_v10 = vsel %vm3817_vm14, %v3835_v46, %v3837_v27  ;;  %1983 = vst.msk [vmem:[#allocation2 + $0x70] sm:$0xf] %vm387_vm0, %v1977_v18  ;;  %v1961_v63 = vsel %vm12936_vm10, %v1959_v58, %v1960_v1  ;;  %3539 = vrot.lane.b32.xlu0 %v3329_v54, %s12203_s29  ;;  %v1537_v46 = vadd.f32 %v12994_v37, %v13074_v57  ;;  %v13176_v1 = vpop.f32.mrb[109].mxu1 }
 0x1e7   : > { %3903 = vst.msk [vmem:[#allocation3 + $0x98] sm:$0xff] %vm2281_vm11, %v3838_v10  ;;  %v3338_v16 = vsel %vm3303_vm15, %v3328_v56, %v13135_v20  ;;  %v2519_v29 = vshll.u32 %v13114_v62, 16  ;;  %v1540_v57 = vadd.f32 %v12994_v37, %v13085_v15  ;;  %11083 = vmatprep.mubr.msk.bf16.mxu0 %vm2281_vm11, %v5131_v3  ;;  %v1691_v40 = vmax.f32 %v1529_v28, 0.0  ;;  %5090 = vst.msk [vmem:[#allocation4 + $0xa0] sm:$0xff] %vm2281_vm11, %v5050_v61  ;;  %v16727_v10 = vld [vmem:[#allocation33_spill] sm:$0xff] }
 0x1e8   : > { %v3840_v42 = vsel %vm3817_vm14, %v3837_v27, %v13123_v31  ;;  %1984 = vst.msk [vmem:[#allocation2 + $0x74] sm:$0x7] %vm1855_vm7, %v1978_v35  ;;  %3541 = vrot.lane.b32.xlu1 %v3338_v16, %s12203_s29  ;;  %v1693_v23 = vmax.f32 %v1537_v46, 0.0  ;;  %v1532_v4 = vadd.f32 %v12994_v37, %v13096_v52  ;;  %v2523_v50 = vshrl.u32 %v13114_v62, 16  ;;  %v16723_v27 = vld [vmem:[#allocation31_spill] sm:$0xff]  ;;  %v16725_v52 = vld [vmem:[#allocation32_spill] sm:$0xff] }
 0x1e9   : > { %1967 = vst.msk [vmem:[#allocation2 + $0x68] sm:$0xf] %vm387_vm0, %v1961_v63  ;;  %v2517_v8 = vor.u32 %v2515_v26, %v13087_v39  ;;  %v2521_v53 = vrot.slane %v2519_v29, 1  ;;  %v1694_v17 = vmax.f32 %v1540_v57, 0.0  ;;  %v2527_v15 = vshll.u32 %v13139_v30, 16  ;;  %v11533_v46 = vld [vmem:[#allocation2 + $0x28] sm:$0xff]  }
 0x1ea   : > { %1968 = vst.msk [vmem:[#allocation2 + $0x6c] sm:$0x1] %vm1834_vm8, %v1962_v33  ;;  %v16724_v58 = vmax.f32 %v16723_v27, 0.0  ;;  %v16726_v5 = vmax.f32 %v16725_v52, 0.0  ;;  %v1692_v18 = vmax.f32 %v1532_v4, 0.0  ;;  %v3340_v35 = vshrl.u32 %v13157_v14, 16 }
 0x1eb   : > { %3904 = vst.msk [vmem:[#allocation3 + $0xa8] sm:$0xff] %vm2281_vm11, %v3840_v42  ;;  %v11522_v38 = vld [vmem:[#allocation2 + $0x60] sm:$0xff]   ;;  %v13184_v33 = vpop.f32.mrb[110].mxu1  ;;  %v2522_v39 = vsel %vm2486_vm13, %v2517_v8, %v2521_v53  ;;  %v16728_v63 = vmax.f32 %v16727_v10, 0.0  ;;  %v2525_v47 = vor.u32 %v2523_v50, %v2521_v53  ;;  %v13189_v42 = vrot.slane %v2527_v15, 1  ;;  %v16730_v29 = vld [vmem:[#allocation16_spill] sm:$0xff] }
 0x1ec   : > { %v1757_v56 = vmax.f32 %v16724_v58, %v1693_v23  ;;  %v1755_v62 = vmax.f32 %v16726_v5, %v1691_v40  ;;  %v13191_v28 = vpop.f32.mrb[111].mxu1  ;;  %v3841_v3 = vrot.slane %v11522_v38, 2  ;;  %3029 = vrot.lane.b32.xlu1 %v2980_v55, %s12201_s25  ;;  %v16729_v16 = vld [vmem:[#allocation15_spill] sm:$0xff]  ;;  %2697 = vrot.lane.b32.xlu0 %v2522_v39, %s12202_s30  ;;  %v16731_v23 = vld [vmem:[#allocation34_spill] sm:$0xff]  ;;  %v5052_v61 = vld [vmem:[#allocation3 + $0x88] sm:$0xff]  ;;  %v3342_v15 = vrot.slane %v3340_v35, 1 }
 0x1ed   : > { %v1758_v54 = vmax.f32 %v16728_v63, %v1694_v17  ;;  %v16732_v40 = vmax.f32 %v16731_v23, 0.0  ;;  %v16733_v50 = vld [vmem:[#allocation17_spill] sm:$0xff]  ;;  %v2530_v17 = vsel %vm2486_vm13, %v2525_v47, %v13189_v42  ;;  %v1553_v55 = vadd.f32 %v12994_v37, %v13116_v13  ;;  %5092 = vst.msk [vmem:[#allocation4 + $0xd8] sm:$0xff] %vm2281_vm11, %v5052_v61  ;;  %v16734_v52 = vld [vmem:[#allocation18_spill] sm:$0xff]  ;;  %v13213_v13 = vld [vmem:[#allocation2 + $0x28] sm:$0xff]  }
 0x1ee   : > { %v1789_v26 = vmax.f32 %v16729_v16, %v1757_v56  ;;  %v1787_v57 = vmax.f32 %v16730_v29, %v1755_v62  ;;  %v3842_v38 = vsel %vm3817_vm14, %v13123_v31, %v3841_v3  ;;  %v5138_v62 = vld [vmem:[#allocation4 + $0x68] sm:$0xff]  ;;  %v3343_v35 = vshll.u32 %v13157_v14, 16  ;;  %v5145_v16 = vld [vmem:[#allocation4 + $0xa0] sm:$0xff] }
 0x1ef   : > { %v1756_v4 = vmax.f32 %v16732_v40, %v1692_v18  ;;  %v13199_v8 = vld [vmem:[#allocation2 + $0x70] sm:$0xff]   ;;  %v1790_v53 = vmax.f32 %v16733_v50, %v1758_v54  ;;  %3905 = vst.msk [vmem:[#allocation3 + $0xb8] sm:$0xff] %vm2281_vm11, %v3842_v38  ;;  %v3349_v10 = vshrl.u32 %v11533_v46, 16  ;;  %11084 = vmatmul.mubr.msk.bf16.vlgmr.msra.gmra.mrb[16].mxu0 %vm2281_vm11, %v5138_v62  ;;  %v3352_v23 = vshll.u32 %v11533_v46, 16 }
 0x1f0   : > { %v10708_v58 = vpack.c.bf16 %v1789_v26, %v1789_v26  ;;  %v10706_v56 = vpack.c.bf16 %v1787_v57, %v1787_v57  ;;  %v3845_v18 = vrot.slane %v13199_v8, 2  ;;  %2699 = vrot.lane.b32.xlu1 %v2530_v17, %s12202_s30  ;;  %v3345_v29 = vrot.slane %v3343_v35, 2  ;;  %11087 = vmatprep.mubr.msk.bf16.mxu0 %vm2281_vm11, %v5145_v16  ;;  %v13226_v38 = vld [vmem:[#allocation2 + $0x30] sm:$0xff]  }
 0x1f1   : > { %v11525_v27 = vld [vmem:[#allocation2 + $0x68] sm:$0xff]   ;;  %v1788_v5 = vmax.f32 %v16734_v52, %v1756_v4  ;;  %v10709_v39 = vpack.c.bf16 %v1790_v53, %v1790_v53  ;;  %v3351_v57 = vrot.slane %v3349_v10, 1  ;;  %v3354_v17 = vrot.slane %v3352_v23, 2 }
 0x1f2   : > { %v3843_v63 = vrot.slane %v11525_v27, 2  ;;  %v2006_v31 = vrot.slane %v10708_v58, 5  ;;  %v1990_v54 = vrot.slane %v10706_v56, 7  ;;  %v3346_v53 = vor.u32 %v3345_v29, %v3342_v15 }
 0x1f3   : > { %v10707_v47 = vpack.c.bf16 %v1788_v5, %v1788_v5  ;;  %v2008_v26 = vrot.slane %v10709_v39, 5  ;;  %v1697_v58 = vmax.f32 %v1553_v55, 0.0  ;;  %v1545_v56 = vadd.f32 %v12994_v37, %v13118_v12  ;;  %v11540_v5 = vld [vmem:[#allocation2 + $0x30] sm:$0xff]  }
 0x1f4   : > { %v3844_v14 = vsel %vm3817_vm14, %v3841_v3, %v3843_v63  ;;  %v3846_v40 = vsel %vm3817_vm14, %v3843_v63, %v3845_v18  ;;  %v2007_v4 = vrot.slane %v2006_v31, 4  ;;  %2014 = vst.msk [vmem:[#allocation2 + $0x80] sm:$0x8] %vm1852_vm3, %v2006_v31  ;;  %v1991_v61 = vrot.slane %v1990_v54, 4  ;;  %v5054_v3 = vld [vmem:[#allocation3 + $0x98] sm:$0xff]  ;;  %v5152_v62 = vld [vmem:[#allocation4 + $0xd8] sm:$0xff] }
 0x1f5   : > { %1998 = vst.msk [vmem:[#allocation2 + $0x78] sm:$0xe] %vm1831_vm6, %v1990_v54  ;;  %v2010_v50 = vrot.slane %v2008_v26, 4  ;;  %v1992_v46 = vrot.slane %v10707_v47, 7  ;;  %v2981_v52 = vrot.slane %v13213_v13, 1  ;;  %v3347_v55 = vsel %vm3303_vm15, %v13135_v20, %v3346_v53  ;;  %v5056_v12 = vld [vmem:[#allocation3 + $0xa8] sm:$0xff] }
 0x1f6   : > { %3906 = vst.msk [vmem:[#allocation3 + $0xc8] sm:$0xff] %vm2281_vm11, %v3844_v14  ;;  %3907 = vst.msk [vmem:[#allocation3 + $0xd8] sm:$0xff] %vm2281_vm11, %v3846_v40  ;;  %v2009_v27 = vsel %vm12928_vm9, %v2007_v4, %v2008_v26  ;;  %v13240_v35 = vor.u32 %v3354_v17, %v3351_v57  ;;  %3543 = vrot.lane.b32.xlu0 %v3347_v55, %s12203_s29  ;;  %v16735_v10 = vmax.f32 %v12868_v49, 0.0  ;;  %v1695_v63 = vmax.f32 %v1545_v56, 0.0  ;;  %v5058_v20 = vld [vmem:[#allocation3 + $0xb8] sm:$0xff]  ;;  %v13259_v26 = vld [vmem:[#allocation2 + $0x38] sm:$0xff]  }
 0x1f7   : > { %5094 = vst.msk [vmem:[#allocation4 + $0x110] sm:$0xff] %vm2281_vm11, %v5054_v3  ;;  %v1993_v15 = vsel %vm12936_vm10, %v1991_v61, %v1992_v46  ;;  %v1994_v39 = vrot.slane %v1992_v46, 4  ;;  %v2982_v31 = vsel %vm2971_vm12, %v2979_v6, %v2981_v52  ;;  %v1556_v54 = vadd.f32 %v12994_v37, %v13121_v11  ;;  %5096 = vst.msk [vmem:[#allocation4 + $0x148] sm:$0xff] %vm2281_vm11, %v5056_v12  ;;  %v16736_v6 = vld [vmem:[#allocation19_spill] sm:$0xff]  ;;  %v16737_v61 = vld [vmem:[#allocation20_spill] sm:$0xff] }
 0x1f8   : > { %2015 = vst.msk [vmem:[#allocation2 + $0x84] sm:$0xf] %vm387_vm0, %v2009_v27  ;;  %1999 = vst.msk [vmem:[#allocation2 + $0x7c] sm:$0xf] %vm387_vm0, %v1993_v15  ;;  %v1761_v13 = vmax.f32 %v16735_v10, %v1697_v58  ;;  %v3356_v47 = vsel %vm3303_vm15, %v3346_v53, %v13240_v35  ;;  %v1548_v49 = vadd.f32 %v12994_v37, %v13127_v0  ;;  %v2983_v16 = vrot.slane %v13226_v38, 1  ;;  %v16740_v15 = vld [vmem:[#allocation21_spill] sm:$0xff] }
 0x1f9   : > { %2016 = vst.msk [vmem:[#allocation2 + $0x88] sm:$0x7] %vm1855_vm7, %v2010_v50  ;;  %v2531_v51 = vshrl.u32 %v13139_v30, 16  ;;  %11088 = vmatmul.mubr.msk.bf16.gmra.mrb[20].mxu0 %vm2281_vm11, %v5152_v62  ;;  %3545 = vrot.lane.b32.xlu1 %v3356_v47, %s12203_s29  ;;  %v1759_v29 = vmax.f32 %v1663_v7, %v1695_v63  ;;  %v1698_v57 = vmax.f32 %v1556_v54, 0.0  ;;  %v2535_v23 = vshll.u32 %v11540_v5, 16  ;;  %v11543_v55 = vld [vmem:[#allocation2 + $0x30] sm:$0xff]  }
 0x1fa   : > { %2000 = vst.msk [vmem:[#allocation2 + $0x80] sm:$0x1] %vm1834_vm8, %v1994_v39  ;;  %v1793_v11 = vmax.f32 %v16736_v6, %v1761_v13  ;;  %v1696_v0 = vmax.f32 %v1548_v49, 0.0  ;;  %v2984_v30 = vsel %vm2971_vm12, %v2981_v52, %v2983_v16  ;;  %v2539_v40 = vshrl.u32 %v11540_v5, 16  ;;  %3031 = vrot.lane.b32.xlu0 %v2982_v31, %s12201_s25  ;;  %v16741_v12 = vld [vmem:[#allocation22_spill] sm:$0xff] }
 0x1fb   : > { %5098 = vst.msk [vmem:[#allocation4 + $0x180] sm:$0xff] %vm2281_vm11, %v5058_v20  ;;  %v2533_v14 = vor.u32 %v2531_v51, %v13189_v42  ;;  %v1791_v50 = vmax.f32 %v16737_v61, %v1759_v29  ;;  %v16738_v46 = vmax.f32 %v12880_v19, 0.0  ;;  %v2537_v22 = vrot.slane %v2535_v23, 1 }
 0x1fc   : > { %v10712_v4 = vpack.c.bf16 %v1793_v11, %v1793_v11  ;;  %v16739_v17 = vmax.f32 %v12884_v45, 0.0  ;;  %v2543_v27 = vshll.u32 %v13259_v26, 16  ;;  %v1569_v58 = vadd.f32 %v12994_v37, %v13172_v44  ;;  %v3668_v5 = vld [vmem:[#allocation2 + $0x78] sm:$0xf] }
 0x1fd   : > { %v1762_v53 = vmax.f32 %v16738_v46, %v1698_v57  ;;  %v5060_v7 = vld [vmem:[#allocation3 + $0xc8] sm:$0xff]  ;;  %v1561_v42 = vadd.f32 %v12994_v37, %v13176_v1  ;;  %v5062_v52 = vld [vmem:[#allocation3 + $0xd8] sm:$0xff]  ;;  %v10710_v62 = vpack.c.bf16 %v1791_v50, %v1791_v50  ;;  %3033 = vrot.lane.b32.xlu1 %v2984_v30, %s12201_s25  ;;  %v2538_v45 = vsel %vm2486_vm13, %v2533_v14, %v2537_v22 }
 0x1fe   : > { %v1760_v3 = vmax.f32 %v16739_v17, %v1696_v0  ;;  %v5159_v56 = vld [vmem:[#allocation4 + $0x110] sm:$0xff]  ;;  %5100 = vst.msk [vmem:[#allocation4 + $0x1b8] sm:$0xff] %vm2281_vm11, %v5060_v7  ;;  %v2038_v19 = vrot.slane %v10712_v4, 5  ;;  %5102 = vst.msk [vmem:[#allocation4 + $0x1f0] sm:$0xff] %vm2281_vm11, %v5062_v52  ;;  %v2541_v13 = vor.u32 %v2539_v40, %v2537_v22  ;;  %v13289_v63 = vrot.slane %v2543_v27, 1  ;;  %2701 = vrot.lane.b32.xlu0 %v2538_v45, %s12202_s30  ;;  %v5166_v6 = vld [vmem:[#allocation4 + $0x148] sm:$0xff] }
 0x1ff   : > { %v1794_v39 = vmax.f32 %v16740_v15, %v1762_v53  ;;  %11091 = vmatprep.mubr.msk.bf16.mxu0 %vm2281_vm11, %v5159_v56  ;;  %v3671_v44 = vld [vmem:[#allocation2 + $0x84] sm:$0xf]  ;;  %v3669_v1 = vld [vmem:[#allocation2 + $0x7c] sm:$0xf]  ;;  %v1701_v31 = vmax.f32 %v1569_v58, 0.0  ;;  %v2022_v49 = vrot.slane %v10710_v62, 7 }
 0x200   : > { %v1792_v10 = vmax.f32 %v16741_v12, %v1760_v3  ;;  %v10287_v20 = vcombine.low %v3668_v5, %v3669_v1  ;;  %v2039_v47 = vrot.slane %v2038_v19, 4  ;;  %2046 = vst.msk [vmem:[#allocation2 + $0x94] sm:$0x8] %vm1852_vm3, %v2038_v19  ;;  %v2546_v23 = vsel %vm2486_vm13, %v2541_v13, %v13289_v63  ;;  %v16743_v53 = vld [vmem:[#allocation23_spill] sm:$0xff]  ;;  %v11546_v17 = vld [vmem:[#allocation2 + $0x38] sm:$0xff]  }
 0x201   : > { %v3670_v54 = vld [vmem:[#allocation2 + $0x80] sm:$0xf]  ;;  %v10713_v51 = vpack.c.bf16 %v1794_v39, %v1794_v39  ;;  %v16742_v0 = vmax.f32 %v12888_v9, 0.0  ;;  %11092 = vmatmul.mubr.msk.bf16.gmra.mrb[24].mxu0 %vm2281_vm11, %v5166_v6  ;;  %v2023_v40 = vrot.slane %v2022_v49, 4  ;;  %2030 = vst.msk [vmem:[#allocation2 + $0x8c] sm:$0xe] %vm1831_vm6, %v2022_v49  ;;  %2703 = vrot.lane.b32.xlu1 %v2546_v23, %s12202_s30  ;;  %v1572_v39 = vadd.f32 %v12994_v37, %v13184_v33 }
 0x202   : > { %v5173_v11 = vld [vmem:[#allocation4 + $0x180] sm:$0xff]  ;;  %v10288_v29 = vcombine.low %v3670_v54, %v3671_v44  ;;  %v10711_v57 = vpack.c.bf16 %v1792_v10, %v1792_v10  ;;  %v3847_v14 = vrot.slane %v10287_v20, 2  ;;  %v1699_v61 = vmax.f32 %v1561_v42, 0.0 }
 0x203   : > { %v1765_v30 = vmax.f32 %v16742_v0, %v1701_v31  ;;  %v2040_v4 = vrot.slane %v10713_v51, 5  ;;  %11095 = vmatprep.mubr.msk.bf16.mxu0 %vm2281_vm11, %v5173_v11  ;;  %v3358_v7 = vshrl.u32 %v11543_v55, 16  ;;  %v16744_v58 = vmax.f32 %v12894_v32, 0.0  ;;  %v11547_v42 = vld [vmem:[#allocation2 + $0x38] sm:$0xff]   ;;  %v16745_v32 = vld [vmem:[#allocation24_spill] sm:$0xff]  ;;  %v13320_v45 = vld [vmem:[#allocation2 + $0x40] sm:$0xff]  }
 0x204   : > { %v3849_v50 = vrot.slane %v10288_v29, 2  ;;  %v2024_v46 = vrot.slane %v10711_v57, 7  ;;  %v3848_v9 = vsel %vm3817_vm14, %v3845_v18, %v3847_v14  ;;  %v3361_v15 = vshll.u32 %v11543_v55, 16  ;;  %v13327_v55 = vld [vmem:[#allocation2 + $0x40] sm:$0xff]   ;;  %v13332_v29 = vld [vmem:[#allocation2 + $0x48] sm:$0xff]  }
 0x205   : > { %v1797_v22 = vmax.f32 %v16743_v53, %v1765_v30  ;;  %v2041_v3 = vsel %vm12928_vm9, %v2039_v47, %v2040_v4  ;;  %v2042_v27 = vrot.slane %v2040_v4, 4  ;;  %v1763_v56 = vmax.f32 %v16744_v58, %v1699_v61  ;;  %3908 = vst.msk [vmem:[#allocation3 + $0xe8] sm:$0xff] %vm2281_vm11, %v3848_v9  ;;  %v5180_v13 = vld [vmem:[#allocation4 + $0x1b8] sm:$0xff]  ;;  %v5187_v49 = vld [vmem:[#allocation4 + $0x1f0] sm:$0xff]  ;;  %v11551_v0 = vld [vmem:[#allocation2 + $0x40] sm:$0xff]  }
 0x206   : > { %v3850_v52 = vsel %vm3817_vm14, %v3847_v14, %v3849_v50  ;;  %2047 = vst.msk [vmem:[#allocation2 + $0x98] sm:$0xf] %vm387_vm0, %v2041_v3  ;;  %v2025_v5 = vsel %vm12936_vm10, %v2023_v40, %v2024_v46  ;;  %v2026_v8 = vrot.slane %v2024_v46, 4  ;;  %v3360_v62 = vrot.slane %v3358_v7, 1  ;;  %v13344_v61 = vld [vmem:[#allocation2 + $0x48] sm:$0xff]  }
 0x207   : > { %v10716_v19 = vpack.c.bf16 %v1797_v22, %v1797_v22  ;;  %3909 = vst.msk [vmem:[#allocation3 + $0xf8] sm:$0xff] %vm2281_vm11, %v3850_v52  ;;  %v1795_v18 = vmax.f32 %v16745_v32, %v1763_v56  ;;  %v1564_v1 = vadd.f32 %v12994_v37, %v13191_v28  ;;  %v3367_v12 = vshrl.u32 %v11546_v17, 16 }
 0x208   : > { %2048 = vst.msk [vmem:[#allocation2 + $0x9c] sm:$0x7] %vm1855_vm7, %v2042_v27  ;;  %v3370_v10 = vshll.u32 %v11546_v17, 16  ;;  %v3363_v54 = vrot.slane %v3361_v15, 2  ;;  %v1702_v20 = vmax.f32 %v1572_v39, 0.0  ;;  %v2985_v47 = vrot.slane %v11547_v42, 1 }
 0x209   : > { %2031 = vst.msk [vmem:[#allocation2 + $0x90] sm:$0xf] %vm387_vm0, %v2025_v5  ;;  %v13323_v44 = vrot.slane %v10716_v19, 5  ;;  %v10714_v31 = vpack.c.bf16 %v1795_v18, %v1795_v18  ;;  %v11534_v33 = vld [vmem:[#allocation2 + $0x88] sm:$0xff]   ;;  %v1700_v6 = vmax.f32 %v1564_v1, 0.0  ;;  %v3369_v11 = vrot.slane %v3367_v12, 1  ;;  %11096 = vmatmul.mubr.msk.bf16.gmra.mrb[28].mxu0 %vm2281_vm11, %v5180_v13 }
 0x20a   : > { %2032 = vst.msk [vmem:[#allocation2 + $0x94] sm:$0x1] %vm1834_vm8, %v2026_v8  ;;  %v3364_v28 = vor.u32 %v3363_v54, %v3360_v62  ;;  %v1766_v57 = vmax.f32 %v1670_v48, %v1702_v20  ;;  %v3372_v23 = vrot.slane %v3370_v10, 2  ;;  %11099 = vmatprep.mubr.msk.bf16.mxu0 %vm2281_vm11, %v5187_v49  ;;  %v3851_v30 = vrot.slane %v11534_v33, 2  ;;  %v16746_v48 = vld [vmem:[#allocation25_spill] sm:$0xff] }
 0x20b   : > { %v2071_v51 = vrot.slane %v13323_v44, 4  ;;  %2078 = vst.msk [vmem:[#allocation2 + $0xa8] sm:$0x8] %vm1852_vm3, %v13323_v44  ;;  %v2054_v37 = vrot.slane %v10714_v31, 7  ;;  %v1764_v14 = vmax.f32 %v1668_v2, %v1700_v6  ;;  %v2986_v40 = vsel %vm2971_vm12, %v2983_v16, %v2985_v47  ;;  %v16747_v16 = vld [vmem:[#allocation26_spill] sm:$0xff] }
 0x20c   : > { %v2987_v4 = vrot.slane %v13320_v45, 1  ;;  %v3365_v21 = vsel %vm3303_vm15, %v13240_v35, %v3364_v28  ;;  %v1798_v53 = vmax.f32 %v16746_v48, %v1766_v57  ;;  %v13350_v22 = vor.u32 %v3372_v23, %v3369_v11  ;;  %v5064_v24 = vld [vmem:[#allocation3 + $0xe8] sm:$0xff]  ;;  %v13376_v1 = vld [vmem:[#allocation2] sm:$0xfe]   ;;  %v13398_v11 = vld [vmem:[#allocation2 + $0x48] sm:$0xff]  }
 0x20d   : > { %v2055_v46 = vrot.slane %v2054_v37, 4  ;;  %2062 = vst.msk [vmem:[#allocation2 + $0xa0] sm:$0xe] %vm1831_vm6, %v2054_v37  ;;  %v3852_v2 = vsel %vm3817_vm14, %v3849_v50, %v3851_v30  ;;  %3547 = vrot.lane.b32.xlu0 %v3365_v21, %s12203_s29  ;;  %v1796_v7 = vmax.f32 %v16747_v16, %v1764_v14  ;;  %v2547_v9 = vshrl.u32 %v13259_v26, 16  ;;  %v13387_v31 = vld [vmem:[#allocation2 + $0xb8] sm:$0xff]   ;;  %v13402_v37 = vld [vmem:[#allocation2 + $0x50] sm:$0xff]  }
 0x20e   : > { %v2988_v17 = vsel %vm2971_vm12, %v2985_v47, %v2987_v4  ;;  %5104 = vst.msk [vmem:[#allocation4 + $0x228] sm:$0xff] %vm2281_vm11, %v5064_v24  ;;  %3910 = vst.msk [vmem:[#allocation3 + $0x108] sm:$0xff] %vm2281_vm11, %v3852_v2  ;;  %v10717_v3 = vpack.c.bf16 %v1798_v53, %v1798_v53  ;;  %v3374_v50 = vsel %vm3303_vm15, %v3364_v28, %v13350_v22  ;;  %v2551_v27 = vshll.u32 %v13327_v55, 16  ;;  %v5066_v56 = vld [vmem:[#allocation3 + $0xf8] sm:$0xff]  ;;  %v13421_v2 = vld [vmem:[#allocation2 + $0x50] sm:$0xff]  }
 0x20f   : > { %v13353_v38 = vld [vmem:[#allocation2 + $0x98] sm:$0xff]   ;;  %v2555_v58 = vshrl.u32 %v13327_v55, 16  ;;  %v10715_v52 = vpack.c.bf16 %v1796_v7, %v1796_v7  ;;  %3549 = vrot.lane.b32.xlu1 %v3374_v50, %s12203_s29  ;;  %v2549_v26 = vor.u32 %v2547_v9, %v13289_v63  ;;  %v2559_v5 = vshll.u32 %v13332_v29, 16  ;;  %5106 = vst.msk [vmem:[#allocation4 + $0x260] sm:$0xff] %vm2281_vm11, %v5066_v56 }
 0x210   : > { %v3855_v42 = vrot.slane %v13353_v38, 2  ;;  %v2072_v19 = vrot.slane %v10717_v3, 5  ;;  %v2553_v32 = vrot.slane %v2551_v27, 1  ;;  %v3376_v18 = vshrl.u32 %v11551_v0, 16  ;;  %v13423_v16 = vld [vmem:[#allocation2 + $0x58] sm:$0xff]  }
 0x211   : > { %v11537_v35 = vld [vmem:[#allocation2 + $0x90] sm:$0xff]   ;;  %v2056_v62 = vrot.slane %v10715_v52, 7  ;;  %3035 = vrot.lane.b32.xlu0 %v2986_v40, %s12201_s25  ;;  %v13373_v15 = vrot.slane %v2559_v5, 1  ;;  %v3379_v39 = vshll.u32 %v11551_v0, 16  ;;  %v3385_v44 = vshrl.u32 %v13344_v61, 16 }
 0x212   : > { %v3853_v8 = vrot.slane %v11537_v35, 2  ;;  %v2073_v10 = vsel %vm12928_vm9, %v2071_v51, %v2072_v19  ;;  %v2074_v13 = vrot.slane %v2072_v19, 4  ;;  %v2554_v47 = vsel %vm2486_vm13, %v2549_v26, %v2553_v32 }
 0x213   : > { %2079 = vst.msk [vmem:[#allocation2 + $0xac] sm:$0xf] %vm387_vm0, %v2073_v10  ;;  %v2057_v54 = vsel %vm12936_vm10, %v2055_v46, %v2056_v62  ;;  %v2058_v20 = vrot.slane %v2056_v62, 4  ;;  %3037 = vrot.lane.b32.xlu1 %v2988_v17, %s12201_s25  ;;  %v2557_v55 = vor.u32 %v2555_v58, %v2553_v32  ;;  %v3378_v49 = vrot.slane %v3376_v18, 1  ;;  %v11575_v17 = vld [vmem:[#allocation2 + $0x8] sm:$0xff]  }
 0x214   : > { %v3854_v63 = vsel %vm3817_vm14, %v3851_v30, %v3853_v8  ;;  %v3856_v12 = vsel %vm3817_vm14, %v3853_v8, %v3855_v42  ;;  %2080 = vst.msk [vmem:[#allocation2 + $0xb0] sm:$0x7] %vm1855_vm7, %v2074_v13  ;;  %v3381_v33 = vrot.slane %v3379_v39, 2  ;;  %v3387_v51 = vrot.slane %v3385_v44, 1  ;;  %v11559_v30 = vld [vmem:[#allocation2 + $0x50] sm:$0xff]   ;;  %v16749_v8 = vld [vmem:[#allocation27_spill] sm:$0xff] }
 0x215   : > { %3911 = vst.msk [vmem:[#allocation3 + $0x118] sm:$0xff] %vm2281_vm11, %v3854_v63  ;;  %3912 = vst.msk [vmem:[#allocation3 + $0x128] sm:$0xff] %vm2281_vm11, %v3856_v12  ;;  %v3388_v6 = vshll.u32 %v13344_v61, 16  ;;  %v5194_v36 = vld [vmem:[#allocation4 + $0x228] sm:$0xff]  ;;  %2705 = vrot.lane.b32.xlu0 %v2554_v47, %s12202_s30  ;;  %v5068_v28 = vld [vmem:[#allocation3 + $0x108] sm:$0xff]  ;;  %v2562_v57 = vsel %vm2486_vm13, %v2557_v55, %v13373_v15  ;;  %v2972_v40 = vrot.slane %v13376_v1, 1 }
 0x216   : > { %2063 = vst.msk [vmem:[#allocation2 + $0xa4] sm:$0xf] %vm387_vm0, %v2057_v54  ;;  %11100 = vmatmul.mubr.msk.bf16.gmra.mrb[32].mxu0 %vm2281_vm11, %v5194_v36  ;;  %v3382_v23 = vor.u32 %v3381_v33, %v3378_v49  ;;  %v5201_v14 = vld [vmem:[#allocation4 + $0x260] sm:$0xff]  ;;  %v2989_v21 = vrot.slane %v13398_v11, 1  ;;  %v16748_v48 = vshrl.u32 %v12854_v34, 16  ;;  %v16646_v24 = vrot.slane %v13387_v31, 2 }
 0x217   : > { %2064 = vst.msk [vmem:[#allocation2 + $0xa8] sm:$0x1] %vm1834_vm8, %v2058_v20  ;;  %v3390_v0 = vrot.slane %v3388_v6, 2  ;;  %2707 = vrot.lane.b32.xlu1 %v2562_v57, %s12202_s30  ;;  %11103 = vmatprep.mubr.msk.bf16.mxu0 %vm2281_vm11, %v5201_v14  ;;  %v3305_v7 = vshrl.u32 %v13393_v43, 16  ;;  %v2567_v35 = vshll.u32 %v13402_v37, 16  ;;  %v3394_v34 = vshrl.u32 %v11559_v30, 16 }
 0x218   : > { %5108 = vst.msk [vmem:[#allocation4 + $0x298] sm:$0xff] %vm2281_vm11, %v5068_v28  ;;  %v3383_v61 = vsel %vm3303_vm15, %v13350_v22, %v3382_v23  ;;  %v2493_v53 = vor.u32 %v12901_v60, %v16748_v48  ;;  %v3678_v22 = vld [vmem:[#allocation2 + $0xa0] sm:$0xf]  ;;  %v3397_v58 = vshll.u32 %v11559_v30, 16  ;;  %2283 = vst.msk [vmem:[#allocation3 + $0x10] sm:$0xff] %vm2281_vm11, %v11575_v17  ;;  %v2990_v5 = vsel %vm2971_vm12, %v2987_v4, %v2989_v21  ;;  %v11562_v13 = vld [vmem:[#allocation2 + $0x58] sm:$0xff]  }
 0x219   : > { %v13413_v46 = vor.u32 %v3390_v0, %v3387_v51  ;;  %3551 = vrot.lane.b32.xlu0 %v3383_v61, %s12203_s29  ;;  %v16750_v32 = vrot.slane %v12760_v59, 1  ;;  %v2991_v44 = vrot.slane %v13421_v2, 1  ;;  %v3308_v1 = vshll.u32 %v13393_v43, 16  ;;  %v11581_v6 = vld [vmem:[#allocation2 + $0x20] sm:$0xff]  }
 0x21a   : > { %v3681_v56 = vld [vmem:[#allocation2 + $0xac] sm:$0xf]  ;;  %v2498_v19 = vsel %vm2486_vm13, %v2493_v53, %v16749_v8  ;;  %v2563_v45 = vshrl.u32 %v13332_v29, 16  ;;  %v2569_v4 = vrot.slane %v2567_v35, 1  ;;  %v2575_v10 = vshll.u32 %v13423_v16, 16  ;;  %2286 = vst.msk [vmem:[#allocation3 + $0x40] sm:$0xff] %vm2281_vm11, %v11581_v6 }
 0x21b   : > { %v3392_v9 = vsel %vm3303_vm15, %v3382_v23, %v13413_v46  ;;  %v11544_v50 = vld [vmem:[#allocation2 + $0xb0] sm:$0xff]   ;;  %v2974_v18 = vsel %vm2971_vm12, %v2972_v40, %v16750_v32  ;;  %v2571_v20 = vshrl.u32 %v13402_v37, 16  ;;  %v3396_v47 = vrot.slane %v3394_v34, 1  ;;  %v13464_v37 = vld [vmem:[#allocation2 + $0x58] sm:$0xff]   ;;  %v11564_v17 = vld [vmem:[#allocation2 + $0x60] sm:$0xff]  }
 0x21c   : > { %v5070_v3 = vld [vmem:[#allocation3 + $0x118] sm:$0xff]  ;;  %v5072_v60 = vld [vmem:[#allocation3 + $0x128] sm:$0xff]  ;;  %3553 = vrot.lane.b32.xlu1 %v3392_v9, %s12203_s29  ;;  %v3861_v62 = vrot.slane %v11544_v50, 2  ;;  %v3399_v55 = vrot.slane %v3397_v58, 2  ;;  %v3307_v33 = vrot.slane %v3305_v7, 1  ;;  %v3310_v51 = vrot.slane %v3308_v1, 2 }
 0x21d   : > { %v3679_v27 = vld [vmem:[#allocation2 + $0xa4] sm:$0xf]  ;;  %5110 = vst.msk [vmem:[#allocation4 + $0x2d0] sm:$0xff] %vm2281_vm11, %v5070_v3  ;;  %5112 = vst.msk [vmem:[#allocation4 + $0x308] sm:$0xff] %vm2281_vm11, %v5072_v60  ;;  %3039 = vrot.lane.b32.xlu0 %v2990_v5, %s12201_s25  ;;  %v2992_v38 = vsel %vm2971_vm12, %v2989_v21, %v2991_v44  ;;  %v2573_v11 = vor.u32 %v2571_v20, %v2569_v4  ;;  %v2577_v36 = vrot.slane %v2575_v10, 1  ;;  %v3403_v0 = vshrl.u32 %v11562_v13, 16 }
 0x21e   : > { %v3680_v52 = vld [vmem:[#allocation2 + $0xa8] sm:$0xf]  ;;  %v10292_v26 = vcombine.low %v3678_v22, %v3679_v27  ;;  %v3864_v59 = vsel %vm3817_vm14, %v3861_v62, %v16646_v24  ;;  %v3400_v23 = vor.u32 %v3399_v55, %v3396_v47  ;;  %v3406_v30 = vshll.u32 %v11562_v13, 16  ;;  %v11563_v21 = vld [vmem:[#allocation2 + $0x60] sm:$0xff]   ;;  %v11592_v10 = vld [vmem:[#allocation2 + $0x38] sm:$0xff]  }
 0x21f   : > { %v10293_v39 = vcombine.low %v3680_v52, %v3681_v56  ;;  %v5208_v63 = vld [vmem:[#allocation4 + $0x298] sm:$0xff]  ;;  %3916 = vst.msk [vmem:[#allocation3 + $0x168] sm:$0xff] %vm2281_vm11, %v3864_v59  ;;  %v16648_v40 = vrot.slane %v13464_v37, 1  ;;  %v3311_v61 = vor.u32 %v3310_v51, %v3307_v33  ;;  %v3405_v2 = vrot.slane %v3403_v0, 1  ;;  %v13492_v52 = vld [vmem:[#allocation2 + $0x68] sm:$0xff]   ;;  %2289 = vst.msk [vmem:[#allocation3 + $0x70] sm:$0xff] %vm2281_vm11, %v11592_v10 }
 0x220   : > { %v3857_v12 = vrot.slane %v10292_v26, 2  ;;  %11104 = vmatmul.mubr.msk.bf16.gmra.mrb[36].mxu0 %vm2281_vm11, %v5208_v63  ;;  %2691 = vrot.lane.b32.xlu1 %v2498_v19, %s12202_s30  ;;  %v3401_v53 = vsel %vm3303_vm15, %v13413_v46, %v3400_v23  ;;  %v3408_v7 = vrot.slane %v3406_v30, 2  ;;  %v11586_v46 = vld [vmem:[#allocation2 + $0x28] sm:$0xff]   ;;  %v2583_v50 = vshll.u32 %v11563_v21, 16  ;;  %v11587_v56 = vld [vmem:[#allocation2 + $0x30] sm:$0xff]   ;;  %v13509_v51 = vld [vmem:[#allocation2 + $0x78] sm:$0xff]  }
 0x221   : > { %v3859_v54 = vrot.slane %v10293_v39, 2  ;;  %3023 = vrot.lane.b32.xlu0 %v2974_v18, %s12201_s25  ;;  %v2994_v34 = vsel %vm2971_vm12, %v2991_v44, %v16648_v40  ;;  %v3320_v3 = vsel %vm3303_vm15, %v3311_v61, %v16722_v25  ;;  %v3412_v27 = vshrl.u32 %v11564_v17, 16  ;;  %2287 = vst.msk [vmem:[#allocation3 + $0x50] sm:$0xff] %vm2281_vm11, %v11586_v46  ;;  %2288 = vst.msk [vmem:[#allocation3 + $0x60] sm:$0xff] %vm2281_vm11, %v11587_v56  ;;  %v11566_v18 = vld [vmem:[#allocation2 + $0x68] sm:$0xff]   ;;  %v11568_v59 = vld [vmem:[#allocation2 + $0x70] sm:$0xff]  }
 0x222   : > { %v3858_v29 = vsel %vm3817_vm14, %v3855_v42, %v3857_v12  ;;  %v2565_v42 = vor.u32 %v2563_v45, %v13373_v15  ;;  %v2578_v15 = vsel %vm2486_vm13, %v2573_v11, %v2577_v36  ;;  %v3409_v60 = vor.u32 %v3408_v7, %v3405_v2  ;;  %v11596_v6 = vld [vmem:[#allocation2] sm:$0xff]   ;;  %v11570_v30 = vld [vmem:[#allocation2 + $0x78] sm:$0xff]   ;;  %v11599_v61 = vld [vmem:[#allocation2 + $0x50] sm:$0xff]  }
 0x223   : > { %v3860_v43 = vsel %vm3817_vm14, %v3857_v12, %v3859_v54  ;;  %v3862_v49 = vsel %vm3817_vm14, %v3859_v54, %v3861_v62  ;;  %3913 = vst.msk [vmem:[#allocation3 + $0x138] sm:$0xff] %vm2281_vm11, %v3858_v29  ;;  %v3415_v58 = vshll.u32 %v11564_v17, 16  ;;  %v2579_v25 = vshrl.u32 %v13423_v16, 16  ;;  %v13504_v54 = vld [vmem:[#allocation2 + $0x8] sm:$0xff]   ;;  %2282 = vst.msk [vmem:[#allocation3] sm:$0xff] %vm2281_vm11, %v11596_v6  ;;  %v11572_v7 = vld [vmem:[#allocation2 + $0x80] sm:$0xff]  }
 0x224   : > { %3914 = vst.msk [vmem:[#allocation3 + $0x148] sm:$0xff] %vm2281_vm11, %v3860_v43  ;;  %3915 = vst.msk [vmem:[#allocation3 + $0x158] sm:$0xff] %vm2281_vm11, %v3862_v49  ;;  %v5215_v28 = vld [vmem:[#allocation4 + $0x2d0] sm:$0xff]  ;;  %3041 = vrot.lane.b32.xlu1 %v2992_v38, %s12201_s25  ;;  %v2570_v57 = vsel %vm2486_vm13, %v2565_v42, %v2569_v4  ;;  %v5222_v14 = vld [vmem:[#allocation4 + $0x308] sm:$0xff]  ;;  %v3410_v26 = vsel %vm3303_vm15, %v3400_v23, %v3409_v60  ;;  %v2585_v5 = vrot.slane %v2583_v50, 1  ;;  %v3414_v8 = vrot.slane %v3412_v27, 1 }
 0x225   : > { %11107 = vmatprep.mubr.msk.bf16.mxu0 %vm2281_vm11, %v5215_v28  ;;  %2709 = vrot.lane.b32.xlu0 %v2570_v57, %s12202_s30  ;;  %v3417_v19 = vrot.slane %v3415_v58, 2  ;;  %v2581_v39 = vor.u32 %v2579_v25, %v2577_v36  ;;  %v2591_v16 = vshll.u32 %v13492_v52, 16  ;;  %v3421_v12 = vshrl.u32 %v11566_v18, 16  ;;  %v13502_v4 = vld [vmem:[#allocation2 + $0x70] sm:$0xff]   ;;  %v11593_v43 = vld [vmem:[#allocation2 + $0x40] sm:$0xff]   ;;  %v13514_v28 = vld [vmem:[#allocation2 + $0x18] sm:$0xff]  }
 0x226   : > { %v5080_v48 = vld [vmem:[#allocation3 + $0x168] sm:$0xff]  ;;  %v3424_v45 = vshll.u32 %v11566_v18, 16  ;;  %v2587_v13 = vshrl.u32 %v11563_v21, 16  ;;  %2290 = vst.msk [vmem:[#allocation3 + $0x80] sm:$0xff] %vm2281_vm11, %v11593_v43  ;;  %v3642_v38 = vld [vmem:[#allocation2 + $0x10] sm:$0xf] }
 0x227   : > { %5120 = vst.msk [vmem:[#allocation4 + $0x3e8] sm:$0xff] %vm2281_vm11, %v5080_v48  ;;  %v2586_v1 = vsel %vm2486_vm13, %v2581_v39, %v2585_v5  ;;  %v3418_v63 = vor.u32 %v3417_v19, %v3414_v8  ;;  %v2593_v29 = vrot.slane %v2591_v16, 1  ;;  %v3423_v47 = vrot.slane %v3421_v12, 1  ;;  %v3643_v42 = vld [vmem:[#allocation2 + $0x14] sm:$0xf]  ;;  %2292 = vst.msk [vmem:[#allocation3 + $0xa0] sm:$0xff] %vm2281_vm11, %v11599_v61 }
 0x228   : > { %11108 = vmatmul.mubr.msk.bf16.gmra.mrb[40].mxu0 %vm2281_vm11, %v5222_v14  ;;  %2711 = vrot.lane.b32.xlu1 %v2578_v15, %s12202_s30  ;;  %v3426_v55 = vrot.slane %v3424_v45, 2  ;;  %v2589_v33 = vor.u32 %v2587_v13, %v2585_v5  ;;  %v2599_v11 = vshll.u32 %v13502_v4, 16  ;;  %v3430_v36 = vshrl.u32 %v11568_v59, 16  ;;  %v11598_v14 = vld [vmem:[#allocation2 + $0x48] sm:$0xff]   ;;  %v3646_v15 = vld [vmem:[#allocation2 + $0x20] sm:$0xff]   ;;  %v13523_v17 = vld [vmem:[#allocation2 + $0xb0] sm:$0xff]  }
 0x229   : > { %3555 = vrot.lane.b32.xlu0 %v3401_v53, %s12203_s29  ;;  %v3419_v20 = vsel %vm3303_vm15, %v3409_v60, %v3418_v63  ;;  %v3433_v0 = vshll.u32 %v11568_v59, 16  ;;  %v16647_v21 = vrot.slane %v13504_v54, 2  ;;  %v2595_v48 = vshrl.u32 %v13492_v52, 16  ;;  %2291 = vst.msk [vmem:[#allocation3 + $0x90] sm:$0xff] %vm2281_vm11, %v11598_v14  ;;  %v11602_v27 = vld [vmem:[#allocation2 + $0x58] sm:$0xff]   ;;  %v11604_v25 = vld [vmem:[#allocation2 + $0x60] sm:$0xff]  }
 0x22a   : > { %v5074_v22 = vld [vmem:[#allocation3 + $0x138] sm:$0xff]  ;;  %v2594_v57 = vsel %vm2486_vm13, %v2589_v33, %v2593_v29  ;;  %v3427_v23 = vor.u32 %v3426_v55, %v3423_v47  ;;  %v2603_v53 = vshrl.u32 %v13502_v4, 16  ;;  %v2607_v2 = vshll.u32 %v13509_v51, 16  ;;  %2293 = vst.msk [vmem:[#allocation3 + $0xb0] sm:$0xff] %vm2281_vm11, %v11602_v27  ;;  %2294 = vst.msk [vmem:[#allocation3 + $0xc0] sm:$0xff] %vm2281_vm11, %v11604_v25  ;;  %v13589_v61 = vld [vmem:[#allocation2 + $0x90] sm:$0xff]  }
 0x22b   : > { %5114 = vst.msk [vmem:[#allocation4 + $0x340] sm:$0xff] %vm2281_vm11, %v5074_v22  ;;  %v5076_v9 = vld [vmem:[#allocation3 + $0x148] sm:$0xff]  ;;  %v5078_v35 = vld [vmem:[#allocation3 + $0x158] sm:$0xff]  ;;  %v2601_v22 = vrot.slane %v2599_v11, 1  ;;  %v3435_v46 = vrot.slane %v3433_v0, 2  ;;  %v3439_v60 = vshrl.u32 %v11570_v30, 16 }
 0x22c   : > { %5116 = vst.msk [vmem:[#allocation4 + $0x378] sm:$0xff] %vm2281_vm11, %v5076_v9  ;;  %5118 = vst.msk [vmem:[#allocation4 + $0x3b0] sm:$0xff] %vm2281_vm11, %v5078_v35  ;;  %3043 = vrot.lane.b32.xlu1 %v2994_v34, %s12201_s25  ;;  %v3432_v9 = vrot.slane %v3430_v36, 1  ;;  %v10274_v35 = vcombine.low %v3642_v38, %v3643_v42  ;;  %v3428_v34 = vsel %vm3303_vm15, %v3418_v63, %v3427_v23  ;;  %v3442_v50 = vshll.u32 %v11570_v30, 16  ;;  %v13536_v19 = vld [vmem:[#allocation2 + $0x80] sm:$0xff]   ;;  %v13539_v18 = vld [vmem:[#allocation2 + $0x88] sm:$0xff]  }
 0x22d   : > { %3537 = vrot.lane.b32.xlu0 %v3320_v3, %s12203_s29  ;;  %v2597_v3 = vor.u32 %v2595_v48, %v2593_v29  ;;  %v13529_v58 = vrot.slane %v2607_v2, 1  ;;  %v2663_v56 = vshll.u32 %v13523_v17, 16  ;;  %v3441_v8 = vrot.slane %v3439_v60, 1  ;;  %v11607_v12 = vld [vmem:[#allocation2 + $0x68] sm:$0xff]   ;;  %v11611_v29 = vld [vmem:[#allocation2 + $0x70] sm:$0xff]   ;;  %v11617_v14 = vld [vmem:[#allocation2 + $0x80] sm:$0xff]  }
 0x22e   : > { %v5250_v49 = vld [vmem:[#allocation4 + $0x3e8] sm:$0xff]  ;;  %v3821_v52 = vrot.slane %v10274_v35, 2  ;;  %v13534_v5 = vor.u32 %v3435_v46, %v3432_v9  ;;  %v3451_v16 = vshll.u32 %v11572_v7, 16  ;;  %v3825_v45 = vrot.slane %v3646_v15, 2  ;;  %2295 = vst.msk [vmem:[#allocation3 + $0xd0] sm:$0xff] %vm2281_vm11, %v11607_v12  ;;  %2296 = vst.msk [vmem:[#allocation3 + $0xe0] sm:$0xff] %vm2281_vm11, %v11611_v29 }
 0x22f   : > { %v13551_v63 = vrot.slane %v2663_v56, 1  ;;  %v3444_v4 = vrot.slane %v3442_v50, 2  ;;  %vm2766_vm0 = vcmask 523520   ;;  %v11608_v10 = vld [vmem:[%s16625_s3 + $0x8] sm:$0xff]   ;;  %v2667_v43 = vshrl.u32 %v13523_v17, 16  ;;  %v13591_v48 = vld [vmem:[#allocation2 + $0x90] sm:$0xff]  }
 0x230   : > { %v3822_v39 = vsel %vm3817_vm14, %v16647_v21, %v3821_v52  ;;  %v3437_v59 = vsel %vm3303_vm15, %v3427_v23, %v13534_v5  ;;  %v3828_v55 = vsel %vm3817_vm14, %v3825_v45, %v13036_v41  ;;  %v2611_v33 = vshrl.u32 %v13509_v51, 16  ;;  %v11614_v41 = vld [vmem:[#allocation2 + $0x78] sm:$0xff]   ;;  %v11620_v2 = vld [vmem:[#allocation2 + $0x88] sm:$0xff]   ;;  %2298 = vst.msk [vmem:[#allocation3 + $0x100] sm:$0xff] %vm2281_vm11, %v11617_v14  ;;  %v11631_v50 = vld [vmem:[#allocation2 + $0xa0] sm:$0xff]  }
 0x231   : > { %3557 = vrot.lane.b32.xlu0 %v3410_v26, %s12203_s29  ;;  %v2602_v26 = vsel %vm2486_vm13, %v2597_v3, %v2601_v22  ;;  %3895 = vst.msk [vmem:[#allocation3 + $0x18] sm:$0xff] %vm2281_vm11, %v3822_v39  ;;  %3898 = vst.msk [vmem:[#allocation3 + $0x48] sm:$0xff] %vm2281_vm11, %v3828_v55  ;;  %v2615_v38 = vshll.u32 %v13536_v19, 16  ;;  %v3453_v11 = vrot.slane %v3451_v16, 2  ;;  %v2623_v51 = vshll.u32 %v13539_v18, 16  ;;  %v11626_v35 = vld [vmem:[#allocation2 + $0x98] sm:$0xff]  }
 0x232   : > { %v5229_v32 = vld [vmem:[#allocation4 + $0x340] sm:$0xff]  ;;  %v3445_v0 = vor.u32 %v3444_v4, %v3441_v8  ;;  %2297 = vst.msk [vmem:[#allocation3 + $0xf0] sm:$0xff] %vm2281_vm11, %v11614_v41  ;;  %v2619_v9 = vshrl.u32 %v13536_v19, 16  ;;  %2299 = vst.msk [vmem:[#allocation3 + $0x110] sm:$0xff] %vm2281_vm11, %v11620_v2  ;;  %v11633_v56 = vld [vmem:[#allocation2 + $0xa8] sm:$0xff]   ;;  %v2627_v8 = vshrl.u32 %v13539_v18, 16 }
 0x233   : > { %11111 = vmatprep.mubr.msk.bf16.mxu0 %vm2281_vm11, %v5229_v32  ;;  %v5236_v62 = vld [vmem:[#allocation4 + $0x378] sm:$0xff]  ;;  %v5243_v44 = vld [vmem:[#allocation4 + $0x3b0] sm:$0xff]  ;;  %v3448_v32 = vshrl.u32 %v11572_v7, 16  ;;  %v2613_v7 = vor.u32 %v2611_v33, %v13529_v58  ;;  %v2617_v17 = vrot.slane %v2615_v38, 1  ;;  %v13604_v46 = vrot.slane %v2623_v51, 1  ;;  %2301 = vst.msk [vmem:[#allocation3 + $0x130] sm:$0xff] %vm2281_vm11, %v11626_v35 }
 0x234   : > { %11112 = vmatmul.mubr.msk.bf16.gmra.mrb[44].mxu0 %vm2281_vm11, %v5236_v62  ;;  %v11606_v62 = vld [vmem:[%s16625_s3] sm:$0xff]   ;;  %2302 = vst.msk [vmem:[#allocation3 + $0x140] sm:$0xff] %vm2281_vm11, %v11631_v50  ;;  %v2631_v19 = vshll.u32 %v13589_v61, 16  ;;  %2303 = vst.msk [vmem:[#allocation3 + $0x150] sm:$0xff] %vm2281_vm11, %v11633_v56  ;;  %vm3612_vm3 = vcmask 1048320   ;;  %v13650_v29 = vld [vmem:[#allocation3 + $0x68] sm:$0xff] }
 0x235   : > { %11115 = vmatprep.mubr.msk.bf16.mxu0 %vm2281_vm11, %v5243_v44  ;;  %2713 = vrot.lane.b32.xlu0 %v2586_v1, %s12202_s30  ;;  %v3823_v44 = vrot.slane %v13514_v28, 2  ;;  %v13549_v1 = vld [vmem:[#allocation2 + $0x88] sm:$0xff]   ;;  %v3450_v42 = vrot.slane %v3448_v32, 1  ;;  %v13575_v28 = vor.u32 %v2667_v43, %v13551_v63  ;;  %v2618_v25 = vsel %vm2486_vm13, %v2613_v7, %v2617_v17  ;;  %v11613_v39 = vld [vmem:[%s16625_s3 + $0x20] sm:$0xff]   ;;  %3972 = vst.msk [vmem:[#allocation4 + $0x158] sm:$0xff] %vm2281_vm11, %v13650_v29  ;;  %v13724_v50 = vld [vmem:[#allocation3 + $0x108] sm:$0xff] }
 0x236   : > { %5733 = vmatpush1.bf16.msra.mxu1 %v11606_v62  ;;  %v3457_v30 = vshrl.u32 %v13549_v1, 16  ;;  %v3460_v15 = vshll.u32 %v13549_v1, 16  ;;  %v3466_v62 = vshrl.u32 %v13591_v48, 16  ;;  %v3469_v33 = vshll.u32 %v13591_v48, 16  ;;  %v13665_v38 = vld [vmem:[#allocation3 + $0x98] sm:$0xff]  ;;  %v13702_v48 = vld [vmem:[#allocation3 + $0xc8] sm:$0xff] }
 0x237   : > { %v3824_v13 = vsel %vm3817_vm14, %v3821_v52, %v3823_v44  ;;  %v3826_v47 = vsel %vm3817_vm14, %v3823_v44, %v3825_v45  ;;  %v13602_v3 = vor.u32 %v3453_v11, %v3450_v42  ;;  %v2621_v52 = vor.u32 %v2619_v9, %v2617_v17  ;;  %v13636_v45 = vld [vmem:[#allocation2 + $0x98] sm:$0xff]   ;;  %v11615_v51 = vld [vmem:[%s16625_s3 + $0x28] sm:$0xff]   ;;  %3978 = vst.msk [vmem:[#allocation4 + $0x200] sm:$0xff] %vm2281_vm11, %v13665_v38  ;;  %v13888_v21 = vld [vmem:[#allocation2 + $0xa0] sm:$0xff]  }
 0x238   : > { %3896 = vst.msk [vmem:[#allocation3 + $0x28] sm:$0xff] %vm2281_vm11, %v3824_v13  ;;  %3897 = vst.msk [vmem:[#allocation3 + $0x38] sm:$0xff] %vm2281_vm11, %v3826_v47  ;;  %v3459_v60 = vrot.slane %v3457_v30, 1  ;;  %v3922_v27 = vld [vmem:[#allocation3 + $0x18] sm:$0xff]  ;;  %v13641_v4 = vld [vmem:[#allocation3 + $0x48] sm:$0xff]  ;;  %v13674_v41 = vrot.slane %v3466_v62, 1  ;;  %v13712_v17 = vor.u32 %v2627_v8, %v13604_v46 }
 0x239   : > { %3559 = vrot.lane.b32.xlu0 %v3419_v20, %s12203_s29  ;;  %v16751_v20 = vmov 0   ;;  %3962 = vst.msk [vmem:[#allocation4 + $0x40] sm:$0xff] %vm2281_vm11, %v3922_v27  ;;  %v3455_v18 = vsel %vm3303_vm15, %v3445_v0, %v13602_v3  ;;  %v13633_v1 = vsel %vm2486_vm13, %v2621_v52, %v13604_v46  ;;  %3968 = vst.msk [vmem:[#allocation4 + $0xe8] sm:$0xff] %vm2281_vm11, %v13641_v4  ;;  %v13652_v47 = vld [vmem:[#allocation3 + $0x78] sm:$0xff]  ;;  %v4440_v43 = vrot.slane %v13641_v4, 4  ;;  %v11616_v8 = vld [vmem:[%s16625_s3 + $0x30] sm:$0xff]  }
 0x23a   : > { %5734 = vmatprep.subr.bf16.mxu1 %v16751_v20  ;;  %3974 = vst.msk [vmem:[#allocation4 + $0x190] sm:$0xff] %vm2281_vm11, %v13652_v47  ;;  %v4448_v7 = vrot.slane %v13650_v29, 4  ;;  %3984 = vst.msk [vmem:[#allocation4 + $0x2a8] sm:$0xff] %vm2281_vm11, %v13702_v48  ;;  %v13720_v35 = vld [vmem:[#allocation3 + $0xf8] sm:$0xff]  ;;  %v13726_v27 = vrot.slane %v3469_v33, 2  ;;  %vm4306_vm6 = vcmask 1047808  }
 0x23b   : > { %5735 = vmatpush1.bf16.msra.mxu1 %v11608_v10  ;;  %3990 = vst.msk [vmem:[#allocation4 + $0x350] sm:$0xff] %vm2281_vm11, %v13720_v35  ;;  %3992 = vst.msk [vmem:[#allocation4 + $0x388] sm:$0xff] %vm2281_vm11, %v13724_v50  ;;  %v13739_v52 = vld [vmem:[#allocation3 + $0x118] sm:$0xff]  ;;  %vm439_vm7 = vcmask 523264   ;;  %vm4657_vm8 = vcmask 785408   ;;  %vm4655_vm9 = vcmask 1048064  }
 0x23c   : > { %11116 = vmatmul.mubr.msk.bf16.gmra.mrb[48].mxu0 %vm2281_vm11, %v5250_v49  ;;  %v2605_v49 = vor.u32 %v2603_v53, %v2601_v22  ;;  %5736 = vmatprep.subr.bf16.mxu1 %v16751_v20  ;;  %v11612_v53 = vld [vmem:[%s16625_s3 + $0x18] sm:$0xff]   ;;  %v11623_v22 = vld [vmem:[#allocation2 + $0x90] sm:$0xff]   ;;  %3994 = vst.msk [vmem:[#allocation4 + $0x3c0] sm:$0xff] %vm2281_vm11, %v13739_v52  ;;  %v11628_v40 = vld [vmem:[#allocation2] sm:$0xfc]   ;;  %vm6604_vm10 = vcmask 523269  }
 0x23d   : > { %2715 = vrot.lane.b32.xlu0 %v2594_v57, %s12202_s30  ;;  %v11610_v57 = vld [vmem:[%s16625_s3 + $0x10] sm:$0xff]   ;;  %2300 = vst.msk [vmem:[#allocation3 + $0x120] sm:$0xff] %vm2281_vm11, %v11623_v22 }
 0x23e   : > { %v2610_v23 = vsel %vm2486_vm13, %v2605_v49, %v13529_v58  ;;  %v3462_v58 = vrot.slane %v3460_v15, 2  ;;  %v4095_v49 = vrot.slane %v13641_v4, 2  ;;  %v3475_v15 = vshrl.u32 %v13636_v45, 16  ;;  %v13718_v22 = vld [vmem:[#allocation3 + $0xe8] sm:$0xff]  ;;  %440 = vst.msk [vmem:[#allocation6] sm:$0xff] %vm439_vm7, %v16751_v20  ;;  %441 = vst.msk [vmem:[#allocation6 + $0x8] sm:$0xff] %vm439_vm7, %v16751_v20 }
 0x23f   : > { %5737 = vmatpush1.bf16.msra.mxu1 %v11610_v57  ;;  %v13626_v44 = vld [vmem:[#allocation3 + $0x38] sm:$0xff]  ;;  %3988 = vst.msk [vmem:[#allocation4 + $0x318] sm:$0xff] %vm2281_vm11, %v13718_v22 }
 0x240   : > { %5738 = vmatprep.subr.bf16.mxu1 %v16751_v20  ;;  %3966 = vst.msk [vmem:[#allocation4 + $0xb0] sm:$0xff] %vm2281_vm11, %v13626_v44  ;;  %v4091_v10 = vrot.slane %v13626_v44, 2  ;;  %v13645_v13 = vor.u32 %v3462_v58, %v3459_v60  ;;  %v16645_v55 = vrot.slane %v13626_v44, 4  ;;  %v4103_v60 = vrot.slane %v13650_v29, 2 }
 0x241   : > { %3561 = vrot.lane.b32.xlu0 %v3428_v34, %s12203_s29  ;;  %v3446_v34 = vsel %vm3303_vm15, %v13534_v5, %v3445_v0  ;;  %v13615_v5 = vld [vmem:[#allocation3 + $0x28] sm:$0xff]  ;;  %v13690_v0 = vld [vmem:[#allocation3 + $0xb8] sm:$0xff]  ;;  %442 = vst.msk [vmem:[#allocation6 + $0x10] sm:$0xff] %vm439_vm7, %v16751_v20  ;;  %443 = vst.msk [vmem:[#allocation6 + $0x18] sm:$0xff] %vm439_vm7, %v16751_v20 }
 0x242   : > { %3964 = vst.msk [vmem:[#allocation4 + $0x78] sm:$0xff] %vm2281_vm11, %v13615_v5  ;;  %v16644_v16 = vrot.slane %v13615_v5, 2  ;;  %v13684_v57 = vsel %vm4431_vm4, %v16645_v55, %v4440_v43  ;;  %v13693_v30 = vsel %vm3817_vm14, %v4091_v10, %v4095_v49  ;;  %3982 = vst.msk [vmem:[#allocation4 + $0x270] sm:$0xff] %vm2281_vm11, %v13690_v0  ;;  %v4468_v33 = vrot.slane %v13690_v0, 4 }
 0x243   : > { %5739 = vmatpush1.bf16.msra.mxu1 %v11612_v53  ;;  %v13704_v53 = vld [vmem:[#allocation3 + $0xd8] sm:$0xff]  ;;  %444 = vst.msk [vmem:[#allocation6 + $0x20] sm:$0xff] %vm439_vm7, %v16751_v20  ;;  %445 = vst.msk [vmem:[#allocation6 + $0x28] sm:$0xff] %vm439_vm7, %v16751_v20 }
 0x244   : > { %v3026_v36 = vpop.permute.xlu1 %3025  ;;  %5740 = vmatprep.subr.bf16.mxu1 %v16751_v20  ;;  %v13670_v42 = vsel %vm3817_vm14, %v16644_v16, %v4091_v10  ;;  %3986 = vst.msk [vmem:[#allocation4 + $0x2e0] sm:$0xff] %vm2281_vm11, %v13704_v53  ;;  %v13841_v16 = vor.u32 %v13726_v27, %v13674_v41 }
 0x245   : > { %2717 = vrot.lane.b32.xlu0 %v2602_v26, %s12202_s30  ;;  %v13612_v26 = vld [vmem:[#allocation2 + $0x98] sm:$0xff]   ;;  %446 = vst.msk [vmem:[#allocation6 + $0x30] sm:$0xff] %vm439_vm7, %v16751_v20 }
 0x246   : > { %v2694_v6 = vpop.permute.xlu0 %2693  ;;  %v2639_v14 = vshll.u32 %v13612_v26, 16 }
 0x247   : > { %2768 = vst.msk [vmem:[#allocation3 + $0x10] sm:$0xff] %vm2766_vm0, %v2694_v6  ;;  %v13663_v6 = vld [vmem:[#allocation3 + $0x88] sm:$0xff]  ;;  %5741 = vmatpush1.bf16.msra.mxu1 %v11613_v39  ;;  %v4460_v39 = vrot.slane %v13665_v38, 4 }
 0x248   : > { %3100 = vst.msk [vmem:[#allocation3 + $0x10] sm:$0xff] %vm3098_vm2, %v3026_v36  ;;  %v3028_v12 = vpop.permute.xlu1 %3027  ;;  %v13672_v36 = vrot.slane %v2631_v19, 1  ;;  %5742 = vmatprep.subr.bf16.mxu1 %v16751_v20  ;;  %v4456_v56 = vrot.slane %v13663_v6, 4 }
 0x249   : > { %3563 = vrot.lane.b32.xlu0 %v3437_v59, %s12203_s29  ;;  %v3930_v59 = vld [vmem:[#allocation3 + $0x58] sm:$0xff]  ;;  %3976 = vst.msk [vmem:[#allocation4 + $0x1c8] sm:$0xff] %vm2281_vm11, %v13663_v6 }
 0x24a   : > { %3970 = vst.msk [vmem:[#allocation4 + $0x120] sm:$0xff] %vm2281_vm11, %v3930_v59  ;;  %v4444_v11 = vrot.slane %v3930_v59, 4  ;;  %v4099_v9 = vrot.slane %v3930_v59, 2  ;;  %v4111_v59 = vrot.slane %v13663_v6, 2 }
 0x24b   : > { %5743 = vmatpush1.bf16.msra.mxu1 %v11615_v51 }
 0x24c   : > { %v13707_v2 = vsel %vm4431_vm4, %v4440_v43, %v4444_v11  ;;  %v13731_v58 = vsel %vm4431_vm4, %v4444_v11, %v4448_v7  ;;  %v13746_v19 = vsel %vm3817_vm14, %v4095_v49, %v4099_v9  ;;  %v13752_v62 = vsel %vm3817_vm14, %v4099_v9, %v4103_v60  ;;  %5744 = vmatprep.subr.bf16.mxu1 %v16751_v20  ;;  %v11658_v11 = vld [vmem:[#allocation2 + $0xb0] sm:$0xff]  }
 0x24d   : > { %2719 = vrot.lane.b32.xlu0 %v2610_v23, %s12202_s30  ;;  %v13688_v23 = vld [vmem:[#allocation3 + $0xa8] sm:$0xff]  ;;  %v13776_v43 = vsel %vm4431_vm4, %v4456_v56, %v4460_v39  ;;  %v4115_v49 = vrot.slane %v13665_v38, 2  ;;  %v4123_v9 = vrot.slane %v13690_v0, 2  ;;  %v3478_v38 = vshll.u32 %v13636_v45, 16  ;;  %2304 = vst.msk [vmem:[#allocation3 + $0x160] sm:$0xff] %vm2281_vm11, %v11658_v11 }
 0x24e   : > { %3980 = vst.msk [vmem:[#allocation4 + $0x238] sm:$0xff] %vm2281_vm11, %v13688_v23  ;;  %v4464_v29 = vrot.slane %v13688_v23, 4  ;;  %v4119_v6 = vrot.slane %v13688_v23, 2  ;;  %v11618_v23 = vld [vmem:[%s16625_s3 + $0x38] sm:$0xff]   ;;  %v3464_v0 = vsel %vm3303_vm15, %v13602_v3, %v13645_v13  ;;  %v13822_v3 = vrot.slane %v2639_v14, 1 }
 0x24f   : > { %5745 = vmatpush1.bf16.msra.mxu1 %v11616_v8  ;;  %v3477_v14 = vrot.slane %v3475_v15, 1  ;;  %v3480_v55 = vrot.slane %v3478_v38, 2  ;;  %v4484_v38 = vrot.slane %v13720_v35, 4 }
 0x250   : > { %5746 = vmatprep.subr.bf16.mxu1 %v16751_v20 }
 0x251   : > { %3565 = vrot.lane.b32.xlu0 %v3446_v34, %s12203_s29  ;;  %v2696_v32 = vpop.permute.xlu0 %2695  ;;  %v4452_v34 = vrot.slane %v13652_v47, 4 }
 0x252   : > { %2769 = vst.msk [vmem:[#allocation3 + $0x20] sm:$0xff] %vm2766_vm0, %v2696_v32 }
 0x253   : > { %3101 = vst.msk [vmem:[#allocation3 + $0x20] sm:$0xff] %vm3098_vm2, %v3028_v12  ;;  %v13749_v32 = vsel %vm4431_vm4, %v4448_v7, %v4452_v34  ;;  %v13761_v4 = vsel %vm4431_vm4, %v4452_v34, %v4456_v56  ;;  %v4472_v7 = vrot.slane %v13702_v48, 4  ;;  %v13796_v34 = vsel %vm3817_vm14, %v4111_v59, %v4115_v49  ;;  %5747 = vmatpush1.bf16.msra.mxu1 %v11618_v23 }
 0x254   : > { %5748 = vmatprep.subr.bf16.mxu1 %v16751_v20 }
 0x255   : > { %2721 = vrot.lane.b32.xlu0 %v2618_v25, %s12202_s30  ;;  %v4107_v25 = vrot.slane %v13652_v47, 2  ;;  %v13770_v47 = vld [vmem:[#allocation3 + $0x138] sm:$0xff] }
 0x256   : > { %16753 = vst [vmem:[#allocation30_spill] sm:$0xff] %v13770_v47  ;;  %3998 = vst.msk [vmem:[#allocation4 + $0x430] sm:$0xff] %vm2281_vm11, %v13770_v47 }
 0x257   : > { %v13764_v10 = vsel %vm3817_vm14, %v4103_v60, %v4107_v25  ;;  %v13784_v51 = vsel %vm3817_vm14, %v4107_v25, %v4111_v59  ;;  %v13799_v60 = vsel %vm4431_vm4, %v4464_v29, %v4468_v33  ;;  %v2635_v25 = vshrl.u32 %v13589_v61, 16  ;;  %v13825_v61 = vld [vmem:[#allocation2 + $0xa0] sm:$0xff]  }
 0x258   : > { %v3540_v46 = vpop.permute.xlu0 %3539  ;;  %v2634_v59 = vsel %vm2486_vm13, %v13712_v17, %v13672_v36  ;;  %v3484_v23 = vshrl.u32 %v13825_v61, 16 }
 0x259   : > { %3567 = vrot.lane.b32.xlu0 %v3455_v18, %s12203_s29  ;;  %3614 = vst.msk [vmem:[#allocation3 + $0x10] sm:$0xff] %vm3612_vm3, %v3540_v46  ;;  %v13757_v18 = vld [vmem:[#allocation3 + $0x128] sm:$0xff]  ;;  %v13802_v46 = vsel %vm3817_vm14, %v4115_v49, %v4119_v6  ;;  %v4476_v49 = vrot.slane %v13704_v53, 4  ;;  %v2637_v11 = vor.u32 %v2635_v25, %v13672_v36  ;;  %v11619_v36 = vld [vmem:[%s16625_s3 + $0x40] sm:$0xff]   ;;  %v4135_v25 = vrot.slane %v13718_v22, 2 }
 0x25a   : > { %16752 = vst [vmem:[#allocation29_spill] sm:$0xff] %v13757_v18  ;;  %v3542_v12 = vpop.permute.xlu1 %3541  ;;  %3996 = vst.msk [vmem:[#allocation4 + $0x3f8] sm:$0xff] %vm2281_vm11, %v13757_v18  ;;  %5749 = vmatpush1.bf16.msra.mxu1 %v11619_v36 }
 0x25b   : > { %3615 = vst.msk [vmem:[#allocation3 + $0x20] sm:$0xff] %vm3612_vm3, %v3542_v12  ;;  %v13814_v12 = vsel %vm3817_vm14, %v4119_v6, %v4123_v9  ;;  %5750 = vmatprep.subr.bf16.mxu1 %v16751_v20 }
 0x25d   : > { %2723 = vrot.lane.b32.xlu0 %v13633_v1, %s12202_s30  ;;  %v13787_v1 = vsel %vm4431_vm4, %v4460_v39, %v4464_v29  ;;  %v13811_v39 = vsel %vm4431_vm4, %v4468_v33, %v4472_v7  ;;  %v13827_v29 = vld [vmem:[#allocation2 + $0x60] sm:$0xff]   ;;  %v4127_v33 = vrot.slane %v13702_v48, 2 }
 0x25e   : > { %v3030_v56 = vpop.permute.xlu1 %3029  ;;  %v2698_v8 = vpop.permute.xlu0 %2697 }
 0x25f   : > { %2770 = vst.msk [vmem:[#allocation3 + $0x30] sm:$0xff] %vm2766_vm0, %v2698_v8  ;;  %v4131_v8 = vrot.slane %v13704_v53, 2  ;;  %v13853_v53 = vsel %vm3817_vm14, %v4123_v9, %v4127_v33 }
 0x260   : > { %v13831_v6 = vld [vmem:[#allocation3 + $0x10] sm:$0xff]  ;;  %3102 = vst.msk [vmem:[#allocation3 + $0x30] sm:$0xff] %vm3098_vm2, %v3030_v56  ;;  %v13847_v56 = vsel %vm4431_vm4, %v4472_v7, %v4476_v49 }
 0x261   : > { %3569 = vrot.lane.b32.xlu0 %v3464_v0, %s12203_s29  ;;  %v3999_v17 = vld [vmem:[#allocation3 + $0x10] sm:$0xfc]  ;;  %v4480_v0 = vrot.slane %v13718_v22, 4  ;;  %v13859_v27 = vsel %vm3817_vm14, %v4127_v33, %v4131_v8  ;;  %v4488_v33 = vrot.slane %v13724_v50, 4  ;;  %v11621_v22 = vld [vmem:[%s16625_s3 + $0x48] sm:$0xff]  }
 0x262   : > { %v4083_v48 = vrot.slane %v3999_v17, 2  ;;  %v13849_v45 = vld [vmem:[#allocation3 + $0x20] sm:$0xff]  ;;  %v2700_v15 = vpop.permute.xlu1 %2699  ;;  %v4139_v17 = vrot.slane %v13720_v35, 2  ;;  %v4143_v35 = vrot.slane %v13724_v50, 2  ;;  %5751 = vmatpush1.bf16.msra.mxu1 %v11621_v22  ;;  %v16760_v22 = vrot.slane %v13504_v54, 2  ;;  %v11624_v54 = vld [vmem:[%s16625_s3 + $0x58] sm:$0xff]  }
 0x263   : > { %v13856_v41 = vsel %vm4431_vm4, %v4476_v49, %v4480_v0  ;;  %3963 = vst [vmem:[#allocation4 + $0x70] sm:$0xff] %v13849_v45  ;;  %2771 = vst.msk [vmem:[#allocation3 + $0x40] sm:$0xff] %vm2766_vm0, %v2700_v15  ;;  %v16649_v7 = vrot.slane %v13849_v45, 2  ;;  %v13870_v49 = vsel %vm4431_vm4, %v4480_v0, %v4484_v38  ;;  %v3473_v15 = vsel %vm3303_vm15, %v13645_v13, %v13841_v16 }
 0x264   : > { %v13885_v0 = vsel %vm3817_vm14, %v4131_v8, %v4135_v25  ;;  %v3487_v13 = vshll.u32 %v13825_v61, 16  ;;  %v13897_v36 = vsel %vm3817_vm14, %v4135_v25, %v4139_v17  ;;  %v13904_v50 = vsel %vm3817_vm14, %v4139_v17, %v4143_v35  ;;  %5752 = vmatprep.subr.bf16.mxu1 %v16751_v20 }
 0x265   : > { %2725 = vrot.lane.b32.xlu0 %v2634_v59, %s12202_s30  ;;  %v4492_v59 = vrot.slane %v13739_v52, 4  ;;  %v4085_v24 = vsel %vm3817_vm14, %v4083_v48, %v16649_v7  ;;  %v13894_v48 = vsel %vm4431_vm4, %v4484_v38, %v4488_v33  ;;  %v4147_v61 = vrot.slane %v13739_v52, 2  ;;  %v11622_v52 = vld [vmem:[%s16625_s3 + $0x50] sm:$0xff]  }
 0x266   : > { %4165 = vrot.lane.b32.xlu1 %v4085_v24, %s12202_s30  ;;  %16754 = vst [vmem:[#allocation12_spill] sm:$0xff] %v13894_v48  ;;  %v4496_v24 = vrot.slane %v13757_v18, 4  ;;  %v16650_v7 = vrot.slane %v13770_v47, 4  ;;  %v2642_v38 = vsel %vm2486_vm13, %v2637_v11, %v13822_v3  ;;  %v3818_v25 = vrot.slane %v11628_v40, 2  ;;  %5753 = vmatpush1.bf16.msra.mxu1 %v11622_v52 }
 0x267   : > { %v13900_v8 = vsel %vm4431_vm4, %v4488_v33, %v4492_v59  ;;  %v4151_v48 = vrot.slane %v13757_v18, 2  ;;  %v16756_v17 = vrot.slane %v13827_v29, 1  ;;  %v13926_v40 = vsel %vm3817_vm14, %v4143_v35, %v4147_v61  ;;  %5754 = vmatprep.subr.bf16.mxu1 %v16751_v20 }
 0x268   : > { %16755 = vst [vmem:[#allocation13_spill] sm:$0xff] %v13900_v8  ;;  %v3544_v9 = vpop.permute.xlu0 %3543  ;;  %v13923_v11 = vsel %vm4431_vm4, %v4492_v59, %v4496_v24  ;;  %v3481_v33 = vor.u32 %v3480_v55, %v3477_v14  ;;  %v3820_v59 = vsel %vm3817_vm14, %v3818_v25, %v16760_v22  ;;  %v16762_v55 = vrot.slane %v13770_v47, 2 }
 0x269   : > { %3571 = vrot.lane.b32.xlu0 %v3473_v15, %s12203_s29  ;;  %3616 = vst.msk [vmem:[#allocation3 + $0x30] sm:$0xff] %vm3612_vm3, %v3544_v9  ;;  %v16757_v15 = vrot.slane %v13464_v37, 1  ;;  %16758 = vst [vmem:[#allocation14_spill] sm:$0xff] %v13923_v11  ;;  %v13931_v9 = vsel %vm4431_vm4, %v4496_v24, %v16650_v7  ;;  %v13940_v35 = vsel %vm3817_vm14, %v4147_v61, %v4151_v48  ;;  %v13949_v7 = vld [vmem:[#allocation2 + $0xa8] sm:$0xff]  }
 0x26a   : > { %16759 = vst [vmem:[#allocation28_spill] sm:$0xff] %v13931_v9  ;;  %16761 = vst [vmem:[#allocation31_spill] sm:$0xff] %v13940_v35  ;;  %v13947_v14 = vsel %vm3817_vm14, %v4151_v48, %v16762_v55  ;;  %v3482_v61 = vsel %vm3303_vm15, %v13841_v16, %v3481_v33  ;;  %v2655_v16 = vshll.u32 %v13949_v7, 16  ;;  %5755 = vmatpush1.bf16.msra.mxu1 %v11624_v54  ;;  %v16765_v54 = vrot.slane %v13849_v45, 2  ;;  %v11627_v45 = vld [vmem:[%s16625_s3 + $0x68] sm:$0xff]  }
 0x26b   : > { %v2996_v8 = vsel %vm2971_vm12, %v16757_v15, %v16756_v17  ;;  %v3546_v37 = vpop.permute.xlu1 %3545  ;;  %v2647_v17 = vshll.u32 %v13888_v21, 16  ;;  %3894 = vst.msk [vmem:[#allocation3 + $0x8] sm:$0xff] %vm2281_vm11, %v3820_v59  ;;  %16763 = vst [vmem:[#allocation32_spill] sm:$0xff] %v13947_v14  ;;  %v3489_v15 = vrot.slane %v3487_v13, 2  ;;  %v13959_v13 = vld [vmem:[#allocation2 + $0x68] sm:$0xff]   ;;  %5756 = vmatprep.subr.bf16.mxu1 %v16751_v20 }
 0x26c   : > { %3045 = vrot.lane.b32.xlu1 %v2996_v8, %s12201_s25  ;;  %v3032_v24 = vpop.permute.xlu0 %3031  ;;  %v3486_v8 = vrot.slane %v3484_v23, 1  ;;  %v11589_v23 = vld [vmem:[#allocation2 + $0xa8] sm:$0xff]  }
 0x26d   : > { %2727 = vrot.lane.b32.xlu0 %v2642_v38, %s12202_s30  ;;  %3103 = vst.msk [vmem:[#allocation3 + $0x40] sm:$0xff] %vm3098_vm2, %v3032_v24  ;;  %v2643_v38 = vshrl.u32 %v13612_v26, 16  ;;  %v2649_v25 = vrot.slane %v2647_v17, 1  ;;  %v2651_v26 = vshrl.u32 %v13888_v21, 16  ;;  %v11625_v17 = vld [vmem:[%s16625_s3 + $0x60] sm:$0xff]  }
 0x26e   : > { %3617 = vst.msk [vmem:[#allocation3 + $0x40] sm:$0xff] %vm3612_vm3, %v3546_v37  ;;  %v13964_v59 = vor.u32 %v3489_v15, %v3486_v8  ;;  %v3493_v8 = vshrl.u32 %v11589_v23, 16  ;;  %v3496_v15 = vshll.u32 %v11589_v23, 16  ;;  %v13976_v21 = vld [vmem:[#allocation3 + $0x158] sm:$0xff]  ;;  %5757 = vmatpush1.bf16.msra.mxu1 %v11625_v17 }
 0x26f   : > { %v3034_v48 = vpop.permute.xlu1 %3033  ;;  %v2645_v22 = vor.u32 %v2643_v38, %v13822_v3  ;;  %16764 = vst [vmem:[#allocation33_spill] sm:$0xff] %v13976_v21  ;;  %v2653_v23 = vor.u32 %v2651_v26, %v2649_v25  ;;  %v16767_v26 = vrot.slane %v13827_v29, 1  ;;  %5758 = vmatprep.subr.bf16.mxu1 %v16751_v20 }
 0x270   : > { %v3925_v52 = vld [vmem:[#allocation3 + $0x30] sm:$0xff]  ;;  %v2702_v55 = vpop.permute.xlu0 %2701 }
 0x271   : > { %3573 = vrot.lane.b32.xlu0 %v3482_v61, %s12203_s29  ;;  %3965 = vst [vmem:[#allocation4 + $0xa8] sm:$0xff] %v3925_v52  ;;  %2772 = vst.msk [vmem:[#allocation3 + $0x50] sm:$0xff] %vm2766_vm0, %v2702_v55  ;;  %v4089_v37 = vrot.slane %v3925_v52, 2  ;;  %v2650_v24 = vsel %vm2486_vm13, %v2645_v22, %v2649_v25  ;;  %v2997_v61 = vrot.slane %v13959_v13, 1  ;;  %v4384_v55 = vld [vmem:[#allocation3 + $0x148] sm:$0xff]  ;;  %v2657_v13 = vrot.slane %v2655_v16, 1 }
 0x272   : > { %3104 = vst.msk [vmem:[#allocation3 + $0x50] sm:$0xff] %vm3098_vm2, %v3034_v48  ;;  %v3920_v38 = vld [vmem:[#allocation3 + $0x8] sm:$0xff]  ;;  %v3491_v48 = vsel %vm3303_vm15, %v3481_v33, %v13964_v59  ;;  %v13987_v22 = vld [vmem:[#allocation2 + $0xc0] sm:$0xff]   ;;  %v16654_v33 = vrot.slane %v13976_v21, 6  ;;  %v3495_v25 = vrot.slane %v3493_v8, 1  ;;  %v3498_v16 = vrot.slane %v3496_v15, 2  ;;  %5759 = vmatpush1.bf16.msra.mxu1 %v11627_v45 }
 0x273   : > { %v2704_v3 = vpop.permute.xlu1 %2703  ;;  %v4090_v52 = vsel %vm3817_vm14, %v16765_v54, %v4089_v37  ;;  %3960 = vst.msk [vmem:[#allocation4 + $0x8] sm:$0xff] %vm2281_vm11, %v3920_v38  ;;  %16766 = vst [vmem:[#allocation15_spill] sm:$0xff] %v13987_v22  ;;  %v4850_v38 = vrot.slane %v4384_v55, 6  ;;  %v2998_v54 = vsel %vm2971_vm12, %v16767_v26, %v2997_v61  ;;  %v16769_v8 = vrot.slane %v13757_v18, 6  ;;  %5760 = vmatprep.subr.bf16.mxu1 %v16751_v20 }
 0x274   : > { %2773 = vst.msk [vmem:[#allocation3 + $0x60] sm:$0xff] %vm2766_vm0, %v2704_v3  ;;  %4169 = vrot.lane.b32.xlu1 %v4090_v52, %s12202_s30  ;;  %v4846_v3 = vrot.slane %v13770_v47, 6  ;;  %v11594_v52 = vld [vmem:[#allocation2 + $0xb0] sm:$0xff]   ;;  %v2658_v26 = vsel %vm2486_vm13, %v2653_v23, %v2657_v13  ;;  %v3499_v18 = vor.u32 %v3498_v16, %v3495_v25  ;;  %v2659_v25 = vshrl.u32 %v13949_v7, 16 }
 0x275   : > { %2729 = vrot.lane.b32.xlu0 %v2650_v24, %s12202_s30  ;;  %v13989_v14 = vld [vmem:[#allocation3 + $0x40] sm:$0xff]  ;;  %v14016_v29 = vsel %vm4781_vm5, %v4850_v38, %v16654_v33  ;;  %v3502_v47 = vshrl.u32 %v11594_v52, 16 }
 0x276   : > { %v4093_v17 = vrot.slane %v13989_v14, 2  ;;  %v14003_v24 = vld [vmem:[#allocation2 + $0x70] sm:$0xff]   ;;  %v14006_v55 = vsel %vm4781_vm5, %v4846_v3, %v4850_v38  ;;  %v14011_v15 = vsel %vm4781_vm5, %v16769_v8, %v4846_v3  ;;  %16771 = vst [vmem:[#allocation17_spill] sm:$0xff] %v14016_v29  ;;  %v3505_v3 = vshll.u32 %v11594_v52, 16 }
 0x277   : > { %16768 = vst [vmem:[#allocation16_spill] sm:$0xff] %v14006_v55  ;;  %16770 = vst [vmem:[#allocation34_spill] sm:$0xff] %v14011_v15  ;;  %v11630_v55 = vld [vmem:[%s16625_s3 + $0x70] sm:$0xff]   ;;  %v16772_v38 = vrot.slane %v13387_v31, 2  ;;  %v2999_v45 = vrot.slane %v14003_v24, 1  ;;  %v11632_v31 = vld [vmem:[%s16625_s3 + $0x78] sm:$0xff]   ;;  %v3500_v52 = vsel %vm3303_vm15, %v13964_v59, %v3499_v18 }
 0x278   : > { %3047 = vrot.lane.b32.xlu1 %v2998_v54, %s12201_s25  ;;  %v4094_v23 = vsel %vm3817_vm14, %v4089_v37, %v4093_v17  ;;  %5761 = vmatpush1.bf16.msra.mxu1 %v11630_v55  ;;  %v2661_v37 = vor.u32 %v2659_v25, %v2657_v13  ;;  %v3504_v8 = vrot.slane %v3502_v47, 1  ;;  %v3507_v24 = vrot.slane %v3505_v3, 2  ;;  %v11597_v13 = vld [vmem:[#allocation2 + $0x78] sm:$0xff]  }
 0x279   : > { %3575 = vrot.lane.b32.xlu0 %v3491_v48, %s12203_s29  ;;  %v16655_v48 = vrot.slane %v13987_v22, 2  ;;  %5762 = vmatprep.subr.bf16.mxu1 %v16751_v20  ;;  %v3000_v7 = vsel %vm2971_vm12, %v2997_v61, %v2999_v45 }
 0x27a   : > { %v14049_v59 = vor.u32 %v3507_v24, %v3504_v8 }
 0x27b   : > { %v3866_v54 = vsel %vm3817_vm14, %v16772_v38, %v16655_v48  ;;  %v2666_v38 = vsel %vm2486_vm13, %v2661_v37, %v13551_v63 }
 0x27c   : > { %3917 = vst.msk [vmem:[#allocation3 + $0x178] sm:$0xff] %vm2281_vm11, %v3866_v54  ;;  %4173 = vrot.lane.b32.xlu1 %v4094_v23, %s12202_s30  ;;  %5763 = vmatpush1.bf16.msra.mxu1 %v11632_v31  ;;  %v3509_v63 = vsel %vm3303_vm15, %v3499_v18, %v14049_v59 }
 0x27d   : > { %2731 = vrot.lane.b32.xlu0 %v2658_v26, %s12202_s30  ;;  %5925 = vmatprep.subr.bf16.mxu1 %v16751_v20 }
 0x27f   : > { %v3548_v16 = vpop.permute.xlu0 %3547 }
 0x280   : > { %3618 = vst.msk [vmem:[#allocation3 + $0x50] sm:$0xff] %vm3612_vm3, %v3548_v16  ;;  %3049 = vrot.lane.b32.xlu1 %v3000_v7, %s12201_s25  ;;  %v3001_v16 = vrot.slane %v11597_v13, 1 }
 0x281   : > { %v3550_v26 = vpop.permute.xlu1 %3549  ;;  %3577 = vrot.lane.b32.xlu0 %v3500_v52, %s12203_s29 }
 0x282   : > { %v3002_v8 = vsel %vm2971_vm12, %v2999_v45, %v3001_v16 }
 0x283   : > { %v3036_v55 = vpop.permute.xlu0 %3035 }
 0x284   : > { %3105 = vst.msk [vmem:[#allocation3 + $0x60] sm:$0xff] %vm3098_vm2, %v3036_v55 }
 0x285   : > { %3619 = vst.msk [vmem:[#allocation3 + $0x60] sm:$0xff] %vm3612_vm3, %v3550_v26  ;;  %v3038_v47 = vpop.permute.xlu1 %3037  ;;  %2733 = vrot.lane.b32.xlu0 %v2666_v38, %s12202_s30  ;;  %v11600_v26 = vld [vmem:[#allocation2 + $0x80] sm:$0xff]  }
 0x286   : > { %v3003_v38 = vrot.slane %v11600_v26, 1 }
 0x287   : > { %v14054_v61 = vld [vmem:[#allocation3 + $0x50] sm:$0xff]  ;;  %v2706_v3 = vpop.permute.xlu0 %2705 }
 0x288   : > { %5085 = vst [vmem:[#allocation4 + $0x28] sm:$0xff] %v14054_v61  ;;  %2774 = vst.msk [vmem:[#allocation3 + $0x70] sm:$0xff] %vm2766_vm0, %v2706_v3  ;;  %v4097_v54 = vrot.slane %v14054_v61, 2  ;;  %v3004_v3 = vsel %vm2971_vm12, %v3001_v16, %v3003_v38 }
 0x289   : > { %3106 = vst.msk [vmem:[#allocation3 + $0x70] sm:$0xff] %vm3098_vm2, %v3038_v47  ;;  %v2708_v23 = vpop.permute.xlu1 %2707  ;;  %3579 = vrot.lane.b32.xlu0 %v3509_v63, %s12203_s29 }
 0x28a   : > { %2775 = vst.msk [vmem:[#allocation3 + $0x80] sm:$0xff] %vm2766_vm0, %v2708_v23  ;;  %v4098_v25 = vsel %vm3817_vm14, %v4093_v17, %v4097_v54  ;;  %v11601_v23 = vld [vmem:[#allocation2 + $0x88] sm:$0xff]  }
 0x28b   : > { %v3552_v31 = vpop.permute.xlu0 %3551  ;;  %4177 = vrot.lane.b32.xlu1 %v4098_v25, %s12202_s30  ;;  %v3005_v16 = vrot.slane %v11601_v23, 1 }
 0x28c   : > { %3620 = vst.msk [vmem:[#allocation3 + $0x70] sm:$0xff] %vm3612_vm3, %v3552_v31  ;;  %v14067_v52 = vld [vmem:[#allocation3 + $0x60] sm:$0xff] }
 0x28d   : > { %v5047_v18 = vld [vmem:[#allocation3 + $0x60] sm:$0xff]  ;;  %v4101_v24 = vrot.slane %v14067_v52, 2 }
 0x28e   : > { %v3554_v37 = vpop.permute.xlu1 %3553  ;;  %5087 = vst [vmem:[#allocation4 + $0x60] sm:$0xff] %v5047_v18 }
 0x28f   : > { %v3040_v7 = vpop.permute.xlu0 %3039  ;;  %3051 = vrot.lane.b32.xlu1 %v3002_v8, %s12201_s25  ;;  %v4102_v55 = vsel %vm3817_vm14, %v4097_v54, %v4101_v24 }
 0x290   : > { %3107 = vst.msk [vmem:[#allocation3 + $0x80] sm:$0xff] %vm3098_vm2, %v3040_v7  ;;  %v3006_v7 = vsel %vm2971_vm12, %v3003_v38, %v3005_v16 }
 0x291   : > { %3621 = vst.msk [vmem:[#allocation3 + $0x80] sm:$0xff] %vm3612_vm3, %v3554_v37 }
 0x292   : > { %v2692_v17 = vpop.permute.xlu1 %2691 }
 0x293   : > { %2767 = vst.msk [vmem:[#allocation3] sm:$0xff] %vm2766_vm0, %v2692_v17  ;;  %v14076_v47 = vld [vmem:[#allocation3 + $0x70] sm:$0xff]  ;;  %v3024_v13 = vpop.permute.xlu0 %3023  ;;  %4181 = vrot.lane.b32.xlu1 %v4102_v55, %s12202_s30  ;;  %v11603_v55 = vld [vmem:[#allocation2 + $0x90] sm:$0xff]  }
 0x294   : > { %5089 = vst [vmem:[#allocation4 + $0x98] sm:$0xff] %v14076_v47  ;;  %3099 = vst.msk [vmem:[#allocation3] sm:$0xff] %vm3098_vm2, %v3024_v13  ;;  %v4105_v63 = vrot.slane %v14076_v47, 2 }
 0x296   : > { %v3042_v45 = vpop.permute.xlu1 %3041  ;;  %v4106_v37 = vsel %vm3817_vm14, %v4101_v24, %v4105_v63 }
 0x297   : > { %v2710_v25 = vpop.permute.xlu0 %2709  ;;  %3053 = vrot.lane.b32.xlu1 %v3004_v3, %s12201_s25 }
 0x298   : > { %2776 = vst.msk [vmem:[#allocation3 + $0x90] sm:$0xff] %vm2766_vm0, %v2710_v25  ;;  %v14085_v54 = vld [vmem:[#allocation3 + $0x80] sm:$0xff] }
 0x299   : > { %v5051_v31 = vld [vmem:[#allocation3 + $0x80] sm:$0xff]  ;;  %3108 = vst.msk [vmem:[#allocation3 + $0x90] sm:$0xff] %vm3098_vm2, %v3042_v45  ;;  %v4109_v17 = vrot.slane %v14085_v54, 2  ;;  %v3007_v45 = vrot.slane %v11603_v55, 1 }
 0x29a   : > { %v2712_v18 = vpop.permute.xlu1 %2711  ;;  %5091 = vst [vmem:[#allocation4 + $0xd0] sm:$0xff] %v5051_v31  ;;  %v11605_v31 = vld [vmem:[#allocation2 + $0x98] sm:$0xff]  }
 0x29b   : > { %2777 = vst.msk [vmem:[#allocation3 + $0xa0] sm:$0xff] %vm2766_vm0, %v2712_v18  ;;  %v3556_v8 = vpop.permute.xlu0 %3555  ;;  %4185 = vrot.lane.b32.xlu1 %v4106_v37, %s12202_s30  ;;  %v4110_v24 = vsel %vm3817_vm14, %v4105_v63, %v4109_v17  ;;  %v3008_v38 = vsel %vm2971_vm12, %v3005_v16, %v3007_v45 }
 0x29c   : > { %3622 = vst.msk [vmem:[#allocation3 + $0x90] sm:$0xff] %vm3612_vm3, %v3556_v8  ;;  %v3009_v8 = vrot.slane %v11605_v31, 1 }
 0x29e   : > { %v3044_v26 = vpop.permute.xlu1 %3043  ;;  %v3010_v16 = vsel %vm2971_vm12, %v3007_v45, %v3009_v8 }
 0x29f   : > { %3109 = vst.msk [vmem:[#allocation3 + $0xa0] sm:$0xff] %vm3098_vm2, %v3044_v26  ;;  %v3538_v13 = vpop.permute.xlu0 %3537  ;;  %3055 = vrot.lane.b32.xlu1 %v3006_v7, %s12201_s25 }
 0x2a0   : > { %3613 = vst.msk [vmem:[#allocation3] sm:$0xff] %vm3612_vm3, %v3538_v13  ;;  %v14116_v13 = vld [vmem:[#allocation2 + $0xa0] sm:$0xff]  }
 0x2a3   : > { %v14098_v3 = vld [vmem:[#allocation3 + $0x90] sm:$0xff]  ;;  %v3558_v23 = vpop.permute.xlu0 %3557  ;;  %4189 = vrot.lane.b32.xlu1 %v4110_v24, %s12202_s30 }
 0x2a4   : > { %5093 = vst [vmem:[#allocation4 + $0x108] sm:$0xff] %v14098_v3  ;;  %3623 = vst.msk [vmem:[#allocation3 + $0xa0] sm:$0xff] %vm3612_vm3, %v3558_v23  ;;  %v4113_v25 = vrot.slane %v14098_v3, 2  ;;  %v16656_v23 = vrot.slane %v14116_v13, 1 }
 0x2a6   : > { %v4114_v63 = vsel %vm3817_vm14, %v4109_v17, %v4113_v25  ;;  %v3012_v45 = vsel %vm2971_vm12, %v3009_v8, %v16656_v23 }
 0x2a7   : > { %v14105_v18 = vld [vmem:[#allocation3] sm:$0xff]  ;;  %v2714_v37 = vpop.permute.xlu0 %2713  ;;  %3057 = vrot.lane.b32.xlu1 %v3008_v38, %s12201_s25 }
 0x2a8   : > { %2778 = vst.msk [vmem:[#allocation3 + $0xb0] sm:$0xff] %vm2766_vm0, %v2714_v37 }
 0x2ab   : > { %v14110_v26 = vld [vmem:[#allocation3 + $0xa0] sm:$0xff]  ;;  %v3560_v7 = vpop.permute.xlu0 %3559  ;;  %4193 = vrot.lane.b32.xlu1 %v4114_v63, %s12202_s30 }
 0x2ac   : > { %5095 = vst [vmem:[#allocation4 + $0x140] sm:$0xff] %v14110_v26  ;;  %v16657_v55 = vrot.slane %v14110_v26, 2 }
 0x2ae   : > { %v4118_v17 = vsel %vm3817_vm14, %v4113_v25, %v16657_v55 }
 0x2af   : > { %v2716_v24 = vpop.permute.xlu0 %2715  ;;  %3059 = vrot.lane.b32.xlu1 %v3010_v16, %s12201_s25 }
 0x2b0   : > { %2779 = vst.msk [vmem:[#allocation3 + $0xc0] sm:$0xff] %vm2766_vm0, %v2716_v24 }
 0x2b3   : > { %v14124_v38 = vpop.permute.xlu0 %3561  ;;  %4197 = vrot.lane.b32.xlu1 %v4118_v17, %s12202_s30 }
 0x2b7   : > { %v2718_v31 = vpop.permute.xlu0 %2717  ;;  %3061 = vrot.lane.b32.xlu1 %v3012_v45, %s12201_s25 }
 0x2b8   : > { %2780 = vst.msk [vmem:[#allocation3 + $0xd0] sm:$0xff] %vm2766_vm0, %v2718_v31 }
 0x2bb   : > { %v14132_v37 = vpop.permute.xlu0 %3563 }
 0x2bf   : > { %v2720_v63 = vpop.permute.xlu0 %2719 }
 0x2c0   : > { %2781 = vst.msk [vmem:[#allocation3 + $0xe0] sm:$0xff] %vm2766_vm0, %v2720_v63 }
 0x2c2   : > { %v14137_v16 = vpop.f32.mrb[16].mxu0 }
 0x2c3   : > { %v14135_v25 = vpop.permute.xlu0 %3565  ;;  %16773 = vst [vmem:[#allocation18_spill] sm:$0xff] %v14137_v16  ;;  %v14139_v24 = vpop.f32.mrb[17].mxu0 }
 0x2c4   : > { %16774 = vst [vmem:[#allocation19_spill] sm:$0xff] %v14139_v24  ;;  %v14141_v17 = vpop.f32.mrb[18].mxu0 }
 0x2c5   : > { %16775 = vst [vmem:[#allocation20_spill] sm:$0xff] %v14141_v17  ;;  %v14143_v8 = vpop.f32.mrb[19].mxu0 }
 0x2c6   : > { %16776 = vst [vmem:[#allocation21_spill] sm:$0xff] %v14143_v8 }
 0x2c7   : > { %v2722_v33 = vpop.permute.xlu0 %2721 }
 0x2c8   : > { %2782 = vst.msk [vmem:[#allocation3 + $0xf0] sm:$0xff] %vm2766_vm0, %v2722_v33 }
 0x2cb   : > { %v14146_v45 = vpop.permute.xlu0 %3567 }
 0x2cc   : > { %v14148_v31 = vpop.f32.mrb[20].mxu0 }
 0x2cd   : > { %16777 = vst [vmem:[#allocation22_spill] sm:$0xff] %v14148_v31  ;;  %v14150_v48 = vpop.f32.mrb[21].mxu0 }
 0x2ce   : > { %16778 = vst [vmem:[#allocation23_spill] sm:$0xff] %v14150_v48  ;;  %v14152_v63 = vpop.f32.mrb[22].mxu0 }
 0x2cf   : > { %16779 = vst [vmem:[#allocation24_spill] sm:$0xff] %v14152_v63  ;;  %v2724_v23 = vpop.permute.xlu0 %2723  ;;  %v14154_v55 = vpop.f32.mrb[23].mxu0 }
 0x2d0   : > { %16780 = vst [vmem:[#allocation25_spill] sm:$0xff] %v14154_v55  ;;  %2783 = vst.msk [vmem:[#allocation3 + $0x100] sm:$0xff] %vm2766_vm0, %v2724_v23 }
 0x2d3   : > { %v14157_v16 = vpop.permute.xlu0 %3569 }
 0x2d4   : > { %v14159_v17 = vpop.f32.mrb[24].mxu0 }
 0x2d5   : > { %16781 = vst [vmem:[#allocation26_spill] sm:$0xff] %v14159_v17  ;;  %v14161_v8 = vpop.f32.mrb[25].mxu0 }
 0x2d6   : > { %16782 = vst [vmem:[#allocation27_spill] sm:$0xff] %v14161_v8  ;;  %v14163_v33 = vpop.f32.mrb[26].mxu0 }
 0x2d7   : > { %16783 = vst [vmem:[#allocation35_spill] sm:$0xff] %v14163_v33  ;;  %v2726_v24 = vpop.permute.xlu0 %2725  ;;  %v14165_v21 = vpop.f32.mrb[27].mxu0 }
 0x2d8   : > { %16784 = vst [vmem:[#allocation36_spill] sm:$0xff] %v14165_v21  ;;  %2784 = vst.msk [vmem:[#allocation3 + $0x110] sm:$0xff] %vm2766_vm0, %v2726_v24  ;;  %v14168_v63 = vpop.permute.xlu1 %4165 }
 0x2d9   : > { %4307 = vst.msk [vmem:[#allocation4 + $0x8] sm:$0xff] %vm4306_vm6, %v14168_v63 }
 0x2db   : > { %v14170_v31 = vpop.permute.xlu0 %3571 }
 0x2dc   : > { %v14174_v23 = vpop.f32.mrb[28].mxu0 }
 0x2dd   : > { %16785 = vst [vmem:[#allocation37_spill] sm:$0xff] %v14174_v23  ;;  %v14176_v17 = vpop.f32.mrb[29].mxu0  ;;  %v11634_v23 = vld [vmem:[#allocation2 + $0xa8] sm:$0xff]  }
 0x2de   : > { %16786 = vst [vmem:[#allocation38_spill] sm:$0xff] %v14176_v17  ;;  %v3046_v8 = vpop.permute.xlu1 %3045  ;;  %v14178_v55 = vpop.f32.mrb[30].mxu0  ;;  %v3013_v15 = vrot.slane %v11634_v23, 1 }
 0x2df   : > { %16787 = vst [vmem:[#allocation39_spill] sm:$0xff] %v14178_v55  ;;  %v2728_v33 = vpop.permute.xlu0 %2727  ;;  %3110 = vst.msk [vmem:[#allocation3 + $0xb0] sm:$0xff] %vm3098_vm2, %v3046_v8  ;;  %v14181_v21 = vpop.f32.mrb[31].mxu0 }
 0x2e0   : > { %16788 = vst [vmem:[#allocation40_spill] sm:$0xff] %v14181_v21  ;;  %2785 = vst.msk [vmem:[#allocation3 + $0x120] sm:$0xff] %vm2766_vm0, %v2728_v33  ;;  %v5126_v24 = vld [vmem:[#allocation4 + $0x8] sm:$0xff] }
 0x2e1   : > { %3624 = vst.msk [vmem:[#allocation3 + $0xb0] sm:$0xff] %vm3612_vm3, %v3560_v7  ;;  %5764 = vmatprep.mubr.bf16.mxu1 %v5126_v24 }
 0x2e2   : > { %5765 = vmatmul.mubr.bf16.vlgmr.msra.gmra.mrb[112].mxu1 %v14105_v18  ;;  %v16791_v18 = vrot.slane %v14110_v26, 2 }
 0x2e3   : > { %v14185_v48 = vpop.permute.xlu0 %3573 }
 0x2e6   : > { %v14191_v55 = vpop.permute.xlu1 %4169 }
 0x2e7   : > { %v2730_v17 = vpop.permute.xlu0 %2729  ;;  %4309 = vst.msk [vmem:[#allocation4 + $0x40] sm:$0xff] %vm4306_vm6, %v14191_v55 }
 0x2e8   : > { %v14188_v29 = vld [vmem:[#allocation3 + $0xb0] sm:$0xff]  ;;  %2786 = vst.msk [vmem:[#allocation3 + $0x130] sm:$0xff] %vm2766_vm0, %v2730_v17 }
 0x2e9   : > { %v4121_v8 = vrot.slane %v14188_v29, 2  ;;  %v14194_v21 = vpop.f32.mrb[32].mxu0  ;;  %v5057_v33 = vld [vmem:[#allocation3 + $0xb0] sm:$0xff] }
 0x2ea   : > { %16789 = vst [vmem:[#allocation41_spill] sm:$0xff] %v14194_v21  ;;  %v14198_v7 = vpop.f32.mrb[33].mxu0  ;;  %5097 = vst [vmem:[#allocation4 + $0x178] sm:$0xff] %v5057_v33  ;;  %v3048_v21 = vpop.permute.xlu1 %3047  ;;  %v16794_v33 = vrot.slane %v14116_v13, 1 }
 0x2eb   : > { %16790 = vst [vmem:[#allocation42_spill] sm:$0xff] %v14198_v7  ;;  %v4122_v24 = vsel %vm3817_vm14, %v16791_v18, %v4121_v8  ;;  %v14203_v9 = vpop.f32.mrb[34].mxu0  ;;  %v14205_v17 = vpop.permute.xlu0 %3575  ;;  %3111 = vst.msk [vmem:[#allocation3 + $0xc0] sm:$0xff] %vm3098_vm2, %v3048_v21 }
 0x2ec   : > { %16792 = vst [vmem:[#allocation43_spill] sm:$0xff] %v14203_v9  ;;  %4201 = vrot.lane.b32.xlu1 %v4122_v24, %s12202_s30  ;;  %v14208_v35 = vpop.f32.mrb[35].mxu0  ;;  %3625 = vst.msk [vmem:[#allocation3 + $0xc0] sm:$0xff] %vm3612_vm3, %v14124_v38  ;;  %v3014_v7 = vsel %vm2971_vm12, %v16794_v33, %v3013_v15  ;;  %v14231_v9 = vld [vmem:[#allocation2 + $0xb0] sm:$0xff]  }
 0x2ed   : > { %16793 = vst [vmem:[#allocation44_spill] sm:$0xff] %v14208_v35  ;;  %v16660_v22 = vrot.slane %v14231_v9, 1 }
 0x2ee   : > { %v14218_v23 = vpop.permute.xlu1 %4173  ;;  %v5133_v24 = vld [vmem:[#allocation4 + $0x40] sm:$0xff] }
 0x2ef   : > { %v2732_v18 = vpop.permute.xlu0 %2731  ;;  %4311 = vst.msk [vmem:[#allocation4 + $0x78] sm:$0xff] %vm4306_vm6, %v14218_v23  ;;  %5772 = vmatprep.mubr.bf16.mxu1 %v5133_v24 }
 0x2f0   : > { %3063 = vrot.lane.b32.xlu1 %v3014_v7, %s12201_s25  ;;  %2787 = vst.msk [vmem:[#allocation3 + $0x140] sm:$0xff] %vm2766_vm0, %v2732_v18  ;;  %5773 = vmatmul.mubr.bf16.gmra.mrb[116].mxu1 %v13831_v6 }
 0x2f2   : > { %v3050_v7 = vpop.permute.xlu1 %3049 }
 0x2f3   : > { %v14222_v21 = vpop.f32.mrb[36].mxu0  ;;  %v14227_v13 = vpop.permute.xlu0 %3577  ;;  %3112 = vst.msk [vmem:[#allocation3 + $0xd0] sm:$0xff] %vm3098_vm2, %v3050_v7  ;;  %v14236_v35 = vld [vmem:[#allocation3 + $0xc0] sm:$0xff] }
 0x2f4   : > { %16795 = vst [vmem:[#allocation45_spill] sm:$0xff] %v14222_v21  ;;  %v14225_v38 = vpop.f32.mrb[37].mxu0  ;;  %v5059_v24 = vld [vmem:[#allocation3 + $0xc0] sm:$0xff]  ;;  %3626 = vst.msk [vmem:[#allocation3 + $0xd0] sm:$0xff] %vm3612_vm3, %v14132_v37  ;;  %v4125_v6 = vrot.slane %v14236_v35, 2 }
 0x2f5   : > { %16796 = vst [vmem:[#allocation46_spill] sm:$0xff] %v14225_v38  ;;  %v14229_v33 = vpop.f32.mrb[38].mxu0  ;;  %5099 = vst [vmem:[#allocation4 + $0x1b0] sm:$0xff] %v5059_v24  ;;  %v5139_v7 = vld [vmem:[#allocation4 + $0x70] sm:$0xff] }
 0x2f6   : > { %16797 = vst [vmem:[#allocation47_spill] sm:$0xff] %v14229_v33  ;;  %v14233_v18 = vpop.f32.mrb[39].mxu0  ;;  %v4126_v33 = vsel %vm3817_vm14, %v4121_v8, %v4125_v6  ;;  %v5140_v38 = vld [vmem:[#allocation4 + $0x78] sm:$0xff] }
 0x2f7   : > { %16798 = vst [vmem:[#allocation48_spill] sm:$0xff] %v14233_v18  ;;  %v2734_v21 = vpop.permute.xlu0 %2733  ;;  %4205 = vrot.lane.b32.xlu1 %v4126_v33, %s12202_s30  ;;  %5780 = vmatprep.mubr.bf16.mxu1 %v5140_v38 }
 0x2f8   : > { %2788 = vst.msk [vmem:[#allocation3 + $0x150] sm:$0xff] %vm2766_vm0, %v2734_v21  ;;  %5781 = vmatmul.mubr.bf16.gmra.mrb[120].mxu1 %v5139_v7  ;;  %v3016_v21 = vsel %vm2971_vm12, %v3013_v15, %v16660_v22 }
 0x2fb   : > { %v14245_v18 = vpop.f32.mrb[40].mxu0  ;;  %3065 = vrot.lane.b32.xlu1 %v3016_v21, %s12201_s25  ;;  %v14259_v33 = vld [vmem:[#allocation3 + $0xd0] sm:$0xff] }
 0x2fc   : > { %16799 = vst [vmem:[#allocation49_spill] sm:$0xff] %v14245_v18  ;;  %v14247_v11 = vpop.f32.mrb[41].mxu0  ;;  %v5061_v38 = vld [vmem:[#allocation3 + $0xd0] sm:$0xff]  ;;  %v4129_v7 = vrot.slane %v14259_v33, 2 }
 0x2fd   : > { %16800 = vst [vmem:[#allocation50_spill] sm:$0xff] %v14247_v11  ;;  %v14249_v37 = vpop.f32.mrb[42].mxu0  ;;  %v14256_v8 = vpop.permute.xlu1 %4177  ;;  %5101 = vst [vmem:[#allocation4 + $0x1e8] sm:$0xff] %v5061_v38  ;;  %v5146_v38 = vld [vmem:[#allocation4 + $0xa8] sm:$0xff] }
 0x2fe   : > { %16801 = vst [vmem:[#allocation51_spill] sm:$0xff] %v14249_v37  ;;  %v14254_v24 = vpop.f32.mrb[43].mxu0  ;;  %4313 = vst.msk [vmem:[#allocation4 + $0xb0] sm:$0xff] %vm4306_vm6, %v14256_v8  ;;  %v4130_v37 = vsel %vm3817_vm14, %v4125_v6, %v4129_v7 }
 0x2ff   : > { %16802 = vst [vmem:[#allocation52_spill] sm:$0xff] %v14254_v24  ;;  %4209 = vrot.lane.b32.xlu1 %v4130_v37, %s12202_s30 }
 0x301   : > { %v3052_v18 = vpop.permute.xlu1 %3051 }
 0x302   : > { %3113 = vst.msk [vmem:[#allocation3 + $0xe0] sm:$0xff] %vm3098_vm2, %v3052_v18 }
 0x303   : > { %3627 = vst.msk [vmem:[#allocation3 + $0xe0] sm:$0xff] %vm3612_vm3, %v14135_v25 }
 0x305   : > { %v14269_v15 = vpop.permute.xlu1 %4181  ;;  %v5147_v21 = vld [vmem:[#allocation4 + $0xb0] sm:$0xff] }
 0x306   : > { %4315 = vst.msk [vmem:[#allocation4 + $0xe8] sm:$0xff] %vm4306_vm6, %v14269_v15  ;;  %5788 = vmatprep.mubr.bf16.mxu1 %v5147_v21 }
 0x307   : > { %v14271_v22 = vpop.f32.mrb[44].mxu0  ;;  %5789 = vmatmul.mubr.bf16.gmra.mrb[124].mxu1 %v5146_v38 }
 0x308   : > { %16803 = vst [vmem:[#allocation53_spill] sm:$0xff] %v14271_v22  ;;  %v14275_v24 = vpop.f32.mrb[45].mxu0 }
 0x309   : > { %16804 = vst [vmem:[#allocation54_spill] sm:$0xff] %v14275_v24  ;;  %v14277_v6 = vpop.f32.mrb[46].mxu0  ;;  %v3054_v18 = vpop.permute.xlu1 %3053 }
 0x30a   : > { %16805 = vst [vmem:[#allocation55_spill] sm:$0xff] %v14277_v6  ;;  %v14279_v37 = vpop.f32.mrb[47].mxu0  ;;  %3114 = vst.msk [vmem:[#allocation3 + $0xf0] sm:$0xff] %vm3098_vm2, %v3054_v18  ;;  %v14282_v25 = vld [vmem:[#allocation3 + $0xe0] sm:$0xff] }
 0x30b   : > { %16806 = vst [vmem:[#allocation56_spill] sm:$0xff] %v14279_v37  ;;  %v5063_v11 = vld [vmem:[#allocation3 + $0xe0] sm:$0xff]  ;;  %3628 = vst.msk [vmem:[#allocation3 + $0xf0] sm:$0xff] %vm3612_vm3, %v14146_v45  ;;  %v4133_v22 = vrot.slane %v14282_v25, 2 }
 0x30c   : > { %5103 = vst [vmem:[#allocation4 + $0x220] sm:$0xff] %v5063_v11 }
 0x30d   : > { %v14287_v21 = vpop.permute.xlu1 %4185  ;;  %v4134_v38 = vsel %vm3817_vm14, %v4129_v7, %v4133_v22  ;;  %v5154_v24 = vld [vmem:[#allocation4 + $0xe8] sm:$0xff] }
 0x30e   : > { %4317 = vst.msk [vmem:[#allocation4 + $0x120] sm:$0xff] %vm4306_vm6, %v14287_v21  ;;  %4213 = vrot.lane.b32.xlu0 %v4134_v38, %s12202_s30  ;;  %5796 = vmatprep.mubr.bf16.mxu1 %v5154_v24 }
 0x30f   : > { %v14290_v6 = vpop.f32.mrb[48].mxu0  ;;  %5797 = vmatmul.mubr.bf16.gmra.mrb[128].mxu1 %v13989_v14 }
 0x310   : > { %16807 = vst [vmem:[#allocation57_spill] sm:$0xff] %v14290_v6  ;;  %v14295_v18 = vpop.f32.mrb[49].mxu0 }
 0x311   : > { %16808 = vst [vmem:[#allocation58_spill] sm:$0xff] %v14295_v18  ;;  %v14298_v45 = vpop.f32.mrb[50].mxu0  ;;  %v3056_v37 = vpop.permute.xlu1 %3055 }
 0x312   : > { %16809 = vst [vmem:[#allocation59_spill] sm:$0xff] %v14298_v45  ;;  %v14300_v11 = vpop.f32.mrb[51].mxu0  ;;  %3115 = vst.msk [vmem:[#allocation3 + $0x100] sm:$0xff] %vm3098_vm2, %v3056_v37  ;;  %v14303_v7 = vld [vmem:[#allocation3 + $0xf0] sm:$0xff] }
 0x313   : > { %16810 = vst [vmem:[#allocation60_spill] sm:$0xff] %v14300_v11  ;;  %v5065_v6 = vld [vmem:[#allocation3 + $0xf0] sm:$0xff]  ;;  %3629 = vst.msk [vmem:[#allocation3 + $0x100] sm:$0xff] %vm3612_vm3, %v14157_v16  ;;  %v4137_v38 = vrot.slane %v14303_v7, 2 }
 0x314   : > { %5105 = vst [vmem:[#allocation4 + $0x258] sm:$0xff] %v5065_v6  ;;  %v11636_v6 = vld [vmem:[%s16625_s3 + $0x80] sm:$0xff]  }
 0x315   : > { %v14308_v24 = vpop.permute.xlu1 %4189  ;;  %v4138_v14 = vsel %vm3817_vm14, %v4133_v22, %v4137_v38  ;;  %v5161_v18 = vld [vmem:[#allocation4 + $0x120] sm:$0xff]  ;;  %5926 = vmatpush1.bf16.msra.mxu1 %v11636_v6  ;;  %v11637_v6 = vld [vmem:[%s16625_s3 + $0x88] sm:$0xff]  }
 0x316   : > { %16811 = vst [vmem:[#allocation61_spill] sm:$0xff] %v14308_v24  ;;  %4319 = vst.msk [vmem:[#allocation4 + $0x158] sm:$0xff] %vm4306_vm6, %v14308_v24  ;;  %4217 = vrot.lane.b32.xlu1 %v4138_v14, %s12202_s30  ;;  %5804 = vmatprep.mubr.bf16.mxu1 %v5161_v18 }
 0x317   : > { %5805 = vmatmul.mubr.bf16.gmra.mrb[132].mxu1 %v14054_v61  ;;  %5927 = vmatprep.subr.bf16.mxu1 %v16751_v20 }
 0x319   : > { %v3058_v37 = vpop.permute.xlu1 %3057  ;;  %5928 = vmatpush1.bf16.msra.mxu1 %v11637_v6 }
 0x31a   : > { %3116 = vst.msk [vmem:[#allocation3 + $0x110] sm:$0xff] %vm3098_vm2, %v3058_v37  ;;  %v14316_v16 = vld [vmem:[#allocation3 + $0x100] sm:$0xff]  ;;  %5929 = vmatprep.subr.bf16.mxu1 %v16751_v20 }
 0x31b   : > { %v5067_v45 = vld [vmem:[#allocation3 + $0x100] sm:$0xff]  ;;  %3630 = vst.msk [vmem:[#allocation3 + $0x110] sm:$0xff] %vm3612_vm3, %v14170_v31  ;;  %v4141_v22 = vrot.slane %v14316_v16, 2 }
 0x31c   : > { %5107 = vst [vmem:[#allocation4 + $0x290] sm:$0xff] %v5067_v45 }
 0x31d   : > { %v14324_v18 = vpop.permute.xlu1 %4193  ;;  %v4142_v61 = vsel %vm3817_vm14, %v4137_v38, %v4141_v22  ;;  %v5168_v14 = vld [vmem:[#allocation4 + $0x158] sm:$0xff] }
 0x31e   : > { %16812 = vst [vmem:[#allocation62_spill] sm:$0xff] %v14324_v18  ;;  %4321 = vst.msk [vmem:[#allocation4 + $0x190] sm:$0xff] %vm4306_vm6, %v14324_v18  ;;  %4221 = vrot.lane.b32.xlu0 %v4142_v61, %s12202_s30  ;;  %5812 = vmatprep.mubr.bf16.mxu1 %v5168_v14 }
 0x31f   : > { %5813 = vmatmul.mubr.bf16.gmra.mrb[136].mxu1 %v14067_v52 }
 0x321   : > { %v3060_v31 = vpop.permute.xlu1 %3059 }
 0x322   : > { %3117 = vst.msk [vmem:[#allocation3 + $0x120] sm:$0xff] %vm3098_vm2, %v3060_v31  ;;  %v14333_v45 = vld [vmem:[#allocation3 + $0x110] sm:$0xff] }
 0x323   : > { %v5069_v37 = vld [vmem:[#allocation3 + $0x110] sm:$0xff]  ;;  %3631 = vst.msk [vmem:[#allocation3 + $0x120] sm:$0xff] %vm3612_vm3, %v14185_v48  ;;  %v4145_v38 = vrot.slane %v14333_v45, 2 }
 0x324   : > { %5109 = vst [vmem:[#allocation4 + $0x2c8] sm:$0xff] %v5069_v37  ;;  %v14352_v37 = vld [vmem:[#allocation3 + $0x30] sm:$0xff] }
 0x325   : > { %v14341_v61 = vpop.permute.xlu1 %4197  ;;  %v4146_v52 = vsel %vm3817_vm14, %v4141_v22, %v4145_v38  ;;  %v5175_v14 = vld [vmem:[#allocation4 + $0x190] sm:$0xff] }
 0x326   : > { %16813 = vst [vmem:[#allocation63_spill] sm:$0xff] %v14341_v61  ;;  %4323 = vst.msk [vmem:[#allocation4 + $0x1c8] sm:$0xff] %vm4306_vm6, %v14341_v61  ;;  %4225 = vrot.lane.b32.xlu1 %v4146_v52, %s12202_s30  ;;  %5820 = vmatprep.mubr.bf16.mxu1 %v5175_v14  ;;  %v16663_v14 = vrot.slane %v14352_v37, 4  ;;  %v4348_v61 = vld [vmem:[#allocation3 + $0x28] sm:$0xf0] }
 0x327   : > { %5821 = vmatmul.mubr.bf16.gmra.mrb[140].mxu1 %v14076_v47  ;;  %v4347_v47 = vld [vmem:[#allocation3 + $0x20] sm:$0xf0] }
 0x328   : > { %v4432_v11 = vrot.slane %v4347_v47, 4 }
 0x329   : > { %v3062_v48 = vpop.permute.xlu1 %3061 }
 0x32a   : > { %3118 = vst.msk [vmem:[#allocation3 + $0x130] sm:$0xff] %vm3098_vm2, %v3062_v48  ;;  %v14350_v31 = vld [vmem:[#allocation3 + $0x120] sm:$0xff] }
 0x32b   : > { %v5071_v22 = vld [vmem:[#allocation3 + $0x120] sm:$0xff]  ;;  %3632 = vst.msk [vmem:[#allocation3 + $0x130] sm:$0xff] %vm3612_vm3, %v14205_v17  ;;  %v4149_v52 = vrot.slane %v14350_v31, 2 }
 0x32c   : > { %5111 = vst [vmem:[#allocation4 + $0x300] sm:$0xff] %v5071_v22  ;;  %v11638_v48 = vld [vmem:[%s16625_s3 + $0x90] sm:$0xff]   ;;  %v4434_v22 = vsel %vm4431_vm4, %v4432_v11, %v16663_v14  ;;  %v16814_v14 = vrot.slane %v13626_v44, 4  ;;  %v11644_v44 = vld [vmem:[%s16625_s3 + $0xa8] sm:$0xff]  }
 0x32d   : > { %v4150_v17 = vsel %vm3817_vm14, %v4145_v38, %v4149_v52  ;;  %v5182_v6 = vld [vmem:[#allocation4 + $0x1c8] sm:$0xff]  ;;  %5930 = vmatpush1.bf16.msra.mxu1 %v11638_v48  ;;  %v4435_v48 = vrot.slane %v4348_v61, 4  ;;  %v14390_v11 = vld [vmem:[#allocation3 + $0x40] sm:$0xff] }
 0x32e   : > { %4229 = vrot.lane.b32.xlu0 %v4150_v17, %s12202_s30  ;;  %5828 = vmatprep.mubr.bf16.mxu1 %v5182_v6  ;;  %v11640_v61 = vld [vmem:[%s16625_s3 + $0xa0] sm:$0xff]  }
 0x32f   : > { %5829 = vmatmul.mubr.bf16.gmra.mrb[144].mxu1 %v14085_v54  ;;  %5931 = vmatprep.subr.bf16.mxu1 %v16751_v20  ;;  %v11639_v54 = vld [vmem:[%s16625_s3 + $0x98] sm:$0xff]  }
 0x331   : > { %5932 = vmatpush1.bf16.msra.mxu1 %v11639_v54 }
 0x332   : > { %4514 = vrot.lane.b32.xlu0 %v4434_v22, %s12201_s25  ;;  %v4035_v38 = vld [vmem:[#allocation3 + $0x130] sm:$0xff]  ;;  %5933 = vmatprep.subr.bf16.mxu1 %v16751_v20 }
 0x333   : > { %v14383_v17 = vld [vmem:[#allocation3 + $0x130] sm:$0xff]  ;;  %v4153_v18 = vrot.slane %v4035_v38, 2  ;;  %v4437_v38 = vsel %vm4431_vm4, %v4435_v48, %v16814_v14  ;;  %v11646_v14 = vld [vmem:[%s16625_s3 + $0xb0] sm:$0xff]   ;;  %v11651_v48 = vld [vmem:[%s16625_s3 + $0xc8] sm:$0xff]  }
 0x334   : > { %v5073_v6 = vld [vmem:[#allocation3 + $0x130] sm:$0xff] }
 0x335   : > { %5113 = vst [vmem:[#allocation4 + $0x338] sm:$0xff] %v5073_v6  ;;  %v4154_v47 = vsel %vm3817_vm14, %v4149_v52, %v4153_v18  ;;  %v4697_v22 = vld [vmem:[#allocation3 + $0x30] sm:$0xc0]  ;;  %v4783_v6 = vrot.slane %v14390_v11, 6  ;;  %5934 = vmatpush1.bf16.msra.mxu1 %v11640_v61 }
 0x336   : > { %4233 = vrot.lane.b32.xlu1 %v4154_v47, %s12202_s30  ;;  %v4782_v24 = vrot.slane %v4697_v22, 6  ;;  %5935 = vmatprep.subr.bf16.mxu1 %v16751_v20 }
 0x338   : > { %v4784_v52 = vsel %vm4781_vm5, %v4782_v24, %v4783_v6  ;;  %v11649_v24 = vld [vmem:[%s16625_s3 + $0xb8] sm:$0xff]  }
 0x339   : > { %5936 = vmatpush1.bf16.msra.mxu1 %v11644_v44 }
 0x33a   : > { %4516 = vrot.lane.b32.xlu1 %v4437_v38, %s12201_s25  ;;  %5937 = vmatprep.subr.bf16.mxu1 %v16751_v20  ;;  %v11652_v38 = vld [vmem:[%s16625_s3 + $0xd0] sm:$0xff]  }
 0x33d   : > { %5938 = vmatpush1.bf16.msra.mxu1 %v11646_v14  ;;  %v4000_v14 = vld [vmem:[#allocation3 + $0x18] sm:$0xfc] }
 0x33e   : > { %4864 = vrot.lane.b32.xlu1 %v4784_v52, %s12203_s29  ;;  %5939 = vmatprep.subr.bf16.mxu1 %v16751_v20 }
 0x341   : > { %5940 = vmatpush1.bf16.msra.mxu1 %v11649_v24 }
 0x342   : > { %4520 = vrot.lane.b32.xlu1 %v13684_v57, %s12201_s25  ;;  %5941 = vmatprep.subr.bf16.mxu1 %v16751_v20  ;;  %v11650_v57 = vld [vmem:[%s16625_s3 + $0xc0] sm:$0xff]  }
 0x345   : > { %5942 = vmatpush1.bf16.msra.mxu1 %v11650_v57 }
 0x346   : > { %5943 = vmatprep.subr.bf16.mxu1 %v16751_v20 }
 0x349   : > { %5944 = vmatpush1.bf16.msra.mxu1 %v11651_v48  ;;  %v3580_v48 = vpop.permute.xlu0 %3579 }
 0x34a   : > { %5945 = vmatprep.subr.bf16.mxu1 %v16751_v20 }
 0x34d   : > { %5946 = vmatpush1.bf16.msra.mxu1 %v11652_v38  ;;  %v16815_v38 = vrot.slane %v13615_v5, 2  ;;  %v11655_v5 = vld [vmem:[%s16625_s3 + $0xe8] sm:$0xff]  }
 0x34e   : > { %5947 = vmatprep.subr.bf16.mxu1 %v16751_v20 }
 0x35e   : > { %v14419_v54 = vpop.permute.xlu1 %4201 }
 0x35f   : > { %4325 = vst.msk [vmem:[#allocation4 + $0x200] sm:$0xff] %vm4306_vm6, %v14419_v54 }
 0x362   : > { %v3064_v47 = vpop.permute.xlu1 %3063 }
 0x363   : > { %3119 = vst.msk [vmem:[#allocation3 + $0x140] sm:$0xff] %vm3098_vm2, %v3064_v47  ;;  %v4086_v47 = vrot.slane %v4000_v14, 2 }
 0x364   : > { %3633 = vst.msk [vmem:[#allocation3 + $0x140] sm:$0xff] %vm3612_vm3, %v14227_v13 }
 0x366   : > { %v5189_v22 = vld [vmem:[#allocation4 + $0x200] sm:$0xff] }
 0x367   : > { %5836 = vmatprep.mubr.bf16.mxu1 %v5189_v22  ;;  %v11654_v22 = vld [vmem:[%s16625_s3 + $0xe0] sm:$0xff]  }
 0x368   : > { %5837 = vmatmul.mubr.bf16.gmra.mrb[148].mxu1 %v14098_v3  ;;  %v11653_v3 = vld [vmem:[%s16625_s3 + $0xd8] sm:$0xff]  }
 0x369   : > { %v14439_v13 = vpop.permute.xlu1 %4205  ;;  %5948 = vmatpush1.bf16.msra.mxu1 %v11653_v3  ;;  %v16816_v3 = vrot.slane %v14352_v37, 4 }
 0x36a   : > { %4327 = vst.msk [vmem:[#allocation4 + $0x238] sm:$0xff] %vm4306_vm6, %v14439_v13  ;;  %5949 = vmatprep.subr.bf16.mxu1 %v16751_v20 }
 0x36b   : > { %v4037_v61 = vld [vmem:[#allocation3 + $0x140] sm:$0xff] }
 0x36c   : > { %v4157_v52 = vrot.slane %v4037_v61, 2  ;;  %v5075_v44 = vld [vmem:[#allocation3 + $0x140] sm:$0xff]  ;;  %v4438_v61 = vrot.slane %v14390_v11, 4 }
 0x36d   : > { %5115 = vst [vmem:[#allocation4 + $0x370] sm:$0xff] %v5075_v44  ;;  %v3066_v57 = vpop.permute.xlu1 %3065  ;;  %5950 = vmatpush1.bf16.msra.mxu1 %v11654_v22 }
 0x36e   : > { %v4158_v24 = vsel %vm3817_vm14, %v4153_v18, %v4157_v52  ;;  %3120 = vst.msk [vmem:[#allocation3 + $0x150] sm:$0xff] %vm3098_vm2, %v3066_v57  ;;  %v4088_v18 = vsel %vm3817_vm14, %v4086_v47, %v16815_v38  ;;  %5951 = vmatprep.subr.bf16.mxu1 %v16751_v20  ;;  %v4701_v57 = vld [vmem:[#allocation3 + $0x50] sm:$0xff] }
 0x36f   : > { %4237 = vrot.lane.b32.xlu0 %v4158_v24, %s12202_s30  ;;  %3634 = vst.msk [vmem:[#allocation3 + $0x150] sm:$0xff] %vm3612_vm3, %v3580_v48  ;;  %v4439_v24 = vsel %vm4431_vm4, %v16816_v3, %v4438_v61  ;;  %v11656_v48 = vld [vmem:[%s16625_s3 + $0xf0] sm:$0xff]   ;;  %v4442_v38 = vrot.slane %v4701_v57, 4 }
 0x371   : > { %v14460_v44 = vpop.permute.xlu1 %4209  ;;  %v5196_v14 = vld [vmem:[#allocation4 + $0x238] sm:$0xff]  ;;  %5952 = vmatpush1.bf16.msra.mxu1 %v11655_v5  ;;  %v4443_v3 = vsel %vm4431_vm4, %v4438_v61, %v4442_v38 }
 0x372   : > { %4329 = vst.msk [vmem:[#allocation4 + $0x270] sm:$0xff] %vm4306_vm6, %v14460_v44  ;;  %5844 = vmatprep.mubr.bf16.mxu1 %v5196_v14  ;;  %5953 = vmatprep.subr.bf16.mxu1 %v16751_v20  ;;  %v4788_v14 = vrot.slane %v4701_v57, 6  ;;  %v11657_v5 = vld [vmem:[%s16625_s3 + $0xf8] sm:$0xff]  }
 0x373   : > { %4167 = vrot.lane.b32.xlu0 %v4088_v18, %s12202_s30  ;;  %5845 = vmatmul.mubr.bf16.gmra.mrb[152].mxu1 %v14110_v26 }
 0x375   : > { %5954 = vmatpush1.bf16.msra.mxu1 %v11656_v48 }
 0x376   : > { %v4039_v47 = vld [vmem:[#allocation3 + $0x150] sm:$0x3]  ;;  %5955 = vmatprep.subr.bf16.mxu1 %v16751_v20 }
 0x377   : > { %4518 = vrot.lane.b32.xlu0 %v4439_v24, %s12201_s25  ;;  %v4161_v22 = vrot.slane %v4039_v47, 2  ;;  %v5077_v18 = vld [vmem:[#allocation3 + $0x150] sm:$0xff] }
 0x378   : > { %5117 = vst [vmem:[#allocation4 + $0x3a8] sm:$0xff] %v5077_v18  ;;  %v4707_v18 = vld [vmem:[#allocation3 + $0x80] sm:$0xff] }
 0x379   : > { %v4162_v26 = vsel %vm3817_vm14, %v4157_v52, %v4161_v22  ;;  %v5203_v37 = vld [vmem:[#allocation4 + $0x270] sm:$0xff]  ;;  %5956 = vmatpush1.bf16.msra.mxu1 %v11657_v5  ;;  %v4789_v52 = vsel %vm4781_vm5, %v4783_v6, %v4788_v14  ;;  %v4705_v6 = vld [vmem:[#allocation3 + $0x70] sm:$0xff] }
 0x37a   : > { %4241 = vrot.lane.b32.xlu1 %v4162_v26, %s12202_s30  ;;  %5852 = vmatprep.mubr.bf16.mxu1 %v5203_v37 }
 0x37b   : > { %4171 = vrot.lane.b32.xlu0 %v13670_v42, %s12202_s30  ;;  %5853 = vmatmul.mubr.bf16.gmra.mrb[156].mxu1 %v14188_v29  ;;  %v4703_v42 = vld [vmem:[#allocation3 + $0x60] sm:$0xff] }
 0x37c   : > { %6118 = vmatprep.subr.bf16.mxu1 %v16751_v20  ;;  %v4446_v57 = vrot.slane %v4703_v42, 4  ;;  %v4792_v61 = vrot.slane %v4703_v42, 6 }
 0x37e   : > { %4868 = vrot.lane.b32.xlu1 %v4789_v52, %s12203_s29  ;;  %v4447_v11 = vsel %vm4431_vm4, %v4442_v38, %v4446_v57  ;;  %v4793_v47 = vsel %vm4781_vm5, %v4788_v14, %v4792_v61 }
 0x37f   : > { %4522 = vrot.lane.b32.xlu0 %v4443_v3, %s12201_s25  ;;  %v4709_v3 = vld [vmem:[#allocation3 + $0x90] sm:$0xff] }
 0x380   : > { %v14492_v24 = vpop.permute.xlu0 %4213 }
 0x381   : > { %4331 = vst.msk [vmem:[#allocation4 + $0x2a8] sm:$0xff] %vm4306_vm6, %v14492_v24 }
 0x382   : > { %4524 = vrot.lane.b32.xlu1 %v13707_v2, %s12201_s25  ;;  %v4796_v2 = vrot.slane %v4705_v6, 6 }
 0x383   : > { %4175 = vrot.lane.b32.xlu0 %v13693_v30, %s12202_s30  ;;  %v4450_v30 = vrot.slane %v4705_v6, 4 }
 0x384   : > { %v4797_v26 = vsel %vm4781_vm5, %v4792_v61, %v4796_v2 }
 0x385   : > { %v4451_v38 = vsel %vm4431_vm4, %v4446_v57, %v4450_v30 }
 0x386   : > { %4872 = vrot.lane.b32.xlu1 %v4793_v47, %s12203_s29 }
 0x387   : > { %4526 = vrot.lane.b32.xlu0 %v4447_v11, %s12201_s25  ;;  %v4711_v11 = vld [vmem:[#allocation3 + $0xa0] sm:$0xff] }
 0x388   : > { %v14504_v48 = vpop.permute.xlu1 %4217  ;;  %v5210_v22 = vld [vmem:[#allocation4 + $0x2a8] sm:$0xff] }
 0x389   : > { %4333 = vst.msk [vmem:[#allocation4 + $0x2e0] sm:$0xff] %vm4306_vm6, %v14504_v48  ;;  %5860 = vmatprep.mubr.bf16.mxu1 %v5210_v22 }
 0x38a   : > { %5861 = vmatmul.mubr.bf16.gmra.mrb[160].mxu1 %v14236_v35  ;;  %4528 = vrot.lane.b32.xlu1 %v13731_v58, %s12201_s25  ;;  %v4800_v58 = vrot.slane %v4707_v18, 6 }
 0x38b   : > { %4179 = vrot.lane.b32.xlu0 %v13746_v19, %s12202_s30  ;;  %v4454_v19 = vrot.slane %v4707_v18, 4 }
 0x38c   : > { %v4801_v42 = vsel %vm4781_vm5, %v4796_v2, %v4800_v58 }
 0x38d   : > { %v4455_v5 = vsel %vm4431_vm4, %v4450_v30, %v4454_v19 }
 0x38e   : > { %4876 = vrot.lane.b32.xlu1 %v4797_v26, %s12203_s29 }
 0x38f   : > { %4530 = vrot.lane.b32.xlu0 %v4451_v38, %s12201_s25 }
 0x390   : > { %v14517_v37 = vpop.permute.xlu0 %4221  ;;  %v5217_v14 = vld [vmem:[#allocation4 + $0x2e0] sm:$0xff] }
 0x391   : > { %4335 = vst.msk [vmem:[#allocation4 + $0x318] sm:$0xff] %vm4306_vm6, %v14517_v37  ;;  %5868 = vmatprep.mubr.bf16.mxu1 %v5217_v14 }
 0x392   : > { %5869 = vmatmul.mubr.bf16.gmra.mrb[164].mxu1 %v14259_v33  ;;  %4532 = vrot.lane.b32.xlu1 %v13749_v32, %s12201_s25  ;;  %v4804_v32 = vrot.slane %v4709_v3, 6 }
 0x393   : > { %4183 = vrot.lane.b32.xlu0 %v13752_v62, %s12202_s30  ;;  %v4458_v62 = vrot.slane %v4709_v3, 4  ;;  %v11641_v3 = vld [vmem:[#allocation2 + $0xb8] sm:$0xff]  }
 0x394   : > { %v4805_v6 = vsel %vm4781_vm5, %v4800_v58, %v4804_v32 }
 0x395   : > { %v4459_v61 = vsel %vm4431_vm4, %v4454_v19, %v4458_v62 }
 0x396   : > { %4880 = vrot.lane.b32.xlu1 %v4801_v42, %s12203_s29  ;;  %v11643_v42 = vld [vmem:[#allocation2 + $0xb8] sm:$0xff]  }
 0x397   : > { %4534 = vrot.lane.b32.xlu0 %v4455_v5, %s12201_s25 }
 0x398   : > { %v14530_v52 = vpop.permute.xlu1 %4225  ;;  %v5224_v57 = vld [vmem:[#allocation4 + $0x318] sm:$0xff] }
 0x399   : > { %4337 = vst.msk [vmem:[#allocation4 + $0x350] sm:$0xff] %vm4306_vm6, %v14530_v52  ;;  %5876 = vmatprep.mubr.bf16.mxu1 %v5224_v57  ;;  %v4816_v57 = vrot.slane %v14236_v35, 6 }
 0x39a   : > { %5877 = vmatmul.mubr.bf16.gmra.mrb[168].mxu1 %v14282_v25  ;;  %4536 = vrot.lane.b32.xlu1 %v13761_v4, %s12201_s25  ;;  %v4808_v4 = vrot.slane %v4711_v11, 6 }
 0x39b   : > { %4187 = vrot.lane.b32.xlu0 %v13764_v10, %s12202_s30  ;;  %v4462_v10 = vrot.slane %v4711_v11, 4  ;;  %v3514_v11 = vshll.u32 %v11643_v42, 16 }
 0x39c   : > { %v4809_v2 = vsel %vm4781_vm5, %v4804_v32, %v4808_v4  ;;  %v2671_v32 = vshll.u32 %v11641_v3, 16 }
 0x39d   : > { %v4463_v30 = vsel %vm4431_vm4, %v4458_v62, %v4462_v10 }
 0x39e   : > { %4884 = vrot.lane.b32.xlu1 %v4805_v6, %s12203_s29 }
 0x39f   : > { %4538 = vrot.lane.b32.xlu0 %v4459_v61, %s12201_s25  ;;  %v3511_v61 = vshrl.u32 %v11643_v42, 16 }
 0x3a0   : > { %v14543_v47 = vpop.permute.xlu0 %4229  ;;  %v5231_v22 = vld [vmem:[#allocation4 + $0x350] sm:$0xff] }
 0x3a1   : > { %4339 = vst.msk [vmem:[#allocation4 + $0x388] sm:$0xff] %vm4306_vm6, %v14543_v47  ;;  %5884 = vmatprep.mubr.bf16.mxu1 %v5231_v22  ;;  %v2673_v22 = vrot.slane %v2671_v32, 1 }
 0x3a2   : > { %5885 = vmatmul.mubr.bf16.gmra.mrb[172].mxu1 %v14303_v7  ;;  %4540 = vrot.lane.b32.xlu1 %v13776_v43, %s12201_s25  ;;  %v4812_v43 = vrot.slane %v14188_v29, 6 }
 0x3a3   : > { %4191 = vrot.lane.b32.xlu0 %v13784_v51, %s12202_s30  ;;  %v4466_v51 = vrot.slane %v14188_v29, 4 }
 0x3a4   : > { %v14566_v26 = vpop.permute.xlu0 %4514  ;;  %v4817_v6 = vsel %vm4781_vm5, %v4812_v43, %v4816_v57 }
 0x3a5   : > { %v4467_v58 = vsel %vm4431_vm4, %v4462_v10, %v4466_v51  ;;  %v3513_v10 = vrot.slane %v3511_v61, 1 }
 0x3a6   : > { %4888 = vrot.lane.b32.xlu1 %v4809_v2, %s12203_s29 }
 0x3a7   : > { %4542 = vrot.lane.b32.xlu0 %v4463_v30, %s12201_s25 }
 0x3a8   : > { %v14556_v38 = vpop.permute.xlu1 %4233  ;;  %v5238_v18 = vld [vmem:[#allocation4 + $0x388] sm:$0xff] }
 0x3a9   : > { %4341 = vst.msk [vmem:[#allocation4 + $0x3c0] sm:$0xff] %vm4306_vm6, %v14556_v38  ;;  %5892 = vmatprep.mubr.bf16.mxu1 %v5238_v18 }
 0x3aa   : > { %5893 = vmatmul.mubr.bf16.gmra.mrb[176].mxu1 %v14316_v16  ;;  %4544 = vrot.lane.b32.xlu1 %v13787_v1, %s12201_s25  ;;  %v4470_v1 = vrot.slane %v14236_v35, 4  ;;  %v2674_v35 = vsel %vm2486_vm13, %v13575_v28, %v2673_v22 }
 0x3ab   : > { %4195 = vrot.lane.b32.xlu0 %v13796_v34, %s12202_s30  ;;  %v4813_v34 = vsel %vm4781_vm5, %v4808_v4, %v4812_v43  ;;  %v3516_v4 = vrot.slane %v3514_v11, 2  ;;  %v11648_v43 = vld [vmem:[#allocation2 + $0xc0] sm:$0xff]  }
 0x3ac   : > { %v4517_v14 = vpop.permute.xlu1 %4516  ;;  %v4471_v62 = vsel %vm4431_vm4, %v4466_v51, %v4470_v1  ;;  %v14604_v51 = vld [vmem:[#allocation2 + $0xc0] sm:$0xff]   ;;  %v3520_v42 = vshrl.u32 %v11648_v43, 16 }
 0x3ad   : > { %v4595_v19 = vsel %vm439_vm7, %v14566_v26, %v4517_v14  ;;  %v3517_v30 = vor.u32 %v3516_v4, %v3513_v10  ;;  %v11661_v14 = vld [vmem:[#allocation2 + $0xb8] sm:$0xff]  }
 0x3ae   : > { %4658 = vst.msk [vmem:[#allocation4 + $0x18] sm:$0xff] %vm4657_vm8, %v4595_v19  ;;  %4892 = vrot.lane.b32.xlu1 %v4813_v34, %s12203_s29  ;;  %v4474_v19 = vrot.slane %v14259_v33, 4  ;;  %v2675_v34 = vshrl.u32 %v11641_v3, 16  ;;  %v3522_v11 = vrot.slane %v3520_v42, 1 }
 0x3af   : > { %4546 = vrot.lane.b32.xlu0 %v4467_v58, %s12201_s25  ;;  %v14611_v58 = vld [vmem:[#allocation2 + $0xc0] sm:$0xff]   ;;  %2305 = vst.msk [vmem:[#allocation3 + $0x170] sm:$0xff] %vm2281_vm11, %v11661_v14 }
 0x3b0   : > { %v14576_v5 = vpop.permute.xlu1 %4864  ;;  %v5245_v29 = vld [vmem:[#allocation4 + $0x3c0] sm:$0xff]  ;;  %v2677_v32 = vor.u32 %v2675_v34, %v2673_v22  ;;  %v4478_v22 = vrot.slane %v14282_v25, 4 }
 0x3b1   : > { %5005 = vst.msk [vmem:[#allocation4 + $0x18] sm:$0xff] %vm3612_vm3, %v14576_v5  ;;  %5900 = vmatprep.mubr.bf16.mxu1 %v5245_v29  ;;  %v2679_v29 = vshll.u32 %v14604_v51, 16  ;;  %v16819_v34 = vld [vmem:[#allocation13_spill] sm:$0xff] }
 0x3b2   : > { %5901 = vmatmul.mubr.bf16.gmra.mrb[180].mxu1 %v14333_v45  ;;  %4548 = vrot.lane.b32.xlu1 %v13799_v60, %s12201_s25  ;;  %v11642_v60 = vld [vmem:[#allocation2 + $0xb8] sm:$0xff]   ;;  %v4479_v4 = vsel %vm4431_vm4, %v4474_v19, %v4478_v22 }
 0x3b3   : > { %4199 = vrot.lane.b32.xlu0 %v13802_v46, %s12202_s30  ;;  %v4820_v46 = vrot.slane %v14259_v33, 6  ;;  %v3017_v18 = vrot.slane %v11642_v60, 1  ;;  %v3019_v33 = vrot.slane %v14611_v58, 1  ;;  %v14623_v61 = vrot.slane %v2679_v29, 1  ;;  %v16837_v58 = vld [vmem:[#allocation33_spill] sm:$0xff] }
 0x3b5   : > { %v4821_v2 = vsel %vm4781_vm5, %v4816_v57, %v4820_v46  ;;  %v3523_v57 = vshll.u32 %v11648_v43, 16 }
 0x3b6   : > { %4896 = vrot.lane.b32.xlu1 %v4817_v6, %s12203_s29  ;;  %v3020_v6 = vsel %vm2971_vm12, %v3017_v18, %v3019_v33 }
 0x3b7   : > { %4550 = vrot.lane.b32.xlu0 %v4471_v62, %s12201_s25  ;;  %v3525_v3 = vrot.slane %v3523_v57, 2 }
 0x3ba   : > { %4552 = vrot.lane.b32.xlu1 %v13811_v39, %s12201_s25  ;;  %v16817_v39 = vrot.slane %v14231_v9, 1  ;;  %v4475_v9 = vsel %vm4431_vm4, %v4470_v1, %v4474_v19  ;;  %v14633_v1 = vor.u32 %v3525_v3, %v3522_v11 }
 0x3bb   : > { %4203 = vrot.lane.b32.xlu0 %v13814_v12, %s12202_s30  ;;  %v3518_v12 = vsel %vm3303_vm15, %v14049_v59, %v3517_v30  ;;  %v4824_v59 = vrot.slane %v14282_v25, 6  ;;  %v4828_v25 = vrot.slane %v14303_v7, 6 }
 0x3bc   : > { %v3018_v28 = vsel %vm2971_vm12, %v16817_v39, %v3017_v18  ;;  %v3527_v10 = vsel %vm3303_vm15, %v3517_v30, %v14633_v1  ;;  %v4521_v18 = vpop.permute.xlu1 %4520 }
 0x3bd   : > { %v4825_v62 = vsel %vm4781_vm5, %v4820_v46, %v4824_v59  ;;  %v4829_v60 = vsel %vm4781_vm5, %v4824_v59, %v4828_v25 }
 0x3be   : > { %4900 = vrot.lane.b32.xlu1 %v4821_v2, %s12203_s29  ;;  %v4836_v2 = vrot.slane %v14333_v45, 6 }
 0x3bf   : > { %2735 = vrot.lane.b32.xlu0 %v2674_v35, %s12202_s30  ;;  %v4486_v35 = vrot.slane %v14316_v16, 4 }
 0x3c2   : > { %3067 = vrot.lane.b32.xlu1 %v3018_v28, %s12201_s25 }
 0x3c3   : > { %3581 = vrot.lane.b32.xlu0 %v3518_v12, %s12203_s29  ;;  %v16818_v12 = vld [vmem:[#allocation12_spill] sm:$0xff] }
 0x3c6   : > { %4554 = vrot.lane.b32.xlu1 %v4475_v9, %s12201_s25 }
 0x3c7   : > { %4556 = vrot.lane.b32.xlu0 %v13847_v56, %s12201_s25  ;;  %v2682_v56 = vsel %vm2486_vm13, %v2677_v32, %v14623_v61 }
 0x3ca   : > { %4207 = vrot.lane.b32.xlu1 %v13853_v53, %s12202_s30  ;;  %v4482_v53 = vrot.slane %v14303_v7, 4 }
 0x3cb   : > { %4904 = vrot.lane.b32.xlu0 %v4825_v62, %s12203_s29  ;;  %v4498_v62 = vrot.slane %v14383_v17, 4 }
 0x3cc   : > { %v4483_v46 = vsel %vm4431_vm4, %v4478_v22, %v4482_v53 }
 0x3ce   : > { %2737 = vrot.lane.b32.xlu1 %v2682_v56, %s12202_s30  ;;  %v5128_v56 = vld [vmem:[#allocation4 + $0x18] sm:$0xff] }
 0x3cf   : > { %3069 = vrot.lane.b32.xlu0 %v3020_v6, %s12201_s25  ;;  %v4844_v6 = vrot.slane %v14383_v17, 6 }
 0x3d2   : > { %3583 = vrot.lane.b32.xlu1 %v3527_v10, %s12203_s29  ;;  %v11670_v10 = vld [vmem:[#allocation2 + $0xc8] ss:$0 sps:$4 sm:$0x33]  }
 0x3d3   : > { %4558 = vrot.lane.b32.xlu0 %v4479_v4, %s12201_s25 }
 0x3d6   : > { %4560 = vrot.lane.b32.xlu1 %v13856_v41, %s12201_s25  ;;  %v4487_v41 = vsel %vm4431_vm4, %v4482_v53, %v4486_v35  ;;  %v14722_v53 = vld [vmem:[#allocation3 + $0x140] sm:$0xff] }
 0x3d7   : > { %4211 = vrot.lane.b32.xlu0 %v13859_v27, %s12202_s30  ;;  %v4832_v27 = vrot.slane %v14316_v16, 6 }
 0x3d9   : > { %v4833_v30 = vsel %vm4781_vm5, %v4828_v25, %v4832_v27  ;;  %v3867_v25 = vrot.slane %v11670_v10, 2  ;;  %v11663_v10 = vld [vmem:[%s16625_s3 + $0x118] sm:$0xff]  }
 0x3da   : > { %4908 = vrot.lane.b32.xlu1 %v4829_v60, %s12203_s29  ;;  %v16821_v60 = vld [vmem:[#allocation15_spill] sm:$0xff] }
 0x3db   : > { %4562 = vrot.lane.b32.xlu0 %v4483_v46, %s12201_s25 }
 0x3de   : > { %4564 = vrot.lane.b32.xlu1 %v13870_v49, %s12201_s25  ;;  %v4490_v49 = vrot.slane %v14333_v45, 4  ;;  %v4837_v45 = vsel %vm4781_vm5, %v4832_v27, %v4836_v2 }
 0x3df   : > { %4215 = vrot.lane.b32.xlu0 %v13885_v0, %s12202_s30 }
 0x3e0   : > { %v4491_v39 = vsel %vm4431_vm4, %v4486_v35, %v4490_v49  ;;  %v16822_v35 = vrot.slane %v16821_v60, 2 }
 0x3e1   : > { %v14659_v7 = vpop.permute.xlu0 %4237 }
 0x3e2   : > { %4343 = vst.msk [vmem:[#allocation4 + $0x3f8] sm:$0xff] %vm4306_vm6, %v14659_v7  ;;  %4912 = vrot.lane.b32.xlu1 %v4833_v30, %s12203_s29  ;;  %v3868_v27 = vsel %vm3817_vm14, %v16822_v35, %v3867_v25  ;;  %v4502_v30 = vrot.slane %v14722_v53, 4  ;;  %v14798_v25 = vld [vmem:[#allocation3 + $0x158] sm:$0xff] }
 0x3e3   : > { %4566 = vrot.lane.b32.xlu0 %v4487_v41, %s12201_s25  ;;  %3918 = vst.msk [vmem:[#allocation3 + $0x188] sm:$0xff] %vm2281_vm11, %v3868_v27 }
 0x3e5   : > { %v4168_v0 = vpop.permute.xlu0 %4167 }
 0x3e6   : > { %v4246_v16 = vsel %vm2281_vm11, %v14168_v63, %v4168_v0  ;;  %4568 = vrot.lane.b32.xlu1 %v16818_v12, %s12201_s25  ;;  %v11659_v0 = vld [vmem:[%s16625_s3 + $0x100] sm:$0xff]   ;;  %v16824_v12 = vld [vmem:[#allocation28_spill] sm:$0xff] }
 0x3e7   : > { %4308 = vst.msk [vmem:[#allocation4 + $0x10] sm:$0xff] %vm439_vm7, %v4246_v16  ;;  %4219 = vrot.lane.b32.xlu0 %v13897_v36, %s12202_s30  ;;  %v4727_v36 = vld [vmem:[#allocation3 + $0x120] sm:$0xff] }
 0x3e8   : > { %4656 = vst.msk [vmem:[#allocation4 + $0x10] sm:$0xff] %vm4655_vm9, %v14566_v26  ;;  %v4494_v19 = vrot.slane %v4727_v36, 4 }
 0x3e9   : > { %v4519_v43 = vpop.permute.xlu0 %4518  ;;  %v5252_v14 = vld [vmem:[#allocation4 + $0x3f8] sm:$0xff] }
 0x3ea   : > { %v4596_v63 = vsel %vm439_vm7, %v4519_v43, %v4521_v18  ;;  %5908 = vmatprep.mubr.bf16.mxu1 %v5252_v14  ;;  %4916 = vrot.lane.b32.xlu1 %v4837_v45, %s12203_s29  ;;  %v14754_v45 = vld [vmem:[#allocation3 + $0x150] sm:$0xff] }
 0x3eb   : > { %4660 = vst.msk [vmem:[#allocation4 + $0x50] sm:$0xff] %vm4657_vm8, %v4596_v63  ;;  %4570 = vrot.lane.b32.xlu0 %v4491_v39, %s12201_s25  ;;  %5909 = vmatmul.mubr.bf16.gmra.mrb[184].mxu1 %v14350_v31  ;;  %v4840_v31 = vrot.slane %v4727_v36, 6  ;;  %v4503_v63 = vsel %vm4431_vm4, %v4498_v62, %v4502_v30  ;;  %v11660_v39 = vld [vmem:[%s16625_s3 + $0x108] sm:$0xff]  }
 0x3ec   : > { %v14687_v59 = vpop.permute.xlu1 %4241 }
 0x3ed   : > { %v4172_v26 = vpop.permute.xlu0 %4171  ;;  %4345 = vst.msk [vmem:[#allocation4 + $0x430] sm:$0xff] %vm4306_vm6, %v14687_v59  ;;  %v4845_v46 = vsel %vm4781_vm5, %v4840_v31, %v4844_v6  ;;  %vm6638_vm6 = vsmask.f32 6410 }
 0x3ee   : > { %v4247_v28 = vsel %vm2281_vm11, %v14191_v55, %v4172_v26  ;;  %4572 = vrot.lane.b32.xlu1 %v16819_v34, %s12201_s25  ;;  %v4495_v55 = vsel %vm4431_vm4, %v4490_v49, %v4494_v19  ;;  %v16823_v49 = vld [vmem:[#allocation31_spill] sm:$0xff] }
 0x3ef   : > { %4310 = vst.msk [vmem:[#allocation4 + $0x48] sm:$0xff] %vm439_vm7, %v4247_v28  ;;  %4223 = vrot.lane.b32.xlu0 %v13904_v50, %s12202_s30  ;;  %v4841_v50 = vsel %vm4781_vm5, %v4836_v2, %v4840_v31  ;;  %v5127_v18 = vld [vmem:[#allocation4 + $0x10] sm:$0xff]  ;;  %v14760_v28 = vld [vmem:[#allocation3 + $0x148] sm:$0xff] }
 0x3f0   : > { %4659 = vst.msk [vmem:[#allocation4 + $0x48] sm:$0xff] %vm4655_vm9, %v4519_v43  ;;  %v14698_v42 = vpop.permute.xlu1 %4868 }
 0x3f1   : > { %v4523_v29 = vpop.permute.xlu0 %4522  ;;  %5007 = vst.msk [vmem:[#allocation4 + $0x50] sm:$0xff] %vm3612_vm3, %v14698_v42 }
 0x3f2   : > { %4920 = vrot.lane.b32.xlu1 %v4841_v50, %s12203_s29 }
 0x3f3   : > { %4574 = vrot.lane.b32.xlu0 %v4495_v55, %s12201_s25  ;;  %v11662_v55 = vld [vmem:[%s16625_s3 + $0x110] sm:$0xff]  }
 0x3f4   : > { %v4525_v32 = vpop.permute.xlu1 %4524  ;;  %v5259_v11 = vld [vmem:[#allocation4 + $0x430] sm:$0xff] }
 0x3f5   : > { %v4176_v57 = vpop.permute.xlu0 %4175  ;;  %v4597_v3 = vsel %vm439_vm7, %v4523_v29, %v4525_v32  ;;  %5916 = vmatprep.mubr.bf16.mxu1 %v5259_v11 }
 0x3f6   : > { %v4248_v9 = vsel %vm2281_vm11, %v14218_v23, %v4176_v57  ;;  %4662 = vst.msk [vmem:[#allocation4 + $0x88] sm:$0xff] %vm4657_vm8, %v4597_v3  ;;  %v16820_v23 = vld [vmem:[#allocation14_spill] sm:$0xff]  ;;  %5917 = vmatmul.mubr.bf16.gmra.mrb[188].mxu1 %v14383_v17  ;;  %v16825_v57 = vld [vmem:[#allocation32_spill] sm:$0xff]  ;;  %v4852_v3 = vrot.slane %v14754_v45, 6 }
 0x3f7   : > { %4312 = vst.msk [vmem:[#allocation4 + $0x80] sm:$0xff] %vm439_vm7, %v4248_v9  ;;  %4227 = vrot.lane.b32.xlu0 %v13926_v40, %s12202_s30  ;;  %4576 = vrot.lane.b32.xlu1 %v16820_v23, %s12201_s25  ;;  %v4499_v40 = vsel %vm4431_vm4, %v4494_v19, %v4498_v62  ;;  %v4504_v19 = vrot.slane %v14760_v28, 4  ;;  %v16826_v62 = vld [vmem:[#allocation30_spill] sm:$0xff] }
 0x3f8   : > { %4661 = vst.msk [vmem:[#allocation4 + $0x80] sm:$0xff] %vm4655_vm9, %v4523_v29  ;;  %5957 = vmatprep.mubr.bf16.mxu1 %v5128_v56  ;;  %v14719_v4 = vpop.permute.xlu1 %4872  ;;  %v5135_v43 = vld [vmem:[#allocation4 + $0x50] sm:$0xff]  ;;  %v4506_v29 = vrot.slane %v14754_v45, 4  ;;  %v16827_v32 = vrot.slane %v16826_v62, 4  ;;  %v5134_v11 = vld [vmem:[#allocation4 + $0x48] sm:$0xff]  ;;  %v16828_v35 = vrot.slane %v16826_v62, 2 }
 0x3f9   : > { %v4527_v22 = vpop.permute.xlu0 %4526  ;;  %5009 = vst.msk [vmem:[#allocation4 + $0x88] sm:$0xff] %vm3612_vm3, %v14719_v4 }
 0x3fa   : > { %v4507_v56 = vsel %vm4431_vm4, %v4502_v30, %v4506_v29 }
 0x3fb   : > { %4578 = vrot.lane.b32.xlu0 %v4499_v40, %s12201_s25  ;;  %4924 = vrot.lane.b32.xlu1 %v4845_v46, %s12203_s29  ;;  %v4508_v46 = vrot.slane %v14798_v25, 4 }
 0x3fc   : > { %v4529_v16 = vpop.permute.xlu1 %4528 }
 0x3fd   : > { %v4180_v17 = vpop.permute.xlu0 %4179  ;;  %v4598_v2 = vsel %vm439_vm7, %v4527_v22, %v4529_v16 }
 0x3fe   : > { %v4249_v41 = vsel %vm2281_vm11, %v14256_v8, %v4180_v17  ;;  %v4848_v8 = vrot.slane %v14722_v53, 6  ;;  %4664 = vst.msk [vmem:[#allocation4 + $0xc0] sm:$0xff] %vm4657_vm8, %v4598_v2  ;;  %5958 = vmatmul.mubr.bf16.vlgmr.msra.gmra.mrb[112].mxu1 %v5127_v18  ;;  %v11665_v18 = vld [vmem:[%s16625_s3 + $0x128] sm:$0xff]  }
 0x3ff   : > { %4314 = vst.msk [vmem:[#allocation4 + $0xb8] sm:$0xff] %vm439_vm7, %v4249_v41  ;;  %4231 = vrot.lane.b32.xlu0 %v16823_v49, %s12202_s30  ;;  %4580 = vrot.lane.b32.xlu1 %v16824_v12, %s12201_s25  ;;  %v11664_v41 = vld [vmem:[%s16625_s3 + $0x120] sm:$0xff]  }
 0x400   : > { %4663 = vst.msk [vmem:[#allocation4 + $0xb8] sm:$0xff] %vm4655_vm9, %v4527_v22  ;;  %5965 = vmatprep.mubr.bf16.mxu1 %v5135_v43  ;;  %6119 = vmatpush1.bf16.msra.mxu1 %v11659_v0  ;;  %v14751_v36 = vpop.permute.xlu1 %4876  ;;  %v4849_v26 = vsel %vm4781_vm5, %v4844_v6, %v4848_v8  ;;  %v5142_v6 = vld [vmem:[#allocation4 + $0x88] sm:$0xff]  ;;  %v4159_v22 = vrot.slane %v14760_v28, 2  ;;  %v4853_v53 = vsel %vm4781_vm5, %v4848_v8, %v4852_v3  ;;  %v5141_v16 = vld [vmem:[#allocation4 + $0x80] sm:$0xff] }
 0x401   : > { %v4531_v14 = vpop.permute.xlu0 %4530  ;;  %6120 = vmatprep.subr.bf16.mxu1 %v16751_v20  ;;  %5011 = vst.msk [vmem:[#allocation4 + $0xc0] sm:$0xff] %vm3612_vm3, %v14751_v36  ;;  %v4509_v0 = vsel %vm4431_vm4, %v4504_v19, %v4508_v46  ;;  %v16829_v43 = vld [vmem:[#allocation61_spill] sm:$0xff] }
 0x402   : > { %v4160_v27 = vsel %vm3817_vm14, %v16828_v35, %v4159_v22 }
 0x403   : > { %4582 = vrot.lane.b32.xlu0 %v4503_v63, %s12201_s25  ;;  %4928 = vrot.lane.b32.xlu1 %v4849_v26, %s12203_s29  ;;  %v11667_v63 = vld [vmem:[%s16625_s3 + $0x130] sm:$0xff]  }
 0x404   : > { %6121 = vmatpush1.bf16.msra.mxu1 %v11660_v39  ;;  %v4533_v50 = vpop.permute.xlu1 %4532 }
 0x405   : > { %v4184_v31 = vpop.permute.xlu0 %4183  ;;  %6122 = vmatprep.subr.bf16.mxu1 %v16751_v20  ;;  %v4599_v9 = vsel %vm439_vm7, %v4531_v14, %v4533_v50 }
 0x406   : > { %v4250_v34 = vsel %vm2281_vm11, %v14269_v15, %v4184_v31  ;;  %v4505_v15 = vsel %vm4431_vm4, %v16827_v32, %v4504_v19  ;;  %4666 = vst.msk [vmem:[#allocation4 + $0xf8] sm:$0xff] %vm4657_vm8, %v4599_v9  ;;  %5966 = vmatmul.mubr.bf16.gmra.mrb[116].mxu1 %v5134_v11  ;;  %v16830_v9 = vld [vmem:[#allocation62_spill] sm:$0xff] }
 0x407   : > { %4316 = vst.msk [vmem:[#allocation4 + $0xf0] sm:$0xff] %vm439_vm7, %v4250_v34  ;;  %4235 = vrot.lane.b32.xlu0 %v16825_v57, %s12202_s30  ;;  %4584 = vrot.lane.b32.xlu1 %v4505_v15, %s12201_s25  ;;  %v5148_v19 = vld [vmem:[#allocation4 + $0xb8] sm:$0xff]  ;;  %v11673_v32 = vld [vmem:[%s16625_s3 + $0x140] sm:$0xff]  }
 0x408   : > { %4665 = vst.msk [vmem:[#allocation4 + $0xf0] sm:$0xff] %vm4655_vm9, %v4531_v14  ;;  %5973 = vmatprep.mubr.bf16.mxu1 %v5142_v6  ;;  %6123 = vmatpush1.bf16.msra.mxu1 %v11662_v55  ;;  %v14789_v40 = vpop.permute.xlu1 %4880  ;;  %v5149_v49 = vld [vmem:[#allocation4 + $0xc0] sm:$0xff] }
 0x409   : > { %v4535_v23 = vpop.permute.xlu0 %4534  ;;  %6124 = vmatprep.subr.bf16.mxu1 %v16751_v20  ;;  %5013 = vst.msk [vmem:[#allocation4 + $0xf8] sm:$0xff] %vm3612_vm3, %v14789_v40  ;;  %v11672_v55 = vld [vmem:[%s16625_s3 + $0x138] sm:$0xff]  }
 0x40b   : > { %4586 = vrot.lane.b32.xlu0 %v4507_v56, %s12201_s25  ;;  %4932 = vrot.lane.b32.xlu1 %v4853_v53, %s12203_s29 }
 0x40c   : > { %6125 = vmatpush1.bf16.msra.mxu1 %v11663_v10  ;;  %v4537_v30 = vpop.permute.xlu1 %4536  ;;  %v11674_v10 = vld [vmem:[%s16625_s3 + $0x148] sm:$0xff]  }
 0x40d   : > { %v4188_v17 = vpop.permute.xlu0 %4187  ;;  %6126 = vmatprep.subr.bf16.mxu1 %v16751_v20 }
 0x40e   : > { %v4251_v60 = vsel %vm2281_vm11, %v14287_v21, %v4188_v17  ;;  %v4600_v21 = vsel %vm439_vm7, %v4535_v23, %v4537_v30  ;;  %5974 = vmatmul.mubr.bf16.gmra.mrb[120].mxu1 %v5141_v16 }
 0x40f   : > { %4318 = vst.msk [vmem:[#allocation4 + $0x128] sm:$0xff] %vm439_vm7, %v4251_v60  ;;  %4239 = vrot.lane.b32.xlu0 %v4160_v27, %s12202_s30  ;;  %4588 = vrot.lane.b32.xlu1 %v4509_v0, %s12201_s25  ;;  %v5155_v6 = vld [vmem:[#allocation4 + $0xf0] sm:$0xff] }
 0x410   : > { %4667 = vst.msk [vmem:[#allocation4 + $0x128] sm:$0xff] %vm4655_vm9, %v4535_v23  ;;  %5981 = vmatprep.mubr.bf16.mxu1 %v5149_v49  ;;  %6127 = vmatpush1.bf16.msra.mxu1 %v11664_v41  ;;  %v14825_v8 = vpop.permute.xlu1 %4884  ;;  %v5156_v31 = vld [vmem:[#allocation4 + $0xf8] sm:$0xff]  ;;  %v16831_v60 = vld [vmem:[#allocation63_spill] sm:$0xff] }
 0x411   : > { %4668 = vst.msk [vmem:[#allocation4 + $0x130] sm:$0xff] %vm4657_vm8, %v4600_v21  ;;  %v4539_v2 = vpop.permute.xlu0 %4538  ;;  %6128 = vmatprep.subr.bf16.mxu1 %v16751_v20  ;;  %v11675_v27 = vld [vmem:[%s16625_s3 + $0x150] sm:$0xff]   ;;  %v11676_v49 = vld [vmem:[%s16625_s3 + $0x158] sm:$0xff]  }
 0x412   : > { %5015 = vst.msk [vmem:[#allocation4 + $0x130] sm:$0xff] %vm3612_vm3, %v14825_v8 }
 0x414   : > { %6129 = vmatpush1.bf16.msra.mxu1 %v11665_v18  ;;  %v4541_v39 = vpop.permute.xlu1 %4540 }
 0x415   : > { %v4192_v12 = vpop.permute.xlu0 %4191  ;;  %6130 = vmatprep.subr.bf16.mxu1 %v16751_v20  ;;  %v4601_v26 = vsel %vm439_vm7, %v4539_v2, %v4541_v39 }
 0x416   : > { %v4252_v14 = vsel %vm2281_vm11, %v16829_v43, %v4192_v12  ;;  %4670 = vst.msk [vmem:[#allocation4 + $0x168] sm:$0xff] %vm4657_vm8, %v4601_v26  ;;  %5982 = vmatmul.mubr.bf16.gmra.mrb[124].mxu1 %v5148_v19  ;;  %v11677_v43 = vld [vmem:[%s16625_s3 + $0x160] sm:$0xff]  }
 0x417   : > { %4320 = vst.msk [vmem:[#allocation4 + $0x160] sm:$0xff] %vm439_vm7, %v4252_v14  ;;  %5989 = vmatprep.mubr.bf16.mxu1 %v5156_v31  ;;  %v5162_v21 = vld [vmem:[#allocation4 + $0x128] sm:$0xff] }
 0x418   : > { %4669 = vst.msk [vmem:[#allocation4 + $0x160] sm:$0xff] %vm4655_vm9, %v4539_v2  ;;  %6131 = vmatpush1.bf16.msra.mxu1 %v11667_v63  ;;  %v14843_v50 = vpop.permute.xlu1 %4888 }
 0x419   : > { %v4543_v34 = vpop.permute.xlu0 %4542  ;;  %6132 = vmatprep.subr.bf16.mxu1 %v16751_v20  ;;  %5017 = vst.msk [vmem:[#allocation4 + $0x168] sm:$0xff] %vm3612_vm3, %v14843_v50  ;;  %v5163_v23 = vld [vmem:[#allocation4 + $0x130] sm:$0xff] }
 0x41c   : > { %6133 = vmatpush1.bf16.msra.mxu1 %v11672_v55  ;;  %v4545_v15 = vpop.permute.xlu1 %4544  ;;  %v11678_v55 = vld [vmem:[%s16625_s3 + $0x168] sm:$0xff]  }
 0x41d   : > { %v4196_v57 = vpop.permute.xlu0 %4195  ;;  %6134 = vmatprep.subr.bf16.mxu1 %v16751_v20  ;;  %v4602_v11 = vsel %vm439_vm7, %v4543_v34, %v4545_v15 }
 0x41e   : > { %v4253_v62 = vsel %vm2281_vm11, %v16830_v9, %v4196_v57  ;;  %4672 = vst.msk [vmem:[#allocation4 + $0x1a0] sm:$0xff] %vm4657_vm8, %v4602_v11  ;;  %5990 = vmatmul.mubr.bf16.gmra.mrb[128].mxu1 %v5155_v6 }
 0x41f   : > { %4322 = vst.msk [vmem:[#allocation4 + $0x198] sm:$0xff] %vm439_vm7, %v4253_v62  ;;  %5997 = vmatprep.mubr.bf16.mxu1 %v5163_v23  ;;  %v5169_v39 = vld [vmem:[#allocation4 + $0x160] sm:$0xff] }
 0x420   : > { %4671 = vst.msk [vmem:[#allocation4 + $0x198] sm:$0xff] %vm4655_vm9, %v4543_v34  ;;  %6135 = vmatpush1.bf16.msra.mxu1 %v11673_v32  ;;  %v14861_v53 = vpop.permute.xlu1 %4892  ;;  %v5170_v0 = vld [vmem:[#allocation4 + $0x168] sm:$0xff] }
 0x421   : > { %v4547_v56 = vpop.permute.xlu0 %4546  ;;  %6136 = vmatprep.subr.bf16.mxu1 %v16751_v20  ;;  %5019 = vst.msk [vmem:[#allocation4 + $0x1a0] sm:$0xff] %vm3612_vm3, %v14861_v53 }
 0x424   : > { %6137 = vmatpush1.bf16.msra.mxu1 %v11674_v10  ;;  %v4549_v41 = vpop.permute.xlu1 %4548 }
 0x425   : > { %v4200_v17 = vpop.permute.xlu0 %4199  ;;  %6138 = vmatprep.subr.bf16.mxu1 %v16751_v20  ;;  %v4603_v30 = vsel %vm439_vm7, %v4547_v56, %v4549_v41 }
 0x426   : > { %v4254_v35 = vsel %vm2281_vm11, %v16831_v60, %v4200_v17  ;;  %4674 = vst.msk [vmem:[#allocation4 + $0x1d8] sm:$0xff] %vm4657_vm8, %v4603_v30  ;;  %5998 = vmatmul.mubr.bf16.gmra.mrb[132].mxu1 %v5162_v21 }
 0x427   : > { %4324 = vst.msk [vmem:[#allocation4 + $0x1d0] sm:$0xff] %vm439_vm7, %v4254_v35  ;;  %6005 = vmatprep.mubr.bf16.mxu1 %v5170_v0  ;;  %v5176_v57 = vld [vmem:[#allocation4 + $0x198] sm:$0xff] }
 0x428   : > { %4673 = vst.msk [vmem:[#allocation4 + $0x1d0] sm:$0xff] %vm4655_vm9, %v4547_v56  ;;  %6139 = vmatpush1.bf16.msra.mxu1 %v11675_v27  ;;  %v14879_v2 = vpop.permute.xlu1 %4896  ;;  %v5177_v26 = vld [vmem:[#allocation4 + $0x1a0] sm:$0xff]  ;;  %v4040_v56 = vld [vmem:[#allocation3 + $0x158] sm:$0x3]  ;;  %v11679_v35 = vld [vmem:[%s16625_s3 + $0x170] sm:$0xff]  }
 0x429   : > { %v4551_v16 = vpop.permute.xlu0 %4550  ;;  %6140 = vmatprep.subr.bf16.mxu1 %v16751_v20  ;;  %5021 = vst.msk [vmem:[#allocation4 + $0x1d8] sm:$0xff] %vm3612_vm3, %v14879_v2  ;;  %v4388_v0 = vld [vmem:[#allocation3 + $0x168] sm:$0xf] }
 0x42c   : > { %6141 = vmatpush1.bf16.msra.mxu1 %v11676_v49  ;;  %v4553_v14 = vpop.permute.xlu1 %4552 }
 0x42d   : > { %v4204_v18 = vpop.permute.xlu0 %4203  ;;  %6142 = vmatprep.subr.bf16.mxu1 %v16751_v20  ;;  %v4604_v63 = vsel %vm439_vm7, %v4551_v16, %v4553_v14  ;;  %v4512_v14 = vrot.slane %v4388_v0, 4  ;;  %v14973_v0 = vld [vmem:[#allocation3 + $0xa8] sm:$0xff] }
 0x42e   : > { %v4255_v12 = vsel %vm2281_vm11, %v14419_v54, %v4204_v18  ;;  %4676 = vst.msk [vmem:[#allocation4 + $0x210] sm:$0xff] %vm4657_vm8, %v4604_v63  ;;  %6006 = vmatmul.mubr.bf16.gmra.mrb[136].mxu1 %v5169_v39  ;;  %v4163_v18 = vrot.slane %v4040_v56, 2 }
 0x42f   : > { %4326 = vst.msk [vmem:[#allocation4 + $0x208] sm:$0xff] %vm439_vm7, %v4255_v12  ;;  %6013 = vmatprep.mubr.bf16.mxu1 %v5177_v26  ;;  %v5183_v23 = vld [vmem:[#allocation4 + $0x1d0] sm:$0xff]  ;;  %v14935_v12 = vld [vmem:[#allocation3 + $0x48] sm:$0xff]  ;;  %v4513_v45 = vsel %vm4431_vm4, %v4508_v46, %v4512_v14  ;;  %v4810_v14 = vrot.slane %v14973_v0, 6  ;;  %v4726_v0 = vld [vmem:[#allocation3 + $0x118] sm:$0xff] }
 0x430   : > { %4675 = vst.msk [vmem:[#allocation4 + $0x208] sm:$0xff] %vm4655_vm9, %v4551_v16  ;;  %6143 = vmatpush1.bf16.msra.mxu1 %v11677_v43  ;;  %v14895_v19 = vpop.permute.xlu1 %4900  ;;  %v5184_v9 = vld [vmem:[#allocation4 + $0x1d8] sm:$0xff]  ;;  %v4786_v39 = vrot.slane %v14935_v12, 6 }
 0x431   : > { %v2736_v54 = vpop.permute.xlu0 %2735  ;;  %6144 = vmatprep.subr.bf16.mxu1 %v16751_v20  ;;  %5023 = vst.msk [vmem:[#allocation4 + $0x210] sm:$0xff] %vm3612_vm3, %v14895_v19 }
 0x432   : > { %2789 = vst.msk [vmem:[#allocation3 + $0x160] sm:$0xff] %vm2766_vm0, %v2736_v54  ;;  %v14948_v54 = vld [vmem:[#allocation3 + $0x68] sm:$0xff] }
 0x434   : > { %v3068_v34 = vpop.permute.xlu1 %3067  ;;  %6145 = vmatpush1.bf16.msra.mxu1 %v11678_v55  ;;  %v4794_v55 = vrot.slane %v14948_v54, 6 }
 0x435   : > { %v3582_v31 = vpop.permute.xlu0 %3581  ;;  %3121 = vst.msk [vmem:[#allocation3 + $0x160] sm:$0xff] %vm3098_vm2, %v3068_v34  ;;  %6146 = vmatprep.subr.bf16.mxu1 %v16751_v20 }
 0x436   : > { %6014 = vmatmul.mubr.bf16.gmra.mrb[140].mxu1 %v5176_v57  ;;  %3635 = vst.msk [vmem:[#allocation3 + $0x160] sm:$0xff] %vm3612_vm3, %v3582_v31 }
 0x437   : > { %6021 = vmatprep.mubr.bf16.mxu1 %v5184_v9  ;;  %v5190_v26 = vld [vmem:[#allocation4 + $0x208] sm:$0xff] }
 0x438   : > { %v4555_v32 = vpop.permute.xlu1 %4554  ;;  %v5191_v27 = vld [vmem:[#allocation4 + $0x210] sm:$0xff]  ;;  %6147 = vmatpush1.bf16.msra.mxu1 %v11679_v35  ;;  %v4706_v9 = vld [vmem:[#allocation3 + $0x78] sm:$0xff]  ;;  %v11680_v35 = vld [vmem:[%s16625_s3 + $0x178] sm:$0xff]  }
 0x439   : > { %v4557_v62 = vpop.permute.xlu0 %4556  ;;  %6148 = vmatprep.subr.bf16.mxu1 %v16751_v20  ;;  %v4164_v20 = vsel %vm3817_vm14, %v4159_v22, %v4163_v18  ;;  %v4702_v22 = vld [vmem:[#allocation3 + $0x58] sm:$0xff] }
 0x43a   : > { %v4605_v15 = vsel %vm439_vm7, %v4555_v32, %v4557_v62  ;;  %v14958_v62 = vld [vmem:[#allocation3 + $0x88] sm:$0xff] }
 0x43b   : > { %4678 = vst.msk [vmem:[#allocation4 + $0x248] sm:$0xff] %vm4657_vm8, %v4605_v15 }
 0x43c   : > { %v4208_v6 = vpop.permute.xlu1 %4207  ;;  %6149 = vmatpush1.bf16.msra.mxu1 %v11680_v35 }
 0x43d   : > { %v14908_v11 = vpop.permute.xlu0 %4904  ;;  %v14912_v10 = vld [vmem:[#allocation3 + $0x160] sm:$0xff]  ;;  %v4256_v17 = vsel %vm2281_vm11, %v14439_v13, %v4208_v6 }
 0x43e   : > { %5025 = vst.msk [vmem:[#allocation4 + $0x248] sm:$0xff] %vm3612_vm3, %v14908_v11  ;;  %v4387_v60 = vld [vmem:[#allocation3 + $0x160] sm:$0xf]  ;;  %5119 = vst [vmem:[#allocation4 + $0x3e0] sm:$0xff] %v14912_v10  ;;  %6022 = vmatmul.mubr.bf16.gmra.mrb[144].mxu1 %v5183_v23  ;;  %v4856_v30 = vrot.slane %v14912_v10, 6  ;;  %v14987_v10 = vld [vmem:[#allocation3 + $0xc8] sm:$0xff] }
 0x43f   : > { %4328 = vst.msk [vmem:[#allocation4 + $0x240] sm:$0xff] %vm439_vm7, %v4256_v17  ;;  %v4510_v21 = vrot.slane %v4387_v60, 4  ;;  %6029 = vmatprep.mubr.bf16.mxu1 %v5191_v27  ;;  %v4798_v17 = vrot.slane %v4706_v9, 6  ;;  %v4802_v60 = vrot.slane %v14958_v62, 6  ;;  %v4818_v54 = vrot.slane %v14987_v10, 6  ;;  %v11681_v10 = vld [vmem:[#allocation2 + $0xc0] sm:$0xff]  }
 0x440   : > { %4677 = vst.msk [vmem:[#allocation4 + $0x240] sm:$0xff] %vm4655_vm9, %v4555_v32  ;;  %v2738_v13 = vpop.permute.xlu1 %2737  ;;  %v4857_v16 = vsel %vm4781_vm5, %v4852_v3, %v4856_v30  ;;  %v4698_v3 = vld [vmem:[#allocation3 + $0x38] sm:$0xc0]  ;;  %v4790_v32 = vrot.slane %v4702_v22, 6 }
 0x441   : > { %v3070_v41 = vpop.permute.xlu0 %3069  ;;  %v4511_v49 = vsel %vm4431_vm4, %v4506_v29, %v4510_v21  ;;  %2790 = vst.msk [vmem:[#allocation3 + $0x170] sm:$0xff] %vm2766_vm0, %v2738_v13  ;;  %4936 = vrot.lane.b32.xlu1 %v4857_v16, %s12203_s29  ;;  %v4785_v31 = vrot.slane %v4698_v3, 6  ;;  %v4710_v21 = vld [vmem:[#allocation3 + $0x98] sm:$0xff]  ;;  %v4803_v12 = vsel %vm4781_vm5, %v4798_v17, %v4802_v60  ;;  %vm6637_vm4 = vcmask 522242  }
 0x442   : > { %4590 = vrot.lane.b32.xlu0 %v4511_v49, %s12201_s25  ;;  %3122 = vst.msk [vmem:[#allocation3 + $0x170] sm:$0xff] %vm3098_vm2, %v3070_v41  ;;  %v4795_v23 = vsel %vm4781_vm5, %v4790_v32, %v4794_v55 }
 0x443   : > { %v4787_v34 = vsel %vm4781_vm5, %v4785_v31, %v4786_v39  ;;  %2306 = vst.msk [vmem:[#allocation3 + $0x180] sm:$0xff] %vm2281_vm11, %v11681_v10 }
 0x444   : > { %v3584_v63 = vpop.permute.xlu1 %3583 }
 0x445   : > { %v4559_v43 = vpop.permute.xlu0 %4558  ;;  %v5198_v29 = vld [vmem:[#allocation4 + $0x248] sm:$0xff]  ;;  %3636 = vst.msk [vmem:[#allocation3 + $0x170] sm:$0xff] %vm3612_vm3, %v3584_v63  ;;  %4592 = vrot.lane.b32.xlu1 %v4513_v45, %s12201_s25 }
 0x446   : > { %4243 = vrot.lane.b32.xlu0 %v4164_v20, %s12202_s30  ;;  %6030 = vmatmul.mubr.bf16.gmra.mrb[148].mxu1 %v5190_v26  ;;  %v4714_v45 = vld [vmem:[#allocation3 + $0xb8] sm:$0xff] }
 0x447   : > { %6037 = vmatprep.mubr.bf16.mxu1 %v5198_v29  ;;  %v5197_v27 = vld [vmem:[#allocation4 + $0x240] sm:$0xff]  ;;  %v4814_v31 = vrot.slane %v4714_v45, 6 }
 0x448   : > { %v4561_v46 = vpop.permute.xlu1 %4560 }
 0x449   : > { %v4212_v25 = vpop.permute.xlu0 %4211  ;;  %v4606_v57 = vsel %vm439_vm7, %v4559_v43, %v4561_v46  ;;  %v4718_v46 = vld [vmem:[#allocation3 + $0xd8] sm:$0xff] }
 0x44a   : > { %v4257_v28 = vsel %vm2281_vm11, %v14460_v44, %v4212_v25  ;;  %4866 = vrot.lane.b32.xlu0 %v4787_v34, %s12203_s29  ;;  %4680 = vst.msk [vmem:[#allocation4 + $0x280] sm:$0xff] %vm4657_vm8, %v4606_v57  ;;  %v14999_v25 = vld [vmem:[#allocation3 + $0xe8] sm:$0xff]  ;;  %v4819_v57 = vsel %vm4781_vm5, %v4814_v31, %v4818_v54 }
 0x44b   : > { %4330 = vst.msk [vmem:[#allocation4 + $0x278] sm:$0xff] %vm439_vm7, %v4257_v28  ;;  %v4799_v28 = vsel %vm4781_vm5, %v4794_v55, %v4798_v17  ;;  %v4826_v9 = vrot.slane %v14999_v25, 6  ;;  %v15011_v55 = vld [vmem:[#allocation3 + $0x108] sm:$0xff] }
 0x44c   : > { %4679 = vst.msk [vmem:[#allocation4 + $0x278] sm:$0xff] %vm4655_vm9, %v4559_v43  ;;  %v14961_v15 = vld [vmem:[#allocation3 + $0x170] sm:$0xff]  ;;  %v14963_v6 = vpop.permute.xlu1 %4908  ;;  %v4806_v43 = vrot.slane %v4710_v21, 6 }
 0x44d   : > { %v4563_v44 = vpop.permute.xlu0 %4562  ;;  %v4737_v56 = vld [vmem:[#allocation3 + $0x170] sm:$0x3f]  ;;  %5027 = vst.msk [vmem:[#allocation4 + $0x280] sm:$0xff] %vm3612_vm3, %v14963_v6 }
 0x44e   : > { %4874 = vrot.lane.b32.xlu0 %v4795_v23, %s12203_s29  ;;  %v4860_v41 = vrot.slane %v4737_v56, 6  ;;  %6038 = vmatmul.mubr.bf16.gmra.mrb[152].mxu1 %v5197_v27  ;;  %v4811_v26 = vsel %vm4781_vm5, %v4806_v43, %v4810_v14  ;;  %v4807_v23 = vsel %vm4781_vm5, %v4802_v60, %v4806_v43 }
 0x450   : > { %v4861_v16 = vsel %vm4781_vm5, %v4856_v30, %v4860_v41  ;;  %v4565_v18 = vpop.permute.xlu1 %4564  ;;  %v4791_v30 = vsel %vm4781_vm5, %v4786_v39, %v4790_v32  ;;  %v4722_v32 = vld [vmem:[#allocation3 + $0xf8] sm:$0xff]  ;;  %v4834_v41 = vrot.slane %v15011_v55, 6 }
 0x451   : > { %v4216_v13 = vpop.permute.xlu0 %4215  ;;  %4940 = vrot.lane.b32.xlu1 %v4861_v16, %s12203_s29  ;;  %v4607_v3 = vsel %vm439_vm7, %v4563_v44, %v4565_v18  ;;  %v4830_v21 = vrot.slane %v4722_v32, 6  ;;  %v11668_v16 = vld [vmem:[#allocation2 + $0xc8] ss:$0 sps:$4 sm:$0x33]   ;;  %v16834_v32 = vld [vmem:[#allocation16_spill] sm:$0xff] }
 0x452   : > { %v4258_v49 = vsel %vm2281_vm11, %v14492_v24, %v4216_v13  ;;  %4882 = vrot.lane.b32.xlu0 %v4803_v12, %s12203_s29  ;;  %4682 = vst.msk [vmem:[#allocation4 + $0x2b8] sm:$0xff] %vm4657_vm8, %v4607_v3  ;;  %v11666_v13 = vld [vmem:[#allocation2 + $0xc8] ss:$0 sps:$4 sm:$0x11]   ;;  %v4838_v3 = vrot.slane %v4726_v0, 6  ;;  %v3532_v45 = vshll.u32 %v11668_v16, 16 }
 0x453   : > { %4332 = vst.msk [vmem:[#allocation4 + $0x2b0] sm:$0xff] %vm439_vm7, %v4258_v49  ;;  %v5204_v63 = vld [vmem:[#allocation4 + $0x278] sm:$0xff]  ;;  %v4815_v49 = vsel %vm4781_vm5, %v4810_v14, %v4814_v31  ;;  %v4835_v43 = vsel %vm4781_vm5, %v4830_v21, %v4834_v41  ;;  %v4738_v0 = vld [vmem:[#allocation3 + $0x178] sm:$0x3f] }
 0x454   : > { %4681 = vst.msk [vmem:[#allocation4 + $0x2b0] sm:$0xff] %vm4655_vm9, %v4563_v44  ;;  %v14991_v20 = vpop.permute.xlu1 %4912  ;;  %v5205_v29 = vld [vmem:[#allocation4 + $0x280] sm:$0xff]  ;;  %v4822_v44 = vrot.slane %v4718_v46, 6 }
 0x455   : > { %v4567_v24 = vpop.permute.xlu0 %4566  ;;  %4870 = vrot.lane.b32.xlu1 %v4791_v30, %s12203_s29  ;;  %5029 = vst.msk [vmem:[#allocation4 + $0x2b8] sm:$0xff] %vm3612_vm3, %v14991_v20  ;;  %6045 = vmatprep.mubr.bf16.mxu1 %v5205_v29  ;;  %v2687_v30 = vshll.u32 %v11666_v13, 16  ;;  %v16832_v31 = vld [vmem:[#allocation29_spill] sm:$0xff] }
 0x456   : > { %4890 = vrot.lane.b32.xlu0 %v4811_v26, %s12203_s29  ;;  %6046 = vmatmul.mubr.bf16.gmra.mrb[156].mxu1 %v5204_v63  ;;  %v4827_v27 = vsel %vm4781_vm5, %v4822_v44, %v4826_v9  ;;  %v3529_v63 = vshrl.u32 %v11668_v16, 16  ;;  %v4823_v29 = vsel %vm4781_vm5, %v4818_v54, %v4822_v44 }
 0x457   : > { %v2689_v46 = vrot.slane %v2687_v30, 1 }
 0x458   : > { %v4569_v34 = vpop.permute.xlu1 %4568 }
 0x459   : > { %v4220_v39 = vpop.permute.xlu0 %4219  ;;  %4878 = vrot.lane.b32.xlu1 %v4799_v28, %s12203_s29  ;;  %v4608_v62 = vsel %vm439_vm7, %v4567_v24, %v4569_v34  ;;  %v16833_v28 = vrot.slane %v16832_v31, 6  ;;  %v3531_v34 = vrot.slane %v3529_v63, 1 }
 0x45a   : > { %v4259_v22 = vsel %vm2281_vm11, %v14504_v48, %v4220_v39  ;;  %4898 = vrot.lane.b32.xlu0 %v4819_v57, %s12203_s29  ;;  %4684 = vst.msk [vmem:[#allocation4 + $0x2f0] sm:$0xff] %vm4657_vm8, %v4608_v62  ;;  %v3534_v57 = vrot.slane %v3532_v45, 2  ;;  %v4831_v62 = vsel %vm4781_vm5, %v4826_v9, %v4830_v21  ;;  %v4736_v21 = vld [vmem:[#allocation3 + $0x168] sm:$0xff] }
 0x45b   : > { %4334 = vst.msk [vmem:[#allocation4 + $0x2e8] sm:$0xff] %vm439_vm7, %v4259_v22  ;;  %v5211_v56 = vld [vmem:[#allocation4 + $0x2b0] sm:$0xff]  ;;  %v4843_v22 = vsel %vm4781_vm5, %v4838_v3, %v16833_v28  ;;  %v16838_v28 = vrot.slane %v16837_v58, 6 }
 0x45c   : > { %4683 = vst.msk [vmem:[#allocation4 + $0x2e8] sm:$0xff] %vm4655_vm9, %v4567_v24  ;;  %v15015_v17 = vpop.permute.xlu1 %4916  ;;  %v5212_v35 = vld [vmem:[#allocation4 + $0x2b8] sm:$0xff] }
 0x45d   : > { %v4571_v48 = vpop.permute.xlu0 %4570  ;;  %4886 = vrot.lane.b32.xlu1 %v4807_v23, %s12203_s29  ;;  %5031 = vst.msk [vmem:[#allocation4 + $0x2f0] sm:$0xff] %vm3612_vm3, %v15015_v17  ;;  %6053 = vmatprep.mubr.bf16.mxu1 %v5212_v35  ;;  %v3535_v23 = vor.u32 %v3534_v57, %v3531_v34 }
 0x45e   : > { %4906 = vrot.lane.b32.xlu0 %v4827_v27, %s12203_s29  ;;  %6054 = vmatmul.mubr.bf16.gmra.mrb[160].mxu1 %v5211_v56 }
 0x460   : > { %v4573_v12 = vpop.permute.xlu1 %4572 }
 0x461   : > { %v4224_v60 = vpop.permute.xlu0 %4223  ;;  %4894 = vrot.lane.b32.xlu1 %v4815_v49, %s12203_s29  ;;  %v4609_v24 = vsel %vm439_vm7, %v4571_v48, %v4573_v12  ;;  %v4858_v12 = vrot.slane %v4736_v21, 6 }
 0x462   : > { %v4260_v18 = vsel %vm2281_vm11, %v14517_v37, %v4224_v60  ;;  %4914 = vrot.lane.b32.xlu0 %v4835_v43, %s12203_s29  ;;  %4686 = vst.msk [vmem:[#allocation4 + $0x328] sm:$0xff] %vm4657_vm8, %v4609_v24  ;;  %v2683_v37 = vshrl.u32 %v14604_v51, 16  ;;  %v11671_v60 = vld [vmem:[#allocation2 + $0xc8] ss:$0 sps:$4 sm:$0x11]   ;;  %v4862_v43 = vrot.slane %v4738_v0, 6 }
 0x463   : > { %4336 = vst.msk [vmem:[#allocation4 + $0x320] sm:$0xff] %vm439_vm7, %v4260_v18  ;;  %v5218_v26 = vld [vmem:[#allocation4 + $0x2e8] sm:$0xff]  ;;  %v3021_v10 = vrot.slane %v11671_v60, 1 }
 0x464   : > { %4685 = vst.msk [vmem:[#allocation4 + $0x320] sm:$0xff] %vm4655_vm9, %v4571_v48  ;;  %v15036_v25 = vpop.permute.xlu1 %4920  ;;  %v5219_v39 = vld [vmem:[#allocation4 + $0x2f0] sm:$0xff]  ;;  %v2685_v54 = vor.u32 %v2683_v37, %v14623_v61  ;;  %v16835_v18 = vld [vmem:[#allocation34_spill] sm:$0xff]  ;;  %v4863_v30 = vsel %vm4781_vm5, %v4858_v12, %v4862_v43 }
 0x465   : > { %v4575_v14 = vpop.permute.xlu0 %4574  ;;  %4902 = vrot.lane.b32.xlu1 %v4823_v29, %s12203_s29  ;;  %5033 = vst.msk [vmem:[#allocation4 + $0x328] sm:$0xff] %vm3612_vm3, %v15036_v25  ;;  %6061 = vmatprep.mubr.bf16.mxu1 %v5219_v39  ;;  %v3022_v63 = vsel %vm2971_vm12, %v3019_v33, %v3021_v10  ;;  %v4859_v33 = vsel %vm4781_vm5, %v16838_v28, %v4858_v12  ;;  %v5130_v10 = vld [vmem:[#allocation4 + $0x28] sm:$0xff] }
 0x466   : > { %4922 = vrot.lane.b32.xlu0 %v4843_v22, %s12203_s29  ;;  %6062 = vmatmul.mubr.bf16.gmra.mrb[164].mxu1 %v5218_v26  ;;  %v2690_v9 = vsel %vm2486_vm13, %v2685_v54, %v2689_v46 }
 0x469   : > { %v4228_v51 = vpop.permute.xlu0 %4227  ;;  %v4577_v48 = vpop.permute.xlu1 %4576  ;;  %4910 = vrot.lane.b32.xlu1 %v4831_v62, %s12203_s29 }
 0x46a   : > { %v4261_v55 = vsel %vm2281_vm11, %v14530_v52, %v4228_v51  ;;  %v4610_v44 = vsel %vm439_vm7, %v4575_v14, %v4577_v48  ;;  %4930 = vrot.lane.b32.xlu0 %v16834_v32, %s12203_s29  ;;  %v4839_v52 = vsel %vm4781_vm5, %v4834_v41, %v4838_v3  ;;  %v3536_v41 = vsel %vm3303_vm15, %v14633_v1, %v3535_v23 }
 0x46b   : > { %4338 = vst.msk [vmem:[#allocation4 + $0x358] sm:$0xff] %vm439_vm7, %v4261_v55  ;;  %v5225_v56 = vld [vmem:[#allocation4 + $0x320] sm:$0xff]  ;;  %vm6610_vm15 = vcmask 517120  }
 0x46c   : > { %4687 = vst.msk [vmem:[#allocation4 + $0x358] sm:$0xff] %vm4655_vm9, %v4575_v14  ;;  %v5226_v27 = vld [vmem:[#allocation4 + $0x328] sm:$0xff]  ;;  %v16836_v14 = vld [vmem:[#allocation17_spill] sm:$0xff] }
 0x46d   : > { %4688 = vst.msk [vmem:[#allocation4 + $0x360] sm:$0xff] %vm4657_vm8, %v4610_v44  ;;  %v4579_v61 = vpop.permute.xlu0 %4578  ;;  %v15058_v35 = vpop.permute.xlu1 %4924  ;;  %4918 = vrot.lane.b32.xlu1 %v4839_v52, %s12203_s29  ;;  %6069 = vmatprep.mubr.bf16.mxu1 %v5226_v27 }
 0x46e   : > { %5035 = vst.msk [vmem:[#allocation4 + $0x360] sm:$0xff] %vm3612_vm3, %v15058_v35  ;;  %2739 = vrot.lane.b32.xlu0 %v2690_v9, %s12202_s30  ;;  %6070 = vmatmul.mubr.bf16.gmra.mrb[168].mxu1 %v5225_v56  ;;  %s379_s30 = scalar_lea.vmem [#allocation9], %s378_s14 }
 0x471   : > { %v4232_v13 = vpop.permute.xlu0 %4231  ;;  %v4581_v49 = vpop.permute.xlu1 %4580  ;;  %4926 = vrot.lane.b32.xlu1 %v16835_v18, %s12203_s29 }
 0x472   : > { %v4262_v16 = vsel %vm2281_vm11, %v14543_v47, %v4232_v13  ;;  %v4611_v3 = vsel %vm439_vm7, %v4579_v61, %v4581_v49  ;;  %3585 = vrot.lane.b32.xlu0 %v3536_v41, %s12203_s29 }
 0x473   : > { %4340 = vst.msk [vmem:[#allocation4 + $0x390] sm:$0xff] %vm439_vm7, %v4262_v16  ;;  %v5232_v24 = vld [vmem:[#allocation4 + $0x358] sm:$0xff] }
 0x474   : > { %4689 = vst.msk [vmem:[#allocation4 + $0x390] sm:$0xff] %vm4655_vm9, %v4579_v61 }
 0x475   : > { %4690 = vst.msk [vmem:[#allocation4 + $0x398] sm:$0xff] %vm4657_vm8, %v4611_v3  ;;  %v4583_v1 = vpop.permute.xlu0 %4582  ;;  %v15075_v47 = vpop.permute.xlu1 %4928  ;;  %4934 = vrot.lane.b32.xlu1 %v16836_v14, %s12203_s29  ;;  %v5233_v37 = vld [vmem:[#allocation4 + $0x360] sm:$0xff] }
 0x476   : > { %5037 = vst.msk [vmem:[#allocation4 + $0x398] sm:$0xff] %vm3612_vm3, %v15075_v47  ;;  %6077 = vmatprep.mubr.bf16.mxu1 %v5233_v37  ;;  %4942 = vrot.lane.b32.xlu0 %v4863_v30, %s12203_s29  ;;  %v12123_v30 = vld [vmem:[#allocation4 + $0x60] sm:$0xff] }
 0x477   : > { %6078 = vmatmul.mubr.bf16.gmra.mrb[172].mxu1 %v5232_v24 }
 0x479   : > { %v4236_v45 = vpop.permute.xlu0 %4235  ;;  %v4585_v26 = vpop.permute.xlu1 %4584  ;;  %3071 = vrot.lane.b32.xlu1 %v3022_v63, %s12201_s25 }
 0x47a   : > { %v4263_v29 = vsel %vm2281_vm11, %v14556_v38, %v4236_v45  ;;  %v4612_v39 = vsel %vm439_vm7, %v4583_v1, %v4585_v26 }
 0x47b   : > { %4342 = vst.msk [vmem:[#allocation4 + $0x3c8] sm:$0xff] %vm439_vm7, %v4263_v29  ;;  %v5239_v22 = vld [vmem:[#allocation4 + $0x390] sm:$0xff] }
 0x47c   : > { %4691 = vst.msk [vmem:[#allocation4 + $0x3c8] sm:$0xff] %vm4655_vm9, %v4583_v1 }
 0x47d   : > { %4692 = vst.msk [vmem:[#allocation4 + $0x3d0] sm:$0xff] %vm4657_vm8, %v4612_v39  ;;  %v4587_v31 = vpop.permute.xlu0 %4586  ;;  %v15096_v51 = vpop.permute.xlu1 %4932  ;;  %4938 = vrot.lane.b32.xlu1 %v4859_v33, %s12203_s29  ;;  %v5240_v38 = vld [vmem:[#allocation4 + $0x398] sm:$0xff]  ;;  %v5082_v33 = vld [vmem:[#allocation3 + $0x178] sm:$0xff]  ;;  %s10003_s29 = sshll.u32 %s379_s30, 4  ;;  %s16582_s29 = int_to_ptr.vmem [resolvable:$true] %s10003_s29 }
 0x47e   : > { %5039 = vst.msk [vmem:[#allocation4 + $0x3d0] sm:$0xff] %vm3612_vm3, %v15096_v51  ;;  %6085 = vmatprep.mubr.bf16.mxu1 %v5240_v38  ;;  %v5144_v39 = vld [vmem:[#allocation4 + $0x98] sm:$0xff]  ;;  %v12124_v38 = vld [vmem:[#allocation4 + $0xd0] sm:$0xff]  ;;  %p12143_p0 = scmp.lt.s32.totalorder %s16582_s29, %s12141_s15 }
 0x47f   : > { %6086 = vmatmul.mubr.bf16.gmra.mrb[176].mxu1 %v5239_v22  ;;  %v5084_v22 = vld [vmem:[#allocation3 + $0x188] sm:$0xff]  ;;  %5122 = vst.msk [vmem:[#allocation4 + $0x420] sm:$0xff] %vm2281_vm11, %v5082_v33 }
 0x480   : > { %5124 = vst.msk [vmem:[#allocation4 + $0x458] sm:$0xff] %vm2281_vm11, %v5084_v22 }
 0x481   : > { %v4240_v54 = vpop.permute.xlu0 %4239  ;;  %v4589_v34 = vpop.permute.xlu1 %4588 }
 0x482   : > { %v4264_v46 = vsel %vm2281_vm11, %v14659_v7, %v4240_v54  ;;  %v4613_v57 = vsel %vm439_vm7, %v4587_v31, %v4589_v34 }
 0x483   : > { %4344 = vst.msk [vmem:[#allocation4 + $0x400] sm:$0xff] %vm439_vm7, %v4264_v46  ;;  %v5246_v62 = vld [vmem:[#allocation4 + $0x3c8] sm:$0xff] }
 0x484   : > { %4693 = vst.msk [vmem:[#allocation4 + $0x400] sm:$0xff] %vm4655_vm9, %v4587_v31 }
 0x485   : > { %4694 = vst.msk [vmem:[#allocation4 + $0x408] sm:$0xff] %vm4657_vm8, %v4613_v57  ;;  %v5247_v55 = vld [vmem:[#allocation4 + $0x3d0] sm:$0xff] }
 0x486   : > { %6093 = vmatprep.mubr.bf16.mxu1 %v5247_v55  ;;  %v5257_v57 = vld [vmem:[#allocation4 + $0x420] sm:$0xff] }
 0x487   : > { %6094 = vmatmul.mubr.bf16.gmra.mrb[180].mxu1 %v5246_v62  ;;  %v5264_v62 = vld [vmem:[#allocation4 + $0x458] sm:$0xff]  ;;  %11119 = vmatprep.mubr.msk.bf16.mxu0 %vm2281_vm11, %v5257_v57 }
 0x488   : > { %11120 = vmatmul.mubr.msk.bf16.gmra.mrb[52].mxu0 %vm2281_vm11, %v5264_v62 }
 0x48b   : > { %v5253_v27 = vld [vmem:[#allocation4 + $0x400] sm:$0xff] }
 0x4b3   : > { %v15107_v44 = vpop.permute.xlu1 %4936 }
 0x4b4   : > { %v4591_v48 = vpop.permute.xlu0 %4590  ;;  %5041 = vst.msk [vmem:[#allocation4 + $0x408] sm:$0xff] %vm3612_vm3, %v15107_v44 }
 0x4b7   : > { %v4593_v32 = vpop.permute.xlu1 %4592 }
 0x4b8   : > { %v4244_v7 = vpop.permute.xlu0 %4243  ;;  %v4614_v9 = vsel %vm439_vm7, %v4591_v48, %v4593_v32  ;;  %v12125_v32 = vld [vmem:[#allocation4 + $0x178] sm:$0xff] }
 0x4b9   : > { %v4265_v61 = vsel %vm2281_vm11, %v14687_v59, %v4244_v7  ;;  %4696 = vst.msk [vmem:[#allocation4 + $0x440] sm:$0xff] %vm4657_vm8, %v4614_v9  ;;  %v5165_v7 = vld [vmem:[#allocation4 + $0x140] sm:$0xff]  ;;  %v12127_v9 = vld [vmem:[#allocation4 + $0x1e8] sm:$0xff]  ;;  %vm6605_vm11 = vsmask.f32 7958 }
 0x4ba   : > { %4346 = vst.msk [vmem:[#allocation4 + $0x438] sm:$0xff] %vm439_vm7, %v4265_v61  ;;  %v12126_v61 = vld [vmem:[#allocation4 + $0x1b0] sm:$0xff] }
 0x4bb   : > { %4695 = vst.msk [vmem:[#allocation4 + $0x438] sm:$0xff] %vm4655_vm9, %v4591_v48  ;;  %v5254_v52 = vld [vmem:[#allocation4 + $0x408] sm:$0xff] }
 0x4bc   : > { %v4867_v23 = vpop.permute.xlu0 %4866  ;;  %6101 = vmatprep.mubr.bf16.mxu1 %v5254_v52  ;;  %v12130_v52 = vld [vmem:[#allocation4 + $0x290] sm:$0xff] }
 0x4bd   : > { %v4945_v56 = vsel %vm4657_vm8, %v14576_v5, %v4867_v23  ;;  %6102 = vmatmul.mubr.bf16.gmra.mrb[184].mxu1 %v5253_v27  ;;  %v12128_v23 = vld [vmem:[#allocation4 + $0x220] sm:$0xff] }
 0x4be   : > { %v12132_v27 = vld [vmem:[#allocation4 + $0x300] sm:$0xff] }
 0x4c0   : > { %v4875_v21 = vpop.permute.xlu0 %4874 }
 0x4c1   : > { %v4947_v59 = vsel %vm4657_vm8, %v14719_v4, %v4875_v21  ;;  %v12133_v21 = vld [vmem:[#allocation4 + $0x338] sm:$0xff] }
 0x4c2   : > { %v5260_v43 = vld [vmem:[#allocation4 + $0x438] sm:$0xff] }
 0x4c3   : > { %v4941_v0 = vpop.permute.xlu1 %4940 }
 0x4c4   : > { %5043 = vst.msk [vmem:[#allocation4 + $0x440] sm:$0xff] %vm3612_vm3, %v4941_v0  ;;  %v4883_v60 = vpop.permute.xlu0 %4882 }
 0x4c5   : > { %v15124_v13 = vsel %vm4657_vm8, %v14789_v40, %v4883_v60  ;;  %v5249_v60 = vld [vmem:[#allocation4 + $0x3e0] sm:$0xff] }
 0x4c7   : > { %v4871_v41 = vpop.permute.xlu1 %4870 }
 0x4c8   : > { %v4946_v16 = vsel %vm4657_vm8, %v14698_v42, %v4871_v41  ;;  %v4891_v5 = vpop.permute.xlu0 %4890 }
 0x4c9   : > { %v15130_v49 = vsel %vm4657_vm8, %v14843_v50, %v4891_v5 }
 0x4cb   : > { %v4879_v18 = vpop.permute.xlu1 %4878  ;;  %v5261_v12 = vld [vmem:[#allocation4 + $0x440] sm:$0xff] }
 0x4cc   : > { %v4948_v4 = vsel %vm4657_vm8, %v14751_v36, %v4879_v18  ;;  %6109 = vmatprep.mubr.bf16.mxu1 %v5261_v12  ;;  %v4899_v3 = vpop.permute.xlu0 %4898  ;;  %v16839_v18 = vld [vmem:[#allocation19_spill] sm:$0xff] }
 0x4cd   : > { %6110 = vmatmul.mubr.bf16.gmra.mrb[188].mxu1 %v5260_v43  ;;  %v15136_v40 = vsel %vm4657_vm8, %v14879_v2, %v4899_v3 }
 0x4ce   : > { %6150 = vmatprep.mubr.bf16.mxu1 %v5130_v10 }
 0x4cf   : > { %v4887_v42 = vpop.permute.xlu1 %4886 }
 0x4d0   : > { %v4950_v50 = vsel %vm4657_vm8, %v14825_v8, %v4887_v42  ;;  %v4907_v1 = vpop.permute.xlu0 %4906 }
 0x4d1   : > { %v15142_v24 = vsel %vm4657_vm8, %v14908_v11, %v4907_v1 }
 0x4d3   : > { %v4895_v36 = vpop.permute.xlu1 %4894 }
 0x4d4   : > { %v4952_v14 = vsel %vm4657_vm8, %v14861_v53, %v4895_v36  ;;  %v4915_v37 = vpop.permute.xlu0 %4914  ;;  %v16841_v36 = vld [vmem:[#allocation18_spill] sm:$0xff] }
 0x4d5   : > { %6151 = vmatmul.mubr.bf16.vlgmr.msra.gmra.mrb[112].mxu1 %v4945_v56  ;;  %v15148_v2 = vsel %vm4657_vm8, %v14991_v20, %v4915_v37  ;;  %v12131_v56 = vld [vmem:[#allocation4 + $0x2c8] sm:$0xff] }
 0x4d6   : > { %6158 = vmatprep.mubr.bf16.mxu1 %v12123_v30 }
 0x4d7   : > { %v4903_v63 = vpop.permute.xlu1 %4902 }
 0x4d8   : > { %v4954_v8 = vsel %vm4657_vm8, %v14895_v19, %v4903_v63  ;;  %v4923_v45 = vpop.permute.xlu0 %4922  ;;  %v16842_v63 = vld [vmem:[#allocation20_spill] sm:$0xff] }
 0x4d9   : > { %v15154_v11 = vsel %vm4657_vm8, %v15036_v25, %v4923_v45 }
 0x4db   : > { %v4911_v29 = vpop.permute.xlu1 %4910 }
 0x4dc   : > { %v4956_v53 = vsel %vm4657_vm8, %v14963_v6, %v4911_v29  ;;  %v4931_v26 = vpop.permute.xlu0 %4930 }
 0x4dd   : > { %6159 = vmatmul.mubr.bf16.gmra.mrb[116].mxu1 %v4946_v16  ;;  %v15160_v20 = vsel %vm4657_vm8, %v15075_v47, %v4931_v26 }
 0x4de   : > { %6166 = vmatprep.mubr.bf16.mxu1 %v5144_v39 }
 0x4df   : > { %v4919_v31 = vpop.permute.xlu1 %4918 }
 0x4e0   : > { %v4958_v19 = vsel %vm4657_vm8, %v15015_v17, %v4919_v31  ;;  %v2740_v58 = vpop.permute.xlu0 %2739 }
 0x4e1   : > { %2791 = vst.msk [vmem:[#allocation3 + $0x180] sm:$0xff] %vm2766_vm0, %v2740_v58  ;;  %vm6611_vm0 = vsmask.f32 1280 }
 0x4e3   : > { %v4927_v25 = vpop.permute.xlu1 %4926 }
 0x4e4   : > { %v4960_v28 = vsel %vm4657_vm8, %v15058_v35, %v4927_v25  ;;  %v3586_v6 = vpop.permute.xlu0 %3585  ;;  %v5158_v35 = vld [vmem:[#allocation4 + $0x108] sm:$0xff]  ;;  %v16844_v25 = vld [vmem:[#allocation25_spill] sm:$0xff] }
 0x4e5   : > { %6167 = vmatmul.mubr.bf16.gmra.mrb[120].mxu1 %v4947_v59  ;;  %v12134_v59 = vld [vmem:[#allocation4 + $0x370] sm:$0xff] }
 0x4e6   : > { %6174 = vmatprep.mubr.bf16.mxu1 %v12124_v38 }
 0x4e7   : > { %v4935_v47 = vpop.permute.xlu1 %4934 }
 0x4e8   : > { %v4962_v17 = vsel %vm4657_vm8, %v15096_v51, %v4935_v47  ;;  %v4943_v54 = vpop.permute.xlu0 %4942 }
 0x4e9   : > { %v4964_v46 = vsel %vm4657_vm8, %v4941_v0, %v4943_v54  ;;  %v12135_v0 = vld [vmem:[#allocation4 + $0x3a8] sm:$0xff] }
 0x4eb   : > { %v3072_v34 = vpop.permute.xlu1 %3071 }
 0x4ec   : > { %3123 = vst.msk [vmem:[#allocation3 + $0x180] sm:$0xff] %vm3098_vm2, %v3072_v34  ;;  %vm6606_vm2 = vmand %vm6604_vm10, %vm6605_vm11  ;;  %vm6664_vm10 = vcmask 523271   ;;  %vm6665_vm11 = vsmask.f32 7966 }
 0x4ed   : > { %3637 = vst.msk [vmem:[#allocation3 + $0x180] sm:$0xff] %vm3612_vm3, %v3586_v6  ;;  %6175 = vmatmul.mubr.bf16.gmra.mrb[124].mxu1 %v4948_v4  ;;  %vm6612_vm3 = vmand %vm6610_vm15, %vm6611_vm0  ;;  %vm6670_vm15 = vcmask 519168   ;;  %vm6671_vm0 = vsmask.f32 3328 }
 0x4ee   : > { %6182 = vmatprep.mubr.bf16.mxu1 %v5158_v35 }
 0x4ef   : > { %v4939_v55 = vpop.permute.xlu1 %4938 }
 0x4f0   : > { %v4963_v51 = vsel %vm4657_vm8, %v15107_v44, %v4939_v55  ;;  %v12129_v44 = vld [vmem:[#allocation4 + $0x258] sm:$0xff]  ;;  %vm6639_vm8 = vmand %vm6637_vm4, %vm6638_vm6  ;;  %vm6698_vm4 = vcmask 523268   ;;  %vm6704_vm6 = vcmask 516096  }
 0x4f1   : > { %v16846_v55 = vld [vmem:[#allocation24_spill] sm:$0xff] }
 0x4f4   : > { %v5083_v48 = vld [vmem:[#allocation3 + $0x180] sm:$0xff] }
 0x4f5   : > { %6183 = vmatmul.mubr.bf16.gmra.mrb[128].mxu1 %v15124_v13  ;;  %v15189_v13 = vld [vmem:[%s16626_s4] ss:$0 sm:$0xff] }
 0x4f6   : > { %6190 = vmatprep.mubr.bf16.mxu1 %v5165_v7 }
 0x4fd   : > { %6191 = vmatmul.mubr.bf16.gmra.mrb[132].mxu1 %v4950_v50 }
 0x4fe   : > { %6198 = vmatprep.mubr.bf16.mxu1 %v12125_v32 }
 0x505   : > { %6199 = vmatmul.mubr.bf16.gmra.mrb[136].mxu1 %v15130_v49 }
 0x506   : > { %6206 = vmatprep.mubr.bf16.mxu1 %v12126_v61 }
 0x50d   : > { %6207 = vmatmul.mubr.bf16.gmra.mrb[140].mxu1 %v4952_v14 }
 0x50e   : > { %6214 = vmatprep.mubr.bf16.mxu1 %v12127_v9 }
 0x515   : > { %6215 = vmatmul.mubr.bf16.gmra.mrb[144].mxu1 %v15136_v40 }
 0x516   : > { %6222 = vmatprep.mubr.bf16.mxu1 %v12128_v23 }
 0x51d   : > { %6223 = vmatmul.mubr.bf16.gmra.mrb[148].mxu1 %v4954_v8 }
 0x51e   : > { %6230 = vmatprep.mubr.bf16.mxu1 %v12129_v44 }
 0x525   : > { %6231 = vmatmul.mubr.bf16.gmra.mrb[152].mxu1 %v15142_v24 }
 0x526   : > { %6238 = vmatprep.mubr.bf16.mxu1 %v12130_v52 }
 0x52d   : > { %6239 = vmatmul.mubr.bf16.gmra.mrb[156].mxu1 %v4956_v53 }
 0x52e   : > { %6246 = vmatprep.mubr.bf16.mxu1 %v12131_v56 }
 0x535   : > { %6247 = vmatmul.mubr.bf16.gmra.mrb[160].mxu1 %v15148_v2 }
 0x536   : > { %6254 = vmatprep.mubr.bf16.mxu1 %v12132_v27 }
 0x53d   : > { %6255 = vmatmul.mubr.bf16.gmra.mrb[164].mxu1 %v4958_v19 }
 0x53e   : > { %6262 = vmatprep.mubr.bf16.mxu1 %v12133_v21 }
 0x545   : > { %6263 = vmatmul.mubr.bf16.gmra.mrb[168].mxu1 %v15154_v11 }
 0x546   : > { %6270 = vmatprep.mubr.bf16.mxu1 %v12134_v59 }
 0x54d   : > { %6271 = vmatmul.mubr.bf16.gmra.mrb[172].mxu1 %v4960_v28 }
 0x54e   : > { %6278 = vmatprep.mubr.bf16.mxu1 %v12135_v0 }
 0x555   : > { %6279 = vmatmul.mubr.bf16.gmra.mrb[176].mxu1 %v15160_v20  ;;  %v16843_v20 = vld [vmem:[#allocation23_spill] sm:$0xff] }
 0x556   : > { %6286 = vmatprep.mubr.bf16.mxu1 %v5249_v60  ;;  %v16847_v60 = vld [vmem:[#allocation27_spill] sm:$0xff] }
 0x55b   : > { %v15216_v27 = vpop.f32.mrb[52].mxu0 }
 0x55c   : > { %v15218_v59 = vpop.f32.mrb[53].mxu0 }
 0x55d   : > { %6287 = vmatmul.mubr.bf16.gmra.mrb[180].mxu1 %v4962_v17  ;;  %v16845_v17 = vld [vmem:[#allocation22_spill] sm:$0xff] }
 0x55e   : > { %6294 = vmatprep.mubr.bf16.mxu1 %v14961_v15  ;;  %v16840_v15 = vld [vmem:[#allocation21_spill] sm:$0xff] }
 0x565   : > { %6295 = vmatmul.mubr.bf16.gmra.mrb[184].mxu1 %v4963_v51 }
 0x566   : > { %6302 = vmatprep.mubr.bf16.mxu1 %v5083_v48 }
 0x56d   : > { %6303 = vmatmul.mubr.bf16.gmra.mrb[188].mxu1 %v4964_v46 }
 0x5a8   : > { %v6152_v41 = vpop.f32.mrb[112].mxu1 }
 0x5a9   : > { %v11167_v16 = vadd.f32 %v15189_v13, %v6152_v41  ;;  %v6154_v5 = vpop.f32.mrb[113].mxu1 }
 0x5aa   : > { %v6155_v49 = vpop.f32.mrb[114].mxu1 }
 0x5ab   : > { %v6346_v12 = vadd.f32 %v11167_v16, %v16839_v18  ;;  %v11168_v4 = vadd.f32 %v15189_v13, %v6155_v49  ;;  %v6157_v43 = vpop.f32.mrb[115].mxu1  ;;  %v15222_v49 = vpop.f32.mrb[54].mxu0 }
 0x5ac   : > { %v15224_v18 = vpop.f32.mrb[55].mxu0 }
 0x5ad   : > { %v6504_v3 = vmax.f32 %v6346_v12, 0.0  ;;  %v6349_v40 = vadd.f32 %v11168_v4, %v16840_v15 }
 0x5af   : > { %6544 = vst.msk [vmem:[#allocation5] sm:$0xff] %vm439_vm7, %v6504_v3  ;;  %v6505_v10 = vmax.f32 %v6349_v40, 0.0  ;;  %v16848_v3 = vld [vmem:[#allocation36_spill] sm:$0xff] }
 0x5b0   : > { %v6160_v42 = vpop.f32.mrb[116].mxu1 }
 0x5b1   : > { %6545 = vst.msk [vmem:[#allocation5 + $0x8] sm:$0xff] %vm439_vm7, %v6505_v10  ;;  %v11169_v50 = vadd.f32 %v15189_v13, %v6160_v42  ;;  %v6162_v1 = vpop.f32.mrb[117].mxu1 }
 0x5b2   : > { %v6163_v24 = vpop.f32.mrb[118].mxu1  ;;  %v6607_v1 = vld [vmem:[#allocation6] sm:$0xe0] }
 0x5b3   : > { %v6354_v14 = vadd.f32 %v11169_v50, %v16841_v36  ;;  %v11170_v37 = vadd.f32 %v15189_v13, %v6163_v24  ;;  %v6165_v2 = vpop.f32.mrb[119].mxu1  ;;  %v6613_v24 = vld [vmem:[#allocation6 + $0x8] sm:$0x3] }
 0x5b5   : > { %v6506_v30 = vmax.f32 %v6354_v14, 0.0  ;;  %v6357_v8 = vadd.f32 %v11170_v37, %v16842_v63 }
 0x5b7   : > { %6546 = vst.msk [vmem:[#allocation5 + $0x10] sm:$0xff] %vm439_vm7, %v6506_v30  ;;  %v6507_v45 = vmax.f32 %v6357_v8, 0.0  ;;  %v16849_v30 = vld [vmem:[#allocation26_spill] sm:$0xff] }
 0x5b8   : > { %v6168_v11 = vpop.f32.mrb[120].mxu1  ;;  %v6584_v35 = vld [vmem:[#allocation5] ss:$2 sm:$0xff]  ;;  %v6586_v57 = vld [vmem:[#allocation5 + $0x1] ss:$2 sm:$0xff] }
 0x5b9   : > { %6547 = vst.msk [vmem:[#allocation5 + $0x18] sm:$0xff] %vm439_vm7, %v6507_v45  ;;  %v11171_v29 = vadd.f32 %v15189_v13, %v6168_v11  ;;  %v6170_v53 = vpop.f32.mrb[121].mxu1  ;;  %v6587_v32 = vmax.f32 %v6584_v35, %v6586_v57 }
 0x5ba   : > { %v6171_v26 = vpop.f32.mrb[122].mxu1 }
 0x5bb   : > { %v6362_v39 = vadd.f32 %v11171_v29, %v16843_v20  ;;  %v11172_v31 = vadd.f32 %v15189_v13, %v6171_v26  ;;  %v6173_v19 = vpop.f32.mrb[123].mxu1  ;;  %v16850_v26 = vld [vmem:[#allocation35_spill] sm:$0xff] }
 0x5bd   : > { %v6508_v58 = vmax.f32 %v6362_v39, 0.0  ;;  %v6365_v28 = vadd.f32 %v11172_v31, %v16844_v25 }
 0x5bf   : > { %6548 = vst.msk [vmem:[#allocation5 + $0x20] sm:$0xff] %vm439_vm7, %v6508_v58  ;;  %v6509_v6 = vmax.f32 %v6365_v28, 0.0 }
 0x5c0   : > { %v6176_v33 = vpop.f32.mrb[124].mxu1 }
 0x5c1   : > { %6549 = vst.msk [vmem:[#allocation5 + $0x28] sm:$0xff] %vm439_vm7, %v6509_v6  ;;  %v11173_v22 = vadd.f32 %v15189_v13, %v6176_v33  ;;  %v6178_v38 = vpop.f32.mrb[125].mxu1 }
 0x5c2   : > { %v6179_v47 = vpop.f32.mrb[126].mxu1 }
 0x5c3   : > { %v6370_v54 = vadd.f32 %v11173_v22, %v16845_v17  ;;  %v11174_v46 = vadd.f32 %v15189_v13, %v6179_v47  ;;  %v6181_v34 = vpop.f32.mrb[127].mxu1 }
 0x5c5   : > { %v6510_v62 = vmax.f32 %v6370_v54, 0.0  ;;  %v6373_v51 = vadd.f32 %v11174_v46, %v16846_v55  ;;  %v16851_v54 = vld [vmem:[#allocation38_spill] sm:$0xff] }
 0x5c6   : > { %v6589_v48 = vld [vmem:[#allocation5 + $0x14] ss:$2 sm:$0xff]  ;;  %v6591_v7 = vld [vmem:[#allocation5 + $0x15] ss:$2 sm:$0xff]  ;;  %v11683_v55 = vld [vmem:[%s16627_s5] sm:$0xff]  }
 0x5c7   : > { %v6592_v61 = vmax.f32 %v6589_v48, %v6591_v7  ;;  %6550 = vst.msk [vmem:[#allocation5 + $0x30] sm:$0xff] %vm439_vm7, %v6510_v62  ;;  %v6511_v9 = vmax.f32 %v6373_v51, 0.0  ;;  %v11682_v62 = vld [vmem:[%s16627_s5 + $0x40] sm:$0xff]   ;;  %v16852_v7 = vld [vmem:[#allocation40_spill] sm:$0xff] }
 0x5c8   : > { %v6184_v23 = vpop.f32.mrb[128].mxu1  ;;  %10812 = vmatprep.subr.bf16.mxu0 %v11682_v62  ;;  %v16857_v62 = vld [vmem:[#allocation41_spill] sm:$0xff] }
 0x5c9   : > { %v6593_v44 = vmax.f32 %v6587_v32, %v6592_v61  ;;  %6551 = vst.msk [vmem:[#allocation5 + $0x38] sm:$0xff] %vm439_vm7, %v6511_v9  ;;  %v11175_v52 = vadd.f32 %v15189_v13, %v6184_v23  ;;  %v6186_v56 = vpop.f32.mrb[129].mxu1  ;;  %10813 = vmatpush3.bf16.msra.mxu0 %v11683_v55  ;;  %v11684_v61 = vld [vmem:[%s16627_s5 + $0x48] sm:$0xff]  }
 0x5ca   : > { %v6187_v21 = vpop.f32.mrb[130].mxu1  ;;  %v11685_v9 = vld [vmem:[%s16627_s5 + $0x8] sm:$0xff]   ;;  %10814 = vmatprep.subr.bf16.mxu0 %v11684_v61 }
 0x5cb   : > { %v6594_v0 = vpack.c.bf16 %v6593_v44, %v6593_v44  ;;  %v6378_v41 = vadd.f32 %v11175_v52, %v16847_v60  ;;  %v11176_v16 = vadd.f32 %v15189_v13, %v6187_v21  ;;  %v6189_v5 = vpop.f32.mrb[131].mxu1  ;;  %v16858_v61 = vld [vmem:[#allocation43_spill] sm:$0xff] }
 0x5cc   : > { %v6640_v5 = vld [vmem:[#allocation6 + $0x8] sm:$0x7c] }
 0x5cd   : > { %v6596_v12 = vshrl.u32 %v6594_v0, 16  ;;  %v6599_v4 = vshll.u32 %v6594_v0, 16  ;;  %v6512_v43 = vmax.f32 %v6378_v41, 0.0  ;;  %v6381_v15 = vadd.f32 %v11176_v16, %v16848_v3  ;;  %10815 = vmatpush3.bf16.msra.mxu0 %v11685_v9 }
 0x5ce   : > { %v6617_v39 = vld [vmem:[#allocation5 + $0x28] ss:$2 sm:$0xff]  ;;  %v6619_v31 = vld [vmem:[#allocation5 + $0x29] ss:$2 sm:$0xff] }
 0x5cf   : > { %v6598_v40 = vrot.slane %v6596_v12, 2  ;;  %v6601_v10 = vrot.slane %v6599_v4, 3  ;;  %6552 = vst.msk [vmem:[#allocation5 + $0x40] sm:$0xff] %vm439_vm7, %v6512_v43  ;;  %v6513_v42 = vmax.f32 %v6381_v15, 0.0  ;;  %v6620_v6 = vmax.f32 %v6617_v39, %v6619_v31  ;;  %v16853_v4 = vld [vmem:[#allocation37_spill] sm:$0xff] }
 0x5d0   : > { %v6192_v50 = vpop.f32.mrb[132].mxu1  ;;  %v11688_v31 = vld [vmem:[%s16627_s5 + $0x58] sm:$0xff]  }
 0x5d1   : > { %v6602_v36 = vor.u32 %v6601_v10, %v6598_v40  ;;  %6553 = vst.msk [vmem:[#allocation5 + $0x48] sm:$0xff] %vm439_vm7, %v6513_v42  ;;  %v11177_v14 = vadd.f32 %v15189_v13, %v6192_v50  ;;  %v6194_v37 = vpop.f32.mrb[133].mxu1  ;;  %v16854_v10 = vld [vmem:[#allocation39_spill] sm:$0xff] }
 0x5d2   : > { %v6195_v2 = vpop.f32.mrb[134].mxu1  ;;  %v11686_v37 = vld [vmem:[%s16627_s5 + $0x50] sm:$0xff]  }
 0x5d3   : > { %v6386_v63 = vadd.f32 %v11177_v14, %v16849_v30  ;;  %v11178_v8 = vadd.f32 %v15189_v13, %v6195_v2  ;;  %v6197_v45 = vpop.f32.mrb[135].mxu1  ;;  %v6608_v11 = vsel %vm6606_vm2, %v6602_v36, %v6607_v1  ;;  %v6614_v29 = vsel %vm6612_vm3, %v6602_v36, %v6613_v24  ;;  %v11687_v2 = vld [vmem:[%s16627_s5 + $0x10] sm:$0xff]   ;;  %10816 = vmatprep.subr.bf16.mxu0 %v11686_v37  ;;  %vm15299_vm2 = vmand %vm6664_vm10, %vm6665_vm11 }
 0x5d4   : > { %6609 = vst [vmem:[#allocation6] sm:$0xe0] %v6608_v11  ;;  %6615 = vst [vmem:[#allocation6 + $0x8] sm:$0x3] %v6614_v29  ;;  %10817 = vmatpush3.bf16.msra.mxu0 %v11687_v2  ;;  %v16864_v2 = vld [vmem:[#allocation48_spill] sm:$0xff] }
 0x5d5   : > { %v6514_v53 = vmax.f32 %v6386_v63, 0.0  ;;  %v6389_v20 = vadd.f32 %v11178_v8, %v16850_v26  ;;  %v16855_v63 = vld [vmem:[#allocation42_spill] sm:$0xff]  ;;  %10818 = vmatprep.subr.bf16.mxu0 %v11688_v31  ;;  %vm15305_vm3 = vmand %vm6670_vm15, %vm6671_vm0  ;;  %vm6699_vm10 = vsmask.f32 7954  ;;  %vm6765_vm0 = vsmask.f32 2304 }
 0x5d6   : > { %vm6700_vm15 = vmand %vm6698_vm4, %vm6699_vm10  ;;  %vm7216_vm4 = vcmask 1044480   ;;  %vm6759_vm10 = vsmask.f32 7962 }
 0x5d7   : > { %6554 = vst.msk [vmem:[#allocation5 + $0x50] sm:$0xff] %vm439_vm7, %v6514_v53  ;;  %v6515_v19 = vmax.f32 %v6389_v20, 0.0  ;;  %v16856_v20 = vld [vmem:[#allocation44_spill] sm:$0xff] }
 0x5d8   : > { %v6622_v58 = vld [vmem:[#allocation5 + $0x3c] ss:$2 sm:$0xff]  ;;  %v6624_v25 = vld [vmem:[#allocation5 + $0x3d] ss:$2 sm:$0xff]  ;;  %v6200_v28 = vpop.f32.mrb[136].mxu1 }
 0x5d9   : > { %v6625_v33 = vmax.f32 %v6622_v58, %v6624_v25  ;;  %6555 = vst.msk [vmem:[#allocation5 + $0x58] sm:$0xff] %vm439_vm7, %v6515_v19  ;;  %v11179_v22 = vadd.f32 %v15189_v13, %v6200_v28  ;;  %v6202_v38 = vpop.f32.mrb[137].mxu1  ;;  %v11689_v19 = vld [vmem:[%s16627_s5 + $0x18] sm:$0xff]  }
 0x5da   : > { %v6203_v47 = vpop.f32.mrb[138].mxu1  ;;  %10819 = vmatpush3.bf16.msra.mxu0 %v11689_v19 }
 0x5db   : > { %v6626_v17 = vmax.f32 %v6620_v6, %v6625_v33  ;;  %v6394_v46 = vadd.f32 %v11179_v22, %v16851_v54  ;;  %v11180_v34 = vadd.f32 %v15189_v13, %v6203_v47  ;;  %v6205_v35 = vpop.f32.mrb[139].mxu1  ;;  %v15238_v57 = vld [vmem:[#allocation6] sm:$0xff] }
 0x5dc   : > { %6828 = vst.msk [vmem:[#allocation7] sm:$0xff] %vm439_vm7, %v15238_v57  ;;  %v11690_v54 = vld [vmem:[%s16627_s5 + $0x60] sm:$0xff]  }
 0x5dd   : > { %v6627_v51 = vpack.c.bf16 %v6626_v17, %v6626_v17  ;;  %v6516_v48 = vmax.f32 %v6394_v46, 0.0  ;;  %v6397_v32 = vadd.f32 %v11180_v34, %v16852_v7  ;;  %v11691_v46 = vld [vmem:[%s16627_s5 + $0x20] sm:$0xff]   ;;  %10820 = vmatprep.subr.bf16.mxu0 %v11690_v54 }
 0x5de   : > { %10821 = vmatpush3.bf16.msra.mxu0 %v11691_v46  ;;  %v6903_v54 = vld [vmem:[#allocation6] sm:$0xfe] }
 0x5df   : > { %v6629_v23 = vshrl.u32 %v6627_v51, 16  ;;  %v6632_v44 = vshll.u32 %v6627_v51, 16  ;;  %6556 = vst.msk [vmem:[#allocation5 + $0x60] sm:$0xff] %vm439_vm7, %v6516_v48  ;;  %v6517_v52 = vmax.f32 %v6397_v32, 0.0 }
 0x5e0   : > { %v6208_v56 = vpop.f32.mrb[140].mxu1  ;;  %v6644_v29 = vld [vmem:[#allocation5 + $0x50] ss:$2 sm:$0xff]  ;;  %v6646_v53 = vld [vmem:[#allocation5 + $0x51] ss:$2 sm:$0xff] }
 0x5e1   : > { %v6631_v21 = vrot.slane %v6629_v23, 5  ;;  %v6634_v0 = vrot.slane %v6632_v44, 6  ;;  %6557 = vst.msk [vmem:[#allocation5 + $0x68] sm:$0xff] %vm439_vm7, %v6517_v52  ;;  %v11181_v60 = vadd.f32 %v15189_v13, %v6208_v56  ;;  %v6210_v41 = vpop.f32.mrb[141].mxu1  ;;  %v6647_v28 = vmax.f32 %v6644_v29, %v6646_v53  ;;  %v11692_v23 = vld [vmem:[%s16627_s5 + $0x68] sm:$0xff]  }
 0x5e2   : > { %v6211_v16 = vpop.f32.mrb[142].mxu1  ;;  %v11693_v44 = vld [vmem:[%s16627_s5 + $0x28] sm:$0xff]   ;;  %10822 = vmatprep.subr.bf16.mxu0 %v11692_v23  ;;  %v6936_v29 = vld [vmem:[#allocation6] sm:$0xe0] }
 0x5e3   : > { %v6635_v12 = vor.u32 %v6634_v0, %v6631_v21  ;;  %v6402_v43 = vadd.f32 %v11181_v60, %v16853_v4  ;;  %v11182_v3 = vadd.f32 %v15189_v13, %v6211_v16  ;;  %v6213_v15 = vpop.f32.mrb[143].mxu1  ;;  %v6667_v56 = vld [vmem:[#allocation6 + $0x8] sm:$0x80]  ;;  %10823 = vmatpush3.bf16.msra.mxu0 %v11693_v44  ;;  %v6915_v44 = vrot.slane %v6903_v54, 1 }
 0x5e5   : > { %v6518_v40 = vmax.f32 %v6402_v43, 0.0  ;;  %v6405_v42 = vadd.f32 %v11182_v3, %v16854_v10  ;;  %v6641_v50 = vsel %vm6639_vm8, %v6635_v12, %v6640_v5  ;;  %v6673_v5 = vld [vmem:[#allocation6 + $0x10] sm:$0xf]  ;;  %v11695_v10 = vld [vmem:[%s16627_s5 + $0x30] sm:$0xff]   ;;  %vm6705_vm8 = vsmask.f32 256 }
 0x5e6   : > { %6642 = vst [vmem:[#allocation6 + $0x8] sm:$0x7c] %v6641_v50  ;;  %vm15357_vm11 = vmand %vm6704_vm6, %vm6705_vm8  ;;  %vm6758_vm8 = vcmask 523270  }
 0x5e7   : > { %6558 = vst.msk [vmem:[#allocation5 + $0x70] sm:$0xff] %vm439_vm7, %v6518_v40  ;;  %v6519_v1 = vmax.f32 %v6405_v42, 0.0  ;;  %v11694_v40 = vld [vmem:[%s16627_s5 + $0x70] sm:$0xff]   ;;  %v16863_v42 = vld [vmem:[#allocation46_spill] sm:$0xff] }
 0x5e8   : > { %v6216_v24 = vpop.f32.mrb[144].mxu1  ;;  %10824 = vmatprep.subr.bf16.mxu0 %v11694_v40 }
 0x5e9   : > { %6559 = vst.msk [vmem:[#allocation5 + $0x78] sm:$0xff] %vm439_vm7, %v6519_v1  ;;  %v11183_v36 = vadd.f32 %v15189_v13, %v6216_v24  ;;  %v6218_v14 = vpop.f32.mrb[145].mxu1  ;;  %10825 = vmatpush3.bf16.msra.mxu0 %v11695_v10 }
 0x5ea   : > { %v6219_v30 = vpop.f32.mrb[146].mxu1  ;;  %v6842_v14 = vshll.u32 %v15238_v57, 16 }
 0x5eb   : > { %v6410_v8 = vadd.f32 %v11183_v36, %v16855_v63  ;;  %v11184_v45 = vadd.f32 %v15189_v13, %v6219_v30  ;;  %v6221_v11 = vpop.f32.mrb[147].mxu1  ;;  %v11696_v63 = vld [vmem:[%s16627_s5 + $0x78] sm:$0xff]  }
 0x5ec   : > { %10826 = vmatprep.subr.bf16.mxu0 %v11696_v63  ;;  %v6844_v31 = vrot.slane %v6842_v14, 1 }
 0x5ed   : > { %v6520_v26 = vmax.f32 %v6410_v8, 0.0  ;;  %v6413_v39 = vadd.f32 %v11184_v45, %v16856_v20  ;;  %v11697_v8 = vld [vmem:[%s16627_s5 + $0x38] sm:$0xff]  }
 0x5ee   : > { %v6649_v58 = vld [vmem:[#allocation5 + $0x64] ss:$2 sm:$0xff]  ;;  %v6651_v25 = vld [vmem:[#allocation5 + $0x65] ss:$2 sm:$0xff]  ;;  %10827 = vmatpush3.bf16.msra.mxu0 %v11697_v8 }
 0x5ef   : > { %v6652_v6 = vmax.f32 %v6649_v58, %v6651_v25  ;;  %6560 = vst.msk [vmem:[#allocation5 + $0x80] sm:$0xff] %vm439_vm7, %v6520_v26  ;;  %v6521_v33 = vmax.f32 %v6413_v39, 0.0 }
 0x5f0   : > { %v6224_v22 = vpop.f32.mrb[148].mxu1 }
 0x5f1   : > { %v6653_v38 = vmax.f32 %v6647_v28, %v6652_v6  ;;  %6561 = vst.msk [vmem:[#allocation5 + $0x88] sm:$0xff] %vm439_vm7, %v6521_v33  ;;  %v11185_v47 = vadd.f32 %v15189_v13, %v6224_v22  ;;  %v6226_v17 = vpop.f32.mrb[149].mxu1  ;;  %v6948_v33 = vrot.slane %v6936_v29, 5 }
 0x5f2   : > { %v6227_v34 = vpop.f32.mrb[150].mxu1 }
 0x5f3   : > { %v6654_v35 = vpack.c.bf16 %v6653_v38, %v6653_v38  ;;  %v6418_v55 = vadd.f32 %v11185_v47, %v16857_v62  ;;  %v11186_v51 = vadd.f32 %v15189_v13, %v6227_v34  ;;  %v6229_v48 = vpop.f32.mrb[151].mxu1  ;;  %v6840_v47 = vshrl.u32 %v15238_v57, 16  ;;  %v16865_v34 = vld [vmem:[#allocation45_spill] sm:$0xff] }
 0x5f5   : > { %v6656_v7 = vshll.u32 %v6654_v35, 16  ;;  %v6522_v32 = vmax.f32 %v6418_v55, 0.0  ;;  %v6421_v9 = vadd.f32 %v11186_v51, %v16858_v61  ;;  %v6659_v0 = vshrl.u32 %v6654_v35, 16  ;;  %v6979_v51 = vld [vmem:[#allocation6] sm:$0xe0] }
 0x5f6   : > { %v6677_v45 = vld [vmem:[#allocation5 + $0x78] ss:$2 sm:$0xff]  ;;  %v6679_v11 = vld [vmem:[#allocation5 + $0x79] ss:$2 sm:$0xff] }
 0x5f7   : > { %v6658_v21 = vrot.slane %v6656_v7, 1  ;;  %6562 = vst.msk [vmem:[#allocation5 + $0x90] sm:$0xff] %vm439_vm7, %v6522_v32  ;;  %v6523_v60 = vmax.f32 %v6421_v9, 0.0  ;;  %v6680_v19 = vmax.f32 %v6677_v45, %v6679_v11  ;;  %v6845_v7 = vor.u32 %v6844_v31, %v6840_v47  ;;  %v16866_v9 = vld [vmem:[#allocation47_spill] sm:$0xff] }
 0x5f8   : > { %v6232_v41 = vpop.f32.mrb[152].mxu1 }
 0x5f9   : > { %v6661_v12 = vor.u32 %v6659_v0, %v6658_v21  ;;  %6563 = vst.msk [vmem:[#allocation5 + $0x98] sm:$0xff] %vm439_vm7, %v6523_v60  ;;  %v11187_v4 = vadd.f32 %v15189_v13, %v6232_v41  ;;  %v6234_v43 = vpop.f32.mrb[153].mxu1  ;;  %v6668_v3 = vsel %vm15299_vm2, %v6658_v21, %v6667_v56  ;;  %v6986_v21 = vshrl.u32 %v6979_v51, 16 }
 0x5fa   : > { %v6235_v15 = vpop.f32.mrb[154].mxu1  ;;  %6669 = vst [vmem:[#allocation6 + $0x8] sm:$0x80] %v6668_v3  ;;  %v6989_v0 = vshll.u32 %v6979_v51, 16  ;;  %v6707_v43 = vld [vmem:[#allocation6 + $0x18] sm:$0x1] }
 0x5fb   : > { %v6426_v50 = vadd.f32 %v11187_v4, %v16863_v42  ;;  %v11188_v1 = vadd.f32 %v15189_v13, %v6235_v15  ;;  %v6237_v24 = vpop.f32.mrb[155].mxu1  ;;  %v6674_v36 = vsel %vm15305_vm3, %v6661_v12, %v6673_v5  ;;  %vm6731_vm2 = vcmask 521217  }
 0x5fc   : > { %6675 = vst [vmem:[#allocation6 + $0x10] sm:$0xf] %v6674_v36  ;;  %v6988_v24 = vrot.slane %v6986_v21, 5  ;;  %v6991_v36 = vrot.slane %v6989_v0, 6  ;;  %vm6732_vm3 = vsmask.f32 5382 }
 0x5fd   : > { %v6524_v37 = vmax.f32 %v6426_v50, 0.0  ;;  %v6429_v30 = vadd.f32 %v11188_v1, %v16864_v2  ;;  %v6701_v50 = vld [vmem:[#allocation6 + $0x10] sm:$0xf0]  ;;  %vm6733_vm6 = vmand %vm6731_vm2, %vm6732_vm3  ;;  %vm6791_vm3 = vcmask 523267  }
 0x5ff   : > { %6564 = vst.msk [vmem:[#allocation5 + $0xa0] sm:$0xff] %vm439_vm7, %v6524_v37  ;;  %v6525_v53 = vmax.f32 %v6429_v30, 0.0  ;;  %v16869_v30 = vld [vmem:[#allocation50_spill] sm:$0xff] }
 0x600   : > { %v6682_v26 = vld [vmem:[#allocation5 + $0x8c] ss:$2 sm:$0xff]  ;;  %v6684_v20 = vld [vmem:[#allocation5 + $0x8d] ss:$2 sm:$0xff]  ;;  %v6240_v39 = vpop.f32.mrb[156].mxu1 }
 0x601   : > { %v6685_v58 = vmax.f32 %v6682_v26, %v6684_v20  ;;  %6565 = vst.msk [vmem:[#allocation5 + $0xa8] sm:$0xff] %vm439_vm7, %v6525_v53  ;;  %v11189_v25 = vadd.f32 %v15189_v13, %v6240_v39  ;;  %v6242_v28 = vpop.f32.mrb[157].mxu1  ;;  %v15334_v6 = vld [vmem:[#allocation6 + $0x8] sm:$0xff]  ;;  %v16870_v20 = vld [vmem:[#allocation52_spill] sm:$0xff] }
 0x602   : > { %v6243_v22 = vpop.f32.mrb[158].mxu1  ;;  %v6949_v38 = vrot.slane %v15334_v6, 5  ;;  %v6847_v17 = vshll.u32 %v15334_v6, 16  ;;  %6829 = vst.msk [vmem:[#allocation7 + $0x28] sm:$0xff] %vm439_vm7, %v15334_v6  ;;  %v6916_v56 = vrot.slane %v15334_v6, 1  ;;  %v6980_v5 = vld [vmem:[#allocation6 + $0x8] sm:$0xff] }
 0x603   : > { %v6686_v46 = vmax.f32 %v6680_v19, %v6685_v58  ;;  %v6434_v35 = vadd.f32 %v11189_v25, %v16865_v34  ;;  %v11190_v62 = vadd.f32 %v15189_v13, %v6243_v22  ;;  %v6245_v55 = vpop.f32.mrb[159].mxu1  ;;  %v6994_v14 = vshrl.u32 %v6980_v5, 16  ;;  %v7091_v54 = vld [vmem:[#allocation6 + $0x8] sm:$0xfc] }
 0x604   : > { %v6950_v48 = vsel %vm1841_vm1, %v6948_v33, %v6949_v38  ;;  %v15346_v57 = vrot.slane %v6847_v17, 1  ;;  %v6917_v3 = vsel %vm2971_vm12, %v6915_v44, %v6916_v56  ;;  %v6997_v37 = vshll.u32 %v6980_v5, 16 }
 0x605   : > { %v6687_v32 = vpack.c.bf16 %v6686_v46, %v6686_v46  ;;  %v6526_v61 = vmax.f32 %v6434_v35, 0.0  ;;  %v6437_v23 = vadd.f32 %v11190_v62, %v16866_v9  ;;  %6959 = vrot.lane.b32.xlu1 %v6950_v48, %s12201_s25  ;;  %6931 = vst.msk [vmem:[#allocation7 + $0x8] sm:$0xff] %vm439_vm7, %v6917_v3  ;;  %v6996_v29 = vrot.slane %v6994_v14, 5  ;;  %v15381_v46 = vld [vmem:[#allocation6 + $0x8] sm:$0xf8]  ;;  %v16871_v62 = vld [vmem:[#allocation49_spill] sm:$0xff] }
 0x606   : > { %v6850_v52 = vsel %vm2486_vm13, %v6845_v7, %v15346_v57  ;;  %v6999_v53 = vrot.slane %v6997_v37, 6  ;;  %v6992_v19 = vor.u32 %v6991_v36, %v6988_v24  ;;  %v6851_v7 = vshrl.u32 %v15334_v6, 16  ;;  %v16872_v9 = vld [vmem:[#allocation51_spill] sm:$0xff] }
 0x607   : > { %v6689_v60 = vshrl.u32 %v6687_v32, 16  ;;  %v6692_v41 = vshll.u32 %v6687_v32, 16  ;;  %6566 = vst.msk [vmem:[#allocation5 + $0xb0] sm:$0xff] %vm439_vm7, %v6526_v61  ;;  %v6527_v16 = vmax.f32 %v6437_v23, 0.0  ;;  %6883 = vrot.lane.b32.xlu0 %v6850_v52, %s12201_s25  ;;  %v7061_v32 = vrot.slane %v15334_v6, 6 }
 0x608   : > { %v6248_v12 = vpop.f32.mrb[160].mxu1  ;;  %v15373_v58 = vor.u32 %v6999_v53, %v6996_v29  ;;  %v6711_v34 = vld [vmem:[#allocation5 + $0xa0] ss:$2 sm:$0xff]  ;;  %v6713_v35 = vld [vmem:[#allocation5 + $0xa1] ss:$2 sm:$0xff]  ;;  %v7103_v52 = vrot.slane %v7091_v54, 2  ;;  %v6853_v5 = vor.u32 %v6851_v7, %v15346_v57 }
 0x609   : > { %v6691_v15 = vrot.slane %v6689_v60, 3  ;;  %v6694_v40 = vrot.slane %v6692_v41, 4  ;;  %6567 = vst.msk [vmem:[#allocation5 + $0xb8] sm:$0xff] %vm439_vm7, %v6527_v16  ;;  %v11191_v10 = vadd.f32 %v15189_v13, %v6248_v12  ;;  %v6250_v42 = vpop.f32.mrb[161].mxu1  ;;  %v7217_v21 = vrot.slane %v15381_v46, 3 }
 0x60a   : > { %v6251_v1 = vpop.f32.mrb[162].mxu1  ;;  %v7001_v33 = vsel %vm6765_vm0, %v6992_v19, %v15373_v58  ;;  %v6714_v0 = vmax.f32 %v6711_v34, %v6713_v35 }
 0x60b   : > { %v6695_v2 = vor.u32 %v6694_v40, %v6691_v15  ;;  %v6442_v63 = vadd.f32 %v11191_v10, %v16869_v30  ;;  %v11192_v8 = vadd.f32 %v15189_v13, %v6251_v1  ;;  %v6253_v45 = vpop.f32.mrb[163].mxu1  ;;  %v6708_v11 = vsel %vm15357_vm11, %v6691_v15, %v6707_v43  ;;  %7043 = vst.msk [vmem:[#allocation7 + $0x10] sm:$0xff] %vm439_vm7, %v7001_v33 }
 0x60c   : > { %6709 = vst [vmem:[#allocation6 + $0x18] sm:$0x1] %v6708_v11  ;;  %v16873_v11 = vld [vmem:[#allocation54_spill] sm:$0xff]  ;;  %vm6764_vm11 = vcmask 518144  }
 0x60d   : > { %v6528_v26 = vmax.f32 %v6442_v63, 0.0  ;;  %v6445_v39 = vadd.f32 %v11192_v8, %v16870_v20  ;;  %v6702_v31 = vsel %vm6700_vm15, %v6695_v2, %v6701_v50  ;;  %vm6760_vm15 = vmand %vm6758_vm8, %vm6759_vm10  ;;  %vm6817_vm10 = vcmask 520192  }
 0x60e   : > { %6703 = vst [vmem:[#allocation6 + $0x10] sm:$0xf0] %v6702_v31  ;;  %vm6766_vm2 = vmand %vm6764_vm11, %vm6765_vm0  ;;  %vm6818_vm11 = vsmask.f32 4354 }
 0x60f   : > { %6568 = vst.msk [vmem:[#allocation5 + $0xc0] sm:$0xff] %vm439_vm7, %v6528_v26  ;;  %v6529_v25 = vmax.f32 %v6445_v39, 0.0 }
 0x610   : > { %v6256_v28 = vpop.f32.mrb[164].mxu1 }
 0x611   : > { %6569 = vst.msk [vmem:[#allocation5 + $0xc8] sm:$0xff] %vm439_vm7, %v6529_v25  ;;  %v11193_v22 = vadd.f32 %v15189_v13, %v6256_v28  ;;  %v6258_v47 = vpop.f32.mrb[165].mxu1 }
 0x612   : > { %v6259_v17 = vpop.f32.mrb[166].mxu1 }
 0x613   : > { %v6450_v55 = vadd.f32 %v11193_v22, %v16871_v62  ;;  %v11194_v51 = vadd.f32 %v15189_v13, %v6259_v17  ;;  %v6261_v48 = vpop.f32.mrb[167].mxu1  ;;  %v16874_v22 = vld [vmem:[#allocation56_spill] sm:$0xff] }
 0x615   : > { %v6530_v61 = vmax.f32 %v6450_v55, 0.0  ;;  %v6453_v23 = vadd.f32 %v11194_v51, %v16872_v9  ;;  %v15388_v44 = vld [vmem:[#allocation6 + $0x10] sm:$0xff]  ;;  %v6734_v55 = vld [vmem:[#allocation6 + $0x18] sm:$0x3e] }
 0x616   : > { %v6716_v60 = vld [vmem:[#allocation5 + $0xb4] ss:$2 sm:$0xff]  ;;  %v6718_v41 = vld [vmem:[#allocation5 + $0xb5] ss:$2 sm:$0xff]  ;;  %v6951_v16 = vrot.slane %v15388_v44, 5  ;;  %v15394_v12 = vshll.u32 %v15388_v44, 16 }
 0x617   : > { %6830 = vst.msk [vmem:[#allocation7 + $0x50] sm:$0xff] %vm439_vm7, %v15388_v44  ;;  %v6719_v4 = vmax.f32 %v6716_v60, %v6718_v41  ;;  %6570 = vst.msk [vmem:[#allocation5 + $0xd0] sm:$0xff] %vm439_vm7, %v6530_v61  ;;  %v6531_v43 = vmax.f32 %v6453_v23, 0.0  ;;  %v15400_v3 = vshrl.u32 %v15388_v44, 16  ;;  %v7063_v15 = vrot.slane %v15388_v44, 6  ;;  %v15422_v37 = vld [vmem:[#allocation6 + $0x10] sm:$0xff] }
 0x618   : > { %v6264_v40 = vpop.f32.mrb[168].mxu1  ;;  %v6952_v57 = vsel %vm1841_vm1, %v6949_v38, %v6951_v16  ;;  %v6857_v10 = vrot.slane %v15394_v12, 1  ;;  %v7145_v42 = vrot.slane %v15394_v12, 3  ;;  %v6918_v50 = vrot.slane %v15388_v44, 1  ;;  %v16875_v23 = vld [vmem:[#allocation53_spill] sm:$0xff] }
 0x619   : > { %v6720_v1 = vmax.f32 %v6714_v0, %v6719_v4  ;;  %6571 = vst.msk [vmem:[#allocation5 + $0xd8] sm:$0xff] %vm439_vm7, %v6531_v43  ;;  %v11195_v24 = vadd.f32 %v15189_v13, %v6264_v40  ;;  %v6266_v36 = vpop.f32.mrb[169].mxu1  ;;  %6961 = vrot.lane.b32.xlu1 %v6952_v57, %s12201_s25  ;;  %v7142_v14 = vrot.slane %v15400_v3, 2  ;;  %v15420_v38 = vsel %vm4781_vm5, %v7061_v32, %v7063_v15 }
 0x61a   : > { %v6267_v2 = vpop.f32.mrb[170].mxu1  ;;  %v6858_v30 = vsel %vm2486_vm13, %v6853_v5, %v6857_v10  ;;  %v6919_v63 = vsel %vm2971_vm12, %v6916_v56, %v6918_v50  ;;  %v7104_v8 = vrot.slane %v15388_v44, 2  ;;  %v7005_v56 = vrot.slane %v15400_v3, 5  ;;  %v16876_v5 = vld [vmem:[#allocation55_spill] sm:$0xff] }
 0x61b   : > { %v6721_v45 = vpack.c.bf16 %v6720_v1, %v6720_v1  ;;  %v6458_v29 = vadd.f32 %v11195_v24, %v16873_v11  ;;  %v11196_v53 = vadd.f32 %v15189_v13, %v6267_v2  ;;  %v6269_v26 = vpop.f32.mrb[171].mxu1  ;;  %6885 = vrot.lane.b32.xlu0 %v6858_v30, %s12201_s25  ;;  %v15436_v20 = vor.u32 %v7145_v42, %v7142_v14 }
 0x61c   : > { %6932 = vst.msk [vmem:[#allocation7 + $0x30] sm:$0xff] %vm439_vm7, %v6919_v63  ;;  %v7105_v39 = vsel %vm3817_vm14, %v7103_v52, %v7104_v8  ;;  %v7008_v31 = vrot.slane %v15394_v12, 6  ;;  %v7218_v19 = vrot.slane %v15422_v37, 3 }
 0x61d   : > { %v6723_v25 = vshrl.u32 %v6721_v45, 16  ;;  %v6726_v28 = vshll.u32 %v6721_v45, 16  ;;  %v6532_v33 = vmax.f32 %v6458_v29, 0.0  ;;  %v6461_v47 = vadd.f32 %v11196_v53, %v16874_v22  ;;  %7119 = vst.msk [vmem:[#allocation7 + $0x18] sm:$0xff] %vm439_vm7, %v7105_v39  ;;  %v16877_v45 = vld [vmem:[#allocation58_spill] sm:$0xff] }
 0x61e   : > { %v15447_v17 = vor.u32 %v7008_v31, %v7005_v56  ;;  %v7219_v54 = vsel %vm7216_vm4, %v7217_v21, %v7218_v19  ;;  %v6740_v43 = vld [vmem:[#allocation5 + $0xc9] ss:$2 sm:$0xff] }
 0x61f   : > { %v6725_v46 = vrot.slane %v6723_v25, 6  ;;  %v6728_v34 = vrot.slane %v6726_v28, 7  ;;  %6572 = vst.msk [vmem:[#allocation5 + $0xe0] sm:$0xff] %vm439_vm7, %v6532_v33  ;;  %v6533_v35 = vmax.f32 %v6461_v47, 0.0  ;;  %7233 = vst.msk [vmem:[#allocation7 + $0x20] sm:$0xff] %vm439_vm7, %v7219_v54  ;;  %v16878_v56 = vld [vmem:[#allocation60_spill] sm:$0xff] }
 0x620   : > { %v6272_v62 = vpop.f32.mrb[172].mxu1  ;;  %v7010_v51 = vsel %vm6765_vm0, %v15373_v58, %v15447_v17  ;;  %v6738_v58 = vld [vmem:[#allocation5 + $0xc8] ss:$2 sm:$0xff] }
 0x621   : > { %v6729_v48 = vor.u32 %v6728_v34, %v6725_v46  ;;  %6573 = vst.msk [vmem:[#allocation5 + $0xe8] sm:$0xff] %vm439_vm7, %v6533_v35  ;;  %v11197_v7 = vadd.f32 %v15189_v13, %v6272_v62  ;;  %v6274_v61 = vpop.f32.mrb[173].mxu1  ;;  %7044 = vst.msk [vmem:[#allocation7 + $0x38] sm:$0xff] %vm439_vm7, %v7010_v51  ;;  %v6741_v24 = vmax.f32 %v6738_v58, %v6740_v43  ;;  %v6761_v62 = vld [vmem:[#allocation6 + $0x18] sm:$0xc0] }
 0x622   : > { %v6275_v9 = vpop.f32.mrb[174].mxu1 }
 0x623   : > { %v6466_v52 = vadd.f32 %v11197_v7, %v16875_v23  ;;  %v11198_v21 = vadd.f32 %v15189_v13, %v6275_v9  ;;  %v6277_v0 = vpop.f32.mrb[175].mxu1  ;;  %v6735_v60 = vsel %vm6733_vm6, %v6729_v48, %v6734_v55  ;;  %v6767_v55 = vld [vmem:[#allocation6 + $0x20] sm:$0x7]  ;;  %vm6792_vm6 = vsmask.f32 7438 }
 0x624   : > { %6736 = vst [vmem:[#allocation6 + $0x18] sm:$0x3e] %v6735_v60  ;;  %v16879_v48 = vld [vmem:[#allocation57_spill] sm:$0xff]  ;;  %vm6793_vm8 = vmand %vm6791_vm3, %vm6792_vm6 }
 0x625   : > { %v6534_v41 = vmax.f32 %v6466_v52, 0.0  ;;  %v6469_v4 = vadd.f32 %v11198_v21, %v16876_v5  ;;  %v16880_v52 = vld [vmem:[#allocation59_spill] sm:$0xff] }
 0x627   : > { %6574 = vst.msk [vmem:[#allocation5 + $0xf0] sm:$0xff] %vm439_vm7, %v6534_v41  ;;  %v6535_v40 = vmax.f32 %v6469_v4, 0.0 }
 0x628   : > { %v6743_v57 = vld [vmem:[#allocation5 + $0xdc] ss:$2 sm:$0xff]  ;;  %v6745_v42 = vld [vmem:[#allocation5 + $0xdd] ss:$2 sm:$0xff]  ;;  %v6280_v1 = vpop.f32.mrb[176].mxu1 }
 0x629   : > { %v6746_v36 = vmax.f32 %v6743_v57, %v6745_v42  ;;  %6575 = vst.msk [vmem:[#allocation5 + $0xf8] sm:$0xff] %vm439_vm7, %v6535_v40  ;;  %v11199_v14 = vadd.f32 %v15189_v13, %v6280_v1  ;;  %v6282_v2 = vpop.f32.mrb[177].mxu1 }
 0x62a   : > { %v6283_v30 = vpop.f32.mrb[178].mxu1 }
 0x62b   : > { %v6747_v63 = vmax.f32 %v6741_v24, %v6746_v36  ;;  %v6474_v11 = vadd.f32 %v11199_v14, %v16877_v45  ;;  %v11200_v29 = vadd.f32 %v15189_v13, %v6283_v30  ;;  %v6285_v53 = vpop.f32.mrb[179].mxu1 }
 0x62d   : > { %v6748_v26 = vpack.c.bf16 %v6747_v63, %v6747_v63  ;;  %v6536_v39 = vmax.f32 %v6474_v11, 0.0  ;;  %v6477_v31 = vadd.f32 %v11200_v29, %v16878_v56 }
 0x62f   : > { %v6750_v25 = vshrl.u32 %v6748_v26, 16  ;;  %v6753_v28 = vshll.u32 %v6748_v26, 16  ;;  %6576 = vst.msk [vmem:[#allocation5 + $0x100] sm:$0xff] %vm439_vm7, %v6536_v39  ;;  %v6537_v33 = vmax.f32 %v6477_v31, 0.0  ;;  %v11698_v26 = vld [vmem:[%s16627_s5 + $0xc0] sm:$0xff]  }
 0x630   : > { %v6288_v22 = vpop.f32.mrb[180].mxu1  ;;  %v6771_v1 = vld [vmem:[#allocation5 + $0xf0] ss:$2 sm:$0xff]  ;;  %v6773_v24 = vld [vmem:[#allocation5 + $0xf1] ss:$2 sm:$0xff]  ;;  %10858 = vmatprep.subr.bf16.mxu0 %v11698_v26 }
 0x631   : > { %v6752_v47 = vrot.slane %v6750_v25, 1  ;;  %v6755_v54 = vrot.slane %v6753_v28, 2  ;;  %6577 = vst.msk [vmem:[#allocation5 + $0x108] sm:$0xff] %vm439_vm7, %v6537_v33  ;;  %v11201_v46 = vadd.f32 %v15189_v13, %v6288_v22  ;;  %v6290_v34 = vpop.f32.mrb[181].mxu1  ;;  %v6774_v29 = vmax.f32 %v6771_v1, %v6773_v24 }
 0x632   : > { %v6291_v35 = vpop.f32.mrb[182].mxu1 }
 0x633   : > { %v6756_v51 = vor.u32 %v6755_v54, %v6752_v47  ;;  %v6482_v7 = vadd.f32 %v11201_v46, %v16879_v48  ;;  %v11202_v61 = vadd.f32 %v15189_v13, %v6291_v35  ;;  %v6293_v9 = vpop.f32.mrb[183].mxu1 }
 0x635   : > { %v6538_v23 = vmax.f32 %v6482_v7, 0.0  ;;  %v6485_v21 = vadd.f32 %v11202_v61, %v16880_v52  ;;  %v6762_v0 = vsel %vm6760_vm15, %v6756_v51, %v6761_v62  ;;  %v6768_v60 = vsel %vm6766_vm2, %v6756_v51, %v6767_v55  ;;  %vm6819_vm15 = vmand %vm6817_vm10, %vm6818_vm11 }
 0x636   : > { %6763 = vst [vmem:[#allocation6 + $0x18] sm:$0xc0] %v6762_v0  ;;  %6769 = vst [vmem:[#allocation6 + $0x20] sm:$0x7] %v6768_v60  ;;  %vm7130_vm2 = vsmask.f32 5376 }
 0x637   : > { %6578 = vst.msk [vmem:[#allocation5 + $0x110] sm:$0xff] %vm439_vm7, %v6538_v23  ;;  %v6539_v41 = vmax.f32 %v6485_v21, 0.0  ;;  %v6794_v21 = vld [vmem:[#allocation6 + $0x20] sm:$0xf8] }
 0x638   : > { %v6296_v5 = vpop.f32.mrb[184].mxu1 }
 0x639   : > { %6579 = vst.msk [vmem:[#allocation5 + $0x118] sm:$0xff] %vm439_vm7, %v6539_v41  ;;  %v11203_v4 = vadd.f32 %v15189_v13, %v6296_v5  ;;  %v6298_v58 = vpop.f32.mrb[185].mxu1 }
 0x63a   : > { %v6299_v43 = vpop.f32.mrb[186].mxu1 }
 0x63b   : > { %v11204_v40 = vadd.f32 %v15189_v13, %v6299_v43  ;;  %v6490_v57 = vadd.f32 %v11203_v4, %v15218_v59  ;;  %v6301_v42 = vpop.f32.mrb[187].mxu1 }
 0x63d   : > { %v6540_v36 = vmax.f32 %v6490_v57, 0.0  ;;  %v6493_v14 = vadd.f32 %v11204_v40, %v15224_v18  ;;  %v15484_v2 = vld [vmem:[#allocation6 + $0x18] sm:$0xff]  ;;  %v6861_v18 = vor.u32 %v15400_v3, %v6857_v10 }
 0x63e   : > { %v6776_v30 = vld [vmem:[#allocation5 + $0x104] ss:$2 sm:$0xff]  ;;  %v6778_v63 = vld [vmem:[#allocation5 + $0x105] ss:$2 sm:$0xff]  ;;  %v6953_v45 = vrot.slane %v15484_v2, 5  ;;  %v15488_v11 = vshll.u32 %v15484_v2, 16 }
 0x63f   : > { %6831 = vst.msk [vmem:[#allocation7 + $0x78] sm:$0xff] %vm439_vm7, %v15484_v2  ;;  %v6779_v59 = vmax.f32 %v6776_v30, %v6778_v63  ;;  %6580 = vst.msk [vmem:[#allocation5 + $0x120] sm:$0xff] %vm439_vm7, %v6540_v36  ;;  %v6541_v53 = vmax.f32 %v6493_v14, 0.0  ;;  %v15506_v25 = vshrl.u32 %v15484_v2, 16  ;;  %v6920_v12 = vrot.slane %v15484_v2, 1 }
 0x640   : > { %v6304_v39 = vpop.f32.mrb[188].mxu1  ;;  %v6954_v56 = vsel %vm1841_vm1, %v6951_v16, %v6953_v45  ;;  %v6865_v31 = vrot.slane %v15488_v11, 1  ;;  %v7106_v47 = vrot.slane %v15484_v2, 2  ;;  %v7220_v51 = vrot.slane %v15484_v2, 3 }
 0x641   : > { %v6780_v28 = vmax.f32 %v6774_v29, %v6779_v59  ;;  %6581 = vst.msk [vmem:[#allocation5 + $0x128] sm:$0xff] %vm439_vm7, %v6541_v53  ;;  %v11205_v3 = vadd.f32 %v15189_v13, %v6304_v39  ;;  %v6306_v10 = vpop.f32.mrb[189].mxu1  ;;  %6963 = vrot.lane.b32.xlu1 %v6954_v56, %s12201_s25  ;;  %v6921_v22 = vsel %vm2971_vm12, %v6918_v50, %v6920_v12  ;;  %v7014_v55 = vrot.slane %v15506_v25, 5 }
 0x642   : > { %v6307_v33 = vpop.f32.mrb[190].mxu1  ;;  %v6866_v16 = vsel %vm2486_vm13, %v6861_v18, %v6865_v31  ;;  %6933 = vst.msk [vmem:[#allocation7 + $0x58] sm:$0xff] %vm439_vm7, %v6921_v22  ;;  %v7107_v62 = vsel %vm3817_vm14, %v7104_v8, %v7106_v47  ;;  %v7017_v50 = vrot.slane %v15488_v11, 6  ;;  %v7221_v9 = vsel %vm7216_vm4, %v7218_v19, %v7220_v51 }
 0x643   : > { %v6781_v54 = vpack.c.bf16 %v6780_v28, %v6780_v28  ;;  %v6498_v46 = vadd.f32 %v11205_v3, %v15216_v27  ;;  %v11206_v34 = vadd.f32 %v15189_v13, %v6307_v33  ;;  %v6309_v35 = vpop.f32.mrb[191].mxu1  ;;  %6887 = vrot.lane.b32.xlu0 %v6866_v16, %s12201_s25  ;;  %7120 = vst.msk [vmem:[#allocation7 + $0x40] sm:$0xff] %vm439_vm7, %v7107_v62  ;;  %7234 = vst.msk [vmem:[#allocation7 + $0x48] sm:$0xff] %vm439_vm7, %v7221_v9  ;;  %v6820_v28 = vld [vmem:[#allocation6 + $0x28] sm:$0x1f] }
 0x644   : > { %v7018_v61 = vor.u32 %v7017_v50, %v7014_v55  ;;  %v6869_v63 = vor.u32 %v15506_v25, %v6865_v31  ;;  %v7124_v3 = vld [vmem:[#allocation6 + $0x8] sm:$0xfc]  ;;  %v7096_v35 = vld [vmem:[#allocation6 + $0x30] sm:$0x3]  ;;  %v7048_v62 = vld [vmem:[#allocation6] sm:$0xc0] }
 0x645   : > { %v6783_v48 = vshrl.u32 %v6781_v54, 16  ;;  %v6786_v27 = vshll.u32 %v6781_v54, 16  ;;  %v6542_v7 = vmax.f32 %v6498_v46, 0.0  ;;  %v6501_v13 = vadd.f32 %v11206_v34, %v15222_v49 }
 0x646   : > { %v7019_v49 = vsel %vm6765_vm0, %v15447_v17, %v7018_v61  ;;  %v6798_v19 = vld [vmem:[#allocation5 + $0x118] ss:$2 sm:$0xff]  ;;  %v6800_v60 = vld [vmem:[#allocation5 + $0x119] ss:$2 sm:$0xff]  ;;  %v7132_v22 = vshrl.u32 %v7124_v3, 16  ;;  %v7151_v9 = vrot.slane %v15506_v25, 2 }
 0x647   : > { %v6785_v23 = vrot.slane %v6783_v48, 4  ;;  %v6788_v8 = vrot.slane %v6786_v27, 5  ;;  %6582 = vst.msk [vmem:[#allocation5 + $0x130] sm:$0xff] %vm439_vm7, %v6542_v7  ;;  %v6543_v52 = vmax.f32 %v6501_v13, 0.0  ;;  %7045 = vst.msk [vmem:[#allocation7 + $0x60] sm:$0xff] %vm439_vm7, %v7019_v49  ;;  %v6801_v4 = vmax.f32 %v6798_v19, %v6800_v60 }
 0x648   : > { %v7134_v46 = vrot.slane %v7132_v22, 2  ;;  %v7112_v27 = vrot.slane %v7096_v35, 2 }
 0x649   : > { %v6789_v0 = vor.u32 %v6788_v8, %v6785_v23  ;;  %6583 = vst.msk [vmem:[#allocation5 + $0x138] sm:$0xff] %vm439_vm7, %v6543_v52  ;;  %v7154_v23 = vrot.slane %v15488_v11, 3  ;;  %v7060_v8 = vrot.slane %v7048_v62, 6  ;;  %v11699_v62 = vld [vmem:[%s16627_s5 + $0x80] sm:$0xff]  }
 0x64b   : > { %v6795_v37 = vsel %vm6793_vm8, %v6789_v0, %v6794_v21 }
 0x64c   : > { %6796 = vst [vmem:[#allocation6 + $0x20] sm:$0xf8] %v6795_v37 }
 0x650   : > { %v6803_v41 = vld [vmem:[#allocation5 + $0x12c] ss:$2 sm:$0xff]  ;;  %v6805_v5 = vld [vmem:[#allocation5 + $0x12d] ss:$2 sm:$0xff] }
 0x651   : > { %v6806_v58 = vmax.f32 %v6803_v41, %v6805_v5 }
 0x653   : > { %v6807_v43 = vmax.f32 %v6801_v4, %v6806_v58  ;;  %v15544_v40 = vld [vmem:[#allocation6 + $0x20] sm:$0xff]  ;;  %v7155_v58 = vor.u32 %v7154_v23, %v7151_v9 }
 0x654   : > { %v6955_v57 = vrot.slane %v15544_v40, 5  ;;  %v15548_v17 = vshll.u32 %v15544_v40, 16  ;;  %v15551_v42 = vshrl.u32 %v15544_v40, 16  ;;  %6832 = vst.msk [vmem:[#allocation7 + $0xa0] sm:$0xff] %vm439_vm7, %v15544_v40  ;;  %v6922_v24 = vrot.slane %v15544_v40, 1  ;;  %v11705_v9 = vld [vmem:[%s16627_s5 + $0x98] sm:$0xff]  }
 0x655   : > { %v6808_v1 = vpack.c.bf16 %v6807_v43, %v6807_v43  ;;  %v7108_v36 = vrot.slane %v15544_v40, 2  ;;  %v7222_v14 = vrot.slane %v15544_v40, 3  ;;  %v7067_v22 = vrot.slane %v15544_v40, 6  ;;  %v11706_v23 = vld [vmem:[%s16627_s5 + $0xe0] sm:$0xff]  }
 0x656   : > { %v6956_v30 = vsel %vm1841_vm1, %v6953_v45, %v6955_v57  ;;  %v6873_v29 = vrot.slane %v15548_v17, 1  ;;  %v6923_v53 = vsel %vm2971_vm12, %v6920_v12, %v6922_v24  ;;  %v7023_v56 = vrot.slane %v15551_v42, 5 }
 0x657   : > { %v6810_v59 = vshrl.u32 %v6808_v1, 16  ;;  %6965 = vrot.lane.b32.xlu1 %v6956_v30, %s12201_s25  ;;  %v6813_v18 = vshll.u32 %v6808_v1, 16  ;;  %6934 = vst.msk [vmem:[#allocation7 + $0x80] sm:$0xff] %vm439_vm7, %v6923_v53  ;;  %v7109_v26 = vsel %vm3817_vm14, %v7106_v47, %v7108_v36  ;;  %v7026_v31 = vrot.slane %v15548_v17, 6  ;;  %v7129_v53 = vld [vmem:[#allocation6 + $0x30] sm:$0x7] }
 0x658   : > { %v6874_v45 = vsel %vm2486_vm13, %v6869_v63, %v6873_v29  ;;  %7121 = vst.msk [vmem:[#allocation7 + $0x68] sm:$0xff] %vm439_vm7, %v7109_v26  ;;  %v7223_v12 = vsel %vm7216_vm4, %v7220_v51, %v7222_v14  ;;  %v7135_v47 = vshll.u32 %v7124_v3, 16  ;;  %v6877_v37 = vor.u32 %v15551_v42, %v6873_v29 }
 0x659   : > { %v6812_v39 = vrot.slane %v6810_v59, 7  ;;  %6889 = vrot.lane.b32.xlu0 %v6874_v45, %s12201_s25  ;;  %7235 = vst.msk [vmem:[#allocation7 + $0x70] sm:$0xff] %vm439_vm7, %v7223_v12  ;;  %v15582_v33 = vor.u32 %v7026_v31, %v7023_v56  ;;  %v7160_v1 = vrot.slane %v15551_v42, 2  ;;  %v7163_v30 = vrot.slane %v15548_v17, 3 }
 0x65a   : > { %v7137_v34 = vrot.slane %v7135_v47, 3  ;;  %v7176_v56 = vshrl.u32 %v7129_v53, 16  ;;  %v7179_v31 = vshll.u32 %v7129_v53, 16 }
 0x65b   : > { %v6815_v10 = vor.u32 %v6813_v18, %v6812_v39  ;;  %v7028_v54 = vsel %vm6765_vm0, %v7018_v61, %v15582_v33  ;;  %v7209_v61 = vld [vmem:[#allocation6 + $0x30] sm:$0x7]  ;;  %v7156_v39 = vsel %vm7130_vm2, %v15436_v20, %v7155_v58  ;;  %v7164_v12 = vor.u32 %v7163_v30, %v7160_v1 }
 0x65c   : > { %7046 = vst.msk [vmem:[#allocation7 + $0x88] sm:$0xff] %vm439_vm7, %v7028_v54  ;;  %v7138_v51 = vor.u32 %v7137_v34, %v7134_v46  ;;  %v7226_v5 = vrot.slane %v7209_v61, 3 }
 0x65d   : > { %v6821_v16 = vsel %vm6819_vm15, %v6815_v10, %v6820_v28  ;;  %v7165_v3 = vsel %vm7130_vm2, %v7155_v58, %v7164_v12  ;;  %v7178_v10 = vrot.slane %v7176_v56, 2  ;;  %v11714_v56 = vld [vmem:[%s16627_s5 + $0x100] sm:$0xff]  }
 0x65e   : > { %6822 = vst [vmem:[#allocation6 + $0x28] sm:$0x1f] %v6821_v16  ;;  %v7147_v60 = vsel %vm7130_vm2, %v7138_v51, %v15436_v20  ;;  %v7181_v16 = vrot.slane %v7179_v31, 3  ;;  %v11701_v51 = vld [vmem:[%s16627_s5 + $0x88] sm:$0xff]  }
 0x660   : > { %v7182_v54 = vor.u32 %v7181_v16, %v7178_v10  ;;  %v11717_v16 = vld [vmem:[%s16627_s5 + $0x118] sm:$0xff]  }
 0x665   : > { %v6941_v55 = vld [vmem:[#allocation6 + $0x28] sm:$0x1f] }
 0x666   : > { %v6838_v50 = vld [vmem:[#allocation6 + $0x28] sm:$0x1]  ;;  %v6957_v7 = vrot.slane %v6941_v55, 5  ;;  %v11700_v55 = vld [vmem:[%s16627_s5 + $0xc8] sm:$0xff]  }
 0x667   : > { %v7128_v48 = vld [vmem:[#allocation6 + $0x28] sm:$0xff]  ;;  %v6879_v13 = vshll.u32 %v6838_v50, 16 }
 0x668   : > { %v6908_v52 = vld [vmem:[#allocation6 + $0x28] sm:$0x1]  ;;  %v7110_v21 = vrot.slane %v7128_v48, 2  ;;  %v6958_v0 = vsel %vm1841_vm1, %v6955_v57, %v6957_v7  ;;  %v7224_v63 = vrot.slane %v7128_v48, 3  ;;  %v7167_v29 = vshrl.u32 %v7128_v48, 16  ;;  %v11704_v7 = vld [vmem:[%s16627_s5 + $0xd8] sm:$0xff]  }
 0x669   : > { %v6984_v49 = vld [vmem:[#allocation6 + $0x28] sm:$0x3f]  ;;  %v6881_v19 = vrot.slane %v6879_v13, 1  ;;  %6967 = vrot.lane.b32.xlu1 %v6958_v0, %s12201_s25  ;;  %v6924_v41 = vrot.slane %v6908_v52, 1  ;;  %v7170_v59 = vshll.u32 %v7128_v48, 16  ;;  %v11702_v48 = vld [vmem:[%s16627_s5 + $0xd0] sm:$0xff]  }
 0x66a   : > { %v7111_v25 = vsel %vm3817_vm14, %v7108_v36, %v7110_v21  ;;  %v7113_v11 = vsel %vm3817_vm14, %v7110_v21, %v7112_v27  ;;  %v7030_v43 = vshrl.u32 %v6984_v49, 16  ;;  %v7033_v57 = vshll.u32 %v6984_v49, 16  ;;  %v11703_v27 = vld [vmem:[%s16627_s5 + $0x90] sm:$0xff]   ;;  %v11708_v52 = vld [vmem:[%s16627_s5 + $0xe8] sm:$0xff]  }
 0x66b   : > { %v6882_v4 = vsel %vm2486_vm13, %v6877_v37, %v6881_v19  ;;  %7122 = vst.msk [vmem:[#allocation7 + $0x90] sm:$0xff] %vm439_vm7, %v7111_v25  ;;  %7123 = vst.msk [vmem:[#allocation7 + $0xb8] sm:$0xff] %vm439_vm7, %v7113_v11  ;;  %v6925_v36 = vsel %vm2971_vm12, %v6922_v24, %v6924_v41  ;;  %v7225_v42 = vsel %vm7216_vm4, %v7222_v14, %v7224_v63  ;;  %v7169_v14 = vrot.slane %v7167_v29, 2  ;;  %v11709_v49 = vld [vmem:[%s16627_s5 + $0xa8] sm:$0xff]   ;;  %v11710_v0 = vld [vmem:[%s16627_s5 + $0xf0] sm:$0xff]  }
 0x66c   : > { %6891 = vrot.lane.b32.xlu0 %v6882_v4, %s12201_s25  ;;  %6935 = vst.msk [vmem:[#allocation7 + $0xa8] sm:$0xff] %vm439_vm7, %v6925_v36  ;;  %v7032_v18 = vrot.slane %v7030_v43, 5  ;;  %v7035_v45 = vrot.slane %v7033_v57, 6  ;;  %v7227_v17 = vsel %vm7216_vm4, %v7224_v63, %v7226_v5  ;;  %v7062_v24 = vsel %vm4781_vm5, %v7060_v8, %v7061_v32  ;;  %7236 = vst.msk [vmem:[#allocation7 + $0x98] sm:$0xff] %vm439_vm7, %v7225_v42  ;;  %v11707_v8 = vld [vmem:[%s16627_s5 + $0xa0] sm:$0xff]   ;;  %v11711_v19 = vld [vmem:[%s16627_s5 + $0xb0] sm:$0xff]  }
 0x66d   : > { %7184 = vrot.lane.b32.xlu1 %v7147_v60, %s12201_s25  ;;  %7237 = vst.msk [vmem:[#allocation7 + $0xc0] sm:$0xff] %vm439_vm7, %v7227_v17  ;;  %v7172_v28 = vrot.slane %v7170_v59, 3  ;;  %v7065_v32 = vrot.slane %v15484_v2, 6  ;;  %v7053_v2 = vld [vmem:[#allocation6 + $0x28] sm:$0x3f]  ;;  %v11712_v60 = vld [vmem:[%s16627_s5 + $0xf8] sm:$0xff]  }
 0x66e   : > { %v7036_v26 = vor.u32 %v7035_v45, %v7032_v18  ;;  %v7069_v34 = vrot.slane %v7053_v2, 6  ;;  %v11713_v41 = vld [vmem:[%s16627_s5 + $0xb8] sm:$0xff]   ;;  %v12204_v25 = vmov 0.0   ;;  %vm12205_vm1 = vmmov 0  }
 0x66f   : > { %v7173_v20 = vor.u32 %v7172_v28, %v7169_v14  ;;  %v7068_v44 = vsel %vm4781_vm5, %v7065_v32, %v7067_v22 }
 0x670   : > { %7071 = vrot.lane.b32.xlu0 %v7062_v24, %s12201_s25  ;;  %v7037_v6 = vsel %vm6765_vm0, %v15582_v33, %v7036_v26  ;;  %v7066_v33 = vsel %vm4781_vm5, %v7063_v15, %v7065_v32  ;;  %v7070_v40 = vsel %vm4781_vm5, %v7067_v22, %v7069_v34 }
 0x671   : > { %7186 = vrot.lane.b32.xlu1 %v7156_v39, %s12201_s25  ;;  %7047 = vst.msk [vmem:[#allocation7 + $0xb0] sm:$0xff] %vm439_vm7, %v7037_v6  ;;  %v7183_v15 = vsel %vm7130_vm2, %v7173_v20, %v7182_v54  ;;  %v11715_v6 = vld [vmem:[%s16627_s5 + $0x108] sm:$0xff]   ;;  %v7242_v54 = vld [vmem:[#allocation7 + $0x20] sm:$0xff] }
 0x673   : > { %v7257_v34 = vld [vmem:[#allocation7 + $0x98] sm:$0xff] }
 0x674   : > { %7073 = vrot.lane.b32.xlu0 %v15420_v38, %s12201_s25  ;;  %v7174_v38 = vsel %vm7130_vm2, %v7164_v12, %v7173_v20 }
 0x675   : > { %7188 = vrot.lane.b32.xlu1 %v7165_v3, %s12201_s25  ;;  %v11716_v3 = vld [vmem:[%s16627_s5 + $0x110] sm:$0xff]  }
 0x677   : > { %v6960_v47 = vpop.permute.xlu1 %6959 }
 0x678   : > { %7075 = vrot.lane.b32.xlu0 %v7066_v33, %s12201_s25  ;;  %6974 = vst.msk [vmem:[#allocation7 + $0x8] sm:$0xff] %vm4655_vm9, %v6960_v47 }
 0x679   : > { %7190 = vrot.lane.b32.xlu1 %v7174_v38, %s12201_s25  ;;  %v6884_v46 = vpop.permute.xlu0 %6883 }
 0x67a   : > { %6898 = vst.msk [vmem:[#allocation7] sm:$0xff] %vm4655_vm9, %v6884_v46  ;;  %v7247_v46 = vld [vmem:[#allocation7 + $0x48] sm:$0xff] }
 0x67c   : > { %7077 = vrot.lane.b32.xlu0 %v7068_v44, %s12201_s25  ;;  %v7252_v44 = vld [vmem:[#allocation7 + $0x70] sm:$0xff] }
 0x67d   : > { %7192 = vrot.lane.b32.xlu1 %v7183_v15, %s12201_s25  ;;  %v7262_v15 = vld [vmem:[#allocation7 + $0xc0] sm:$0xff] }
 0x67f   : > { %v7239_v35 = vld [vmem:[#allocation7 + $0x8] sm:$0xff] }
 0x680   : > { %7079 = vrot.lane.b32.xlu0 %v7070_v40, %s12201_s25  ;;  %7605 = vmatprep.mubr.bf16.mxu0 %v7239_v35  ;;  %v11718_v40 = vld [vmem:[%s16629_s7] ss:$8 sps:$4 sm:$0xff]   ;;  %v11720_v35 = vld [vmem:[%s16629_s7 + $0x4] ss:$8 sps:$4 sm:$0xff]   ;;  %s12136_s25 = scalar_lea.vmem %s16582_s29, 16 }
 0x681   : > { %v7238_v50 = vld [vmem:[#allocation7] sm:$0xff]  ;;  %p12137_p11 = scmp.ne.s32.totalorder %s16582_s29, %s12136_s25  ;;  %p12144_p1 = scmp.lt.s32.totalorder %s12142_s0, %s12136_s25 }
 0x682   : > { %7606 = vmatmul.mubr.bf16.vlgmr.msra.gmra.mrb[56].mxu0 %v7238_v50  ;;  %v11726_v50 = vld [vmem:[%s16629_s7 + $0x24] ss:$8 sps:$4 sm:$0xff]  }
 0x683   : > { %10859 = vmatpush3.bf16.msra.mxu0 %v11699_v62  ;;  %v11721_v62 = vld [vmem:[%s16629_s7 + $0x10] ss:$8 sps:$4 sm:$0xff]   ;;  %p12138_p12 = pnand %p12137_p11, %p12305_p5  ;;  %p12145_p2 = por %p12144_p1, %p12143_p0 }
 0x684   : > { %10860 = vmatprep.subr.bf16.mxu0 %v11700_v55  ;;  %v11723_v55 = vld [vmem:[%s16629_s7 + $0x14] ss:$8 sps:$4 sm:$0xff]  }
 0x685   : > { %p12139_p13 = pneg %p12138_p12 }
 0x687   : > { %10861 = vmatpush3.bf16.msra.mxu0 %v11701_v51  ;;  %v11724_v51 = vld [vmem:[%s16629_s7 + $0x20] ss:$8 sps:$4 sm:$0xff]   ;;  %p12146_p3 = pnand %p12145_p2, %p12139_p13 }
 0x688   : > { %10862 = vmatprep.subr.bf16.mxu0 %v11702_v48  ;;  %v11727_v48 = vld [vmem:[%s16629_s7 + $0x30] ss:$8 sps:$4 sm:$0xff]  }
 0x68b   : > { %v6962_v13 = vpop.permute.xlu1 %6961  ;;  %10863 = vmatpush3.bf16.msra.mxu0 %v11703_v27  ;;  %v11729_v27 = vld [vmem:[%s16629_s7 + $0x34] ss:$8 sps:$4 sm:$0xff]  }
 0x68c   : > { %6975 = vst.msk [vmem:[#allocation7 + $0x30] sm:$0xff] %vm4655_vm9, %v6962_v13  ;;  %10864 = vmatprep.subr.bf16.mxu0 %v11704_v7  ;;  %v11732_v7 = vld [vmem:[%s16629_s7 + $0x44] ss:$8 sps:$4 sm:$0xff]   ;;  %v11730_v13 = vld [vmem:[%s16629_s7 + $0x40] ss:$8 sps:$4 sm:$0xff]  }
 0x68d   : > { %v6886_v61 = vpop.permute.xlu0 %6885 }
 0x68e   : > { %6899 = vst.msk [vmem:[#allocation7 + $0x28] sm:$0xff] %vm4655_vm9, %v6886_v61 }
 0x68f   : > { %10865 = vmatpush3.bf16.msra.mxu0 %v11705_v9  ;;  %v11733_v9 = vld [vmem:[%s16629_s7 + $0x50] ss:$8 sps:$4 sm:$0xff]  }
 0x690   : > { %10866 = vmatprep.subr.bf16.mxu0 %v11706_v23  ;;  %v11735_v23 = vld [vmem:[%s16629_s7 + $0x54] ss:$8 sps:$4 sm:$0xff]  }
 0x693   : > { %v7244_v21 = vld [vmem:[#allocation7 + $0x30] sm:$0xff]  ;;  %10867 = vmatpush3.bf16.msra.mxu0 %v11707_v8 }
 0x694   : > { %7613 = vmatprep.mubr.bf16.mxu0 %v7244_v21  ;;  %10868 = vmatprep.subr.bf16.mxu0 %v11708_v52  ;;  %v11738_v8 = vld [vmem:[%s16629_s7 + $0x64] ss:$8 sps:$4 sm:$0xff]   ;;  %v11736_v21 = vld [vmem:[%s16629_s7 + $0x60] ss:$8 sps:$4 sm:$0xff]  }
 0x695   : > { %v7243_v37 = vld [vmem:[#allocation7 + $0x28] sm:$0xff] }
 0x696   : > { %7614 = vmatmul.mubr.bf16.gmra.mrb[60].mxu0 %v7243_v37 }
 0x697   : > { %10869 = vmatpush3.bf16.msra.mxu0 %v11709_v49 }
 0x698   : > { %10870 = vmatprep.subr.bf16.mxu0 %v11710_v0 }
 0x69b   : > { %10871 = vmatpush3.bf16.msra.mxu0 %v11711_v19 }
 0x69c   : > { %10872 = vmatprep.subr.bf16.mxu0 %v11712_v60  ;;  %v11739_v60 = vld [vmem:[%s16629_s7 + $0x70] ss:$8 sps:$4 sm:$0xff]  }
 0x69f   : > { %10873 = vmatpush3.bf16.msra.mxu0 %v11713_v41  ;;  %v11741_v41 = vld [vmem:[%s16629_s7 + $0x74] ss:$8 sps:$4 sm:$0xff]  }
 0x6a0   : > { %11123 = vmatprep.subr.bf16.mxu0 %v12204_v25 }
 0x6b3   : > { %v6964_v11 = vpop.permute.xlu1 %6963 }
 0x6b4   : > { %6976 = vst.msk [vmem:[#allocation7 + $0x58] sm:$0xff] %vm4655_vm9, %v6964_v11  ;;  %v11742_v11 = vld [vmem:[%s16629_s7 + $0x80] ss:$8 sps:$4 sm:$0xff]  }
 0x6b5   : > { %v6888_v5 = vpop.permute.xlu0 %6887 }
 0x6b6   : > { %6900 = vst.msk [vmem:[#allocation7 + $0x50] sm:$0xff] %vm4655_vm9, %v6888_v5  ;;  %v11745_v5 = vld [vmem:[%s16629_s7 + $0x90] ss:$8 sps:$4 sm:$0xff]  }
 0x6bb   : > { %v7249_v4 = vld [vmem:[#allocation7 + $0x58] sm:$0xff] }
 0x6bc   : > { %7621 = vmatprep.mubr.bf16.mxu0 %v7249_v4  ;;  %v11747_v4 = vld [vmem:[%s16629_s7 + $0x94] ss:$8 sps:$4 sm:$0xff]  }
 0x6bd   : > { %v7248_v58 = vld [vmem:[#allocation7 + $0x50] sm:$0xff] }
 0x6be   : > { %7622 = vmatmul.mubr.bf16.gmra.mrb[64].mxu0 %v7248_v58  ;;  %v11750_v58 = vld [vmem:[%s16629_s7 + $0xa4] ss:$8 sps:$4 sm:$0xff]  }
 0x6c9   : > { %v6966_v43 = vpop.permute.xlu1 %6965 }
 0x6ca   : > { %6977 = vst.msk [vmem:[#allocation7 + $0x80] sm:$0xff] %vm4655_vm9, %v6966_v43  ;;  %v11748_v43 = vld [vmem:[%s16629_s7 + $0xa0] ss:$8 sps:$4 sm:$0xff]  }
 0x6cb   : > { %v6890_v57 = vpop.permute.xlu0 %6889 }
 0x6cc   : > { %6901 = vst.msk [vmem:[#allocation7 + $0x78] sm:$0xff] %vm4655_vm9, %v6890_v57 }
 0x6d1   : > { %v7254_v1 = vld [vmem:[#allocation7 + $0x80] sm:$0xff] }
 0x6d2   : > { %7629 = vmatprep.mubr.bf16.mxu0 %v7254_v1 }
 0x6d3   : > { %v7253_v30 = vld [vmem:[#allocation7 + $0x78] sm:$0xff] }
 0x6d4   : > { %7630 = vmatmul.mubr.bf16.gmra.mrb[68].mxu0 %v7253_v30 }
 0x6db   : > { %v6968_v36 = vpop.permute.xlu1 %6967 }
 0x6dc   : > { %6978 = vst.msk [vmem:[#allocation7 + $0xa8] sm:$0xff] %vm4655_vm9, %v6968_v36 }
 0x6de   : > { %v6892_v63 = vpop.permute.xlu0 %6891 }
 0x6df   : > { %6902 = vst.msk [vmem:[#allocation7 + $0xa0] sm:$0xff] %vm4655_vm9, %v6892_v63  ;;  %v7185_v29 = vpop.permute.xlu1 %7184 }
 0x6e0   : > { %7199 = vst.msk [vmem:[#allocation7 + $0x18] sm:$0xff] %vm4655_vm9, %v7185_v29 }
 0x6e2   : > { %v7072_v59 = vpop.permute.xlu0 %7071 }
 0x6e3   : > { %7086 = vst.msk [vmem:[#allocation7 + $0x10] sm:$0xff] %vm4655_vm9, %v7072_v59  ;;  %v7187_v53 = vpop.permute.xlu1 %7186  ;;  %v7259_v18 = vld [vmem:[#allocation7 + $0xa8] sm:$0xff]  ;;  %v11751_v59 = vld [vmem:[%s16629_s7 + $0xb0] ss:$8 sps:$4 sm:$0xff]  }
 0x6e4   : > { %7200 = vst.msk [vmem:[#allocation7 + $0x40] sm:$0xff] %vm4655_vm9, %v7187_v53  ;;  %7637 = vmatprep.mubr.bf16.mxu0 %v7259_v18  ;;  %v11753_v53 = vld [vmem:[%s16629_s7 + $0xb4] ss:$8 sps:$4 sm:$0xff]   ;;  %v11756_v18 = vld [vmem:[%s16629_s7 + $0xc4] ss:$8 sps:$4 sm:$0xff]  }
 0x6e6   : > { %v7074_v45 = vpop.permute.xlu0 %7073  ;;  %v7258_v42 = vld [vmem:[#allocation7 + $0xa0] sm:$0xff] }
 0x6e7   : > { %7087 = vst.msk [vmem:[#allocation7 + $0x38] sm:$0xff] %vm4655_vm9, %v7074_v45  ;;  %7638 = vmatmul.mubr.bf16.gmra.mrb[72].mxu0 %v7258_v42  ;;  %v7189_v17 = vpop.permute.xlu1 %7188  ;;  %v7241_v24 = vld [vmem:[#allocation7 + $0x18] sm:$0xff]  ;;  %v11754_v45 = vld [vmem:[%s16629_s7 + $0xc0] ss:$8 sps:$4 sm:$0xff]  }
 0x6e8   : > { %7201 = vst.msk [vmem:[#allocation7 + $0x68] sm:$0xff] %vm4655_vm9, %v7189_v17  ;;  %7678 = vmatprep.mubr.bf16.mxu0 %v7241_v24  ;;  %v11757_v42 = vld [vmem:[%s16629_s7 + $0xd0] ss:$8 sps:$4 sm:$0xff]   ;;  %v11759_v17 = vld [vmem:[%s16629_s7 + $0xd4] ss:$8 sps:$4 sm:$0xff]  }
 0x6e9   : > { %v11762_v24 = vld [vmem:[%s16629_s7 + $0xe4] ss:$8 sps:$4 sm:$0xff]  }
 0x6ea   : > { %v7076_v26 = vpop.permute.xlu0 %7075  ;;  %v7240_v12 = vld [vmem:[#allocation7 + $0x10] sm:$0xff] }
 0x6eb   : > { %7088 = vst.msk [vmem:[#allocation7 + $0x60] sm:$0xff] %vm4655_vm9, %v7076_v26  ;;  %v7191_v39 = vpop.permute.xlu1 %7190  ;;  %v7246_v14 = vld [vmem:[#allocation7 + $0x40] sm:$0xff]  ;;  %v11760_v26 = vld [vmem:[%s16629_s7 + $0xe0] ss:$8 sps:$4 sm:$0xff]  }
 0x6ec   : > { %7202 = vst.msk [vmem:[#allocation7 + $0x90] sm:$0xff] %vm4655_vm9, %v7191_v39  ;;  %v11763_v39 = vld [vmem:[%s16629_s7 + $0xf0] ss:$8 sps:$4 sm:$0xff]  }
 0x6ee   : > { %v7078_v31 = vpop.permute.xlu0 %7077  ;;  %v7245_v20 = vld [vmem:[#allocation7 + $0x38] sm:$0xff] }
 0x6ef   : > { %7089 = vst.msk [vmem:[#allocation7 + $0x88] sm:$0xff] %vm4655_vm9, %v7078_v31  ;;  %7679 = vmatmul.mubr.bf16.vlgmr.msra.gmra.mrb[76].mxu0 %v7240_v12  ;;  %v7193_v28 = vpop.permute.xlu1 %7192  ;;  %v7251_v10 = vld [vmem:[#allocation7 + $0x68] sm:$0xff]  ;;  %v11768_v31 = vld [vmem:[%s16629_s7 + $0x104] ss:$8 sps:$4 sm:$0xff]  }
 0x6f0   : > { %11124 = vmatpush3.bf16.msra.mxu0 %v11714_v56  ;;  %7686 = vmatprep.mubr.bf16.mxu0 %v7246_v14  ;;  %7203 = vst.msk [vmem:[#allocation7 + $0xb8] sm:$0xff] %vm4655_vm9, %v7193_v28  ;;  %v11765_v56 = vld [vmem:[%s16629_s7 + $0xf4] ss:$8 sps:$4 sm:$0xff]  }
 0x6f1   : > { %11125 = vmatprep.subr.bf16.mxu0 %v12204_v25 }
 0x6f2   : > { %v7080_v32 = vpop.permute.xlu0 %7079  ;;  %v7250_v33 = vld [vmem:[#allocation7 + $0x60] sm:$0xff] }
 0x6f3   : > { %7090 = vst.msk [vmem:[#allocation7 + $0xb0] sm:$0xff] %vm4655_vm9, %v7080_v32  ;;  %v7256_v22 = vld [vmem:[#allocation7 + $0x90] sm:$0xff] }
 0x6f4   : > { %11126 = vmatpush3.bf16.msra.mxu0 %v11715_v6 }
 0x6f5   : > { %11127 = vmatprep.subr.bf16.mxu0 %v12204_v25 }
 0x6f6   : > { %v7255_v47 = vld [vmem:[#allocation7 + $0x88] sm:$0xff] }
 0x6f7   : > { %7687 = vmatmul.mubr.bf16.gmra.mrb[80].mxu0 %v7245_v20  ;;  %v7261_v2 = vld [vmem:[#allocation7 + $0xb8] sm:$0xff] }
 0x6f8   : > { %7694 = vmatprep.mubr.bf16.mxu0 %v7251_v10  ;;  %11128 = vmatpush3.bf16.msra.mxu0 %v11716_v3 }
 0x6f9   : > { %11129 = vmatprep.subr.bf16.mxu0 %v12204_v25 }
 0x6fa   : > { %v7260_v38 = vld [vmem:[#allocation7 + $0xb0] sm:$0xff] }
 0x6fc   : > { %11130 = vmatpush3.bf16.msra.mxu0 %v11717_v16 }
 0x6fd   : > { %9488 = vmatprep.subr.bf16.mxu0 %v11720_v35 }
 0x6ff   : > { %7695 = vmatmul.mubr.bf16.gmra.mrb[84].mxu0 %v7250_v33 }
 0x700   : > { %7702 = vmatprep.mubr.bf16.mxu0 %v7256_v22 }
 0x707   : > { %7703 = vmatmul.mubr.bf16.gmra.mrb[88].mxu0 %v7255_v47 }
 0x708   : > { %7710 = vmatprep.mubr.bf16.mxu0 %v7261_v2 }
 0x70f   : > { %7711 = vmatmul.mubr.bf16.gmra.mrb[92].mxu0 %v7260_v38 }
 0x710   : > { %11131 = vmatprep.mubr.msk.bf16.mxu0 %vm12205_vm1, %v12204_v25 }
 0x717   : > { %11132 = vmatmul.mubr.msk.bf16.vlgmr.msra.gmra.mrb[96].mxu0 %vm439_vm7, %v7242_v54 }
 0x718   : > { %11135 = vmatprep.mubr.msk.bf16.mxu0 %vm12205_vm1, %v12204_v25  ;;  %9489 = vmatpush1.bf16.msra.mxu0 %v11718_v40 }
 0x719   : > { %9490 = vmatprep.subr.bf16.mxu0 %v11723_v55 }
 0x71c   : > { %9491 = vmatpush1.bf16.msra.mxu0 %v11721_v62 }
 0x71d   : > { %9492 = vmatprep.subr.bf16.mxu0 %v11726_v50 }
 0x71f   : > { %11136 = vmatmul.mubr.msk.bf16.gmra.mrb[100].mxu0 %vm439_vm7, %v7247_v46 }
 0x720   : > { %11139 = vmatprep.mubr.msk.bf16.mxu0 %vm12205_vm1, %v12204_v25  ;;  %9493 = vmatpush1.bf16.msra.mxu0 %v11724_v51 }
 0x721   : > { %9494 = vmatprep.subr.bf16.mxu0 %v11729_v27 }
 0x724   : > { %9495 = vmatpush1.bf16.msra.mxu0 %v11727_v48 }
 0x725   : > { %9496 = vmatprep.subr.bf16.mxu0 %v11732_v7 }
 0x727   : > { %11140 = vmatmul.mubr.msk.bf16.gmra.mrb[104].mxu0 %vm439_vm7, %v7252_v44 }
 0x728   : > { %11143 = vmatprep.mubr.msk.bf16.mxu0 %vm12205_vm1, %v12204_v25  ;;  %9497 = vmatpush1.bf16.msra.mxu0 %v11730_v13 }
 0x729   : > { %9498 = vmatprep.subr.bf16.mxu0 %v11735_v23 }
 0x72c   : > { %9499 = vmatpush1.bf16.msra.mxu0 %v11733_v9 }
 0x72d   : > { %9500 = vmatprep.subr.bf16.mxu0 %v11738_v8 }
 0x72f   : > { %11144 = vmatmul.mubr.msk.bf16.gmra.mrb[108].mxu0 %vm439_vm7, %v7257_v34 }
 0x730   : > { %11147 = vmatprep.mubr.msk.bf16.mxu0 %vm12205_vm1, %v12204_v25  ;;  %9501 = vmatpush1.bf16.msra.mxu0 %v11736_v21  ;;  %v11744_v25 = vld [vmem:[%s16629_s7 + $0x84] ss:$8 sps:$4 sm:$0xff]  }
 0x731   : > { %9502 = vmatprep.subr.bf16.mxu0 %v11741_v41 }
 0x734   : > { %9503 = vmatpush1.bf16.msra.mxu0 %v11739_v60 }
 0x735   : > { %9504 = vmatprep.subr.bf16.mxu0 %v11744_v25 }
 0x737   : > { %11148 = vmatmul.mubr.msk.bf16.gmra.mrb[112].mxu0 %vm439_vm7, %v7262_v15  ;;  %v10369_v15 = vld [vmem:[%s16628_s6] ss:$0 sm:$0xff] }
 0x738   : > { %9505 = vmatpush1.bf16.msra.mxu0 %v11742_v11 }
 0x739   : > { %9506 = vmatprep.subr.bf16.mxu0 %v11747_v4 }
 0x73c   : > { %9507 = vmatpush1.bf16.msra.mxu0 %v11745_v5 }
 0x73d   : > { %9508 = vmatprep.subr.bf16.mxu0 %v11750_v58 }
 0x740   : > { %9509 = vmatpush1.bf16.msra.mxu0 %v11748_v43 }
 0x741   : > { %9510 = vmatprep.subr.bf16.mxu0 %v11753_v53 }
 0x744   : > { %9511 = vmatpush1.bf16.msra.mxu0 %v11751_v59 }
 0x745   : > { %9512 = vmatprep.subr.bf16.mxu0 %v11756_v18 }
 0x748   : > { %9513 = vmatpush1.bf16.msra.mxu0 %v11754_v45 }
 0x749   : > { %9514 = vmatprep.subr.bf16.mxu0 %v11759_v17 }
 0x74c   : > { %9515 = vmatpush1.bf16.msra.mxu0 %v11757_v42 }
 0x74d   : > { %9516 = vmatprep.subr.bf16.mxu0 %v11762_v24 }
 0x750   : > { %9517 = vmatpush1.bf16.msra.mxu0 %v11760_v26 }
 0x751   : > { %9518 = vmatprep.subr.bf16.mxu0 %v11765_v56 }
 0x754   : > { %9519 = vmatpush1.bf16.msra.mxu0 %v11763_v39 }
 0x755   : > { %v10828_v61 = vpop.f32.mrb[56].mxu0  ;;  %9529 = vmatprep.subr.bf16.mxu0 %v11768_v31 }
 0x756   : > { %v10829_v52 = vpop.f32.mrb[57].mxu0 }
 0x757   : > { %v15774_v49 = vadd.f32 %v10829_v52, %v10828_v61  ;;  %v10831_v0 = vpop.f32.mrb[58].mxu0 }
 0x758   : > { %v10832_v37 = vpop.f32.mrb[59].mxu0 }
 0x759   : > { %v15776_v19 = vadd.f32 %v10832_v37, %v10831_v0  ;;  %v7608_v62 = vadd.f32 %v15774_v49, %v10369_v15 }
 0x75b   : > { %v7611_v48 = vadd.f32 %v15776_v19, %v10369_v15 }
 0x769   : > { %v10834_v57 = vpop.f32.mrb[60].mxu0 }
 0x76a   : > { %v10835_v1 = vpop.f32.mrb[61].mxu0 }
 0x76b   : > { %v10836_v30 = vadd.f32 %v10835_v1, %v10834_v57  ;;  %v10837_v36 = vpop.f32.mrb[62].mxu0 }
 0x76c   : > { %v10838_v63 = vpop.f32.mrb[63].mxu0 }
 0x76d   : > { %v10839_v29 = vadd.f32 %v10838_v63, %v10837_v36  ;;  %v7616_v61 = vadd.f32 %v10836_v30, %v10369_v15 }
 0x76f   : > { %v7619_v0 = vadd.f32 %v10839_v29, %v10369_v15 }
 0x791   : > { %v10840_v12 = vpop.f32.mrb[64].mxu0 }
 0x792   : > { %v10841_v14 = vpop.f32.mrb[65].mxu0 }
 0x793   : > { %v10842_v28 = vadd.f32 %v10841_v14, %v10840_v12  ;;  %v10843_v6 = vpop.f32.mrb[66].mxu0 }
 0x794   : > { %v10844_v32 = vpop.f32.mrb[67].mxu0 }
 0x795   : > { %v10845_v3 = vadd.f32 %v10844_v32, %v10843_v6  ;;  %v7624_v11 = vadd.f32 %v10842_v28, %v10369_v15 }
 0x797   : > { %v7627_v19 = vadd.f32 %v10845_v3, %v10369_v15 }
 0x7a7   : > { %v10846_v20 = vpop.f32.mrb[68].mxu0 }
 0x7a8   : > { %v10847_v10 = vpop.f32.mrb[69].mxu0 }
 0x7a9   : > { %v10848_v16 = vadd.f32 %v10847_v10, %v10846_v20  ;;  %v10849_v33 = vpop.f32.mrb[70].mxu0 }
 0x7aa   : > { %v10850_v22 = vpop.f32.mrb[71].mxu0 }
 0x7ab   : > { %v10851_v47 = vadd.f32 %v10850_v22, %v10849_v33  ;;  %v7632_v30 = vadd.f32 %v10848_v16, %v10369_v15 }
 0x7ad   : > { %v7635_v29 = vadd.f32 %v10851_v47, %v10369_v15 }
 0x7ba   : > { %v10852_v2 = vpop.f32.mrb[72].mxu0 }
 0x7bb   : > { %v10853_v38 = vpop.f32.mrb[73].mxu0 }
 0x7bc   : > { %v10854_v54 = vadd.f32 %v10853_v38, %v10852_v2  ;;  %v10855_v46 = vpop.f32.mrb[74].mxu0 }
 0x7bd   : > { %v10856_v44 = vpop.f32.mrb[75].mxu0 }
 0x7be   : > { %v10857_v34 = vadd.f32 %v10856_v44, %v10855_v46  ;;  %v7640_v39 = vadd.f32 %v10854_v54, %v10369_v15 }
 0x7c0   : > { %v7643_v14 = vadd.f32 %v10857_v34, %v10369_v15 }
 0x7c2   : > { %v10874_v40 = vpop.f32.mrb[76].mxu0 }
 0x7c3   : > { %v10875_v35 = vpop.f32.mrb[77].mxu0 }
 0x7c4   : > { %v10876_v55 = vadd.f32 %v10875_v35, %v10874_v40  ;;  %v10877_v50 = vpop.f32.mrb[78].mxu0 }
 0x7c5   : > { %v10878_v51 = vpop.f32.mrb[79].mxu0 }
 0x7c6   : > { %v10879_v27 = vadd.f32 %v10878_v51, %v10877_v50  ;;  %v7681_v7 = vadd.f32 %v10876_v55, %v7608_v62 }
 0x7c8   : > { %v7684_v13 = vadd.f32 %v10879_v27, %v7611_v48 }
 0x7ca   : > { %v10880_v9 = vpop.f32.mrb[80].mxu0 }
 0x7cb   : > { %v10881_v23 = vpop.f32.mrb[81].mxu0 }
 0x7cc   : > { %v10882_v8 = vadd.f32 %v10881_v23, %v10880_v9  ;;  %v10883_v52 = vpop.f32.mrb[82].mxu0 }
 0x7cd   : > { %v10884_v21 = vpop.f32.mrb[83].mxu0 }
 0x7ce   : > { %v10885_v37 = vadd.f32 %v10884_v21, %v10883_v52  ;;  %v7689_v60 = vadd.f32 %v10882_v8, %v7616_v61 }
 0x7d0   : > { %v7692_v41 = vadd.f32 %v10885_v37, %v7619_v0 }
 0x7d2   : > { %v10886_v25 = vpop.f32.mrb[84].mxu0 }
 0x7d3   : > { %v10887_v49 = vpop.f32.mrb[85].mxu0 }
 0x7d4   : > { %v10888_v5 = vadd.f32 %v10887_v49, %v10886_v25  ;;  %v10889_v4 = vpop.f32.mrb[86].mxu0 }
 0x7d5   : > { %v10890_v58 = vpop.f32.mrb[87].mxu0 }
 0x7d6   : > { %v10891_v43 = vadd.f32 %v10890_v58, %v10889_v4  ;;  %v7697_v57 = vadd.f32 %v10888_v5, %v7624_v11 }
 0x7d8   : > { %v7700_v1 = vadd.f32 %v10891_v43, %v7627_v19  ;;  %v11766_v19 = vld [vmem:[%s16629_s7 + $0x100] ss:$8 sps:$4 sm:$0xff]  }
 0x7da   : > { %v10892_v36 = vpop.f32.mrb[88].mxu0 }
 0x7db   : > { %v10893_v63 = vpop.f32.mrb[89].mxu0 }
 0x7dc   : > { %v10894_v59 = vadd.f32 %v10893_v63, %v10892_v36  ;;  %v10895_v53 = vpop.f32.mrb[90].mxu0  ;;  %v11771_v36 = vld [vmem:[%s16629_s7 + $0x114] ss:$8 sps:$4 sm:$0xff]  }
 0x7dd   : > { %v10896_v18 = vpop.f32.mrb[91].mxu0 }
 0x7de   : > { %v10897_v45 = vadd.f32 %v10896_v18, %v10895_v53  ;;  %v15840_v42 = vadd.f32 %v10894_v59, %v7632_v30 }
 0x7e0   : > { %v15842_v17 = vadd.f32 %v10897_v45, %v7635_v29  ;;  %v11774_v45 = vld [vmem:[%s16629_s7 + $0x124] ss:$8 sps:$4 sm:$0xff]  }
 0x7e2   : > { %v10898_v24 = vpop.f32.mrb[92].mxu0 }
 0x7e3   : > { %v10899_v26 = vpop.f32.mrb[93].mxu0 }
 0x7e4   : > { %v10900_v56 = vadd.f32 %v10899_v26, %v10898_v24  ;;  %v10901_v31 = vpop.f32.mrb[94].mxu0 }
 0x7e5   : > { %v10902_v12 = vpop.f32.mrb[95].mxu0 }
 0x7e6   : > { %v10903_v28 = vadd.f32 %v10902_v12, %v10901_v31  ;;  %v15844_v6 = vadd.f32 %v10900_v56, %v7640_v39 }
 0x7e8   : > { %v15846_v32 = vadd.f32 %v10903_v28, %v7643_v14  ;;  %v11772_v28 = vld [vmem:[%s16629_s7 + $0x120] ss:$8 sps:$4 sm:$0xff]  }
 0x7ea   : > { %v7753_v3 = vpop.f32.mrb[96].mxu0 }
 0x7eb   : > { %v7754_v20 = vadd.f32 %v7753_v3, %v7681_v7  ;;  %v11133_v10 = vpop.f32.mrb[97].mxu0  ;;  %v11777_v3 = vld [vmem:[%s16629_s7 + $0x134] ss:$8 sps:$4 sm:$0xff]  }
 0x7ec   : > { %v7756_v16 = vpop.f32.mrb[98].mxu0  ;;  %v11780_v10 = vld [vmem:[%s16629_s7 + $0x144] ss:$8 sps:$4 sm:$0xff]  }
 0x7ed   : > { %v7792_v33 = vmax.f32 %v7754_v20, 0.0  ;;  %v7757_v22 = vadd.f32 %v7756_v16, %v7684_v13  ;;  %v11134_v47 = vpop.f32.mrb[99].mxu0 }
 0x7ef   : > { %7802 = vst [vmem:[#allocation8] sm:$0xff] %v7792_v33  ;;  %v7793_v2 = vmax.f32 %v7757_v22, 0.0 }
 0x7f1   : > { %7803 = vst [vmem:[#allocation8 + $0x8] sm:$0xff] %v7793_v2 }
 0x7f2   : > { %v7761_v38 = vpop.f32.mrb[100].mxu0 }
 0x7f3   : > { %v7762_v54 = vadd.f32 %v7761_v38, %v7689_v60  ;;  %v11137_v46 = vpop.f32.mrb[101].mxu0 }
 0x7f4   : > { %v7764_v44 = vpop.f32.mrb[102].mxu0  ;;  %v11783_v46 = vld [vmem:[%s16629_s7 + $0x154] ss:$8 sps:$4 sm:$0xff]  }
 0x7f5   : > { %v7794_v34 = vmax.f32 %v7762_v54, 0.0  ;;  %v7765_v15 = vadd.f32 %v7764_v44, %v7692_v41  ;;  %v11138_v40 = vpop.f32.mrb[103].mxu0  ;;  %v11778_v54 = vld [vmem:[%s16629_s7 + $0x140] ss:$8 sps:$4 sm:$0xff]  }
 0x7f6   : > { %v7819_v35 = vld [vmem:[#allocation8 + $0x2] sm:$0x1]  ;;  %v7820_v62 = vld [vmem:[#allocation8 + $0x3] sm:$0x1]  ;;  %v7812_v50 = vld [vmem:[#allocation8] sm:$0x1] }
 0x7f7   : > { %7804 = vst [vmem:[#allocation8 + $0x10] sm:$0xff] %v7794_v34  ;;  %v7795_v55 = vmax.f32 %v7765_v15, 0.0  ;;  %v7813_v51 = vld [vmem:[#allocation8 + $0x1] sm:$0x1]  ;;  %v7821_v13 = vmax.f32 %v7819_v35, %v7820_v62  ;;  %v7833_v25 = vld [vmem:[#allocation8 + $0x6] sm:$0x1] }
 0x7f8   : > { %v7822_v48 = vld [vmem:[#allocation8 + $0xc] sm:$0x1]  ;;  %v7823_v27 = vld [vmem:[#allocation8 + $0xd] sm:$0x1]  ;;  %v7815_v7 = vld [vmem:[#allocation8 + $0xa] sm:$0x1]  ;;  %v7814_v8 = vmax.f32 %v7812_v50, %v7813_v51 }
 0x7f9   : > { %7805 = vst [vmem:[#allocation8 + $0x18] sm:$0xff] %v7795_v55  ;;  %v7824_v9 = vmax.f32 %v7822_v48, %v7823_v27  ;;  %v7816_v23 = vld [vmem:[#allocation8 + $0xb] sm:$0x1]  ;;  %v7834_v49 = vld [vmem:[#allocation8 + $0x7] sm:$0x1] }
 0x7fa   : > { %v7769_v61 = vpop.f32.mrb[104].mxu0  ;;  %v7817_v52 = vmax.f32 %v7815_v7, %v7816_v23  ;;  %v7835_v59 = vmax.f32 %v7833_v25, %v7834_v49  ;;  %v11784_v34 = vld [vmem:[%s16629_s7 + $0x160] ss:$8 sps:$4 sm:$0xff]   ;;  %v11789_v15 = vld [vmem:[%s16629_s7 + $0x174] ss:$8 sps:$4 sm:$0xff]  }
 0x7fb   : > { %v7770_v21 = vadd.f32 %v7769_v61, %v7697_v57  ;;  %v11141_v0 = vpop.f32.mrb[105].mxu0  ;;  %v7825_v37 = vmax.f32 %v7821_v13, %v7824_v9  ;;  %v11787_v40 = vld [vmem:[%s16629_s7 + $0x170] ss:$8 sps:$4 sm:$0xff]   ;;  %v11792_v35 = vld [vmem:[%s16629_s7 + $0x184] ss:$8 sps:$4 sm:$0xff]  }
 0x7fc   : > { %v7772_v60 = vpop.f32.mrb[106].mxu0  ;;  %v7818_v41 = vmax.f32 %v7814_v8, %v7817_v52  ;;  %v11790_v62 = vld [vmem:[%s16629_s7 + $0x180] ss:$8 sps:$4 sm:$0xff]   ;;  %v11795_v55 = vld [vmem:[%s16629_s7 + $0x194] ss:$8 sps:$4 sm:$0xff]  }
 0x7fd   : > { %v7796_v11 = vmax.f32 %v7770_v21, 0.0  ;;  %v7773_v5 = vadd.f32 %v7772_v60, %v7700_v1  ;;  %v11142_v4 = vpop.f32.mrb[107].mxu0  ;;  %v7925_v58 = vpack.c.bf16 %v7825_v37, %v7825_v37  ;;  %v11769_v1 = vld [vmem:[%s16629_s7 + $0x110] ss:$8 sps:$4 sm:$0xff]   ;;  %v11798_v51 = vld [vmem:[%s16629_s7 + $0x1a4] ss:$8 sps:$4 sm:$0xff]  }
 0x7fe   : > { %v7924_v43 = vpack.c.bf16 %v7818_v41, %v7818_v41  ;;  %v7836_v57 = vld [vmem:[#allocation8 + $0x10] sm:$0x1]  ;;  %v7837_v63 = vld [vmem:[#allocation8 + $0x11] sm:$0x1]  ;;  %v11793_v50 = vld [vmem:[%s16629_s7 + $0x190] ss:$8 sps:$4 sm:$0xff]  }
 0x7ff   : > { %7806 = vst [vmem:[#allocation8 + $0x20] sm:$0xff] %v7796_v11  ;;  %v7797_v30 = vmax.f32 %v7773_v5, 0.0  ;;  %9520 = vmatprep.mubr.bf16.mxu0 %v7925_v58  ;;  %v7838_v53 = vmax.f32 %v7836_v57, %v7837_v63  ;;  %v11796_v48 = vld [vmem:[%s16629_s7 + $0x1a0] ss:$8 sps:$4 sm:$0xff]   ;;  %v11801_v27 = vld [vmem:[%s16629_s7 + $0x1b4] ss:$8 sps:$4 sm:$0xff]  }
 0x800   : > { %9521 = vmatmul.mubr.bf16.vlgmr.msra.gmra.mrb[116].mxu0 %v7924_v43  ;;  %v11799_v7 = vld [vmem:[%s16629_s7 + $0x1b0] ss:$8 sps:$4 sm:$0xff]   ;;  %v11804_v13 = vld [vmem:[%s16629_s7 + $0x1c4] ss:$8 sps:$4 sm:$0xff]   ;;  %v11802_v9 = vld [vmem:[%s16629_s7 + $0x1c0] ss:$8 sps:$4 sm:$0xff]  }
 0x801   : > { %7807 = vst [vmem:[#allocation8 + $0x28] sm:$0xff] %v7797_v30  ;;  %9530 = vmatpush1.bf16.msra.mxu0 %v11766_v19  ;;  %v7839_v18 = vmax.f32 %v7835_v59, %v7838_v53  ;;  %v11807_v23 = vld [vmem:[%s16629_s7 + $0x1d4] ss:$8 sps:$4 sm:$0xff]   ;;  %v11805_v61 = vld [vmem:[%s16629_s7 + $0x1d0] ss:$8 sps:$4 sm:$0xff]  }
 0x802   : > { %v7777_v29 = vpop.f32.mrb[108].mxu0  ;;  %9531 = vmatprep.subr.bf16.mxu0 %v11771_v36  ;;  %v11810_v8 = vld [vmem:[%s16629_s7 + $0x1e4] ss:$8 sps:$4 sm:$0xff]   ;;  %v7829_v52 = vld [vmem:[#allocation8 + $0xe] sm:$0x1] }
 0x803   : > { %v7778_v24 = vadd.f32 %v7777_v29, %v15840_v42  ;;  %v11145_v26 = vpop.f32.mrb[109].mxu0  ;;  %v7927_v39 = vpack.c.bf16 %v7839_v18, %v7839_v18  ;;  %v7830_v21 = vld [vmem:[#allocation8 + $0xf] sm:$0x1]  ;;  %v7826_v41 = vld [vmem:[#allocation8 + $0x4] sm:$0x1] }
 0x804   : > { %v7780_v56 = vpop.f32.mrb[110].mxu0  ;;  %v11808_v60 = vld [vmem:[%s16629_s7 + $0x1e0] ss:$8 sps:$4 sm:$0xff]   ;;  %v11813_v49 = vld [vmem:[%s16629_s7 + $0x1f4] ss:$8 sps:$4 sm:$0xff]   ;;  %v7831_v11 = vmax.f32 %v7829_v52, %v7830_v21 }
 0x805   : > { %v7798_v31 = vmax.f32 %v7778_v24, 0.0  ;;  %v7781_v12 = vadd.f32 %v7780_v56, %v15842_v17  ;;  %9532 = vmatpush1.bf16.msra.mxu0 %v11769_v1  ;;  %v11146_v14 = vpop.f32.mrb[111].mxu0  ;;  %9561 = vmatprep.mubr.bf16.mxu0 %v7927_v39  ;;  %v11775_v17 = vld [vmem:[%s16629_s7 + $0x130] ss:$8 sps:$4 sm:$0xff]   ;;  %v7827_v25 = vld [vmem:[#allocation8 + $0x5] sm:$0x1] }
 0x806   : > { %9533 = vmatprep.subr.bf16.mxu0 %v11774_v45  ;;  %v7850_v0 = vld [vmem:[#allocation8 + $0x20] sm:$0x1]  ;;  %v7851_v37 = vld [vmem:[#allocation8 + $0x21] sm:$0x1]  ;;  %v7847_v5 = vld [vmem:[#allocation8 + $0x16] sm:$0x1]  ;;  %v7828_v19 = vmax.f32 %v7826_v41, %v7827_v25 }
 0x807   : > { %7808 = vst [vmem:[#allocation8 + $0x30] sm:$0xff] %v7798_v31  ;;  %v7799_v42 = vmax.f32 %v7781_v12, 0.0  ;;  %v7848_v4 = vld [vmem:[#allocation8 + $0x17] sm:$0x1]  ;;  %v7852_v58 = vmax.f32 %v7850_v0, %v7851_v37  ;;  %v11816_v63 = vld [vmem:[%s16629_s7 + $0x204] ss:$8 sps:$4 sm:$0xff]  }
 0x808   : > { %v11811_v43 = vld [vmem:[%s16629_s7 + $0x1f0] ss:$8 sps:$4 sm:$0xff]   ;;  %v7849_v36 = vmax.f32 %v7847_v5, %v7848_v4  ;;  %v7832_v57 = vmax.f32 %v7828_v19, %v7831_v11  ;;  %v11814_v59 = vld [vmem:[%s16629_s7 + $0x200] ss:$8 sps:$4 sm:$0xff]   ;;  %v11819_v1 = vld [vmem:[%s16629_s7 + $0x214] ss:$8 sps:$4 sm:$0xff]  }
 0x809   : > { %7809 = vst [vmem:[#allocation8 + $0x38] sm:$0xff] %v7799_v42  ;;  %9534 = vmatpush1.bf16.msra.mxu0 %v11772_v28  ;;  %v11817_v29 = vld [vmem:[%s16629_s7 + $0x210] ss:$8 sps:$4 sm:$0xff]   ;;  %v11822_v45 = vld [vmem:[%s16629_s7 + $0x224] ss:$8 sps:$4 sm:$0xff]  }
 0x80a   : > { %v7785_v20 = vpop.f32.mrb[112].mxu0  ;;  %9535 = vmatprep.subr.bf16.mxu0 %v11777_v3  ;;  %v7853_v30 = vmax.f32 %v7849_v36, %v7852_v58  ;;  %v7926_v53 = vpack.c.bf16 %v7832_v57, %v7832_v57  ;;  %v11820_v24 = vld [vmem:[%s16629_s7 + $0x220] ss:$8 sps:$4 sm:$0xff]   ;;  %v11825_v26 = vld [vmem:[%s16629_s7 + $0x234] ss:$8 sps:$4 sm:$0xff]  }
 0x80b   : > { %v7786_v16 = vadd.f32 %v7785_v20, %v15844_v6  ;;  %v11149_v33 = vpop.f32.mrb[113].mxu0  ;;  %v11781_v6 = vld [vmem:[%s16629_s7 + $0x150] ss:$8 sps:$4 sm:$0xff]   ;;  %v11828_v56 = vld [vmem:[%s16629_s7 + $0x244] ss:$8 sps:$4 sm:$0xff]  }
 0x80c   : > { %v7788_v22 = vpop.f32.mrb[114].mxu0  ;;  %v7929_v18 = vpack.c.bf16 %v7853_v30, %v7853_v30  ;;  %v11823_v39 = vld [vmem:[%s16629_s7 + $0x230] ss:$8 sps:$4 sm:$0xff]   ;;  %v11826_v31 = vld [vmem:[%s16629_s7 + $0x240] ss:$8 sps:$4 sm:$0xff]  }
 0x80d   : > { %v7800_v47 = vmax.f32 %v7786_v16, 0.0  ;;  %v7789_v2 = vadd.f32 %v7788_v22, %v15846_v32  ;;  %9536 = vmatpush1.bf16.msra.mxu0 %v11775_v17  ;;  %v11150_v38 = vpop.f32.mrb[115].mxu0  ;;  %v11786_v32 = vld [vmem:[%s16629_s7 + $0x164] ss:$8 sps:$4 sm:$0xff]   ;;  %v11831_v12 = vld [vmem:[%s16629_s7 + $0x254] ss:$8 sps:$4 sm:$0xff]  }
 0x80e   : > { %9537 = vmatprep.subr.bf16.mxu0 %v11780_v10  ;;  %v11829_v14 = vld [vmem:[%s16629_s7 + $0x250] ss:$8 sps:$4 sm:$0xff]   ;;  %v11834_v28 = vld [vmem:[%s16629_s7 + $0x264] ss:$8 sps:$4 sm:$0xff]   ;;  %v11832_v3 = vld [vmem:[%s16629_s7 + $0x260] ss:$8 sps:$4 sm:$0xff]  }
 0x80f   : > { %7810 = vst [vmem:[#allocation8 + $0x40] sm:$0xff] %v7800_v47  ;;  %v7801_v44 = vmax.f32 %v7789_v2, 0.0  ;;  %v11837_v42 = vld [vmem:[%s16629_s7 + $0x274] ss:$8 sps:$4 sm:$0xff]   ;;  %v11835_v17 = vld [vmem:[%s16629_s7 + $0x270] ss:$8 sps:$4 sm:$0xff]  }
 0x810   : > { %v11840_v20 = vld [vmem:[%s16629_s7 + $0x284] ss:$8 sps:$4 sm:$0xff]   ;;  %v11838_v10 = vld [vmem:[%s16629_s7 + $0x280] ss:$8 sps:$4 sm:$0xff]   ;;  %v11843_v16 = vld [vmem:[%s16629_s7 + $0x294] ss:$8 sps:$4 sm:$0xff]  }
 0x811   : > { %7811 = vst [vmem:[#allocation8 + $0x48] sm:$0xff] %v7801_v44  ;;  %9538 = vmatpush1.bf16.msra.mxu0 %v11778_v54  ;;  %v11841_v33 = vld [vmem:[%s16629_s7 + $0x290] ss:$8 sps:$4 sm:$0xff]   ;;  %v11846_v22 = vld [vmem:[%s16629_s7 + $0x2a4] ss:$8 sps:$4 sm:$0xff]  }
 0x812   : > { %9539 = vmatprep.subr.bf16.mxu0 %v11783_v46  ;;  %v11844_v47 = vld [vmem:[%s16629_s7 + $0x2a0] ss:$8 sps:$4 sm:$0xff]   ;;  %v11849_v2 = vld [vmem:[%s16629_s7 + $0x2b4] ss:$8 sps:$4 sm:$0xff]   ;;  %v11847_v38 = vld [vmem:[%s16629_s7 + $0x2b0] ss:$8 sps:$4 sm:$0xff]  }
 0x813   : > { %v11852_v54 = vld [vmem:[%s16629_s7 + $0x2c4] ss:$8 sps:$4 sm:$0xff]   ;;  %v11850_v46 = vld [vmem:[%s16629_s7 + $0x2c0] ss:$8 sps:$4 sm:$0xff]   ;;  %v11855_v44 = vld [vmem:[%s16629_s7 + $0x2d4] ss:$8 sps:$4 sm:$0xff]  }
 0x814   : > { %v11864_v52 = vld [vmem:[%s16629_s7 + $0x304] ss:$8 sps:$4 sm:$0xff]   ;;  %v11862_v0 = vld [vmem:[%s16629_s7 + $0x300] ss:$8 sps:$4 sm:$0xff]   ;;  %v11865_v25 = vld [vmem:[%s16629_s7 + $0x310] ss:$8 sps:$4 sm:$0xff]  }
 0x815   : > { %9540 = vmatpush1.bf16.msra.mxu0 %v11781_v6  ;;  %v11853_v6 = vld [vmem:[%s16629_s7 + $0x2d0] ss:$8 sps:$4 sm:$0xff]   ;;  %v11868_v11 = vld [vmem:[%s16629_s7 + $0x320] ss:$8 sps:$4 sm:$0xff]   ;;  %v11873_v5 = vld [vmem:[%s16629_s7 + $0x334] ss:$8 sps:$4 sm:$0xff]  }
 0x816   : > { %9541 = vmatprep.subr.bf16.mxu0 %v11786_v32  ;;  %v11858_v32 = vld [vmem:[%s16629_s7 + $0x2e4] ss:$8 sps:$4 sm:$0xff]   ;;  %v11871_v4 = vld [vmem:[%s16629_s7 + $0x330] ss:$8 sps:$4 sm:$0xff]   ;;  %v11874_v19 = vld [vmem:[%s16629_s7 + $0x340] ss:$8 sps:$4 sm:$0xff]  }
 0x817   : > { %v11876_v58 = vld [vmem:[%s16629_s7 + $0x344] ss:$8 sps:$4 sm:$0xff]   ;;  %v11877_v36 = vld [vmem:[%s16629_s7 + $0x350] ss:$8 sps:$4 sm:$0xff]   ;;  %v11885_v30 = vld [vmem:[%s16629_s7 + $0x374] ss:$8 sps:$4 sm:$0xff]  }
 0x818   : > { %v11882_v57 = vld [vmem:[%s16629_s7 + $0x364] ss:$8 sps:$4 sm:$0xff]  }
 0x819   : > { %9542 = vmatpush1.bf16.msra.mxu0 %v11784_v34  ;;  %v7843_v34 = vld [vmem:[#allocation8 + $0x1e] sm:$0x1] }
 0x81a   : > { %9543 = vmatprep.subr.bf16.mxu0 %v11789_v15  ;;  %v7844_v15 = vld [vmem:[#allocation8 + $0x1f] sm:$0x1] }
 0x81d   : > { %9544 = vmatpush1.bf16.msra.mxu0 %v11787_v40  ;;  %v7864_v40 = vld [vmem:[#allocation8 + $0x24] sm:$0x1] }
 0x81e   : > { %9545 = vmatprep.subr.bf16.mxu0 %v11792_v35  ;;  %v7865_v35 = vld [vmem:[#allocation8 + $0x25] sm:$0x1] }
 0x821   : > { %9546 = vmatpush1.bf16.msra.mxu0 %v11790_v62  ;;  %v11856_v62 = vld [vmem:[%s16629_s7 + $0x2e0] ss:$8 sps:$4 sm:$0xff]  }
 0x822   : > { %9547 = vmatprep.subr.bf16.mxu0 %v11795_v55  ;;  %v7840_v55 = vld [vmem:[#allocation8 + $0x14] sm:$0x1] }
 0x825   : > { %9548 = vmatpush1.bf16.msra.mxu0 %v11793_v50  ;;  %v7841_v50 = vld [vmem:[#allocation8 + $0x15] sm:$0x1] }
 0x826   : > { %9549 = vmatprep.subr.bf16.mxu0 %v11798_v51  ;;  %v11861_v51 = vld [vmem:[%s16629_s7 + $0x2f4] ss:$8 sps:$4 sm:$0xff]  }
 0x829   : > { %9550 = vmatpush1.bf16.msra.mxu0 %v11796_v48  ;;  %v7845_v48 = vmax.f32 %v7843_v34, %v7844_v15  ;;  %v11912_v34 = vld [vmem:[%s16629_s7 + $0x404] ss:$8 sps:$4 sm:$0xff]  }
 0x82a   : > { %9551 = vmatprep.subr.bf16.mxu0 %v11801_v27  ;;  %v7861_v27 = vld [vmem:[#allocation8 + $0x1a] sm:$0x1] }
 0x82d   : > { %9552 = vmatpush1.bf16.msra.mxu0 %v11799_v7  ;;  %v7862_v7 = vld [vmem:[#allocation8 + $0x1b] sm:$0x1] }
 0x82e   : > { %9553 = vmatprep.subr.bf16.mxu0 %v11804_v13  ;;  %v7866_v13 = vmax.f32 %v7864_v40, %v7865_v35  ;;  %v11910_v40 = vld [vmem:[%s16629_s7 + $0x400] ss:$8 sps:$4 sm:$0xff]  }
 0x831   : > { %9554 = vmatpush1.bf16.msra.mxu0 %v11802_v9  ;;  %v7842_v9 = vmax.f32 %v7840_v55, %v7841_v50  ;;  %v11913_v50 = vld [vmem:[%s16629_s7 + $0x410] ss:$8 sps:$4 sm:$0xff]  }
 0x832   : > { %9555 = vmatprep.subr.bf16.mxu0 %v11807_v23  ;;  %v11859_v23 = vld [vmem:[%s16629_s7 + $0x2f0] ss:$8 sps:$4 sm:$0xff]  }
 0x835   : > { %9556 = vmatpush1.bf16.msra.mxu0 %v11805_v61  ;;  %v7863_v61 = vmax.f32 %v7861_v27, %v7862_v7  ;;  %v11921_v27 = vld [vmem:[%s16629_s7 + $0x434] ss:$8 sps:$4 sm:$0xff]   ;;  %v11919_v7 = vld [vmem:[%s16629_s7 + $0x430] ss:$8 sps:$4 sm:$0xff]  }
 0x836   : > { %9557 = vmatprep.subr.bf16.mxu0 %v11810_v8  ;;  %v7846_v8 = vmax.f32 %v7842_v9, %v7845_v48  ;;  %v11916_v48 = vld [vmem:[%s16629_s7 + $0x420] ss:$8 sps:$4 sm:$0xff]  }
 0x837   : > { %v7867_v21 = vmax.f32 %v7863_v61, %v7866_v13  ;;  %v11924_v13 = vld [vmem:[%s16629_s7 + $0x444] ss:$8 sps:$4 sm:$0xff]   ;;  %v11922_v9 = vld [vmem:[%s16629_s7 + $0x440] ss:$8 sps:$4 sm:$0xff]   ;;  %v11925_v61 = vld [vmem:[%s16629_s7 + $0x450] ss:$8 sps:$4 sm:$0xff]  }
 0x838   : > { %v7928_v37 = vpack.c.bf16 %v7846_v8, %v7846_v8  ;;  %v11930_v8 = vld [vmem:[%s16629_s7 + $0x464] ss:$8 sps:$4 sm:$0xff]  }
 0x839   : > { %9558 = vmatpush1.bf16.msra.mxu0 %v11808_v60  ;;  %v11867_v60 = vld [vmem:[%s16629_s7 + $0x314] ss:$8 sps:$4 sm:$0xff]   ;;  %v7931_v41 = vpack.c.bf16 %v7867_v21, %v7867_v21 }
 0x83a   : > { %9559 = vmatprep.subr.bf16.mxu0 %v11813_v49  ;;  %v11870_v49 = vld [vmem:[%s16629_s7 + $0x324] ss:$8 sps:$4 sm:$0xff]   ;;  %v11933_v21 = vld [vmem:[%s16629_s7 + $0x474] ss:$8 sps:$4 sm:$0xff]  }
 0x83d   : > { %9560 = vmatpush1.bf16.msra.mxu0 %v11811_v43  ;;  %v11879_v43 = vld [vmem:[%s16629_s7 + $0x354] ss:$8 sps:$4 sm:$0xff]  }
 0x83e   : > { %9570 = vmatprep.subr.bf16.mxu0 %v11816_v63  ;;  %v11880_v63 = vld [vmem:[%s16629_s7 + $0x360] ss:$8 sps:$4 sm:$0xff]  }
 0x840   : > { %9562 = vmatmul.mubr.bf16.vlgmr.msra.gmra.mrb[116].mxu0 %v7926_v53  ;;  %v11888_v53 = vld [vmem:[%s16629_s7 + $0x384] ss:$8 sps:$4 sm:$0xff]  }
 0x841   : > { %9571 = vmatpush1.bf16.msra.mxu0 %v11814_v59  ;;  %9602 = vmatprep.mubr.bf16.mxu0 %v7929_v18  ;;  %v11883_v59 = vld [vmem:[%s16629_s7 + $0x370] ss:$8 sps:$4 sm:$0xff]   ;;  %v11891_v18 = vld [vmem:[%s16629_s7 + $0x394] ss:$8 sps:$4 sm:$0xff]  }
 0x842   : > { %9572 = vmatprep.subr.bf16.mxu0 %v11819_v1  ;;  %v11886_v1 = vld [vmem:[%s16629_s7 + $0x380] ss:$8 sps:$4 sm:$0xff]  }
 0x845   : > { %9573 = vmatpush1.bf16.msra.mxu0 %v11817_v29  ;;  %v11889_v29 = vld [vmem:[%s16629_s7 + $0x390] ss:$8 sps:$4 sm:$0xff]  }
 0x846   : > { %9574 = vmatprep.subr.bf16.mxu0 %v11822_v45  ;;  %v11894_v45 = vld [vmem:[%s16629_s7 + $0x3a4] ss:$8 sps:$4 sm:$0xff]  }
 0x849   : > { %9575 = vmatpush1.bf16.msra.mxu0 %v11820_v24  ;;  %v11892_v24 = vld [vmem:[%s16629_s7 + $0x3a0] ss:$8 sps:$4 sm:$0xff]  }
 0x84a   : > { %9576 = vmatprep.subr.bf16.mxu0 %v11825_v26  ;;  %v11897_v26 = vld [vmem:[%s16629_s7 + $0x3b4] ss:$8 sps:$4 sm:$0xff]  }
 0x84d   : > { %9577 = vmatpush1.bf16.msra.mxu0 %v11823_v39  ;;  %v11895_v39 = vld [vmem:[%s16629_s7 + $0x3b0] ss:$8 sps:$4 sm:$0xff]  }
 0x84e   : > { %9578 = vmatprep.subr.bf16.mxu0 %v11828_v56  ;;  %v11900_v56 = vld [vmem:[%s16629_s7 + $0x3c4] ss:$8 sps:$4 sm:$0xff]  }
 0x851   : > { %9579 = vmatpush1.bf16.msra.mxu0 %v11826_v31  ;;  %v11898_v31 = vld [vmem:[%s16629_s7 + $0x3c0] ss:$8 sps:$4 sm:$0xff]  }
 0x852   : > { %9580 = vmatprep.subr.bf16.mxu0 %v11831_v12  ;;  %v11903_v12 = vld [vmem:[%s16629_s7 + $0x3d4] ss:$8 sps:$4 sm:$0xff]  }
 0x855   : > { %9581 = vmatpush1.bf16.msra.mxu0 %v11829_v14  ;;  %v11901_v14 = vld [vmem:[%s16629_s7 + $0x3d0] ss:$8 sps:$4 sm:$0xff]  }
 0x856   : > { %9582 = vmatprep.subr.bf16.mxu0 %v11834_v28  ;;  %v11906_v28 = vld [vmem:[%s16629_s7 + $0x3e4] ss:$8 sps:$4 sm:$0xff]  }
 0x859   : > { %9583 = vmatpush1.bf16.msra.mxu0 %v11832_v3  ;;  %v7857_v3 = vld [vmem:[#allocation8 + $0x22] sm:$0x1] }
 0x85a   : > { %9584 = vmatprep.subr.bf16.mxu0 %v11837_v42  ;;  %v7858_v42 = vld [vmem:[#allocation8 + $0x23] sm:$0x1] }
 0x85d   : > { %9585 = vmatpush1.bf16.msra.mxu0 %v11835_v17  ;;  %v7878_v17 = vld [vmem:[#allocation8 + $0x34] sm:$0x1] }
 0x85e   : > { %9586 = vmatprep.subr.bf16.mxu0 %v11840_v20  ;;  %v7879_v20 = vld [vmem:[#allocation8 + $0x35] sm:$0x1] }
 0x861   : > { %9587 = vmatpush1.bf16.msra.mxu0 %v11838_v10  ;;  %v11904_v10 = vld [vmem:[%s16629_s7 + $0x3e0] ss:$8 sps:$4 sm:$0xff]  }
 0x862   : > { %9588 = vmatprep.subr.bf16.mxu0 %v11843_v16  ;;  %v7854_v16 = vld [vmem:[#allocation8 + $0x18] sm:$0x1] }
 0x865   : > { %9589 = vmatpush1.bf16.msra.mxu0 %v11841_v33  ;;  %v7855_v33 = vld [vmem:[#allocation8 + $0x19] sm:$0x1] }
 0x866   : > { %9590 = vmatprep.subr.bf16.mxu0 %v11846_v22  ;;  %v11909_v22 = vld [vmem:[%s16629_s7 + $0x3f4] ss:$8 sps:$4 sm:$0xff]  }
 0x869   : > { %9591 = vmatpush1.bf16.msra.mxu0 %v11844_v47  ;;  %v7859_v47 = vmax.f32 %v7857_v3, %v7858_v42  ;;  %v11960_v3 = vld [vmem:[%s16629_s7 + $0x504] ss:$8 sps:$4 sm:$0xff]  }
 0x86a   : > { %9592 = vmatprep.subr.bf16.mxu0 %v11849_v2  ;;  %v7875_v2 = vld [vmem:[#allocation8 + $0x2a] sm:$0x1] }
 0x86d   : > { %9593 = vmatpush1.bf16.msra.mxu0 %v11847_v38  ;;  %v7876_v38 = vld [vmem:[#allocation8 + $0x2b] sm:$0x1] }
 0x86e   : > { %9594 = vmatprep.subr.bf16.mxu0 %v11852_v54  ;;  %v7880_v54 = vmax.f32 %v7878_v17, %v7879_v20  ;;  %v11958_v17 = vld [vmem:[%s16629_s7 + $0x500] ss:$8 sps:$4 sm:$0xff]  }
 0x871   : > { %9595 = vmatpush1.bf16.msra.mxu0 %v11850_v46  ;;  %v7856_v46 = vmax.f32 %v7854_v16, %v7855_v33  ;;  %v11961_v33 = vld [vmem:[%s16629_s7 + $0x510] ss:$8 sps:$4 sm:$0xff]  }
 0x872   : > { %9596 = vmatprep.subr.bf16.mxu0 %v11855_v44  ;;  %v11907_v44 = vld [vmem:[%s16629_s7 + $0x3f0] ss:$8 sps:$4 sm:$0xff]  }
 0x875   : > { %9597 = vmatpush1.bf16.msra.mxu0 %v11853_v6  ;;  %v7877_v6 = vmax.f32 %v7875_v2, %v7876_v38  ;;  %v11969_v2 = vld [vmem:[%s16629_s7 + $0x534] ss:$8 sps:$4 sm:$0xff]   ;;  %v11967_v38 = vld [vmem:[%s16629_s7 + $0x530] ss:$8 sps:$4 sm:$0xff]  }
 0x876   : > { %9598 = vmatprep.subr.bf16.mxu0 %v11858_v32  ;;  %v7860_v32 = vmax.f32 %v7856_v46, %v7859_v47  ;;  %v11964_v47 = vld [vmem:[%s16629_s7 + $0x520] ss:$8 sps:$4 sm:$0xff]  }
 0x877   : > { %v7881_v15 = vmax.f32 %v7877_v6, %v7880_v54  ;;  %v11972_v54 = vld [vmem:[%s16629_s7 + $0x544] ss:$8 sps:$4 sm:$0xff]   ;;  %v11970_v46 = vld [vmem:[%s16629_s7 + $0x540] ss:$8 sps:$4 sm:$0xff]   ;;  %v11973_v6 = vld [vmem:[%s16629_s7 + $0x550] ss:$8 sps:$4 sm:$0xff]  }
 0x878   : > { %v7930_v35 = vpack.c.bf16 %v7860_v32, %v7860_v32  ;;  %v11978_v32 = vld [vmem:[%s16629_s7 + $0x564] ss:$8 sps:$4 sm:$0xff]  }
 0x879   : > { %9599 = vmatpush1.bf16.msra.mxu0 %v11856_v62  ;;  %v11915_v62 = vld [vmem:[%s16629_s7 + $0x414] ss:$8 sps:$4 sm:$0xff]   ;;  %v7933_v55 = vpack.c.bf16 %v7881_v15, %v7881_v15 }
 0x87a   : > { %9600 = vmatprep.subr.bf16.mxu0 %v11861_v51  ;;  %v11918_v51 = vld [vmem:[%s16629_s7 + $0x424] ss:$8 sps:$4 sm:$0xff]   ;;  %v11981_v15 = vld [vmem:[%s16629_s7 + $0x574] ss:$8 sps:$4 sm:$0xff]  }
 0x87d   : > { %9601 = vmatpush1.bf16.msra.mxu0 %v11859_v23  ;;  %v11927_v23 = vld [vmem:[%s16629_s7 + $0x454] ss:$8 sps:$4 sm:$0xff]  }
 0x87e   : > { %9611 = vmatprep.subr.bf16.mxu0 %v11864_v52  ;;  %v11928_v52 = vld [vmem:[%s16629_s7 + $0x460] ss:$8 sps:$4 sm:$0xff]  }
 0x880   : > { %9603 = vmatmul.mubr.bf16.vlgmr.msra.gmra.mrb[116].mxu0 %v7928_v37  ;;  %v11936_v37 = vld [vmem:[%s16629_s7 + $0x484] ss:$8 sps:$4 sm:$0xff]  }
 0x881   : > { %9612 = vmatpush1.bf16.msra.mxu0 %v11862_v0  ;;  %9643 = vmatprep.mubr.bf16.mxu0 %v7931_v41  ;;  %v11931_v0 = vld [vmem:[%s16629_s7 + $0x470] ss:$8 sps:$4 sm:$0xff]   ;;  %v11939_v41 = vld [vmem:[%s16629_s7 + $0x494] ss:$8 sps:$4 sm:$0xff]  }
 0x882   : > { %9613 = vmatprep.subr.bf16.mxu0 %v11867_v60  ;;  %v11934_v60 = vld [vmem:[%s16629_s7 + $0x480] ss:$8 sps:$4 sm:$0xff]  }
 0x885   : > { %9614 = vmatpush1.bf16.msra.mxu0 %v11865_v25  ;;  %v11937_v25 = vld [vmem:[%s16629_s7 + $0x490] ss:$8 sps:$4 sm:$0xff]  }
 0x886   : > { %9615 = vmatprep.subr.bf16.mxu0 %v11870_v49  ;;  %v11942_v49 = vld [vmem:[%s16629_s7 + $0x4a4] ss:$8 sps:$4 sm:$0xff]  }
 0x889   : > { %9616 = vmatpush1.bf16.msra.mxu0 %v11868_v11  ;;  %v11940_v11 = vld [vmem:[%s16629_s7 + $0x4a0] ss:$8 sps:$4 sm:$0xff]  }
 0x88a   : > { %9617 = vmatprep.subr.bf16.mxu0 %v11873_v5  ;;  %v11945_v5 = vld [vmem:[%s16629_s7 + $0x4b4] ss:$8 sps:$4 sm:$0xff]  }
 0x88d   : > { %9618 = vmatpush1.bf16.msra.mxu0 %v11871_v4  ;;  %v11943_v4 = vld [vmem:[%s16629_s7 + $0x4b0] ss:$8 sps:$4 sm:$0xff]  }
 0x88e   : > { %9619 = vmatprep.subr.bf16.mxu0 %v11876_v58  ;;  %v11948_v58 = vld [vmem:[%s16629_s7 + $0x4c4] ss:$8 sps:$4 sm:$0xff]  }
 0x891   : > { %9620 = vmatpush1.bf16.msra.mxu0 %v11874_v19  ;;  %v11946_v19 = vld [vmem:[%s16629_s7 + $0x4c0] ss:$8 sps:$4 sm:$0xff]  }
 0x892   : > { %9621 = vmatprep.subr.bf16.mxu0 %v11879_v43  ;;  %v11951_v43 = vld [vmem:[%s16629_s7 + $0x4d4] ss:$8 sps:$4 sm:$0xff]  }
 0x895   : > { %9622 = vmatpush1.bf16.msra.mxu0 %v11877_v36  ;;  %v11949_v36 = vld [vmem:[%s16629_s7 + $0x4d0] ss:$8 sps:$4 sm:$0xff]  }
 0x896   : > { %9623 = vmatprep.subr.bf16.mxu0 %v11882_v57  ;;  %v11954_v57 = vld [vmem:[%s16629_s7 + $0x4e4] ss:$8 sps:$4 sm:$0xff]  }
 0x899   : > { %9624 = vmatpush1.bf16.msra.mxu0 %v11880_v63  ;;  %v7871_v63 = vld [vmem:[#allocation8 + $0x32] sm:$0x1] }
 0x89a   : > { %9625 = vmatprep.subr.bf16.mxu0 %v11885_v30  ;;  %v7872_v30 = vld [vmem:[#allocation8 + $0x33] sm:$0x1] }
 0x89d   : > { %9626 = vmatpush1.bf16.msra.mxu0 %v11883_v59  ;;  %v7892_v59 = vld [vmem:[#allocation8 + $0x38] sm:$0x1] }
 0x89e   : > { %9627 = vmatprep.subr.bf16.mxu0 %v11888_v53  ;;  %v7893_v53 = vld [vmem:[#allocation8 + $0x39] sm:$0x1] }
 0x8a1   : > { %9628 = vmatpush1.bf16.msra.mxu0 %v11886_v1  ;;  %v11952_v1 = vld [vmem:[%s16629_s7 + $0x4e0] ss:$8 sps:$4 sm:$0xff]  }
 0x8a2   : > { %9629 = vmatprep.subr.bf16.mxu0 %v11891_v18  ;;  %v7868_v18 = vld [vmem:[#allocation8 + $0x28] sm:$0x1] }
 0x8a5   : > { %9630 = vmatpush1.bf16.msra.mxu0 %v11889_v29  ;;  %v7869_v29 = vld [vmem:[#allocation8 + $0x29] sm:$0x1] }
 0x8a6   : > { %9631 = vmatprep.subr.bf16.mxu0 %v11894_v45  ;;  %v11957_v45 = vld [vmem:[%s16629_s7 + $0x4f4] ss:$8 sps:$4 sm:$0xff]  }
 0x8a9   : > { %9632 = vmatpush1.bf16.msra.mxu0 %v11892_v24  ;;  %v7873_v24 = vmax.f32 %v7871_v63, %v7872_v30  ;;  %v12008_v63 = vld [vmem:[%s16629_s7 + $0x604] ss:$8 sps:$4 sm:$0xff]  }
 0x8aa   : > { %9633 = vmatprep.subr.bf16.mxu0 %v11897_v26  ;;  %v7889_v26 = vld [vmem:[#allocation8 + $0x2e] sm:$0x1] }
 0x8ad   : > { %9634 = vmatpush1.bf16.msra.mxu0 %v11895_v39  ;;  %v7890_v39 = vld [vmem:[#allocation8 + $0x2f] sm:$0x1] }
 0x8ae   : > { %9635 = vmatprep.subr.bf16.mxu0 %v11900_v56  ;;  %v7894_v56 = vmax.f32 %v7892_v59, %v7893_v53  ;;  %v12006_v59 = vld [vmem:[%s16629_s7 + $0x600] ss:$8 sps:$4 sm:$0xff]  }
 0x8b1   : > { %9636 = vmatpush1.bf16.msra.mxu0 %v11898_v31  ;;  %v7870_v31 = vmax.f32 %v7868_v18, %v7869_v29  ;;  %v12102_v29 = vld [vmem:[%s16631_s9 + $0x40] sm:$0xff]  }
 0x8b2   : > { %9637 = vmatprep.subr.bf16.mxu0 %v11903_v12  ;;  %v11955_v12 = vld [vmem:[%s16629_s7 + $0x4f0] ss:$8 sps:$4 sm:$0xff]   ;;  %10913 = vmatprep.subr.bf16.mxu1 %v12102_v29 }
 0x8b3   : > { %v12057_v29 = vld [vmem:[%s16629_s7 + $0x710] ss:$8 sps:$4 sm:$0xff]  }
 0x8b5   : > { %9638 = vmatpush1.bf16.msra.mxu0 %v11901_v14  ;;  %v7891_v14 = vmax.f32 %v7889_v26, %v7890_v39  ;;  %v12009_v26 = vld [vmem:[%s16629_s7 + $0x610] ss:$8 sps:$4 sm:$0xff]   ;;  %v12014_v39 = vld [vmem:[%s16629_s7 + $0x624] ss:$8 sps:$4 sm:$0xff]  }
 0x8b6   : > { %9639 = vmatprep.subr.bf16.mxu0 %v11906_v28  ;;  %v7874_v28 = vmax.f32 %v7870_v31, %v7873_v24  ;;  %v12104_v24 = vld [vmem:[%s16631_s9 + $0x48] sm:$0xff]   ;;  %v12106_v31 = vld [vmem:[%s16631_s9 + $0x50] sm:$0xff]  }
 0x8b7   : > { %v7895_v42 = vmax.f32 %v7891_v14, %v7894_v56  ;;  %v12105_v56 = vld [vmem:[%s16631_s9 + $0x8] sm:$0xff]   ;;  %v12017_v14 = vld [vmem:[%s16629_s7 + $0x634] ss:$8 sps:$4 sm:$0xff]  }
 0x8b8   : > { %v7932_v20 = vpack.c.bf16 %v7874_v28, %v7874_v28  ;;  %v12107_v28 = vld [vmem:[%s16631_s9 + $0x10] sm:$0xff]  }
 0x8b9   : > { %9640 = vmatpush1.bf16.msra.mxu0 %v11904_v10  ;;  %v11963_v10 = vld [vmem:[%s16629_s7 + $0x514] ss:$8 sps:$4 sm:$0xff]   ;;  %v7935_v16 = vpack.c.bf16 %v7895_v42, %v7895_v42  ;;  %v12015_v42 = vld [vmem:[%s16629_s7 + $0x630] ss:$8 sps:$4 sm:$0xff]  }
 0x8ba   : > { %9641 = vmatprep.subr.bf16.mxu0 %v11909_v22  ;;  %v11966_v22 = vld [vmem:[%s16629_s7 + $0x524] ss:$8 sps:$4 sm:$0xff]  }
 0x8bd   : > { %9642 = vmatpush1.bf16.msra.mxu0 %v11907_v44  ;;  %v11975_v44 = vld [vmem:[%s16629_s7 + $0x554] ss:$8 sps:$4 sm:$0xff]  }
 0x8be   : > { %9652 = vmatprep.subr.bf16.mxu0 %v11912_v34  ;;  %v11976_v34 = vld [vmem:[%s16629_s7 + $0x560] ss:$8 sps:$4 sm:$0xff]  }
 0x8c0   : > { %9644 = vmatmul.mubr.bf16.vlgmr.msra.gmra.mrb[116].mxu0 %v7930_v35  ;;  %v11984_v35 = vld [vmem:[%s16629_s7 + $0x584] ss:$8 sps:$4 sm:$0xff]  }
 0x8c1   : > { %9653 = vmatpush1.bf16.msra.mxu0 %v11910_v40  ;;  %9684 = vmatprep.mubr.bf16.mxu0 %v7933_v55  ;;  %v11979_v40 = vld [vmem:[%s16629_s7 + $0x570] ss:$8 sps:$4 sm:$0xff]   ;;  %v11987_v55 = vld [vmem:[%s16629_s7 + $0x594] ss:$8 sps:$4 sm:$0xff]  }
 0x8c2   : > { %9654 = vmatprep.subr.bf16.mxu0 %v11915_v62  ;;  %v11982_v62 = vld [vmem:[%s16629_s7 + $0x580] ss:$8 sps:$4 sm:$0xff]  }
 0x8c5   : > { %9655 = vmatpush1.bf16.msra.mxu0 %v11913_v50  ;;  %v11985_v50 = vld [vmem:[%s16629_s7 + $0x590] ss:$8 sps:$4 sm:$0xff]  }
 0x8c6   : > { %9656 = vmatprep.subr.bf16.mxu0 %v11918_v51  ;;  %v11990_v51 = vld [vmem:[%s16629_s7 + $0x5a4] ss:$8 sps:$4 sm:$0xff]  }
 0x8c9   : > { %9657 = vmatpush1.bf16.msra.mxu0 %v11916_v48  ;;  %v11988_v48 = vld [vmem:[%s16629_s7 + $0x5a0] ss:$8 sps:$4 sm:$0xff]  }
 0x8ca   : > { %9658 = vmatprep.subr.bf16.mxu0 %v11921_v27  ;;  %v11993_v27 = vld [vmem:[%s16629_s7 + $0x5b4] ss:$8 sps:$4 sm:$0xff]  }
 0x8cd   : > { %9659 = vmatpush1.bf16.msra.mxu0 %v11919_v7  ;;  %v11991_v7 = vld [vmem:[%s16629_s7 + $0x5b0] ss:$8 sps:$4 sm:$0xff]  }
 0x8ce   : > { %9660 = vmatprep.subr.bf16.mxu0 %v11924_v13  ;;  %v11996_v13 = vld [vmem:[%s16629_s7 + $0x5c4] ss:$8 sps:$4 sm:$0xff]  }
 0x8d1   : > { %9661 = vmatpush1.bf16.msra.mxu0 %v11922_v9  ;;  %v11994_v9 = vld [vmem:[%s16629_s7 + $0x5c0] ss:$8 sps:$4 sm:$0xff]  }
 0x8d2   : > { %9662 = vmatprep.subr.bf16.mxu0 %v11927_v23  ;;  %v11999_v23 = vld [vmem:[%s16629_s7 + $0x5d4] ss:$8 sps:$4 sm:$0xff]  }
 0x8d5   : > { %9663 = vmatpush1.bf16.msra.mxu0 %v11925_v61  ;;  %v11997_v61 = vld [vmem:[%s16629_s7 + $0x5d0] ss:$8 sps:$4 sm:$0xff]  }
 0x8d6   : > { %9664 = vmatprep.subr.bf16.mxu0 %v11930_v8  ;;  %v12002_v8 = vld [vmem:[%s16629_s7 + $0x5e4] ss:$8 sps:$4 sm:$0xff]  }
 0x8d9   : > { %9665 = vmatpush1.bf16.msra.mxu0 %v11928_v52  ;;  %v7885_v52 = vld [vmem:[#allocation8 + $0x36] sm:$0x1] }
 0x8da   : > { %9666 = vmatprep.subr.bf16.mxu0 %v11933_v21  ;;  %v7886_v21 = vld [vmem:[#allocation8 + $0x37] sm:$0x1] }
 0x8dd   : > { %9667 = vmatpush1.bf16.msra.mxu0 %v11931_v0  ;;  %v7906_v0 = vld [vmem:[#allocation8 + $0x48] sm:$0x1] }
 0x8de   : > { %9668 = vmatprep.subr.bf16.mxu0 %v11936_v37  ;;  %v7907_v37 = vld [vmem:[#allocation8 + $0x49] sm:$0x1] }
 0x8e1   : > { %9669 = vmatpush1.bf16.msra.mxu0 %v11934_v60  ;;  %v12000_v60 = vld [vmem:[%s16629_s7 + $0x5e0] ss:$8 sps:$4 sm:$0xff]  }
 0x8e2   : > { %9670 = vmatprep.subr.bf16.mxu0 %v11939_v41  ;;  %v7882_v41 = vld [vmem:[#allocation8 + $0x2c] sm:$0x1] }
 0x8e5   : > { %9671 = vmatpush1.bf16.msra.mxu0 %v11937_v25  ;;  %v7883_v25 = vld [vmem:[#allocation8 + $0x2d] sm:$0x1] }
 0x8e6   : > { %9672 = vmatprep.subr.bf16.mxu0 %v11942_v49  ;;  %v12005_v49 = vld [vmem:[%s16629_s7 + $0x5f4] ss:$8 sps:$4 sm:$0xff]  }
 0x8e9   : > { %9673 = vmatpush1.bf16.msra.mxu0 %v11940_v11  ;;  %v7887_v11 = vmax.f32 %v7885_v52, %v7886_v21  ;;  %v7899_v52 = vld [vmem:[#allocation8 + $0x46] sm:$0x1]  ;;  %v7900_v21 = vld [vmem:[#allocation8 + $0x47] sm:$0x1] }
 0x8ea   : > { %9674 = vmatprep.subr.bf16.mxu0 %v11945_v5  ;;  %v7903_v5 = vld [vmem:[#allocation8 + $0x3e] sm:$0x1] }
 0x8ed   : > { %9675 = vmatpush1.bf16.msra.mxu0 %v11943_v4  ;;  %v7904_v4 = vld [vmem:[#allocation8 + $0x3f] sm:$0x1] }
 0x8ee   : > { %9676 = vmatprep.subr.bf16.mxu0 %v11948_v58  ;;  %v7908_v58 = vmax.f32 %v7906_v0, %v7907_v37  ;;  %v7920_v0 = vld [vmem:[#allocation8 + $0x4c] sm:$0x1]  ;;  %v7921_v37 = vld [vmem:[#allocation8 + $0x4d] sm:$0x1] }
 0x8f1   : > { %9677 = vmatpush1.bf16.msra.mxu0 %v11946_v19  ;;  %v7884_v19 = vmax.f32 %v7882_v41, %v7883_v25  ;;  %v7896_v41 = vld [vmem:[#allocation8 + $0x3c] sm:$0x1]  ;;  %v7897_v25 = vld [vmem:[#allocation8 + $0x3d] sm:$0x1] }
 0x8f2   : > { %9678 = vmatprep.subr.bf16.mxu0 %v11951_v43  ;;  %v12003_v43 = vld [vmem:[%s16629_s7 + $0x5f0] ss:$8 sps:$4 sm:$0xff]  }
 0x8f5   : > { %9679 = vmatpush1.bf16.msra.mxu0 %v11949_v36  ;;  %v7905_v36 = vmax.f32 %v7903_v5, %v7904_v4  ;;  %v7917_v5 = vld [vmem:[#allocation8 + $0x42] sm:$0x1]  ;;  %v7918_v4 = vld [vmem:[#allocation8 + $0x43] sm:$0x1] }
 0x8f6   : > { %9680 = vmatprep.subr.bf16.mxu0 %v11954_v57  ;;  %v7888_v57 = vmax.f32 %v7884_v19, %v7887_v11  ;;  %v7901_v11 = vmax.f32 %v7899_v52, %v7900_v21  ;;  %v7898_v19 = vmax.f32 %v7896_v41, %v7897_v25 }
 0x8f7   : > { %v7909_v30 = vmax.f32 %v7905_v36, %v7908_v58  ;;  %v7922_v58 = vmax.f32 %v7920_v0, %v7921_v37  ;;  %v7919_v36 = vmax.f32 %v7917_v5, %v7918_v4 }
 0x8f8   : > { %v7934_v53 = vpack.c.bf16 %v7888_v57, %v7888_v57  ;;  %v7902_v57 = vmax.f32 %v7898_v19, %v7901_v11 }
 0x8f9   : > { %9681 = vmatpush1.bf16.msra.mxu0 %v11952_v1  ;;  %v12011_v1 = vld [vmem:[%s16629_s7 + $0x614] ss:$8 sps:$4 sm:$0xff]   ;;  %v7937_v18 = vpack.c.bf16 %v7909_v30, %v7909_v30  ;;  %v7923_v30 = vmax.f32 %v7919_v36, %v7922_v58 }
 0x8fa   : > { %9682 = vmatprep.subr.bf16.mxu0 %v11957_v45  ;;  %v12103_v45 = vld [vmem:[%s16631_s9] sm:$0xff]  }
 0x8fb   : > { %10914 = vmatpush3.bf16.msra.mxu1 %v12103_v45  ;;  %v12062_v45 = vld [vmem:[%s16629_s7 + $0x724] ss:$8 sps:$4 sm:$0xff]  }
 0x8fc   : > { %10915 = vmatprep.subr.bf16.mxu1 %v12104_v24  ;;  %v12060_v24 = vld [vmem:[%s16629_s7 + $0x720] ss:$8 sps:$4 sm:$0xff]  }
 0x8fd   : > { %9683 = vmatpush1.bf16.msra.mxu0 %v11955_v12  ;;  %v12012_v12 = vld [vmem:[%s16629_s7 + $0x620] ss:$8 sps:$4 sm:$0xff]  }
 0x8fe   : > { %9693 = vmatprep.subr.bf16.mxu0 %v11960_v3  ;;  %v12108_v3 = vld [vmem:[%s16631_s9 + $0x58] sm:$0xff]  }
 0x8ff   : > { %10916 = vmatpush3.bf16.msra.mxu1 %v12105_v56  ;;  %v12068_v56 = vld [vmem:[%s16629_s7 + $0x744] ss:$8 sps:$4 sm:$0xff]  }
 0x900   : > { %9685 = vmatmul.mubr.bf16.vlgmr.msra.gmra.mrb[116].mxu0 %v7932_v20  ;;  %10917 = vmatprep.subr.bf16.mxu1 %v12106_v31  ;;  %v12109_v20 = vld [vmem:[%s16631_s9 + $0x18] sm:$0xff]   ;;  %v12066_v31 = vld [vmem:[%s16629_s7 + $0x740] ss:$8 sps:$4 sm:$0xff]  }
 0x901   : > { %9694 = vmatpush1.bf16.msra.mxu0 %v11958_v17  ;;  %9725 = vmatprep.mubr.bf16.mxu0 %v7935_v16  ;;  %v12020_v17 = vld [vmem:[%s16629_s7 + $0x644] ss:$8 sps:$4 sm:$0xff]   ;;  %v12018_v16 = vld [vmem:[%s16629_s7 + $0x640] ss:$8 sps:$4 sm:$0xff]  }
 0x902   : > { %9695 = vmatprep.subr.bf16.mxu0 %v11963_v10  ;;  %v12110_v10 = vld [vmem:[%s16631_s9 + $0x60] sm:$0xff]  }
 0x903   : > { %10918 = vmatpush3.bf16.msra.mxu1 %v12107_v28  ;;  %v12074_v28 = vld [vmem:[%s16629_s7 + $0x764] ss:$8 sps:$4 sm:$0xff]  }
 0x904   : > { %10919 = vmatprep.subr.bf16.mxu1 %v12108_v3  ;;  %v12072_v3 = vld [vmem:[%s16629_s7 + $0x760] ss:$8 sps:$4 sm:$0xff]  }
 0x905   : > { %9696 = vmatpush1.bf16.msra.mxu0 %v11961_v33  ;;  %v12023_v33 = vld [vmem:[%s16629_s7 + $0x654] ss:$8 sps:$4 sm:$0xff]  }
 0x906   : > { %9697 = vmatprep.subr.bf16.mxu0 %v11966_v22  ;;  %v12111_v22 = vld [vmem:[%s16631_s9 + $0x20] sm:$0xff]  }
 0x907   : > { %10920 = vmatpush3.bf16.msra.mxu1 %v12109_v20  ;;  %v12080_v20 = vld [vmem:[%s16629_s7 + $0x784] ss:$8 sps:$4 sm:$0xff]  }
 0x908   : > { %10921 = vmatprep.subr.bf16.mxu1 %v12110_v10  ;;  %v12078_v10 = vld [vmem:[%s16629_s7 + $0x780] ss:$8 sps:$4 sm:$0xff]  }
 0x909   : > { %9698 = vmatpush1.bf16.msra.mxu0 %v11964_v47  ;;  %v12112_v47 = vld [vmem:[%s16631_s9 + $0x68] sm:$0xff]  }
 0x90a   : > { %9699 = vmatprep.subr.bf16.mxu0 %v11969_v2  ;;  %v12021_v2 = vld [vmem:[%s16629_s7 + $0x650] ss:$8 sps:$4 sm:$0xff]  }
 0x90b   : > { %10922 = vmatpush3.bf16.msra.mxu1 %v12111_v22  ;;  %v12086_v22 = vld [vmem:[%s16629_s7 + $0x7a4] ss:$8 sps:$4 sm:$0xff]  }
 0x90c   : > { %10923 = vmatprep.subr.bf16.mxu1 %v12112_v47  ;;  %v12084_v47 = vld [vmem:[%s16629_s7 + $0x7a0] ss:$8 sps:$4 sm:$0xff]  }
 0x90d   : > { %9700 = vmatpush1.bf16.msra.mxu0 %v11967_v38  ;;  %v12026_v38 = vld [vmem:[%s16629_s7 + $0x664] ss:$8 sps:$4 sm:$0xff]  }
 0x90e   : > { %9701 = vmatprep.subr.bf16.mxu0 %v11972_v54  ;;  %v12113_v54 = vld [vmem:[%s16631_s9 + $0x28] sm:$0xff]  }
 0x90f   : > { %10924 = vmatpush3.bf16.msra.mxu1 %v12113_v54  ;;  %v12092_v54 = vld [vmem:[%s16629_s7 + $0x7c4] ss:$8 sps:$4 sm:$0xff]  }
 0x911   : > { %9702 = vmatpush1.bf16.msra.mxu0 %v11970_v46  ;;  %v12114_v46 = vld [vmem:[%s16631_s9 + $0x70] sm:$0xff]  }
 0x912   : > { %9703 = vmatprep.subr.bf16.mxu0 %v11975_v44  ;;  %v12024_v44 = vld [vmem:[%s16629_s7 + $0x660] ss:$8 sps:$4 sm:$0xff]   ;;  %10925 = vmatprep.subr.bf16.mxu1 %v12114_v46 }
 0x913   : > { %v12090_v46 = vld [vmem:[%s16629_s7 + $0x7c0] ss:$8 sps:$4 sm:$0xff]  }
 0x915   : > { %9704 = vmatpush1.bf16.msra.mxu0 %v11973_v6  ;;  %v12029_v6 = vld [vmem:[%s16629_s7 + $0x674] ss:$8 sps:$4 sm:$0xff]  }
 0x916   : > { %9705 = vmatprep.subr.bf16.mxu0 %v11978_v32  ;;  %v12115_v32 = vld [vmem:[%s16631_s9 + $0x30] sm:$0xff]  }
 0x917   : > { %10926 = vmatpush3.bf16.msra.mxu1 %v12115_v32  ;;  %v12098_v32 = vld [vmem:[%s16629_s7 + $0x7e4] ss:$8 sps:$4 sm:$0xff]  }
 0x919   : > { %9706 = vmatpush1.bf16.msra.mxu0 %v11976_v34  ;;  %v12116_v34 = vld [vmem:[%s16631_s9 + $0x78] sm:$0xff]  }
 0x91a   : > { %9707 = vmatprep.subr.bf16.mxu0 %v11981_v15  ;;  %v12027_v15 = vld [vmem:[%s16629_s7 + $0x670] ss:$8 sps:$4 sm:$0xff]   ;;  %10927 = vmatprep.subr.bf16.mxu1 %v12116_v34  ;;  %v7913_v34 = vld [vmem:[#allocation8 + $0x4a] sm:$0x1] }
 0x91d   : > { %9708 = vmatpush1.bf16.msra.mxu0 %v11979_v40  ;;  %v12032_v40 = vld [vmem:[%s16629_s7 + $0x684] ss:$8 sps:$4 sm:$0xff]  }
 0x91e   : > { %9709 = vmatprep.subr.bf16.mxu0 %v11984_v35  ;;  %v12117_v35 = vld [vmem:[%s16631_s9 + $0x38] sm:$0xff]  }
 0x91f   : > { %10928 = vmatpush3.bf16.msra.mxu1 %v12117_v35  ;;  %v7910_v35 = vld [vmem:[#allocation8 + $0x40] sm:$0x1] }
 0x921   : > { %9710 = vmatpush1.bf16.msra.mxu0 %v11982_v62  ;;  %v12030_v62 = vld [vmem:[%s16629_s7 + $0x680] ss:$8 sps:$4 sm:$0xff]  }
 0x922   : > { %9711 = vmatprep.subr.bf16.mxu0 %v11987_v55  ;;  %v12035_v55 = vld [vmem:[%s16629_s7 + $0x694] ss:$8 sps:$4 sm:$0xff]  }
 0x925   : > { %9712 = vmatpush1.bf16.msra.mxu0 %v11985_v50  ;;  %v12033_v50 = vld [vmem:[%s16629_s7 + $0x690] ss:$8 sps:$4 sm:$0xff]  }
 0x926   : > { %9713 = vmatprep.subr.bf16.mxu0 %v11990_v51  ;;  %v12038_v51 = vld [vmem:[%s16629_s7 + $0x6a4] ss:$8 sps:$4 sm:$0xff]  }
 0x929   : > { %9714 = vmatpush1.bf16.msra.mxu0 %v11988_v48  ;;  %v12036_v48 = vld [vmem:[%s16629_s7 + $0x6a0] ss:$8 sps:$4 sm:$0xff]  }
 0x92a   : > { %9715 = vmatprep.subr.bf16.mxu0 %v11993_v27  ;;  %v12041_v27 = vld [vmem:[%s16629_s7 + $0x6b4] ss:$8 sps:$4 sm:$0xff]  }
 0x92d   : > { %9716 = vmatpush1.bf16.msra.mxu0 %v11991_v7  ;;  %v12039_v7 = vld [vmem:[%s16629_s7 + $0x6b0] ss:$8 sps:$4 sm:$0xff]  }
 0x92e   : > { %9717 = vmatprep.subr.bf16.mxu0 %v11996_v13  ;;  %v12044_v13 = vld [vmem:[%s16629_s7 + $0x6c4] ss:$8 sps:$4 sm:$0xff]  }
 0x931   : > { %9718 = vmatpush1.bf16.msra.mxu0 %v11994_v9  ;;  %v12042_v9 = vld [vmem:[%s16629_s7 + $0x6c0] ss:$8 sps:$4 sm:$0xff]  }
 0x932   : > { %9719 = vmatprep.subr.bf16.mxu0 %v11999_v23  ;;  %v12047_v23 = vld [vmem:[%s16629_s7 + $0x6d4] ss:$8 sps:$4 sm:$0xff]  }
 0x935   : > { %9720 = vmatpush1.bf16.msra.mxu0 %v11997_v61  ;;  %v12045_v61 = vld [vmem:[%s16629_s7 + $0x6d0] ss:$8 sps:$4 sm:$0xff]  }
 0x936   : > { %9721 = vmatprep.subr.bf16.mxu0 %v12002_v8  ;;  %v12050_v8 = vld [vmem:[%s16629_s7 + $0x6e4] ss:$8 sps:$4 sm:$0xff]  }
 0x939   : > { %9722 = vmatpush1.bf16.msra.mxu0 %v12000_v60  ;;  %v12048_v60 = vld [vmem:[%s16629_s7 + $0x6e0] ss:$8 sps:$4 sm:$0xff]  }
 0x93a   : > { %9723 = vmatprep.subr.bf16.mxu0 %v12005_v49  ;;  %v12053_v49 = vld [vmem:[%s16629_s7 + $0x6f4] ss:$8 sps:$4 sm:$0xff]  }
 0x93d   : > { %9724 = vmatpush1.bf16.msra.mxu0 %v12003_v43  ;;  %v12051_v43 = vld [vmem:[%s16629_s7 + $0x6f0] ss:$8 sps:$4 sm:$0xff]  }
 0x93e   : > { %9734 = vmatprep.subr.bf16.mxu0 %v12008_v63  ;;  %v12056_v63 = vld [vmem:[%s16629_s7 + $0x704] ss:$8 sps:$4 sm:$0xff]  }
 0x940   : > { %9726 = vmatmul.mubr.bf16.vlgmr.msra.gmra.mrb[116].mxu0 %v7934_v53  ;;  %v7936_v53 = vpack.c.bf16 %v7902_v57, %v7902_v57 }
 0x941   : > { %9735 = vmatpush1.bf16.msra.mxu0 %v12006_v59  ;;  %9766 = vmatprep.mubr.bf16.mxu0 %v7937_v18  ;;  %v12054_v59 = vld [vmem:[%s16629_s7 + $0x700] ss:$8 sps:$4 sm:$0xff]   ;;  %v7939_v18 = vpack.c.bf16 %v7923_v30, %v7923_v30 }
 0x942   : > { %9736 = vmatprep.subr.bf16.mxu0 %v12011_v1  ;;  %v12059_v1 = vld [vmem:[%s16629_s7 + $0x714] ss:$8 sps:$4 sm:$0xff]  }
 0x945   : > { %9737 = vmatpush1.bf16.msra.mxu0 %v12009_v26  ;;  %v12065_v26 = vld [vmem:[%s16629_s7 + $0x734] ss:$8 sps:$4 sm:$0xff]  }
 0x946   : > { %9738 = vmatprep.subr.bf16.mxu0 %v12014_v39  ;;  %v12063_v39 = vld [vmem:[%s16629_s7 + $0x730] ss:$8 sps:$4 sm:$0xff]  }
 0x949   : > { %9739 = vmatpush1.bf16.msra.mxu0 %v12012_v12  ;;  %v12071_v12 = vld [vmem:[%s16629_s7 + $0x754] ss:$8 sps:$4 sm:$0xff]  }
 0x94a   : > { %9740 = vmatprep.subr.bf16.mxu0 %v12017_v14  ;;  %v12069_v14 = vld [vmem:[%s16629_s7 + $0x750] ss:$8 sps:$4 sm:$0xff]  }
 0x94d   : > { %9741 = vmatpush1.bf16.msra.mxu0 %v12015_v42  ;;  %v12077_v42 = vld [vmem:[%s16629_s7 + $0x774] ss:$8 sps:$4 sm:$0xff]  }
 0x94e   : > { %9742 = vmatprep.subr.bf16.mxu0 %v12020_v17  ;;  %v12075_v17 = vld [vmem:[%s16629_s7 + $0x770] ss:$8 sps:$4 sm:$0xff]  }
 0x951   : > { %9743 = vmatpush1.bf16.msra.mxu0 %v12018_v16  ;;  %v12083_v16 = vld [vmem:[%s16629_s7 + $0x794] ss:$8 sps:$4 sm:$0xff]  }
 0x952   : > { %9744 = vmatprep.subr.bf16.mxu0 %v12023_v33  ;;  %v12081_v33 = vld [vmem:[%s16629_s7 + $0x790] ss:$8 sps:$4 sm:$0xff]  }
 0x955   : > { %9745 = vmatpush1.bf16.msra.mxu0 %v12021_v2  ;;  %v12089_v2 = vld [vmem:[%s16629_s7 + $0x7b4] ss:$8 sps:$4 sm:$0xff]  }
 0x956   : > { %9746 = vmatprep.subr.bf16.mxu0 %v12026_v38  ;;  %v12087_v38 = vld [vmem:[%s16629_s7 + $0x7b0] ss:$8 sps:$4 sm:$0xff]  }
 0x959   : > { %9747 = vmatpush1.bf16.msra.mxu0 %v12024_v44  ;;  %v12095_v44 = vld [vmem:[%s16629_s7 + $0x7d4] ss:$8 sps:$4 sm:$0xff]  }
 0x95a   : > { %9748 = vmatprep.subr.bf16.mxu0 %v12029_v6  ;;  %v12093_v6 = vld [vmem:[%s16629_s7 + $0x7d0] ss:$8 sps:$4 sm:$0xff]  }
 0x95d   : > { %9749 = vmatpush1.bf16.msra.mxu0 %v12027_v15  ;;  %v7914_v15 = vld [vmem:[#allocation8 + $0x4b] sm:$0x1] }
 0x95e   : > { %9750 = vmatprep.subr.bf16.mxu0 %v12032_v40  ;;  %v12096_v40 = vld [vmem:[%s16629_s7 + $0x7e0] ss:$8 sps:$4 sm:$0xff]  }
 0x961   : > { %9751 = vmatpush1.bf16.msra.mxu0 %v12030_v62  ;;  %v7911_v62 = vld [vmem:[#allocation8 + $0x41] sm:$0x1] }
 0x962   : > { %9752 = vmatprep.subr.bf16.mxu0 %v12035_v55  ;;  %v12101_v55 = vld [vmem:[%s16629_s7 + $0x7f4] ss:$8 sps:$4 sm:$0xff]  }
 0x965   : > { %9753 = vmatpush1.bf16.msra.mxu0 %v12033_v50  ;;  %v7915_v50 = vmax.f32 %v7913_v34, %v7914_v15 }
 0x966   : > { %9754 = vmatprep.subr.bf16.mxu0 %v12038_v51  ;;  %v7912_v51 = vmax.f32 %v7910_v35, %v7911_v62 }
 0x969   : > { %9755 = vmatpush1.bf16.msra.mxu0 %v12036_v48  ;;  %v12099_v48 = vld [vmem:[%s16629_s7 + $0x7f0] ss:$8 sps:$4 sm:$0xff]  }
 0x96a   : > { %9756 = vmatprep.subr.bf16.mxu0 %v12041_v27  ;;  %v7916_v27 = vmax.f32 %v7912_v51, %v7915_v50 }
 0x96d   : > { %9757 = vmatpush1.bf16.msra.mxu0 %v12039_v7  ;;  %v7938_v7 = vpack.c.bf16 %v7916_v27, %v7916_v27 }
 0x96e   : > { %9758 = vmatprep.subr.bf16.mxu0 %v12044_v13  ;;  %v9478_v13 = vlaneseq }
 0x971   : > { %9759 = vmatpush1.bf16.msra.mxu0 %v12042_v9  ;;  %v9479_v9 = vshrl.u32 %v9478_v13, 7 }
 0x972   : > { %9760 = vmatprep.subr.bf16.mxu0 %v12047_v23 }
 0x973   : > { %v9480_v23 = vsub.s32 0, %v9479_v9 }
 0x975   : > { %9761 = vmatpush1.bf16.msra.mxu0 %v12045_v61  ;;  %v8196_v61 = vld [vmem:[%s16630_s8] sm:$0x3] }
 0x976   : > { %9762 = vmatprep.subr.bf16.mxu0 %v12050_v8  ;;  %v9484_v8 = vsub.s32 1, %v9479_v9  ;;  %v9481_v52 = vrot.slane %v8196_v61, %v9480_v23 }
 0x978   : > { %v9485_v21 = vrot.slane %v8196_v61, %v9484_v8 }
 0x979   : > { %9763 = vmatpush1.bf16.msra.mxu0 %v12048_v60 }
 0x97a   : > { %9764 = vmatprep.subr.bf16.mxu0 %v12053_v49 }
 0x97d   : > { %9765 = vmatpush1.bf16.msra.mxu0 %v12051_v43  ;;  %v9852_v43 = vld [vmem:[%s16632_s10] sm:$0x1] }
 0x97e   : > { %9775 = vmatprep.subr.bf16.mxu0 %v12056_v63 }
 0x980   : > { %9767 = vmatmul.mubr.bf16.vlgmr.msra.gmra.mrb[116].mxu0 %v7936_v53 }
 0x981   : > { %9776 = vmatpush1.bf16.msra.mxu0 %v12054_v59  ;;  %9807 = vmatprep.mubr.bf16.mxu0 %v7939_v18 }
 0x982   : > { %9777 = vmatprep.subr.bf16.mxu0 %v12059_v1 }
 0x985   : > { %9778 = vmatpush1.bf16.msra.mxu0 %v12057_v29 }
 0x986   : > { %9779 = vmatprep.subr.bf16.mxu0 %v12062_v45 }
 0x989   : > { %9780 = vmatpush1.bf16.msra.mxu0 %v12060_v24 }
 0x98a   : > { %9781 = vmatprep.subr.bf16.mxu0 %v12065_v26 }
 0x98d   : > { %9782 = vmatpush1.bf16.msra.mxu0 %v12063_v39 }
 0x98e   : > { %9783 = vmatprep.subr.bf16.mxu0 %v12068_v56 }
 0x991   : > { %9784 = vmatpush1.bf16.msra.mxu0 %v12066_v31 }
 0x992   : > { %9785 = vmatprep.subr.bf16.mxu0 %v12071_v12 }
 0x995   : > { %9786 = vmatpush1.bf16.msra.mxu0 %v12069_v14 }
 0x996   : > { %9787 = vmatprep.subr.bf16.mxu0 %v12074_v28 }
 0x999   : > { %9788 = vmatpush1.bf16.msra.mxu0 %v12072_v3 }
 0x99a   : > { %9789 = vmatprep.subr.bf16.mxu0 %v12077_v42 }
 0x99d   : > { %9790 = vmatpush1.bf16.msra.mxu0 %v12075_v17 }
 0x99e   : > { %9791 = vmatprep.subr.bf16.mxu0 %v12080_v20 }
 0x9a1   : > { %9792 = vmatpush1.bf16.msra.mxu0 %v12078_v10 }
 0x9a2   : > { %9793 = vmatprep.subr.bf16.mxu0 %v12083_v16 }
 0x9a5   : > { %9794 = vmatpush1.bf16.msra.mxu0 %v12081_v33 }
 0x9a6   : > { %9795 = vmatprep.subr.bf16.mxu0 %v12086_v22 }
 0x9a9   : > { %9796 = vmatpush1.bf16.msra.mxu0 %v12084_v47 }
 0x9aa   : > { %9797 = vmatprep.subr.bf16.mxu0 %v12089_v2 }
 0x9ad   : > { %9798 = vmatpush1.bf16.msra.mxu0 %v12087_v38 }
 0x9ae   : > { %9799 = vmatprep.subr.bf16.mxu0 %v12092_v54 }
 0x9b1   : > { %9800 = vmatpush1.bf16.msra.mxu0 %v12090_v46 }
 0x9b2   : > { %9801 = vmatprep.subr.bf16.mxu0 %v12095_v44 }
 0x9b5   : > { %9802 = vmatpush1.bf16.msra.mxu0 %v12093_v6 }
 0x9b6   : > { %9803 = vmatprep.subr.bf16.mxu0 %v12098_v32 }
 0x9b9   : > { %9804 = vmatpush1.bf16.msra.mxu0 %v12096_v40 }
 0x9ba   : > { %9805 = vmatprep.subr.bf16.mxu0 %v12101_v55 }
 0x9bd   : > { %9806 = vmatpush1.bf16.msra.mxu0 %v12099_v48 }
 0x9c0   : > { %9808 = vmatmul.mubr.bf16.vlgmr.msra.gmra.mrb[116].mxu0 %v7938_v7 }
 0xa93   : > { %v9809_v0 = vpop.f32.mrb[116].mxu0 }
 0xa94   : > { %v11207_v37 = vadd.f32 %v9809_v0, %v9481_v52  ;;  %v9811_v60 = vpop.f32.mrb[117].mxu0 }
 0xa95   : > { %v11208_v41 = vadd.f32 %v9811_v60, %v9485_v21  ;;  %v9813_v25 = vpop.f32.mrb[118].mxu0 }
 0xa96   : > { %v9816_v49 = vmax.f32 %v11207_v37, 0.0  ;;  %v9814_v11 = vpop.f32.mrb[119].mxu0 }
 0xa97   : > { %v9817_v5 = vmax.f32 %v11208_v41, 0.0 }
 0xa98   : > { %v9818_v58 = vpack.c.bf16 %v9816_v49, %v9816_v49 }
 0xa99   : > { %v9819_v4 = vpack.c.bf16 %v9817_v5, %v9817_v5 }
 0xa9b   : > { %9981 = vmatprep.mubr.bf16.mxu1 %v9819_v4 }
 0xa9c   : > { %9982 = vmatmul.mubr.bf16.vlgmr.msra.gmra.mrb[192].mxu1 %v9818_v58 }
 0xb6f   : > { %v10929_v19 = vpop.f32.mrb[192].mxu1 }
 0xb70   : > { %v10930_v36 = vpop.f32.mrb[193].mxu1 }
 0xb71   : > { %v10931_v57 = vadd.f32 %v10930_v36, %v10929_v19  ;;  %v10932_v63 = vpop.f32.mrb[194].mxu1 }
 0xb72   : > { %v10933_v30 = vpop.f32.mrb[195].mxu1 }
 0xb73   : > { %v9984_v59 = vadd.f32 %v10931_v57, %v9852_v43 }
 0xb75   : > { %9989 = vst [vmem:[%s379_s30] sm:$0x1] %v9984_v59 }
 0xb76   : > { %12149 = shalt.err (!%p12146_p3)
}
 0xb77   : > { %s12150_s14 = scalar_lea.hbm %s16580_s13, 16  ;;  %s12154_s22 = scalar_lea.hbm %s16633_s11, 32 }
 0xb78   : > { %p12151_p4 = scmp.ne.s32.totalorder %s16580_s13, %s12150_s14  ;;  %p12155_p9 = scmp.lt.u32.totalorder %s16580_s13, %s16633_s11 }
 0xb79   : > { %p12156_p10 = scmp.lt.u32.totalorder %s12154_s22, %s12150_s14  ;;  %p12158_p12 = scmp.lt.u32.totalorder %s12150_s14, %s16580_s13 }
 0xb7a   : > { %p12152_p7 = pnand %p12151_p4, %p12305_p5 }
 0xb7b   : > { %p12157_p11 = por %p12156_p10, %p12155_p9 }
 0xb7c   : > { %p12153_p8 = pneg %p12152_p7 }
 0xb7d   : > { %p12159_p13 = por %p12158_p12, %p12157_p11 }
 0xb7f   : > { %p12160_p0 = pnand %p12159_p13, %p12153_p8 }
 0xb81   : > { %12163 = shalt.err (!%p12160_p0)
}
 0xb82   : > { %11397 = dma.vmem_to_hbm [thread:$0]  (%p12305_p5), %s16582_s29, 16, %s16580_s13, %s9991_s12  }
 0xb83 PF: > { %p11403_p1 = scmp.ge.s32.totalorder %s12198_s20, 2  ;;  %s10015_s0 = sand.u32 1, %s12186_s17  }
 0xb84   : > { %s10016_s25 = scalar_lea.sflag [#allocation10], %s10015_s0 }
 0xb85   : > { %p11400_p2 = pnand %p11403_p1, %p12309_p6 }
 0xb87   : > { %12181 = dma.done.wait (!%p11400_p2), %s10016_s25, 16  }
 0xb88   : > { %12183 = vsyncadd (!%p11400_p2), %s10016_s25, 4294967280  ;;  %p21_p3 = scmp.ge.s32.totalorder %s12292_s23, 4   ;;  %s16881_s17 = smov %s12190_s18 }
 0xb89   : > { %s16882_s18 = smov %s12194_s19  ;;  %s16883_s19 = smov %s12303_s26 }
 0xb8a   : > { %s16884_s20 = smov %s12292_s23  ;;  %23 = sbr.rel (!%p21_p3) target bundleno = 5 (0x5), region = 130 }
 0xb91   :  { %10020 = vsyncpa [#allocation10], 1 }
 0xb92   :  { %10022 = vsyncpa [#allocation10 + $0x1], 1 }

</bundles_post_ra>
